<compile_context>
chip_gen: v7x
topology: tpu7x:2x2x1
jax: 0.10.0
libtpu: 0.0.40
codegen_flags: <defaults>
</compile_context>

<pallas_src>
import numpy as np
import jax
import jax.numpy as jnp
from jax.experimental import pallas as pl

BN_EPS = 1e-5


# ----------------------------------------------------------------------------
# Fused Pallas kernel: whole autoencoder forward, VMEM resident.
# Activations are kept as Python lists of per-image-row values of shape
# (N, W*C) with column layout (w-major, channel-minor).
# ----------------------------------------------------------------------------
def _fused_autoencoder_kernel(
        x_ref,
        c1_t, c1_b,
        c2_t, c2_b, c2_g, c2_be,
        c3_t, c3_b,
        l1_w, l1_b,
        l2_w, l2_b,
        d1_w, d1_b,
        d2_w, d2_b,
        u1_t, u1_b, u1_g, u1_be,
        u2_t, u2_b, u2_g, u2_be,
        u3_t, u3_b,
        g_7x16, gt_7x16, g_14x8, gt_14x8,
        out_ref):
    f32 = jnp.float32
    n = x_ref.shape[1]

    def mm(a, b):
        return jnp.dot(a, b, preferred_element_type=f32)

    def conv_rows(rows, h_in, t_ref, b_ref, stride, pad, kh, h_out):
        """Strided conv over the row (H) dim; W taps/stride/pad/channels are
        already folded into the per-ki row matrices in t_ref."""
        taps = [t_ref[k] for k in range(kh)]
        bias = b_ref[...]
        out = []
        for oh in range(h_out):
            acc = None
            for ki in range(kh):
                h = oh * stride - pad + ki
                if 0 <= h < h_in:
                    term = mm(rows[h], taps[ki])
                    acc = term if acc is None else acc + term
            out.append(acc + bias)
        return out

    def deconv_rows(rows, h_in, t_ref, b_ref, stride, pad, kh, h_out):
        """Transposed conv over the row dim (sub-pixel form: no zero dilation)."""
        taps = [t_ref[k] for k in range(kh)]
        bias = b_ref[...]
        out = []
        for oh in range(h_out):
            acc = None
            for ih in range(h_in):
                ki = oh + pad - ih * stride
                if 0 <= ki < kh:
                    term = mm(rows[ih], taps[ki])
                    acc = term if acc is None else acc + term
            out.append(acc + bias)
        return out

    def relu_rows(rows):
        return [jnp.maximum(r, 0.0) for r in rows]

    def bn_relu_rows(rows, gamma_ref, beta_ref, g_ref, gt_ref, count):
        # Train-mode BatchNorm with batch statistics; single-pass biased variance.
        s1 = rows[0]
        s2 = rows[0] * rows[0]
        for r in rows[1:]:
            s1 = s1 + r
            s2 = s2 + r * r
        s1 = jnp.sum(s1, axis=0, keepdims=True)            # (1, OW*C)
        s2 = jnp.sum(s2, axis=0, keepdims=True)
        inv_n = 1.0 / float(count)
        mean_c = mm(s1, g_ref[...]) * inv_n                # (1, C)
        ex2_c = mm(s2, g_ref[...]) * inv_n
        var_c = jnp.maximum(ex2_c - mean_c * mean_c, 0.0)
        scale_c = gamma_ref[...] * jax.lax.rsqrt(var_c + BN_EPS)
        shift_c = beta_ref[...] - mean_c * scale_c
        scale_r = mm(scale_c, gt_ref[...])                 # (1, OW*C)
        shift_r = mm(shift_c, gt_ref[...])
        return [jnp.maximum(r * scale_r + shift_r, 0.0) for r in rows]

    # ------------------------------ encoder CNN ------------------------------
    x = [x_ref[h] for h in range(28)]                                # 28 x (N, 28)
    x = relu_rows(conv_rows(x, 28, c1_t, c1_b, 2, 1, 3, 14))         # 14 x (N, 112)
    x = conv_rows(x, 14, c2_t, c2_b, 2, 1, 3, 7)                     # 7 x (N, 112)
    x = bn_relu_rows(x, c2_g, c2_be, g_7x16, gt_7x16, n * 7 * 7)
    x = relu_rows(conv_rows(x, 7, c3_t, c3_b, 2, 0, 3, 3))           # 3 x (N, 96)

    # ------------------------- encoder / decoder MLP -------------------------
    # Flatten in PyTorch (C,H,W) order is folded into the l1 weight layout.
    h1 = mm(x[0], l1_w[0]) + mm(x[1], l1_w[1]) + mm(x[2], l1_w[2]) + l1_b[...]
    h1 = jnp.maximum(h1, 0.0)                                        # (N, 128)
    code = mm(h1, l2_w[...]) + l2_b[...]                             # (N, code_dim)
    h2 = jnp.maximum(mm(code, d1_w[...]) + d1_b[...], 0.0)           # (N, 128)
    # d_l2 + ReLU, produced directly as the 3 unflattened rows (w-major, c-minor)
    y = [jnp.maximum(mm(h2, d2_w[h]) + d2_b[h], 0.0) for h in range(3)]  # 3 x (N, 96)

    # ------------------------------ decoder CNN ------------------------------
    y = deconv_rows(y, 3, u1_t, u1_b, 2, 0, 3, 7)                    # 7 x (N, 112)
    y = bn_relu_rows(y, u1_g, u1_be, g_7x16, gt_7x16, n * 7 * 7)
    y = deconv_rows(y, 7, u2_t, u2_b, 2, 1, 3, 14)                   # 14 x (N, 112)
    y = bn_relu_rows(y, u2_g, u2_be, g_14x8, gt_14x8, n * 14 * 14)
    y = deconv_rows(y, 14, u3_t, u3_b, 2, 1, 3, 28)                  # 28 x (N, 28)

    for oh in range(28):
        out_ref[oh] = 1.0 / (1.0 + jnp.exp(-y[oh]))                  # sigmoid


# ----------------------------------------------------------------------------
# One-time weight preparation (outside the hot path): fold width taps / stride /
# padding / channel mixing of each (transposed) conv into per-ki row matrices,
# and fold the PyTorch flatten/unflatten permutations into the linear weights.
# ----------------------------------------------------------------------------
def _conv_row_mats(w_oihw, stride, pad, w_in):
    """T[ki][(iw,ci),(ow,co)] = W[co,ci,ki,kj] with iw = ow*stride - pad + kj."""
    cout, cin, kh, kw = w_oihw.shape
    w_out = (w_in + 2 * pad - kw) // stride + 1
    sel = np.zeros((kw, w_in, w_out), np.float32)
    for ow in range(w_out):
        for kj in range(kw):
            iw = ow * stride - pad + kj
            if 0 <= iw < w_in:
                sel[kj, iw, ow] = 1.0
    t = jnp.einsum("kio,cdnk->nidoc", sel, w_oihw.astype(jnp.float32))
    return t.reshape(kh, w_in * cin, w_out * cout)


def _deconv_row_mats(w_iohw, stride, pad, w_in, w_out):
    """U[ki][(iw,ci),(ow,co)] = W[ci,co,ki,kj] with ow = iw*stride - pad + kj."""
    cin, cout, kh, kw = w_iohw.shape
    sel = np.zeros((kw, w_in, w_out), np.float32)
    for iw in range(w_in):
        for kj in range(kw):
            ow = iw * stride - pad + kj
            if 0 <= ow < w_out:
                sel[kj, iw, ow] = 1.0
    t = jnp.einsum("kio,dcnk->nidoc", sel, w_iohw.astype(jnp.float32))
    return t.reshape(kh, w_in * cin, w_out * cout)


def prepare_kernel_params(p):
    f32 = jnp.float32

    def tile_bias(b, reps):
        return jnp.tile(b.astype(f32), reps).reshape(1, -1)

    # (transposed) conv row matrices
    c1_t = _conv_row_mats(p["e_c1_w"], 2, 1, 28)          # (3, 28, 112)
    c2_t = _conv_row_mats(p["e_c2_w"], 2, 1, 14)          # (3, 112, 112)
    c3_t = _conv_row_mats(p["e_c3_w"], 2, 0, 7)           # (3, 112, 96)
    u1_t = _deconv_row_mats(p["d_t1_w"], 2, 0, 3, 7)      # (3, 96, 112)
    u2_t = _deconv_row_mats(p["d_t2_w"], 2, 1, 7, 14)     # (3, 112, 112)
    u3_t = _deconv_row_mats(p["d_t3_w"], 2, 1, 14, 28)    # (3, 112, 28)

    # encoder fc1: fold flatten order (c*9 + h*3 + w) -> per-h blocks (w*32 + c)
    l1_w = jnp.reshape(
        jnp.transpose(jnp.reshape(p["e_l1_w"].astype(f32), (32, 3, 3, 128)),
                      (1, 2, 0, 3)),
        (3, 96, 128))
    # decoder fc2: fold unflatten order; output per-h blocks (w*32 + c)
    d2_w = jnp.transpose(
        jnp.reshape(
            jnp.transpose(jnp.reshape(p["d_l2_w"].astype(f32), (128, 32, 3, 3)),
                          (2, 3, 1, 0)),
            (3, 96, 128)),
        (0, 2, 1))                                        # (3, 128, 96)
    d2_b = jnp.reshape(
        jnp.transpose(jnp.reshape(p["d_l2_b"].astype(f32), (32, 3, 3)), (1, 2, 0)),
        (3, 1, 96))

    # constant matrices for in-kernel per-channel BN reduce / broadcast
    g_7x16 = jnp.asarray(np.tile(np.eye(16, dtype=np.float32), (7, 1)))   # (112,16)
    g_14x8 = jnp.asarray(np.tile(np.eye(8, dtype=np.float32), (14, 1)))   # (112, 8)

    return (
        c1_t, tile_bias(p["e_c1_b"], 14),
        c2_t, tile_bias(p["e_c2_b"], 7),
        p["e_bn2_g"].reshape(1, 16).astype(f32), p["e_bn2_b"].reshape(1, 16).astype(f32),
        c3_t, tile_bias(p["e_c3_b"], 3),
        l1_w, p["e_l1_b"].reshape(1, 128).astype(f32),
        p["e_l2_w"].astype(f32), p["e_l2_b"].reshape(1, -1).astype(f32),
        p["d_l1_w"].astype(f32), p["d_l1_b"].reshape(1, 128).astype(f32),
        d2_w, d2_b,
        u1_t, tile_bias(p["d_t1_b"], 7),
        p["d_bn1_g"].reshape(1, 16).astype(f32), p["d_bn1_b"].reshape(1, 16).astype(f32),
        u2_t, tile_bias(p["d_t2_b"], 14),
        p["d_bn2_g"].reshape(1, 8).astype(f32), p["d_bn2_b"].reshape(1, 8).astype(f32),
        u3_t, tile_bias(p["d_t3_b"], 28),
        g_7x16, jnp.transpose(g_7x16), g_14x8, jnp.transpose(g_14x8),
    )


# ----------------------------------------------------------------------------
# Forward: one fused pallas_call (plus two trivial NCHW<->row-layout transposes).
# ----------------------------------------------------------------------------
@jax.jit
def autoencoder_forward(kparams, x_nchw):
    n = x_nchw.shape[0]
    # (N,1,28,28) -> (H=28, N, W=28): row h readable as a (N, W*Cin) tile in-kernel
    x_rows = jnp.transpose(x_nchw[:, 0, :, :], (1, 0, 2)).astype(jnp.float32)
    out_rows = pl.pallas_call(
        _fused_autoencoder_kernel,
        out_shape=jax.ShapeDtypeStruct((28, n, 28), jnp.float32),
    )(x_rows, *kparams)
    return jnp.transpose(out_rows, (1, 0, 2))[:, None, :, :]          # -> NCHW


# ----------------------------------------------------------------------------
# Parameter init (deterministic, PyTorch-like uniform(-1/sqrt(fan_in), ...))
# ----------------------------------------------------------------------------
def _uinit(key, shape, fan_in):
    bound = 1.0 / np.sqrt(fan_in)
    return jax.random.uniform(key, shape, jnp.float32, -bound, bound)


def init_params(key, encoder_dim):
    ks = jax.random.split(key, 20)
    p = {}
    # ---- Encoder ----
    p["e_c1_w"] = _uinit(ks[0], (8, 1, 3, 3), 1 * 9);    p["e_c1_b"] = _uinit(ks[1], (8,), 1 * 9)
    p["e_c2_w"] = _uinit(ks[2], (16, 8, 3, 3), 8 * 9);   p["e_c2_b"] = _uinit(ks[3], (16,), 8 * 9)
    p["e_bn2_g"] = jnp.ones((16,), jnp.float32);         p["e_bn2_b"] = jnp.zeros((16,), jnp.float32)
    p["e_c3_w"] = _uinit(ks[4], (32, 16, 3, 3), 16 * 9); p["e_c3_b"] = _uinit(ks[5], (32,), 16 * 9)
    p["e_l1_w"] = _uinit(ks[6], (288, 128), 288);        p["e_l1_b"] = _uinit(ks[7], (128,), 288)
    p["e_l2_w"] = _uinit(ks[8], (128, encoder_dim), 128); p["e_l2_b"] = _uinit(ks[9], (encoder_dim,), 128)
    # ---- Decoder ----
    p["d_l1_w"] = _uinit(ks[10], (encoder_dim, 128), encoder_dim); p["d_l1_b"] = _uinit(ks[11], (128,), encoder_dim)
    p["d_l2_w"] = _uinit(ks[12], (128, 288), 128);       p["d_l2_b"] = _uinit(ks[13], (288,), 128)
    p["d_t1_w"] = _uinit(ks[14], (32, 16, 3, 3), 16 * 9); p["d_t1_b"] = _uinit(ks[15], (16,), 16 * 9)
    p["d_bn1_g"] = jnp.ones((16,), jnp.float32);         p["d_bn1_b"] = jnp.zeros((16,), jnp.float32)
    p["d_t2_w"] = _uinit(ks[16], (16, 8, 3, 3), 8 * 9);  p["d_t2_b"] = _uinit(ks[17], (8,), 8 * 9)
    p["d_bn2_g"] = jnp.ones((8,), jnp.float32);          p["d_bn2_b"] = jnp.zeros((8,), jnp.float32)
    p["d_t3_w"] = _uinit(ks[18], (8, 1, 3, 3), 1 * 9);   p["d_t3_b"] = _uinit(ks[19], (1,), 1 * 9)
    return p


if __name__ == "__main__":
    ENCODER_DIM = 8
    BATCH = 2
    key = jax.random.PRNGKey(0)
    k_par, k_in = jax.random.split(key)
    params = init_params(k_par, ENCODER_DIM)
    kparams = prepare_kernel_params(params)          # one-time weight re-layout
    x = jax.random.uniform(k_in, (BATCH, 1, 28, 28), jnp.float32)     # NCHW input

    out = autoencoder_forward(kparams, x)
    out = jax.block_until_ready(out)

    assert out.shape == (BATCH, 1, 28, 28), out.shape
    assert out.dtype == jnp.float32
    assert bool(jnp.all(jnp.isfinite(out)))
    assert bool(jnp.all((out >= 0.0) & (out <= 1.0)))                 # sigmoid output
    print("KERNEL_OK")
</pallas_src>

<mosaic_0001>
module attributes {stable_mosaic.version = 11 : i64} {
  func.func @_fused_autoencoder_kernel(%arg0: memref<28x2x28xf32, #tpu.memory_space<vmem>>, %arg1: memref<3x28x112xf32, #tpu.memory_space<vmem>>, %arg2: memref<1x112xf32, #tpu.memory_space<vmem>>, %arg3: memref<3x112x112xf32, #tpu.memory_space<vmem>>, %arg4: memref<1x112xf32, #tpu.memory_space<vmem>>, %arg5: memref<1x16xf32, #tpu.memory_space<vmem>>, %arg6: memref<1x16xf32, #tpu.memory_space<vmem>>, %arg7: memref<3x112x96xf32, #tpu.memory_space<vmem>>, %arg8: memref<1x96xf32, #tpu.memory_space<vmem>>, %arg9: memref<3x96x128xf32, #tpu.memory_space<vmem>>, %arg10: memref<1x128xf32, #tpu.memory_space<vmem>>, %arg11: memref<128x8xf32, #tpu.memory_space<vmem>>, %arg12: memref<1x8xf32, #tpu.memory_space<vmem>>, %arg13: memref<8x128xf32, #tpu.memory_space<vmem>>, %arg14: memref<1x128xf32, #tpu.memory_space<vmem>>, %arg15: memref<3x128x96xf32, #tpu.memory_space<vmem>>, %arg16: memref<3x1x96xf32, #tpu.memory_space<vmem>>, %arg17: memref<3x96x112xf32, #tpu.memory_space<vmem>>, %arg18: memref<1x112xf32, #tpu.memory_space<vmem>>, %arg19: memref<1x16xf32, #tpu.memory_space<vmem>>, %arg20: memref<1x16xf32, #tpu.memory_space<vmem>>, %arg21: memref<3x112x112xf32, #tpu.memory_space<vmem>>, %arg22: memref<1x112xf32, #tpu.memory_space<vmem>>, %arg23: memref<1x8xf32, #tpu.memory_space<vmem>>, %arg24: memref<1x8xf32, #tpu.memory_space<vmem>>, %arg25: memref<3x112x28xf32, #tpu.memory_space<vmem>>, %arg26: memref<1x28xf32, #tpu.memory_space<vmem>>, %arg27: memref<112x16xf32, #tpu.memory_space<vmem>>, %arg28: memref<16x112xf32, #tpu.memory_space<vmem>>, %arg29: memref<112x8xf32, #tpu.memory_space<vmem>>, %arg30: memref<8x112xf32, #tpu.memory_space<vmem>>, %arg31: memref<28x2x28xf32, #tpu.memory_space<vmem>>) attributes {dimension_semantics = [], scalar_prefetch = 0 : i64, scratch_operands = 0 : i64, tpu.core_type = #tpu.core_type<tc>} {
    %c0 = arith.constant 0 : index
    %c0_0 = arith.constant 0 : index
    %c0_1 = arith.constant 0 : index
    %0 = vector.load %arg0[%c0, %c0_0, %c0_1] : memref<28x2x28xf32, #tpu.memory_space<vmem>>, vector<1x2x28xf32>
    %1 = vector.shape_cast %0 : vector<1x2x28xf32> to vector<2x28xf32>
    %c1 = arith.constant 1 : index
    %c0_2 = arith.constant 0 : index
    %c0_3 = arith.constant 0 : index
    %2 = vector.load %arg0[%c1, %c0_2, %c0_3] : memref<28x2x28xf32, #tpu.memory_space<vmem>>, vector<1x2x28xf32>
    %3 = vector.shape_cast %2 : vector<1x2x28xf32> to vector<2x28xf32>
    %c2 = arith.constant 2 : index
    %c0_4 = arith.constant 0 : index
    %c0_5 = arith.constant 0 : index
    %4 = vector.load %arg0[%c2, %c0_4, %c0_5] : memref<28x2x28xf32, #tpu.memory_space<vmem>>, vector<1x2x28xf32>
    %5 = vector.shape_cast %4 : vector<1x2x28xf32> to vector<2x28xf32>
    %c3 = arith.constant 3 : index
    %c0_6 = arith.constant 0 : index
    %c0_7 = arith.constant 0 : index
    %6 = vector.load %arg0[%c3, %c0_6, %c0_7] : memref<28x2x28xf32, #tpu.memory_space<vmem>>, vector<1x2x28xf32>
    %7 = vector.shape_cast %6 : vector<1x2x28xf32> to vector<2x28xf32>
    %c4 = arith.constant 4 : index
    %c0_8 = arith.constant 0 : index
    %c0_9 = arith.constant 0 : index
    %8 = vector.load %arg0[%c4, %c0_8, %c0_9] : memref<28x2x28xf32, #tpu.memory_space<vmem>>, vector<1x2x28xf32>
    %9 = vector.shape_cast %8 : vector<1x2x28xf32> to vector<2x28xf32>
    %c5 = arith.constant 5 : index
    %c0_10 = arith.constant 0 : index
    %c0_11 = arith.constant 0 : index
    %10 = vector.load %arg0[%c5, %c0_10, %c0_11] : memref<28x2x28xf32, #tpu.memory_space<vmem>>, vector<1x2x28xf32>
    %11 = vector.shape_cast %10 : vector<1x2x28xf32> to vector<2x28xf32>
    %c6 = arith.constant 6 : index
    %c0_12 = arith.constant 0 : index
    %c0_13 = arith.constant 0 : index
    %12 = vector.load %arg0[%c6, %c0_12, %c0_13] : memref<28x2x28xf32, #tpu.memory_space<vmem>>, vector<1x2x28xf32>
    %13 = vector.shape_cast %12 : vector<1x2x28xf32> to vector<2x28xf32>
    %c7 = arith.constant 7 : index
    %c0_14 = arith.constant 0 : index
    %c0_15 = arith.constant 0 : index
    %14 = vector.load %arg0[%c7, %c0_14, %c0_15] : memref<28x2x28xf32, #tpu.memory_space<vmem>>, vector<1x2x28xf32>
    %15 = vector.shape_cast %14 : vector<1x2x28xf32> to vector<2x28xf32>
    %c8 = arith.constant 8 : index
    %c0_16 = arith.constant 0 : index
    %c0_17 = arith.constant 0 : index
    %16 = vector.load %arg0[%c8, %c0_16, %c0_17] : memref<28x2x28xf32, #tpu.memory_space<vmem>>, vector<1x2x28xf32>
    %17 = vector.shape_cast %16 : vector<1x2x28xf32> to vector<2x28xf32>
    %c9 = arith.constant 9 : index
    %c0_18 = arith.constant 0 : index
    %c0_19 = arith.constant 0 : index
    %18 = vector.load %arg0[%c9, %c0_18, %c0_19] : memref<28x2x28xf32, #tpu.memory_space<vmem>>, vector<1x2x28xf32>
    %19 = vector.shape_cast %18 : vector<1x2x28xf32> to vector<2x28xf32>
    %c10 = arith.constant 10 : index
    %c0_20 = arith.constant 0 : index
    %c0_21 = arith.constant 0 : index
    %20 = vector.load %arg0[%c10, %c0_20, %c0_21] : memref<28x2x28xf32, #tpu.memory_space<vmem>>, vector<1x2x28xf32>
    %21 = vector.shape_cast %20 : vector<1x2x28xf32> to vector<2x28xf32>
    %c11 = arith.constant 11 : index
    %c0_22 = arith.constant 0 : index
    %c0_23 = arith.constant 0 : index
    %22 = vector.load %arg0[%c11, %c0_22, %c0_23] : memref<28x2x28xf32, #tpu.memory_space<vmem>>, vector<1x2x28xf32>
    %23 = vector.shape_cast %22 : vector<1x2x28xf32> to vector<2x28xf32>
    %c12 = arith.constant 12 : index
    %c0_24 = arith.constant 0 : index
    %c0_25 = arith.constant 0 : index
    %24 = vector.load %arg0[%c12, %c0_24, %c0_25] : memref<28x2x28xf32, #tpu.memory_space<vmem>>, vector<1x2x28xf32>
    %25 = vector.shape_cast %24 : vector<1x2x28xf32> to vector<2x28xf32>
    %c13 = arith.constant 13 : index
    %c0_26 = arith.constant 0 : index
    %c0_27 = arith.constant 0 : index
    %26 = vector.load %arg0[%c13, %c0_26, %c0_27] : memref<28x2x28xf32, #tpu.memory_space<vmem>>, vector<1x2x28xf32>
    %27 = vector.shape_cast %26 : vector<1x2x28xf32> to vector<2x28xf32>
    %c14 = arith.constant 14 : index
    %c0_28 = arith.constant 0 : index
    %c0_29 = arith.constant 0 : index
    %28 = vector.load %arg0[%c14, %c0_28, %c0_29] : memref<28x2x28xf32, #tpu.memory_space<vmem>>, vector<1x2x28xf32>
    %29 = vector.shape_cast %28 : vector<1x2x28xf32> to vector<2x28xf32>
    %c15 = arith.constant 15 : index
    %c0_30 = arith.constant 0 : index
    %c0_31 = arith.constant 0 : index
    %30 = vector.load %arg0[%c15, %c0_30, %c0_31] : memref<28x2x28xf32, #tpu.memory_space<vmem>>, vector<1x2x28xf32>
    %31 = vector.shape_cast %30 : vector<1x2x28xf32> to vector<2x28xf32>
    %c16 = arith.constant 16 : index
    %c0_32 = arith.constant 0 : index
    %c0_33 = arith.constant 0 : index
    %32 = vector.load %arg0[%c16, %c0_32, %c0_33] : memref<28x2x28xf32, #tpu.memory_space<vmem>>, vector<1x2x28xf32>
    %33 = vector.shape_cast %32 : vector<1x2x28xf32> to vector<2x28xf32>
    %c17 = arith.constant 17 : index
    %c0_34 = arith.constant 0 : index
    %c0_35 = arith.constant 0 : index
    %34 = vector.load %arg0[%c17, %c0_34, %c0_35] : memref<28x2x28xf32, #tpu.memory_space<vmem>>, vector<1x2x28xf32>
    %35 = vector.shape_cast %34 : vector<1x2x28xf32> to vector<2x28xf32>
    %c18 = arith.constant 18 : index
    %c0_36 = arith.constant 0 : index
    %c0_37 = arith.constant 0 : index
    %36 = vector.load %arg0[%c18, %c0_36, %c0_37] : memref<28x2x28xf32, #tpu.memory_space<vmem>>, vector<1x2x28xf32>
    %37 = vector.shape_cast %36 : vector<1x2x28xf32> to vector<2x28xf32>
    %c19 = arith.constant 19 : index
    %c0_38 = arith.constant 0 : index
    %c0_39 = arith.constant 0 : index
    %38 = vector.load %arg0[%c19, %c0_38, %c0_39] : memref<28x2x28xf32, #tpu.memory_space<vmem>>, vector<1x2x28xf32>
    %39 = vector.shape_cast %38 : vector<1x2x28xf32> to vector<2x28xf32>
    %c20 = arith.constant 20 : index
    %c0_40 = arith.constant 0 : index
    %c0_41 = arith.constant 0 : index
    %40 = vector.load %arg0[%c20, %c0_40, %c0_41] : memref<28x2x28xf32, #tpu.memory_space<vmem>>, vector<1x2x28xf32>
    %41 = vector.shape_cast %40 : vector<1x2x28xf32> to vector<2x28xf32>
    %c21 = arith.constant 21 : index
    %c0_42 = arith.constant 0 : index
    %c0_43 = arith.constant 0 : index
    %42 = vector.load %arg0[%c21, %c0_42, %c0_43] : memref<28x2x28xf32, #tpu.memory_space<vmem>>, vector<1x2x28xf32>
    %43 = vector.shape_cast %42 : vector<1x2x28xf32> to vector<2x28xf32>
    %c22 = arith.constant 22 : index
    %c0_44 = arith.constant 0 : index
    %c0_45 = arith.constant 0 : index
    %44 = vector.load %arg0[%c22, %c0_44, %c0_45] : memref<28x2x28xf32, #tpu.memory_space<vmem>>, vector<1x2x28xf32>
    %45 = vector.shape_cast %44 : vector<1x2x28xf32> to vector<2x28xf32>
    %c23 = arith.constant 23 : index
    %c0_46 = arith.constant 0 : index
    %c0_47 = arith.constant 0 : index
    %46 = vector.load %arg0[%c23, %c0_46, %c0_47] : memref<28x2x28xf32, #tpu.memory_space<vmem>>, vector<1x2x28xf32>
    %47 = vector.shape_cast %46 : vector<1x2x28xf32> to vector<2x28xf32>
    %c24 = arith.constant 24 : index
    %c0_48 = arith.constant 0 : index
    %c0_49 = arith.constant 0 : index
    %48 = vector.load %arg0[%c24, %c0_48, %c0_49] : memref<28x2x28xf32, #tpu.memory_space<vmem>>, vector<1x2x28xf32>
    %49 = vector.shape_cast %48 : vector<1x2x28xf32> to vector<2x28xf32>
    %c25 = arith.constant 25 : index
    %c0_50 = arith.constant 0 : index
    %c0_51 = arith.constant 0 : index
    %50 = vector.load %arg0[%c25, %c0_50, %c0_51] : memref<28x2x28xf32, #tpu.memory_space<vmem>>, vector<1x2x28xf32>
    %51 = vector.shape_cast %50 : vector<1x2x28xf32> to vector<2x28xf32>
    %c26 = arith.constant 26 : index
    %c0_52 = arith.constant 0 : index
    %c0_53 = arith.constant 0 : index
    %52 = vector.load %arg0[%c26, %c0_52, %c0_53] : memref<28x2x28xf32, #tpu.memory_space<vmem>>, vector<1x2x28xf32>
    %53 = vector.shape_cast %52 : vector<1x2x28xf32> to vector<2x28xf32>
    %c27 = arith.constant 27 : index
    %c0_54 = arith.constant 0 : index
    %c0_55 = arith.constant 0 : index
    %54 = vector.load %arg0[%c27, %c0_54, %c0_55] : memref<28x2x28xf32, #tpu.memory_space<vmem>>, vector<1x2x28xf32>
    %55 = vector.shape_cast %54 : vector<1x2x28xf32> to vector<2x28xf32>
    %c0_56 = arith.constant 0 : index
    %c0_57 = arith.constant 0 : index
    %c0_58 = arith.constant 0 : index
    %56 = vector.load %arg1[%c0_56, %c0_57, %c0_58] : memref<3x28x112xf32, #tpu.memory_space<vmem>>, vector<1x28x112xf32>
    %57 = vector.shape_cast %56 : vector<1x28x112xf32> to vector<28x112xf32>
    %c1_59 = arith.constant 1 : index
    %c0_60 = arith.constant 0 : index
    %c0_61 = arith.constant 0 : index
    %58 = vector.load %arg1[%c1_59, %c0_60, %c0_61] : memref<3x28x112xf32, #tpu.memory_space<vmem>>, vector<1x28x112xf32>
    %59 = vector.shape_cast %58 : vector<1x28x112xf32> to vector<28x112xf32>
    %c2_62 = arith.constant 2 : index
    %c0_63 = arith.constant 0 : index
    %c0_64 = arith.constant 0 : index
    %60 = vector.load %arg1[%c2_62, %c0_63, %c0_64] : memref<3x28x112xf32, #tpu.memory_space<vmem>>, vector<1x28x112xf32>
    %61 = vector.shape_cast %60 : vector<1x28x112xf32> to vector<28x112xf32>
    %c0_65 = arith.constant 0 : index
    %c0_66 = arith.constant 0 : index
    %62 = vector.load %arg2[%c0_65, %c0_66] : memref<1x112xf32, #tpu.memory_space<vmem>>, vector<1x112xf32>
    %cst = arith.constant dense<0.000000e+00> : vector<2x112xf32>
    %63 = tpu.matmul %1, %59, %cst {dimension_numbers = #tpu.dot_dimension_numbers<[1], [0], [0], [1], [0, 0, 1, 1], [], []>} : vector<2x28xf32>, vector<28x112xf32>, vector<2x112xf32> -> vector<2x112xf32>
    %cst_67 = arith.constant dense<0.000000e+00> : vector<2x112xf32>
    %64 = tpu.matmul %3, %61, %cst_67 {dimension_numbers = #tpu.dot_dimension_numbers<[1], [0], [0], [1], [0, 0, 1, 1], [], []>} : vector<2x28xf32>, vector<28x112xf32>, vector<2x112xf32> -> vector<2x112xf32>
    %65 = arith.addf %63, %64 : vector<2x112xf32>
    %66 = vector.broadcast %62 : vector<1x112xf32> to vector<2x112xf32>
    %67 = arith.addf %65, %66 : vector<2x112xf32>
    %cst_68 = arith.constant dense<0.000000e+00> : vector<2x112xf32>
    %68 = tpu.matmul %3, %57, %cst_68 {dimension_numbers = #tpu.dot_dimension_numbers<[1], [0], [0], [1], [0, 0, 1, 1], [], []>} : vector<2x28xf32>, vector<28x112xf32>, vector<2x112xf32> -> vector<2x112xf32>
    %cst_69 = arith.constant dense<0.000000e+00> : vector<2x112xf32>
    %69 = tpu.matmul %5, %59, %cst_69 {dimension_numbers = #tpu.dot_dimension_numbers<[1], [0], [0], [1], [0, 0, 1, 1], [], []>} : vector<2x28xf32>, vector<28x112xf32>, vector<2x112xf32> -> vector<2x112xf32>
    %70 = arith.addf %68, %69 : vector<2x112xf32>
    %cst_70 = arith.constant dense<0.000000e+00> : vector<2x112xf32>
    %71 = tpu.matmul %7, %61, %cst_70 {dimension_numbers = #tpu.dot_dimension_numbers<[1], [0], [0], [1], [0, 0, 1, 1], [], []>} : vector<2x28xf32>, vector<28x112xf32>, vector<2x112xf32> -> vector<2x112xf32>
    %72 = arith.addf %70, %71 : vector<2x112xf32>
    %73 = vector.broadcast %62 : vector<1x112xf32> to vector<2x112xf32>
    %74 = arith.addf %72, %73 : vector<2x112xf32>
    %cst_71 = arith.constant dense<0.000000e+00> : vector<2x112xf32>
    %75 = tpu.matmul %7, %57, %cst_71 {dimension_numbers = #tpu.dot_dimension_numbers<[1], [0], [0], [1], [0, 0, 1, 1], [], []>} : vector<2x28xf32>, vector<28x112xf32>, vector<2x112xf32> -> vector<2x112xf32>
    %cst_72 = arith.constant dense<0.000000e+00> : vector<2x112xf32>
    %76 = tpu.matmul %9, %59, %cst_72 {dimension_numbers = #tpu.dot_dimension_numbers<[1], [0], [0], [1], [0, 0, 1, 1], [], []>} : vector<2x28xf32>, vector<28x112xf32>, vector<2x112xf32> -> vector<2x112xf32>
    %77 = arith.addf %75, %76 : vector<2x112xf32>
    %cst_73 = arith.constant dense<0.000000e+00> : vector<2x112xf32>
    %78 = tpu.matmul %11, %61, %cst_73 {dimension_numbers = #tpu.dot_dimension_numbers<[1], [0], [0], [1], [0, 0, 1, 1], [], []>} : vector<2x28xf32>, vector<28x112xf32>, vector<2x112xf32> -> vector<2x112xf32>
    %79 = arith.addf %77, %78 : vector<2x112xf32>
    %80 = vector.broadcast %62 : vector<1x112xf32> to vector<2x112xf32>
    %81 = arith.addf %79, %80 : vector<2x112xf32>
    %cst_74 = arith.constant dense<0.000000e+00> : vector<2x112xf32>
    %82 = tpu.matmul %11, %57, %cst_74 {dimension_numbers = #tpu.dot_dimension_numbers<[1], [0], [0], [1], [0, 0, 1, 1], [], []>} : vector<2x28xf32>, vector<28x112xf32>, vector<2x112xf32> -> vector<2x112xf32>
    %cst_75 = arith.constant dense<0.000000e+00> : vector<2x112xf32>
    %83 = tpu.matmul %13, %59, %cst_75 {dimension_numbers = #tpu.dot_dimension_numbers<[1], [0], [0], [1], [0, 0, 1, 1], [], []>} : vector<2x28xf32>, vector<28x112xf32>, vector<2x112xf32> -> vector<2x112xf32>
    %84 = arith.addf %82, %83 : vector<2x112xf32>
    %cst_76 = arith.constant dense<0.000000e+00> : vector<2x112xf32>
    %85 = tpu.matmul %15, %61, %cst_76 {dimension_numbers = #tpu.dot_dimension_numbers<[1], [0], [0], [1], [0, 0, 1, 1], [], []>} : vector<2x28xf32>, vector<28x112xf32>, vector<2x112xf32> -> vector<2x112xf32>
    %86 = arith.addf %84, %85 : vector<2x112xf32>
    %87 = vector.broadcast %62 : vector<1x112xf32> to vector<2x112xf32>
    %88 = arith.addf %86, %87 : vector<2x112xf32>
    %cst_77 = arith.constant dense<0.000000e+00> : vector<2x112xf32>
    %89 = tpu.matmul %15, %57, %cst_77 {dimension_numbers = #tpu.dot_dimension_numbers<[1], [0], [0], [1], [0, 0, 1, 1], [], []>} : vector<2x28xf32>, vector<28x112xf32>, vector<2x112xf32> -> vector<2x112xf32>
    %cst_78 = arith.constant dense<0.000000e+00> : vector<2x112xf32>
    %90 = tpu.matmul %17, %59, %cst_78 {dimension_numbers = #tpu.dot_dimension_numbers<[1], [0], [0], [1], [0, 0, 1, 1], [], []>} : vector<2x28xf32>, vector<28x112xf32>, vector<2x112xf32> -> vector<2x112xf32>
    %91 = arith.addf %89, %90 : vector<2x112xf32>
    %cst_79 = arith.constant dense<0.000000e+00> : vector<2x112xf32>
    %92 = tpu.matmul %19, %61, %cst_79 {dimension_numbers = #tpu.dot_dimension_numbers<[1], [0], [0], [1], [0, 0, 1, 1], [], []>} : vector<2x28xf32>, vector<28x112xf32>, vector<2x112xf32> -> vector<2x112xf32>
    %93 = arith.addf %91, %92 : vector<2x112xf32>
    %94 = vector.broadcast %62 : vector<1x112xf32> to vector<2x112xf32>
    %95 = arith.addf %93, %94 : vector<2x112xf32>
    %cst_80 = arith.constant dense<0.000000e+00> : vector<2x112xf32>
    %96 = tpu.matmul %19, %57, %cst_80 {dimension_numbers = #tpu.dot_dimension_numbers<[1], [0], [0], [1], [0, 0, 1, 1], [], []>} : vector<2x28xf32>, vector<28x112xf32>, vector<2x112xf32> -> vector<2x112xf32>
    %cst_81 = arith.constant dense<0.000000e+00> : vector<2x112xf32>
    %97 = tpu.matmul %21, %59, %cst_81 {dimension_numbers = #tpu.dot_dimension_numbers<[1], [0], [0], [1], [0, 0, 1, 1], [], []>} : vector<2x28xf32>, vector<28x112xf32>, vector<2x112xf32> -> vector<2x112xf32>
    %98 = arith.addf %96, %97 : vector<2x112xf32>
    %cst_82 = arith.constant dense<0.000000e+00> : vector<2x112xf32>
    %99 = tpu.matmul %23, %61, %cst_82 {dimension_numbers = #tpu.dot_dimension_numbers<[1], [0], [0], [1], [0, 0, 1, 1], [], []>} : vector<2x28xf32>, vector<28x112xf32>, vector<2x112xf32> -> vector<2x112xf32>
    %100 = arith.addf %98, %99 : vector<2x112xf32>
    %101 = vector.broadcast %62 : vector<1x112xf32> to vector<2x112xf32>
    %102 = arith.addf %100, %101 : vector<2x112xf32>
    %cst_83 = arith.constant dense<0.000000e+00> : vector<2x112xf32>
    %103 = tpu.matmul %23, %57, %cst_83 {dimension_numbers = #tpu.dot_dimension_numbers<[1], [0], [0], [1], [0, 0, 1, 1], [], []>} : vector<2x28xf32>, vector<28x112xf32>, vector<2x112xf32> -> vector<2x112xf32>
    %cst_84 = arith.constant dense<0.000000e+00> : vector<2x112xf32>
    %104 = tpu.matmul %25, %59, %cst_84 {dimension_numbers = #tpu.dot_dimension_numbers<[1], [0], [0], [1], [0, 0, 1, 1], [], []>} : vector<2x28xf32>, vector<28x112xf32>, vector<2x112xf32> -> vector<2x112xf32>
    %105 = arith.addf %103, %104 : vector<2x112xf32>
    %cst_85 = arith.constant dense<0.000000e+00> : vector<2x112xf32>
    %106 = tpu.matmul %27, %61, %cst_85 {dimension_numbers = #tpu.dot_dimension_numbers<[1], [0], [0], [1], [0, 0, 1, 1], [], []>} : vector<2x28xf32>, vector<28x112xf32>, vector<2x112xf32> -> vector<2x112xf32>
    %107 = arith.addf %105, %106 : vector<2x112xf32>
    %108 = vector.broadcast %62 : vector<1x112xf32> to vector<2x112xf32>
    %109 = arith.addf %107, %108 : vector<2x112xf32>
    %cst_86 = arith.constant dense<0.000000e+00> : vector<2x112xf32>
    %110 = tpu.matmul %27, %57, %cst_86 {dimension_numbers = #tpu.dot_dimension_numbers<[1], [0], [0], [1], [0, 0, 1, 1], [], []>} : vector<2x28xf32>, vector<28x112xf32>, vector<2x112xf32> -> vector<2x112xf32>
    %cst_87 = arith.constant dense<0.000000e+00> : vector<2x112xf32>
    %111 = tpu.matmul %29, %59, %cst_87 {dimension_numbers = #tpu.dot_dimension_numbers<[1], [0], [0], [1], [0, 0, 1, 1], [], []>} : vector<2x28xf32>, vector<28x112xf32>, vector<2x112xf32> -> vector<2x112xf32>
    %112 = arith.addf %110, %111 : vector<2x112xf32>
    %cst_88 = arith.constant dense<0.000000e+00> : vector<2x112xf32>
    %113 = tpu.matmul %31, %61, %cst_88 {dimension_numbers = #tpu.dot_dimension_numbers<[1], [0], [0], [1], [0, 0, 1, 1], [], []>} : vector<2x28xf32>, vector<28x112xf32>, vector<2x112xf32> -> vector<2x112xf32>
    %114 = arith.addf %112, %113 : vector<2x112xf32>
    %115 = vector.broadcast %62 : vector<1x112xf32> to vector<2x112xf32>
    %116 = arith.addf %114, %115 : vector<2x112xf32>
    %cst_89 = arith.constant dense<0.000000e+00> : vector<2x112xf32>
    %117 = tpu.matmul %31, %57, %cst_89 {dimension_numbers = #tpu.dot_dimension_numbers<[1], [0], [0], [1], [0, 0, 1, 1], [], []>} : vector<2x28xf32>, vector<28x112xf32>, vector<2x112xf32> -> vector<2x112xf32>
    %cst_90 = arith.constant dense<0.000000e+00> : vector<2x112xf32>
    %118 = tpu.matmul %33, %59, %cst_90 {dimension_numbers = #tpu.dot_dimension_numbers<[1], [0], [0], [1], [0, 0, 1, 1], [], []>} : vector<2x28xf32>, vector<28x112xf32>, vector<2x112xf32> -> vector<2x112xf32>
    %119 = arith.addf %117, %118 : vector<2x112xf32>
    %cst_91 = arith.constant dense<0.000000e+00> : vector<2x112xf32>
    %120 = tpu.matmul %35, %61, %cst_91 {dimension_numbers = #tpu.dot_dimension_numbers<[1], [0], [0], [1], [0, 0, 1, 1], [], []>} : vector<2x28xf32>, vector<28x112xf32>, vector<2x112xf32> -> vector<2x112xf32>
    %121 = arith.addf %119, %120 : vector<2x112xf32>
    %122 = vector.broadcast %62 : vector<1x112xf32> to vector<2x112xf32>
    %123 = arith.addf %121, %122 : vector<2x112xf32>
    %cst_92 = arith.constant dense<0.000000e+00> : vector<2x112xf32>
    %124 = tpu.matmul %35, %57, %cst_92 {dimension_numbers = #tpu.dot_dimension_numbers<[1], [0], [0], [1], [0, 0, 1, 1], [], []>} : vector<2x28xf32>, vector<28x112xf32>, vector<2x112xf32> -> vector<2x112xf32>
    %cst_93 = arith.constant dense<0.000000e+00> : vector<2x112xf32>
    %125 = tpu.matmul %37, %59, %cst_93 {dimension_numbers = #tpu.dot_dimension_numbers<[1], [0], [0], [1], [0, 0, 1, 1], [], []>} : vector<2x28xf32>, vector<28x112xf32>, vector<2x112xf32> -> vector<2x112xf32>
    %126 = arith.addf %124, %125 : vector<2x112xf32>
    %cst_94 = arith.constant dense<0.000000e+00> : vector<2x112xf32>
    %127 = tpu.matmul %39, %61, %cst_94 {dimension_numbers = #tpu.dot_dimension_numbers<[1], [0], [0], [1], [0, 0, 1, 1], [], []>} : vector<2x28xf32>, vector<28x112xf32>, vector<2x112xf32> -> vector<2x112xf32>
    %128 = arith.addf %126, %127 : vector<2x112xf32>
    %129 = vector.broadcast %62 : vector<1x112xf32> to vector<2x112xf32>
    %130 = arith.addf %128, %129 : vector<2x112xf32>
    %cst_95 = arith.constant dense<0.000000e+00> : vector<2x112xf32>
    %131 = tpu.matmul %39, %57, %cst_95 {dimension_numbers = #tpu.dot_dimension_numbers<[1], [0], [0], [1], [0, 0, 1, 1], [], []>} : vector<2x28xf32>, vector<28x112xf32>, vector<2x112xf32> -> vector<2x112xf32>
    %cst_96 = arith.constant dense<0.000000e+00> : vector<2x112xf32>
    %132 = tpu.matmul %41, %59, %cst_96 {dimension_numbers = #tpu.dot_dimension_numbers<[1], [0], [0], [1], [0, 0, 1, 1], [], []>} : vector<2x28xf32>, vector<28x112xf32>, vector<2x112xf32> -> vector<2x112xf32>
    %133 = arith.addf %131, %132 : vector<2x112xf32>
    %cst_97 = arith.constant dense<0.000000e+00> : vector<2x112xf32>
    %134 = tpu.matmul %43, %61, %cst_97 {dimension_numbers = #tpu.dot_dimension_numbers<[1], [0], [0], [1], [0, 0, 1, 1], [], []>} : vector<2x28xf32>, vector<28x112xf32>, vector<2x112xf32> -> vector<2x112xf32>
    %135 = arith.addf %133, %134 : vector<2x112xf32>
    %136 = vector.broadcast %62 : vector<1x112xf32> to vector<2x112xf32>
    %137 = arith.addf %135, %136 : vector<2x112xf32>
    %cst_98 = arith.constant dense<0.000000e+00> : vector<2x112xf32>
    %138 = tpu.matmul %43, %57, %cst_98 {dimension_numbers = #tpu.dot_dimension_numbers<[1], [0], [0], [1], [0, 0, 1, 1], [], []>} : vector<2x28xf32>, vector<28x112xf32>, vector<2x112xf32> -> vector<2x112xf32>
    %cst_99 = arith.constant dense<0.000000e+00> : vector<2x112xf32>
    %139 = tpu.matmul %45, %59, %cst_99 {dimension_numbers = #tpu.dot_dimension_numbers<[1], [0], [0], [1], [0, 0, 1, 1], [], []>} : vector<2x28xf32>, vector<28x112xf32>, vector<2x112xf32> -> vector<2x112xf32>
    %140 = arith.addf %138, %139 : vector<2x112xf32>
    %cst_100 = arith.constant dense<0.000000e+00> : vector<2x112xf32>
    %141 = tpu.matmul %47, %61, %cst_100 {dimension_numbers = #tpu.dot_dimension_numbers<[1], [0], [0], [1], [0, 0, 1, 1], [], []>} : vector<2x28xf32>, vector<28x112xf32>, vector<2x112xf32> -> vector<2x112xf32>
    %142 = arith.addf %140, %141 : vector<2x112xf32>
    %143 = vector.broadcast %62 : vector<1x112xf32> to vector<2x112xf32>
    %144 = arith.addf %142, %143 : vector<2x112xf32>
    %cst_101 = arith.constant dense<0.000000e+00> : vector<2x112xf32>
    %145 = tpu.matmul %47, %57, %cst_101 {dimension_numbers = #tpu.dot_dimension_numbers<[1], [0], [0], [1], [0, 0, 1, 1], [], []>} : vector<2x28xf32>, vector<28x112xf32>, vector<2x112xf32> -> vector<2x112xf32>
    %cst_102 = arith.constant dense<0.000000e+00> : vector<2x112xf32>
    %146 = tpu.matmul %49, %59, %cst_102 {dimension_numbers = #tpu.dot_dimension_numbers<[1], [0], [0], [1], [0, 0, 1, 1], [], []>} : vector<2x28xf32>, vector<28x112xf32>, vector<2x112xf32> -> vector<2x112xf32>
    %147 = arith.addf %145, %146 : vector<2x112xf32>
    %cst_103 = arith.constant dense<0.000000e+00> : vector<2x112xf32>
    %148 = tpu.matmul %51, %61, %cst_103 {dimension_numbers = #tpu.dot_dimension_numbers<[1], [0], [0], [1], [0, 0, 1, 1], [], []>} : vector<2x28xf32>, vector<28x112xf32>, vector<2x112xf32> -> vector<2x112xf32>
    %149 = arith.addf %147, %148 : vector<2x112xf32>
    %150 = vector.broadcast %62 : vector<1x112xf32> to vector<2x112xf32>
    %151 = arith.addf %149, %150 : vector<2x112xf32>
    %cst_104 = arith.constant dense<0.000000e+00> : vector<2x112xf32>
    %152 = tpu.matmul %51, %57, %cst_104 {dimension_numbers = #tpu.dot_dimension_numbers<[1], [0], [0], [1], [0, 0, 1, 1], [], []>} : vector<2x28xf32>, vector<28x112xf32>, vector<2x112xf32> -> vector<2x112xf32>
    %cst_105 = arith.constant dense<0.000000e+00> : vector<2x112xf32>
    %153 = tpu.matmul %53, %59, %cst_105 {dimension_numbers = #tpu.dot_dimension_numbers<[1], [0], [0], [1], [0, 0, 1, 1], [], []>} : vector<2x28xf32>, vector<28x112xf32>, vector<2x112xf32> -> vector<2x112xf32>
    %154 = arith.addf %152, %153 : vector<2x112xf32>
    %cst_106 = arith.constant dense<0.000000e+00> : vector<2x112xf32>
    %155 = tpu.matmul %55, %61, %cst_106 {dimension_numbers = #tpu.dot_dimension_numbers<[1], [0], [0], [1], [0, 0, 1, 1], [], []>} : vector<2x28xf32>, vector<28x112xf32>, vector<2x112xf32> -> vector<2x112xf32>
    %156 = arith.addf %154, %155 : vector<2x112xf32>
    %157 = vector.broadcast %62 : vector<1x112xf32> to vector<2x112xf32>
    %158 = arith.addf %156, %157 : vector<2x112xf32>
    %cst_107 = arith.constant 0.000000e+00 : f32
    %159 = vector.broadcast %cst_107 : f32 to vector<2x112xf32>
    %160 = arith.maximumf %67, %159 : vector<2x112xf32>
    %cst_108 = arith.constant 0.000000e+00 : f32
    %161 = vector.broadcast %cst_108 : f32 to vector<2x112xf32>
    %162 = arith.maximumf %74, %161 : vector<2x112xf32>
    %cst_109 = arith.constant 0.000000e+00 : f32
    %163 = vector.broadcast %cst_109 : f32 to vector<2x112xf32>
    %164 = arith.maximumf %81, %163 : vector<2x112xf32>
    %cst_110 = arith.constant 0.000000e+00 : f32
    %165 = vector.broadcast %cst_110 : f32 to vector<2x112xf32>
    %166 = arith.maximumf %88, %165 : vector<2x112xf32>
    %cst_111 = arith.constant 0.000000e+00 : f32
    %167 = vector.broadcast %cst_111 : f32 to vector<2x112xf32>
    %168 = arith.maximumf %95, %167 : vector<2x112xf32>
    %cst_112 = arith.constant 0.000000e+00 : f32
    %169 = vector.broadcast %cst_112 : f32 to vector<2x112xf32>
    %170 = arith.maximumf %102, %169 : vector<2x112xf32>
    %cst_113 = arith.constant 0.000000e+00 : f32
    %171 = vector.broadcast %cst_113 : f32 to vector<2x112xf32>
    %172 = arith.maximumf %109, %171 : vector<2x112xf32>
    %cst_114 = arith.constant 0.000000e+00 : f32
    %173 = vector.broadcast %cst_114 : f32 to vector<2x112xf32>
    %174 = arith.maximumf %116, %173 : vector<2x112xf32>
    %cst_115 = arith.constant 0.000000e+00 : f32
    %175 = vector.broadcast %cst_115 : f32 to vector<2x112xf32>
    %176 = arith.maximumf %123, %175 : vector<2x112xf32>
    %cst_116 = arith.constant 0.000000e+00 : f32
    %177 = vector.broadcast %cst_116 : f32 to vector<2x112xf32>
    %178 = arith.maximumf %130, %177 : vector<2x112xf32>
    %cst_117 = arith.constant 0.000000e+00 : f32
    %179 = vector.broadcast %cst_117 : f32 to vector<2x112xf32>
    %180 = arith.maximumf %137, %179 : vector<2x112xf32>
    %cst_118 = arith.constant 0.000000e+00 : f32
    %181 = vector.broadcast %cst_118 : f32 to vector<2x112xf32>
    %182 = arith.maximumf %144, %181 : vector<2x112xf32>
    %cst_119 = arith.constant 0.000000e+00 : f32
    %183 = vector.broadcast %cst_119 : f32 to vector<2x112xf32>
    %184 = arith.maximumf %151, %183 : vector<2x112xf32>
    %cst_120 = arith.constant 0.000000e+00 : f32
    %185 = vector.broadcast %cst_120 : f32 to vector<2x112xf32>
    %186 = arith.maximumf %158, %185 : vector<2x112xf32>
    %c0_121 = arith.constant 0 : index
    %c0_122 = arith.constant 0 : index
    %c0_123 = arith.constant 0 : index
    %187 = vector.load %arg3[%c0_121, %c0_122, %c0_123] : memref<3x112x112xf32, #tpu.memory_space<vmem>>, vector<1x112x112xf32>
    %188 = vector.shape_cast %187 : vector<1x112x112xf32> to vector<112x112xf32>
    %c1_124 = arith.constant 1 : index
    %c0_125 = arith.constant 0 : index
    %c0_126 = arith.constant 0 : index
    %189 = vector.load %arg3[%c1_124, %c0_125, %c0_126] : memref<3x112x112xf32, #tpu.memory_space<vmem>>, vector<1x112x112xf32>
    %190 = vector.shape_cast %189 : vector<1x112x112xf32> to vector<112x112xf32>
    %c2_127 = arith.constant 2 : index
    %c0_128 = arith.constant 0 : index
    %c0_129 = arith.constant 0 : index
    %191 = vector.load %arg3[%c2_127, %c0_128, %c0_129] : memref<3x112x112xf32, #tpu.memory_space<vmem>>, vector<1x112x112xf32>
    %192 = vector.shape_cast %191 : vector<1x112x112xf32> to vector<112x112xf32>
    %c0_130 = arith.constant 0 : index
    %c0_131 = arith.constant 0 : index
    %193 = vector.load %arg4[%c0_130, %c0_131] : memref<1x112xf32, #tpu.memory_space<vmem>>, vector<1x112xf32>
    %cst_132 = arith.constant dense<0.000000e+00> : vector<2x112xf32>
    %194 = tpu.matmul %160, %190, %cst_132 {dimension_numbers = #tpu.dot_dimension_numbers<[1], [0], [0], [1], [0, 0, 1, 1], [], []>} : vector<2x112xf32>, vector<112x112xf32>, vector<2x112xf32> -> vector<2x112xf32>
    %cst_133 = arith.constant dense<0.000000e+00> : vector<2x112xf32>
    %195 = tpu.matmul %162, %192, %cst_133 {dimension_numbers = #tpu.dot_dimension_numbers<[1], [0], [0], [1], [0, 0, 1, 1], [], []>} : vector<2x112xf32>, vector<112x112xf32>, vector<2x112xf32> -> vector<2x112xf32>
    %196 = arith.addf %194, %195 : vector<2x112xf32>
    %197 = vector.broadcast %193 : vector<1x112xf32> to vector<2x112xf32>
    %198 = arith.addf %196, %197 : vector<2x112xf32>
    %cst_134 = arith.constant dense<0.000000e+00> : vector<2x112xf32>
    %199 = tpu.matmul %162, %188, %cst_134 {dimension_numbers = #tpu.dot_dimension_numbers<[1], [0], [0], [1], [0, 0, 1, 1], [], []>} : vector<2x112xf32>, vector<112x112xf32>, vector<2x112xf32> -> vector<2x112xf32>
    %cst_135 = arith.constant dense<0.000000e+00> : vector<2x112xf32>
    %200 = tpu.matmul %164, %190, %cst_135 {dimension_numbers = #tpu.dot_dimension_numbers<[1], [0], [0], [1], [0, 0, 1, 1], [], []>} : vector<2x112xf32>, vector<112x112xf32>, vector<2x112xf32> -> vector<2x112xf32>
    %201 = arith.addf %199, %200 : vector<2x112xf32>
    %cst_136 = arith.constant dense<0.000000e+00> : vector<2x112xf32>
    %202 = tpu.matmul %166, %192, %cst_136 {dimension_numbers = #tpu.dot_dimension_numbers<[1], [0], [0], [1], [0, 0, 1, 1], [], []>} : vector<2x112xf32>, vector<112x112xf32>, vector<2x112xf32> -> vector<2x112xf32>
    %203 = arith.addf %201, %202 : vector<2x112xf32>
    %204 = vector.broadcast %193 : vector<1x112xf32> to vector<2x112xf32>
    %205 = arith.addf %203, %204 : vector<2x112xf32>
    %cst_137 = arith.constant dense<0.000000e+00> : vector<2x112xf32>
    %206 = tpu.matmul %166, %188, %cst_137 {dimension_numbers = #tpu.dot_dimension_numbers<[1], [0], [0], [1], [0, 0, 1, 1], [], []>} : vector<2x112xf32>, vector<112x112xf32>, vector<2x112xf32> -> vector<2x112xf32>
    %cst_138 = arith.constant dense<0.000000e+00> : vector<2x112xf32>
    %207 = tpu.matmul %168, %190, %cst_138 {dimension_numbers = #tpu.dot_dimension_numbers<[1], [0], [0], [1], [0, 0, 1, 1], [], []>} : vector<2x112xf32>, vector<112x112xf32>, vector<2x112xf32> -> vector<2x112xf32>
    %208 = arith.addf %206, %207 : vector<2x112xf32>
    %cst_139 = arith.constant dense<0.000000e+00> : vector<2x112xf32>
    %209 = tpu.matmul %170, %192, %cst_139 {dimension_numbers = #tpu.dot_dimension_numbers<[1], [0], [0], [1], [0, 0, 1, 1], [], []>} : vector<2x112xf32>, vector<112x112xf32>, vector<2x112xf32> -> vector<2x112xf32>
    %210 = arith.addf %208, %209 : vector<2x112xf32>
    %211 = vector.broadcast %193 : vector<1x112xf32> to vector<2x112xf32>
    %212 = arith.addf %210, %211 : vector<2x112xf32>
    %cst_140 = arith.constant dense<0.000000e+00> : vector<2x112xf32>
    %213 = tpu.matmul %170, %188, %cst_140 {dimension_numbers = #tpu.dot_dimension_numbers<[1], [0], [0], [1], [0, 0, 1, 1], [], []>} : vector<2x112xf32>, vector<112x112xf32>, vector<2x112xf32> -> vector<2x112xf32>
    %cst_141 = arith.constant dense<0.000000e+00> : vector<2x112xf32>
    %214 = tpu.matmul %172, %190, %cst_141 {dimension_numbers = #tpu.dot_dimension_numbers<[1], [0], [0], [1], [0, 0, 1, 1], [], []>} : vector<2x112xf32>, vector<112x112xf32>, vector<2x112xf32> -> vector<2x112xf32>
    %215 = arith.addf %213, %214 : vector<2x112xf32>
    %cst_142 = arith.constant dense<0.000000e+00> : vector<2x112xf32>
    %216 = tpu.matmul %174, %192, %cst_142 {dimension_numbers = #tpu.dot_dimension_numbers<[1], [0], [0], [1], [0, 0, 1, 1], [], []>} : vector<2x112xf32>, vector<112x112xf32>, vector<2x112xf32> -> vector<2x112xf32>
    %217 = arith.addf %215, %216 : vector<2x112xf32>
    %218 = vector.broadcast %193 : vector<1x112xf32> to vector<2x112xf32>
    %219 = arith.addf %217, %218 : vector<2x112xf32>
    %cst_143 = arith.constant dense<0.000000e+00> : vector<2x112xf32>
    %220 = tpu.matmul %174, %188, %cst_143 {dimension_numbers = #tpu.dot_dimension_numbers<[1], [0], [0], [1], [0, 0, 1, 1], [], []>} : vector<2x112xf32>, vector<112x112xf32>, vector<2x112xf32> -> vector<2x112xf32>
    %cst_144 = arith.constant dense<0.000000e+00> : vector<2x112xf32>
    %221 = tpu.matmul %176, %190, %cst_144 {dimension_numbers = #tpu.dot_dimension_numbers<[1], [0], [0], [1], [0, 0, 1, 1], [], []>} : vector<2x112xf32>, vector<112x112xf32>, vector<2x112xf32> -> vector<2x112xf32>
    %222 = arith.addf %220, %221 : vector<2x112xf32>
    %cst_145 = arith.constant dense<0.000000e+00> : vector<2x112xf32>
    %223 = tpu.matmul %178, %192, %cst_145 {dimension_numbers = #tpu.dot_dimension_numbers<[1], [0], [0], [1], [0, 0, 1, 1], [], []>} : vector<2x112xf32>, vector<112x112xf32>, vector<2x112xf32> -> vector<2x112xf32>
    %224 = arith.addf %222, %223 : vector<2x112xf32>
    %225 = vector.broadcast %193 : vector<1x112xf32> to vector<2x112xf32>
    %226 = arith.addf %224, %225 : vector<2x112xf32>
    %cst_146 = arith.constant dense<0.000000e+00> : vector<2x112xf32>
    %227 = tpu.matmul %178, %188, %cst_146 {dimension_numbers = #tpu.dot_dimension_numbers<[1], [0], [0], [1], [0, 0, 1, 1], [], []>} : vector<2x112xf32>, vector<112x112xf32>, vector<2x112xf32> -> vector<2x112xf32>
    %cst_147 = arith.constant dense<0.000000e+00> : vector<2x112xf32>
    %228 = tpu.matmul %180, %190, %cst_147 {dimension_numbers = #tpu.dot_dimension_numbers<[1], [0], [0], [1], [0, 0, 1, 1], [], []>} : vector<2x112xf32>, vector<112x112xf32>, vector<2x112xf32> -> vector<2x112xf32>
    %229 = arith.addf %227, %228 : vector<2x112xf32>
    %cst_148 = arith.constant dense<0.000000e+00> : vector<2x112xf32>
    %230 = tpu.matmul %182, %192, %cst_148 {dimension_numbers = #tpu.dot_dimension_numbers<[1], [0], [0], [1], [0, 0, 1, 1], [], []>} : vector<2x112xf32>, vector<112x112xf32>, vector<2x112xf32> -> vector<2x112xf32>
    %231 = arith.addf %229, %230 : vector<2x112xf32>
    %232 = vector.broadcast %193 : vector<1x112xf32> to vector<2x112xf32>
    %233 = arith.addf %231, %232 : vector<2x112xf32>
    %cst_149 = arith.constant dense<0.000000e+00> : vector<2x112xf32>
    %234 = tpu.matmul %182, %188, %cst_149 {dimension_numbers = #tpu.dot_dimension_numbers<[1], [0], [0], [1], [0, 0, 1, 1], [], []>} : vector<2x112xf32>, vector<112x112xf32>, vector<2x112xf32> -> vector<2x112xf32>
    %cst_150 = arith.constant dense<0.000000e+00> : vector<2x112xf32>
    %235 = tpu.matmul %184, %190, %cst_150 {dimension_numbers = #tpu.dot_dimension_numbers<[1], [0], [0], [1], [0, 0, 1, 1], [], []>} : vector<2x112xf32>, vector<112x112xf32>, vector<2x112xf32> -> vector<2x112xf32>
    %236 = arith.addf %234, %235 : vector<2x112xf32>
    %cst_151 = arith.constant dense<0.000000e+00> : vector<2x112xf32>
    %237 = tpu.matmul %186, %192, %cst_151 {dimension_numbers = #tpu.dot_dimension_numbers<[1], [0], [0], [1], [0, 0, 1, 1], [], []>} : vector<2x112xf32>, vector<112x112xf32>, vector<2x112xf32> -> vector<2x112xf32>
    %238 = arith.addf %236, %237 : vector<2x112xf32>
    %239 = vector.broadcast %193 : vector<1x112xf32> to vector<2x112xf32>
    %240 = arith.addf %238, %239 : vector<2x112xf32>
    %241 = arith.mulf %198, %198 : vector<2x112xf32>
    %242 = arith.addf %198, %205 : vector<2x112xf32>
    %243 = arith.mulf %205, %205 : vector<2x112xf32>
    %244 = arith.addf %241, %243 : vector<2x112xf32>
    %245 = arith.addf %242, %212 : vector<2x112xf32>
    %246 = arith.mulf %212, %212 : vector<2x112xf32>
    %247 = arith.addf %244, %246 : vector<2x112xf32>
    %248 = arith.addf %245, %219 : vector<2x112xf32>
    %249 = arith.mulf %219, %219 : vector<2x112xf32>
    %250 = arith.addf %247, %249 : vector<2x112xf32>
    %251 = arith.addf %248, %226 : vector<2x112xf32>
    %252 = arith.mulf %226, %226 : vector<2x112xf32>
    %253 = arith.addf %250, %252 : vector<2x112xf32>
    %254 = arith.addf %251, %233 : vector<2x112xf32>
    %255 = arith.mulf %233, %233 : vector<2x112xf32>
    %256 = arith.addf %253, %255 : vector<2x112xf32>
    %257 = arith.addf %254, %240 : vector<2x112xf32>
    %258 = arith.mulf %240, %240 : vector<2x112xf32>
    %259 = arith.addf %256, %258 : vector<2x112xf32>
    %cst_152 = arith.constant dense<0.000000e+00> : vector<112xf32>
    %260 = vector.multi_reduction <add>, %257, %cst_152 [0] : vector<2x112xf32> to vector<112xf32>
    %261 = vector.shape_cast %260 : vector<112xf32> to vector<1x112xf32>
    %cst_153 = arith.constant dense<0.000000e+00> : vector<112xf32>
    %262 = vector.multi_reduction <add>, %259, %cst_153 [0] : vector<2x112xf32> to vector<112xf32>
    %263 = vector.shape_cast %262 : vector<112xf32> to vector<1x112xf32>
    %c0_154 = arith.constant 0 : index
    %c0_155 = arith.constant 0 : index
    %264 = vector.load %arg27[%c0_154, %c0_155] : memref<112x16xf32, #tpu.memory_space<vmem>>, vector<112x16xf32>
    %cst_156 = arith.constant dense<0.000000e+00> : vector<1x16xf32>
    %265 = tpu.matmul %261, %264, %cst_156 {dimension_numbers = #tpu.dot_dimension_numbers<[1], [0], [0], [1], [0, 0, 1, 1], [], []>} : vector<1x112xf32>, vector<112x16xf32>, vector<1x16xf32> -> vector<1x16xf32>
    %cst_157 = arith.constant 0.0102040814 : f32
    %266 = vector.broadcast %cst_157 : f32 to vector<1x16xf32>
    %267 = arith.mulf %265, %266 : vector<1x16xf32>
    %c0_158 = arith.constant 0 : index
    %c0_159 = arith.constant 0 : index
    %268 = vector.load %arg27[%c0_158, %c0_159] : memref<112x16xf32, #tpu.memory_space<vmem>>, vector<112x16xf32>
    %cst_160 = arith.constant dense<0.000000e+00> : vector<1x16xf32>
    %269 = tpu.matmul %263, %268, %cst_160 {dimension_numbers = #tpu.dot_dimension_numbers<[1], [0], [0], [1], [0, 0, 1, 1], [], []>} : vector<1x112xf32>, vector<112x16xf32>, vector<1x16xf32> -> vector<1x16xf32>
    %cst_161 = arith.constant 0.0102040814 : f32
    %270 = vector.broadcast %cst_161 : f32 to vector<1x16xf32>
    %271 = arith.mulf %269, %270 : vector<1x16xf32>
    %272 = arith.mulf %267, %267 : vector<1x16xf32>
    %273 = arith.subf %271, %272 : vector<1x16xf32>
    %cst_162 = arith.constant 0.000000e+00 : f32
    %274 = vector.broadcast %cst_162 : f32 to vector<1x16xf32>
    %275 = arith.maximumf %273, %274 : vector<1x16xf32>
    %c0_163 = arith.constant 0 : index
    %c0_164 = arith.constant 0 : index
    %276 = vector.load %arg5[%c0_163, %c0_164] : memref<1x16xf32, #tpu.memory_space<vmem>>, vector<1x16xf32>
    %cst_165 = arith.constant 9.99999974E-6 : f32
    %277 = vector.broadcast %cst_165 : f32 to vector<1x16xf32>
    %278 = arith.addf %275, %277 : vector<1x16xf32>
    %279 = math.rsqrt %278 : vector<1x16xf32>
    %280 = arith.mulf %276, %279 : vector<1x16xf32>
    %c0_166 = arith.constant 0 : index
    %c0_167 = arith.constant 0 : index
    %281 = vector.load %arg6[%c0_166, %c0_167] : memref<1x16xf32, #tpu.memory_space<vmem>>, vector<1x16xf32>
    %282 = arith.mulf %267, %280 : vector<1x16xf32>
    %283 = arith.subf %281, %282 : vector<1x16xf32>
    %c0_168 = arith.constant 0 : index
    %c0_169 = arith.constant 0 : index
    %284 = vector.load %arg28[%c0_168, %c0_169] : memref<16x112xf32, #tpu.memory_space<vmem>>, vector<16x112xf32>
    %cst_170 = arith.constant dense<0.000000e+00> : vector<1x112xf32>
    %285 = tpu.matmul %280, %284, %cst_170 {dimension_numbers = #tpu.dot_dimension_numbers<[1], [0], [0], [1], [0, 0, 1, 1], [], []>} : vector<1x16xf32>, vector<16x112xf32>, vector<1x112xf32> -> vector<1x112xf32>
    %c0_171 = arith.constant 0 : index
    %c0_172 = arith.constant 0 : index
    %286 = vector.load %arg28[%c0_171, %c0_172] : memref<16x112xf32, #tpu.memory_space<vmem>>, vector<16x112xf32>
    %cst_173 = arith.constant dense<0.000000e+00> : vector<1x112xf32>
    %287 = tpu.matmul %283, %286, %cst_173 {dimension_numbers = #tpu.dot_dimension_numbers<[1], [0], [0], [1], [0, 0, 1, 1], [], []>} : vector<1x16xf32>, vector<16x112xf32>, vector<1x112xf32> -> vector<1x112xf32>
    %288 = vector.broadcast %285 : vector<1x112xf32> to vector<2x112xf32>
    %289 = arith.mulf %198, %288 : vector<2x112xf32>
    %290 = vector.broadcast %287 : vector<1x112xf32> to vector<2x112xf32>
    %291 = arith.addf %289, %290 : vector<2x112xf32>
    %cst_174 = arith.constant 0.000000e+00 : f32
    %292 = vector.broadcast %cst_174 : f32 to vector<2x112xf32>
    %293 = arith.maximumf %291, %292 : vector<2x112xf32>
    %294 = vector.broadcast %285 : vector<1x112xf32> to vector<2x112xf32>
    %295 = arith.mulf %205, %294 : vector<2x112xf32>
    %296 = vector.broadcast %287 : vector<1x112xf32> to vector<2x112xf32>
    %297 = arith.addf %295, %296 : vector<2x112xf32>
    %cst_175 = arith.constant 0.000000e+00 : f32
    %298 = vector.broadcast %cst_175 : f32 to vector<2x112xf32>
    %299 = arith.maximumf %297, %298 : vector<2x112xf32>
    %300 = vector.broadcast %285 : vector<1x112xf32> to vector<2x112xf32>
    %301 = arith.mulf %212, %300 : vector<2x112xf32>
    %302 = vector.broadcast %287 : vector<1x112xf32> to vector<2x112xf32>
    %303 = arith.addf %301, %302 : vector<2x112xf32>
    %cst_176 = arith.constant 0.000000e+00 : f32
    %304 = vector.broadcast %cst_176 : f32 to vector<2x112xf32>
    %305 = arith.maximumf %303, %304 : vector<2x112xf32>
    %306 = vector.broadcast %285 : vector<1x112xf32> to vector<2x112xf32>
    %307 = arith.mulf %219, %306 : vector<2x112xf32>
    %308 = vector.broadcast %287 : vector<1x112xf32> to vector<2x112xf32>
    %309 = arith.addf %307, %308 : vector<2x112xf32>
    %cst_177 = arith.constant 0.000000e+00 : f32
    %310 = vector.broadcast %cst_177 : f32 to vector<2x112xf32>
    %311 = arith.maximumf %309, %310 : vector<2x112xf32>
    %312 = vector.broadcast %285 : vector<1x112xf32> to vector<2x112xf32>
    %313 = arith.mulf %226, %312 : vector<2x112xf32>
    %314 = vector.broadcast %287 : vector<1x112xf32> to vector<2x112xf32>
    %315 = arith.addf %313, %314 : vector<2x112xf32>
    %cst_178 = arith.constant 0.000000e+00 : f32
    %316 = vector.broadcast %cst_178 : f32 to vector<2x112xf32>
    %317 = arith.maximumf %315, %316 : vector<2x112xf32>
    %318 = vector.broadcast %285 : vector<1x112xf32> to vector<2x112xf32>
    %319 = arith.mulf %233, %318 : vector<2x112xf32>
    %320 = vector.broadcast %287 : vector<1x112xf32> to vector<2x112xf32>
    %321 = arith.addf %319, %320 : vector<2x112xf32>
    %cst_179 = arith.constant 0.000000e+00 : f32
    %322 = vector.broadcast %cst_179 : f32 to vector<2x112xf32>
    %323 = arith.maximumf %321, %322 : vector<2x112xf32>
    %324 = vector.broadcast %285 : vector<1x112xf32> to vector<2x112xf32>
    %325 = arith.mulf %240, %324 : vector<2x112xf32>
    %326 = vector.broadcast %287 : vector<1x112xf32> to vector<2x112xf32>
    %327 = arith.addf %325, %326 : vector<2x112xf32>
    %cst_180 = arith.constant 0.000000e+00 : f32
    %328 = vector.broadcast %cst_180 : f32 to vector<2x112xf32>
    %329 = arith.maximumf %327, %328 : vector<2x112xf32>
    %c0_181 = arith.constant 0 : index
    %c0_182 = arith.constant 0 : index
    %c0_183 = arith.constant 0 : index
    %330 = vector.load %arg7[%c0_181, %c0_182, %c0_183] : memref<3x112x96xf32, #tpu.memory_space<vmem>>, vector<1x112x96xf32>
    %331 = vector.shape_cast %330 : vector<1x112x96xf32> to vector<112x96xf32>
    %c1_184 = arith.constant 1 : index
    %c0_185 = arith.constant 0 : index
    %c0_186 = arith.constant 0 : index
    %332 = vector.load %arg7[%c1_184, %c0_185, %c0_186] : memref<3x112x96xf32, #tpu.memory_space<vmem>>, vector<1x112x96xf32>
    %333 = vector.shape_cast %332 : vector<1x112x96xf32> to vector<112x96xf32>
    %c2_187 = arith.constant 2 : index
    %c0_188 = arith.constant 0 : index
    %c0_189 = arith.constant 0 : index
    %334 = vector.load %arg7[%c2_187, %c0_188, %c0_189] : memref<3x112x96xf32, #tpu.memory_space<vmem>>, vector<1x112x96xf32>
    %335 = vector.shape_cast %334 : vector<1x112x96xf32> to vector<112x96xf32>
    %c0_190 = arith.constant 0 : index
    %c0_191 = arith.constant 0 : index
    %336 = vector.load %arg8[%c0_190, %c0_191] : memref<1x96xf32, #tpu.memory_space<vmem>>, vector<1x96xf32>
    %cst_192 = arith.constant dense<0.000000e+00> : vector<2x96xf32>
    %337 = tpu.matmul %293, %331, %cst_192 {dimension_numbers = #tpu.dot_dimension_numbers<[1], [0], [0], [1], [0, 0, 1, 1], [], []>} : vector<2x112xf32>, vector<112x96xf32>, vector<2x96xf32> -> vector<2x96xf32>
    %cst_193 = arith.constant dense<0.000000e+00> : vector<2x96xf32>
    %338 = tpu.matmul %299, %333, %cst_193 {dimension_numbers = #tpu.dot_dimension_numbers<[1], [0], [0], [1], [0, 0, 1, 1], [], []>} : vector<2x112xf32>, vector<112x96xf32>, vector<2x96xf32> -> vector<2x96xf32>
    %339 = arith.addf %337, %338 : vector<2x96xf32>
    %cst_194 = arith.constant dense<0.000000e+00> : vector<2x96xf32>
    %340 = tpu.matmul %305, %335, %cst_194 {dimension_numbers = #tpu.dot_dimension_numbers<[1], [0], [0], [1], [0, 0, 1, 1], [], []>} : vector<2x112xf32>, vector<112x96xf32>, vector<2x96xf32> -> vector<2x96xf32>
    %341 = arith.addf %339, %340 : vector<2x96xf32>
    %342 = vector.broadcast %336 : vector<1x96xf32> to vector<2x96xf32>
    %343 = arith.addf %341, %342 : vector<2x96xf32>
    %cst_195 = arith.constant dense<0.000000e+00> : vector<2x96xf32>
    %344 = tpu.matmul %305, %331, %cst_195 {dimension_numbers = #tpu.dot_dimension_numbers<[1], [0], [0], [1], [0, 0, 1, 1], [], []>} : vector<2x112xf32>, vector<112x96xf32>, vector<2x96xf32> -> vector<2x96xf32>
    %cst_196 = arith.constant dense<0.000000e+00> : vector<2x96xf32>
    %345 = tpu.matmul %311, %333, %cst_196 {dimension_numbers = #tpu.dot_dimension_numbers<[1], [0], [0], [1], [0, 0, 1, 1], [], []>} : vector<2x112xf32>, vector<112x96xf32>, vector<2x96xf32> -> vector<2x96xf32>
    %346 = arith.addf %344, %345 : vector<2x96xf32>
    %cst_197 = arith.constant dense<0.000000e+00> : vector<2x96xf32>
    %347 = tpu.matmul %317, %335, %cst_197 {dimension_numbers = #tpu.dot_dimension_numbers<[1], [0], [0], [1], [0, 0, 1, 1], [], []>} : vector<2x112xf32>, vector<112x96xf32>, vector<2x96xf32> -> vector<2x96xf32>
    %348 = arith.addf %346, %347 : vector<2x96xf32>
    %349 = vector.broadcast %336 : vector<1x96xf32> to vector<2x96xf32>
    %350 = arith.addf %348, %349 : vector<2x96xf32>
    %cst_198 = arith.constant dense<0.000000e+00> : vector<2x96xf32>
    %351 = tpu.matmul %317, %331, %cst_198 {dimension_numbers = #tpu.dot_dimension_numbers<[1], [0], [0], [1], [0, 0, 1, 1], [], []>} : vector<2x112xf32>, vector<112x96xf32>, vector<2x96xf32> -> vector<2x96xf32>
    %cst_199 = arith.constant dense<0.000000e+00> : vector<2x96xf32>
    %352 = tpu.matmul %323, %333, %cst_199 {dimension_numbers = #tpu.dot_dimension_numbers<[1], [0], [0], [1], [0, 0, 1, 1], [], []>} : vector<2x112xf32>, vector<112x96xf32>, vector<2x96xf32> -> vector<2x96xf32>
    %353 = arith.addf %351, %352 : vector<2x96xf32>
    %cst_200 = arith.constant dense<0.000000e+00> : vector<2x96xf32>
    %354 = tpu.matmul %329, %335, %cst_200 {dimension_numbers = #tpu.dot_dimension_numbers<[1], [0], [0], [1], [0, 0, 1, 1], [], []>} : vector<2x112xf32>, vector<112x96xf32>, vector<2x96xf32> -> vector<2x96xf32>
    %355 = arith.addf %353, %354 : vector<2x96xf32>
    %356 = vector.broadcast %336 : vector<1x96xf32> to vector<2x96xf32>
    %357 = arith.addf %355, %356 : vector<2x96xf32>
    %cst_201 = arith.constant 0.000000e+00 : f32
    %358 = vector.broadcast %cst_201 : f32 to vector<2x96xf32>
    %359 = arith.maximumf %343, %358 : vector<2x96xf32>
    %cst_202 = arith.constant 0.000000e+00 : f32
    %360 = vector.broadcast %cst_202 : f32 to vector<2x96xf32>
    %361 = arith.maximumf %350, %360 : vector<2x96xf32>
    %cst_203 = arith.constant 0.000000e+00 : f32
    %362 = vector.broadcast %cst_203 : f32 to vector<2x96xf32>
    %363 = arith.maximumf %357, %362 : vector<2x96xf32>
    %c0_204 = arith.constant 0 : index
    %c0_205 = arith.constant 0 : index
    %c0_206 = arith.constant 0 : index
    %364 = vector.load %arg9[%c0_204, %c0_205, %c0_206] : memref<3x96x128xf32, #tpu.memory_space<vmem>>, vector<1x96x128xf32>
    %365 = vector.shape_cast %364 : vector<1x96x128xf32> to vector<96x128xf32>
    %cst_207 = arith.constant dense<0.000000e+00> : vector<2x128xf32>
    %366 = tpu.matmul %359, %365, %cst_207 {dimension_numbers = #tpu.dot_dimension_numbers<[1], [0], [0], [1], [0, 0, 1, 1], [], []>} : vector<2x96xf32>, vector<96x128xf32>, vector<2x128xf32> -> vector<2x128xf32>
    %c1_208 = arith.constant 1 : index
    %c0_209 = arith.constant 0 : index
    %c0_210 = arith.constant 0 : index
    %367 = vector.load %arg9[%c1_208, %c0_209, %c0_210] : memref<3x96x128xf32, #tpu.memory_space<vmem>>, vector<1x96x128xf32>
    %368 = vector.shape_cast %367 : vector<1x96x128xf32> to vector<96x128xf32>
    %cst_211 = arith.constant dense<0.000000e+00> : vector<2x128xf32>
    %369 = tpu.matmul %361, %368, %cst_211 {dimension_numbers = #tpu.dot_dimension_numbers<[1], [0], [0], [1], [0, 0, 1, 1], [], []>} : vector<2x96xf32>, vector<96x128xf32>, vector<2x128xf32> -> vector<2x128xf32>
    %370 = arith.addf %366, %369 : vector<2x128xf32>
    %c2_212 = arith.constant 2 : index
    %c0_213 = arith.constant 0 : index
    %c0_214 = arith.constant 0 : index
    %371 = vector.load %arg9[%c2_212, %c0_213, %c0_214] : memref<3x96x128xf32, #tpu.memory_space<vmem>>, vector<1x96x128xf32>
    %372 = vector.shape_cast %371 : vector<1x96x128xf32> to vector<96x128xf32>
    %cst_215 = arith.constant dense<0.000000e+00> : vector<2x128xf32>
    %373 = tpu.matmul %363, %372, %cst_215 {dimension_numbers = #tpu.dot_dimension_numbers<[1], [0], [0], [1], [0, 0, 1, 1], [], []>} : vector<2x96xf32>, vector<96x128xf32>, vector<2x128xf32> -> vector<2x128xf32>
    %374 = arith.addf %370, %373 : vector<2x128xf32>
    %c0_216 = arith.constant 0 : index
    %c0_217 = arith.constant 0 : index
    %375 = vector.load %arg10[%c0_216, %c0_217] : memref<1x128xf32, #tpu.memory_space<vmem>>, vector<1x128xf32>
    %376 = vector.broadcast %375 : vector<1x128xf32> to vector<2x128xf32>
    %377 = arith.addf %374, %376 : vector<2x128xf32>
    %cst_218 = arith.constant 0.000000e+00 : f32
    %378 = vector.broadcast %cst_218 : f32 to vector<2x128xf32>
    %379 = arith.maximumf %377, %378 : vector<2x128xf32>
    %c0_219 = arith.constant 0 : index
    %c0_220 = arith.constant 0 : index
    %380 = vector.load %arg11[%c0_219, %c0_220] : memref<128x8xf32, #tpu.memory_space<vmem>>, vector<128x8xf32>
    %cst_221 = arith.constant dense<0.000000e+00> : vector<2x8xf32>
    %381 = tpu.matmul %379, %380, %cst_221 {dimension_numbers = #tpu.dot_dimension_numbers<[1], [0], [0], [1], [0, 0, 1, 1], [], []>} : vector<2x128xf32>, vector<128x8xf32>, vector<2x8xf32> -> vector<2x8xf32>
    %c0_222 = arith.constant 0 : index
    %c0_223 = arith.constant 0 : index
    %382 = vector.load %arg12[%c0_222, %c0_223] : memref<1x8xf32, #tpu.memory_space<vmem>>, vector<1x8xf32>
    %383 = vector.broadcast %382 : vector<1x8xf32> to vector<2x8xf32>
    %384 = arith.addf %381, %383 : vector<2x8xf32>
    %c0_224 = arith.constant 0 : index
    %c0_225 = arith.constant 0 : index
    %385 = vector.load %arg13[%c0_224, %c0_225] : memref<8x128xf32, #tpu.memory_space<vmem>>, vector<8x128xf32>
    %cst_226 = arith.constant dense<0.000000e+00> : vector<2x128xf32>
    %386 = tpu.matmul %384, %385, %cst_226 {dimension_numbers = #tpu.dot_dimension_numbers<[1], [0], [0], [1], [0, 0, 1, 1], [], []>} : vector<2x8xf32>, vector<8x128xf32>, vector<2x128xf32> -> vector<2x128xf32>
    %c0_227 = arith.constant 0 : index
    %c0_228 = arith.constant 0 : index
    %387 = vector.load %arg14[%c0_227, %c0_228] : memref<1x128xf32, #tpu.memory_space<vmem>>, vector<1x128xf32>
    %388 = vector.broadcast %387 : vector<1x128xf32> to vector<2x128xf32>
    %389 = arith.addf %386, %388 : vector<2x128xf32>
    %cst_229 = arith.constant 0.000000e+00 : f32
    %390 = vector.broadcast %cst_229 : f32 to vector<2x128xf32>
    %391 = arith.maximumf %389, %390 : vector<2x128xf32>
    %c0_230 = arith.constant 0 : index
    %c0_231 = arith.constant 0 : index
    %c0_232 = arith.constant 0 : index
    %392 = vector.load %arg15[%c0_230, %c0_231, %c0_232] : memref<3x128x96xf32, #tpu.memory_space<vmem>>, vector<1x128x96xf32>
    %393 = vector.shape_cast %392 : vector<1x128x96xf32> to vector<128x96xf32>
    %cst_233 = arith.constant dense<0.000000e+00> : vector<2x96xf32>
    %394 = tpu.matmul %391, %393, %cst_233 {dimension_numbers = #tpu.dot_dimension_numbers<[1], [0], [0], [1], [0, 0, 1, 1], [], []>} : vector<2x128xf32>, vector<128x96xf32>, vector<2x96xf32> -> vector<2x96xf32>
    %c0_234 = arith.constant 0 : index
    %c0_235 = arith.constant 0 : index
    %c0_236 = arith.constant 0 : index
    %395 = vector.load %arg16[%c0_234, %c0_235, %c0_236] : memref<3x1x96xf32, #tpu.memory_space<vmem>>, vector<1x1x96xf32>
    %396 = vector.shape_cast %395 : vector<1x1x96xf32> to vector<1x96xf32>
    %397 = vector.broadcast %396 : vector<1x96xf32> to vector<2x96xf32>
    %398 = arith.addf %394, %397 : vector<2x96xf32>
    %cst_237 = arith.constant 0.000000e+00 : f32
    %399 = vector.broadcast %cst_237 : f32 to vector<2x96xf32>
    %400 = arith.maximumf %398, %399 : vector<2x96xf32>
    %c1_238 = arith.constant 1 : index
    %c0_239 = arith.constant 0 : index
    %c0_240 = arith.constant 0 : index
    %401 = vector.load %arg15[%c1_238, %c0_239, %c0_240] : memref<3x128x96xf32, #tpu.memory_space<vmem>>, vector<1x128x96xf32>
    %402 = vector.shape_cast %401 : vector<1x128x96xf32> to vector<128x96xf32>
    %cst_241 = arith.constant dense<0.000000e+00> : vector<2x96xf32>
    %403 = tpu.matmul %391, %402, %cst_241 {dimension_numbers = #tpu.dot_dimension_numbers<[1], [0], [0], [1], [0, 0, 1, 1], [], []>} : vector<2x128xf32>, vector<128x96xf32>, vector<2x96xf32> -> vector<2x96xf32>
    %c1_242 = arith.constant 1 : index
    %c0_243 = arith.constant 0 : index
    %c0_244 = arith.constant 0 : index
    %404 = vector.load %arg16[%c1_242, %c0_243, %c0_244] : memref<3x1x96xf32, #tpu.memory_space<vmem>>, vector<1x1x96xf32>
    %405 = vector.shape_cast %404 : vector<1x1x96xf32> to vector<1x96xf32>
    %406 = vector.broadcast %405 : vector<1x96xf32> to vector<2x96xf32>
    %407 = arith.addf %403, %406 : vector<2x96xf32>
    %cst_245 = arith.constant 0.000000e+00 : f32
    %408 = vector.broadcast %cst_245 : f32 to vector<2x96xf32>
    %409 = arith.maximumf %407, %408 : vector<2x96xf32>
    %c2_246 = arith.constant 2 : index
    %c0_247 = arith.constant 0 : index
    %c0_248 = arith.constant 0 : index
    %410 = vector.load %arg15[%c2_246, %c0_247, %c0_248] : memref<3x128x96xf32, #tpu.memory_space<vmem>>, vector<1x128x96xf32>
    %411 = vector.shape_cast %410 : vector<1x128x96xf32> to vector<128x96xf32>
    %cst_249 = arith.constant dense<0.000000e+00> : vector<2x96xf32>
    %412 = tpu.matmul %391, %411, %cst_249 {dimension_numbers = #tpu.dot_dimension_numbers<[1], [0], [0], [1], [0, 0, 1, 1], [], []>} : vector<2x128xf32>, vector<128x96xf32>, vector<2x96xf32> -> vector<2x96xf32>
    %c2_250 = arith.constant 2 : index
    %c0_251 = arith.constant 0 : index
    %c0_252 = arith.constant 0 : index
    %413 = vector.load %arg16[%c2_250, %c0_251, %c0_252] : memref<3x1x96xf32, #tpu.memory_space<vmem>>, vector<1x1x96xf32>
    %414 = vector.shape_cast %413 : vector<1x1x96xf32> to vector<1x96xf32>
    %415 = vector.broadcast %414 : vector<1x96xf32> to vector<2x96xf32>
    %416 = arith.addf %412, %415 : vector<2x96xf32>
    %cst_253 = arith.constant 0.000000e+00 : f32
    %417 = vector.broadcast %cst_253 : f32 to vector<2x96xf32>
    %418 = arith.maximumf %416, %417 : vector<2x96xf32>
    %c0_254 = arith.constant 0 : index
    %c0_255 = arith.constant 0 : index
    %c0_256 = arith.constant 0 : index
    %419 = vector.load %arg17[%c0_254, %c0_255, %c0_256] : memref<3x96x112xf32, #tpu.memory_space<vmem>>, vector<1x96x112xf32>
    %420 = vector.shape_cast %419 : vector<1x96x112xf32> to vector<96x112xf32>
    %c1_257 = arith.constant 1 : index
    %c0_258 = arith.constant 0 : index
    %c0_259 = arith.constant 0 : index
    %421 = vector.load %arg17[%c1_257, %c0_258, %c0_259] : memref<3x96x112xf32, #tpu.memory_space<vmem>>, vector<1x96x112xf32>
    %422 = vector.shape_cast %421 : vector<1x96x112xf32> to vector<96x112xf32>
    %c2_260 = arith.constant 2 : index
    %c0_261 = arith.constant 0 : index
    %c0_262 = arith.constant 0 : index
    %423 = vector.load %arg17[%c2_260, %c0_261, %c0_262] : memref<3x96x112xf32, #tpu.memory_space<vmem>>, vector<1x96x112xf32>
    %424 = vector.shape_cast %423 : vector<1x96x112xf32> to vector<96x112xf32>
    %c0_263 = arith.constant 0 : index
    %c0_264 = arith.constant 0 : index
    %425 = vector.load %arg18[%c0_263, %c0_264] : memref<1x112xf32, #tpu.memory_space<vmem>>, vector<1x112xf32>
    %cst_265 = arith.constant dense<0.000000e+00> : vector<2x112xf32>
    %426 = tpu.matmul %400, %420, %cst_265 {dimension_numbers = #tpu.dot_dimension_numbers<[1], [0], [0], [1], [0, 0, 1, 1], [], []>} : vector<2x96xf32>, vector<96x112xf32>, vector<2x112xf32> -> vector<2x112xf32>
    %427 = vector.broadcast %425 : vector<1x112xf32> to vector<2x112xf32>
    %428 = arith.addf %426, %427 : vector<2x112xf32>
    %cst_266 = arith.constant dense<0.000000e+00> : vector<2x112xf32>
    %429 = tpu.matmul %400, %422, %cst_266 {dimension_numbers = #tpu.dot_dimension_numbers<[1], [0], [0], [1], [0, 0, 1, 1], [], []>} : vector<2x96xf32>, vector<96x112xf32>, vector<2x112xf32> -> vector<2x112xf32>
    %430 = vector.broadcast %425 : vector<1x112xf32> to vector<2x112xf32>
    %431 = arith.addf %429, %430 : vector<2x112xf32>
    %cst_267 = arith.constant dense<0.000000e+00> : vector<2x112xf32>
    %432 = tpu.matmul %400, %424, %cst_267 {dimension_numbers = #tpu.dot_dimension_numbers<[1], [0], [0], [1], [0, 0, 1, 1], [], []>} : vector<2x96xf32>, vector<96x112xf32>, vector<2x112xf32> -> vector<2x112xf32>
    %cst_268 = arith.constant dense<0.000000e+00> : vector<2x112xf32>
    %433 = tpu.matmul %409, %420, %cst_268 {dimension_numbers = #tpu.dot_dimension_numbers<[1], [0], [0], [1], [0, 0, 1, 1], [], []>} : vector<2x96xf32>, vector<96x112xf32>, vector<2x112xf32> -> vector<2x112xf32>
    %434 = arith.addf %432, %433 : vector<2x112xf32>
    %435 = vector.broadcast %425 : vector<1x112xf32> to vector<2x112xf32>
    %436 = arith.addf %434, %435 : vector<2x112xf32>
    %cst_269 = arith.constant dense<0.000000e+00> : vector<2x112xf32>
    %437 = tpu.matmul %409, %422, %cst_269 {dimension_numbers = #tpu.dot_dimension_numbers<[1], [0], [0], [1], [0, 0, 1, 1], [], []>} : vector<2x96xf32>, vector<96x112xf32>, vector<2x112xf32> -> vector<2x112xf32>
    %438 = vector.broadcast %425 : vector<1x112xf32> to vector<2x112xf32>
    %439 = arith.addf %437, %438 : vector<2x112xf32>
    %cst_270 = arith.constant dense<0.000000e+00> : vector<2x112xf32>
    %440 = tpu.matmul %409, %424, %cst_270 {dimension_numbers = #tpu.dot_dimension_numbers<[1], [0], [0], [1], [0, 0, 1, 1], [], []>} : vector<2x96xf32>, vector<96x112xf32>, vector<2x112xf32> -> vector<2x112xf32>
    %cst_271 = arith.constant dense<0.000000e+00> : vector<2x112xf32>
    %441 = tpu.matmul %418, %420, %cst_271 {dimension_numbers = #tpu.dot_dimension_numbers<[1], [0], [0], [1], [0, 0, 1, 1], [], []>} : vector<2x96xf32>, vector<96x112xf32>, vector<2x112xf32> -> vector<2x112xf32>
    %442 = arith.addf %440, %441 : vector<2x112xf32>
    %443 = vector.broadcast %425 : vector<1x112xf32> to vector<2x112xf32>
    %444 = arith.addf %442, %443 : vector<2x112xf32>
    %cst_272 = arith.constant dense<0.000000e+00> : vector<2x112xf32>
    %445 = tpu.matmul %418, %422, %cst_272 {dimension_numbers = #tpu.dot_dimension_numbers<[1], [0], [0], [1], [0, 0, 1, 1], [], []>} : vector<2x96xf32>, vector<96x112xf32>, vector<2x112xf32> -> vector<2x112xf32>
    %446 = vector.broadcast %425 : vector<1x112xf32> to vector<2x112xf32>
    %447 = arith.addf %445, %446 : vector<2x112xf32>
    %cst_273 = arith.constant dense<0.000000e+00> : vector<2x112xf32>
    %448 = tpu.matmul %418, %424, %cst_273 {dimension_numbers = #tpu.dot_dimension_numbers<[1], [0], [0], [1], [0, 0, 1, 1], [], []>} : vector<2x96xf32>, vector<96x112xf32>, vector<2x112xf32> -> vector<2x112xf32>
    %449 = vector.broadcast %425 : vector<1x112xf32> to vector<2x112xf32>
    %450 = arith.addf %448, %449 : vector<2x112xf32>
    %451 = arith.mulf %428, %428 : vector<2x112xf32>
    %452 = arith.addf %428, %431 : vector<2x112xf32>
    %453 = arith.mulf %431, %431 : vector<2x112xf32>
    %454 = arith.addf %451, %453 : vector<2x112xf32>
    %455 = arith.addf %452, %436 : vector<2x112xf32>
    %456 = arith.mulf %436, %436 : vector<2x112xf32>
    %457 = arith.addf %454, %456 : vector<2x112xf32>
    %458 = arith.addf %455, %439 : vector<2x112xf32>
    %459 = arith.mulf %439, %439 : vector<2x112xf32>
    %460 = arith.addf %457, %459 : vector<2x112xf32>
    %461 = arith.addf %458, %444 : vector<2x112xf32>
    %462 = arith.mulf %444, %444 : vector<2x112xf32>
    %463 = arith.addf %460, %462 : vector<2x112xf32>
    %464 = arith.addf %461, %447 : vector<2x112xf32>
    %465 = arith.mulf %447, %447 : vector<2x112xf32>
    %466 = arith.addf %463, %465 : vector<2x112xf32>
    %467 = arith.addf %464, %450 : vector<2x112xf32>
    %468 = arith.mulf %450, %450 : vector<2x112xf32>
    %469 = arith.addf %466, %468 : vector<2x112xf32>
    %cst_274 = arith.constant dense<0.000000e+00> : vector<112xf32>
    %470 = vector.multi_reduction <add>, %467, %cst_274 [0] : vector<2x112xf32> to vector<112xf32>
    %471 = vector.shape_cast %470 : vector<112xf32> to vector<1x112xf32>
    %cst_275 = arith.constant dense<0.000000e+00> : vector<112xf32>
    %472 = vector.multi_reduction <add>, %469, %cst_275 [0] : vector<2x112xf32> to vector<112xf32>
    %473 = vector.shape_cast %472 : vector<112xf32> to vector<1x112xf32>
    %c0_276 = arith.constant 0 : index
    %c0_277 = arith.constant 0 : index
    %474 = vector.load %arg27[%c0_276, %c0_277] : memref<112x16xf32, #tpu.memory_space<vmem>>, vector<112x16xf32>
    %cst_278 = arith.constant dense<0.000000e+00> : vector<1x16xf32>
    %475 = tpu.matmul %471, %474, %cst_278 {dimension_numbers = #tpu.dot_dimension_numbers<[1], [0], [0], [1], [0, 0, 1, 1], [], []>} : vector<1x112xf32>, vector<112x16xf32>, vector<1x16xf32> -> vector<1x16xf32>
    %cst_279 = arith.constant 0.0102040814 : f32
    %476 = vector.broadcast %cst_279 : f32 to vector<1x16xf32>
    %477 = arith.mulf %475, %476 : vector<1x16xf32>
    %c0_280 = arith.constant 0 : index
    %c0_281 = arith.constant 0 : index
    %478 = vector.load %arg27[%c0_280, %c0_281] : memref<112x16xf32, #tpu.memory_space<vmem>>, vector<112x16xf32>
    %cst_282 = arith.constant dense<0.000000e+00> : vector<1x16xf32>
    %479 = tpu.matmul %473, %478, %cst_282 {dimension_numbers = #tpu.dot_dimension_numbers<[1], [0], [0], [1], [0, 0, 1, 1], [], []>} : vector<1x112xf32>, vector<112x16xf32>, vector<1x16xf32> -> vector<1x16xf32>
    %cst_283 = arith.constant 0.0102040814 : f32
    %480 = vector.broadcast %cst_283 : f32 to vector<1x16xf32>
    %481 = arith.mulf %479, %480 : vector<1x16xf32>
    %482 = arith.mulf %477, %477 : vector<1x16xf32>
    %483 = arith.subf %481, %482 : vector<1x16xf32>
    %cst_284 = arith.constant 0.000000e+00 : f32
    %484 = vector.broadcast %cst_284 : f32 to vector<1x16xf32>
    %485 = arith.maximumf %483, %484 : vector<1x16xf32>
    %c0_285 = arith.constant 0 : index
    %c0_286 = arith.constant 0 : index
    %486 = vector.load %arg19[%c0_285, %c0_286] : memref<1x16xf32, #tpu.memory_space<vmem>>, vector<1x16xf32>
    %cst_287 = arith.constant 9.99999974E-6 : f32
    %487 = vector.broadcast %cst_287 : f32 to vector<1x16xf32>
    %488 = arith.addf %485, %487 : vector<1x16xf32>
    %489 = math.rsqrt %488 : vector<1x16xf32>
    %490 = arith.mulf %486, %489 : vector<1x16xf32>
    %c0_288 = arith.constant 0 : index
    %c0_289 = arith.constant 0 : index
    %491 = vector.load %arg20[%c0_288, %c0_289] : memref<1x16xf32, #tpu.memory_space<vmem>>, vector<1x16xf32>
    %492 = arith.mulf %477, %490 : vector<1x16xf32>
    %493 = arith.subf %491, %492 : vector<1x16xf32>
    %c0_290 = arith.constant 0 : index
    %c0_291 = arith.constant 0 : index
    %494 = vector.load %arg28[%c0_290, %c0_291] : memref<16x112xf32, #tpu.memory_space<vmem>>, vector<16x112xf32>
    %cst_292 = arith.constant dense<0.000000e+00> : vector<1x112xf32>
    %495 = tpu.matmul %490, %494, %cst_292 {dimension_numbers = #tpu.dot_dimension_numbers<[1], [0], [0], [1], [0, 0, 1, 1], [], []>} : vector<1x16xf32>, vector<16x112xf32>, vector<1x112xf32> -> vector<1x112xf32>
    %c0_293 = arith.constant 0 : index
    %c0_294 = arith.constant 0 : index
    %496 = vector.load %arg28[%c0_293, %c0_294] : memref<16x112xf32, #tpu.memory_space<vmem>>, vector<16x112xf32>
    %cst_295 = arith.constant dense<0.000000e+00> : vector<1x112xf32>
    %497 = tpu.matmul %493, %496, %cst_295 {dimension_numbers = #tpu.dot_dimension_numbers<[1], [0], [0], [1], [0, 0, 1, 1], [], []>} : vector<1x16xf32>, vector<16x112xf32>, vector<1x112xf32> -> vector<1x112xf32>
    %498 = vector.broadcast %495 : vector<1x112xf32> to vector<2x112xf32>
    %499 = arith.mulf %428, %498 : vector<2x112xf32>
    %500 = vector.broadcast %497 : vector<1x112xf32> to vector<2x112xf32>
    %501 = arith.addf %499, %500 : vector<2x112xf32>
    %cst_296 = arith.constant 0.000000e+00 : f32
    %502 = vector.broadcast %cst_296 : f32 to vector<2x112xf32>
    %503 = arith.maximumf %501, %502 : vector<2x112xf32>
    %504 = vector.broadcast %495 : vector<1x112xf32> to vector<2x112xf32>
    %505 = arith.mulf %431, %504 : vector<2x112xf32>
    %506 = vector.broadcast %497 : vector<1x112xf32> to vector<2x112xf32>
    %507 = arith.addf %505, %506 : vector<2x112xf32>
    %cst_297 = arith.constant 0.000000e+00 : f32
    %508 = vector.broadcast %cst_297 : f32 to vector<2x112xf32>
    %509 = arith.maximumf %507, %508 : vector<2x112xf32>
    %510 = vector.broadcast %495 : vector<1x112xf32> to vector<2x112xf32>
    %511 = arith.mulf %436, %510 : vector<2x112xf32>
    %512 = vector.broadcast %497 : vector<1x112xf32> to vector<2x112xf32>
    %513 = arith.addf %511, %512 : vector<2x112xf32>
    %cst_298 = arith.constant 0.000000e+00 : f32
    %514 = vector.broadcast %cst_298 : f32 to vector<2x112xf32>
    %515 = arith.maximumf %513, %514 : vector<2x112xf32>
    %516 = vector.broadcast %495 : vector<1x112xf32> to vector<2x112xf32>
    %517 = arith.mulf %439, %516 : vector<2x112xf32>
    %518 = vector.broadcast %497 : vector<1x112xf32> to vector<2x112xf32>
    %519 = arith.addf %517, %518 : vector<2x112xf32>
    %cst_299 = arith.constant 0.000000e+00 : f32
    %520 = vector.broadcast %cst_299 : f32 to vector<2x112xf32>
    %521 = arith.maximumf %519, %520 : vector<2x112xf32>
    %522 = vector.broadcast %495 : vector<1x112xf32> to vector<2x112xf32>
    %523 = arith.mulf %444, %522 : vector<2x112xf32>
    %524 = vector.broadcast %497 : vector<1x112xf32> to vector<2x112xf32>
    %525 = arith.addf %523, %524 : vector<2x112xf32>
    %cst_300 = arith.constant 0.000000e+00 : f32
    %526 = vector.broadcast %cst_300 : f32 to vector<2x112xf32>
    %527 = arith.maximumf %525, %526 : vector<2x112xf32>
    %528 = vector.broadcast %495 : vector<1x112xf32> to vector<2x112xf32>
    %529 = arith.mulf %447, %528 : vector<2x112xf32>
    %530 = vector.broadcast %497 : vector<1x112xf32> to vector<2x112xf32>
    %531 = arith.addf %529, %530 : vector<2x112xf32>
    %cst_301 = arith.constant 0.000000e+00 : f32
    %532 = vector.broadcast %cst_301 : f32 to vector<2x112xf32>
    %533 = arith.maximumf %531, %532 : vector<2x112xf32>
    %534 = vector.broadcast %495 : vector<1x112xf32> to vector<2x112xf32>
    %535 = arith.mulf %450, %534 : vector<2x112xf32>
    %536 = vector.broadcast %497 : vector<1x112xf32> to vector<2x112xf32>
    %537 = arith.addf %535, %536 : vector<2x112xf32>
    %cst_302 = arith.constant 0.000000e+00 : f32
    %538 = vector.broadcast %cst_302 : f32 to vector<2x112xf32>
    %539 = arith.maximumf %537, %538 : vector<2x112xf32>
    %c0_303 = arith.constant 0 : index
    %c0_304 = arith.constant 0 : index
    %c0_305 = arith.constant 0 : index
    %540 = vector.load %arg21[%c0_303, %c0_304, %c0_305] : memref<3x112x112xf32, #tpu.memory_space<vmem>>, vector<1x112x112xf32>
    %541 = vector.shape_cast %540 : vector<1x112x112xf32> to vector<112x112xf32>
    %c1_306 = arith.constant 1 : index
    %c0_307 = arith.constant 0 : index
    %c0_308 = arith.constant 0 : index
    %542 = vector.load %arg21[%c1_306, %c0_307, %c0_308] : memref<3x112x112xf32, #tpu.memory_space<vmem>>, vector<1x112x112xf32>
    %543 = vector.shape_cast %542 : vector<1x112x112xf32> to vector<112x112xf32>
    %c2_309 = arith.constant 2 : index
    %c0_310 = arith.constant 0 : index
    %c0_311 = arith.constant 0 : index
    %544 = vector.load %arg21[%c2_309, %c0_310, %c0_311] : memref<3x112x112xf32, #tpu.memory_space<vmem>>, vector<1x112x112xf32>
    %545 = vector.shape_cast %544 : vector<1x112x112xf32> to vector<112x112xf32>
    %c0_312 = arith.constant 0 : index
    %c0_313 = arith.constant 0 : index
    %546 = vector.load %arg22[%c0_312, %c0_313] : memref<1x112xf32, #tpu.memory_space<vmem>>, vector<1x112xf32>
    %cst_314 = arith.constant dense<0.000000e+00> : vector<2x112xf32>
    %547 = tpu.matmul %503, %543, %cst_314 {dimension_numbers = #tpu.dot_dimension_numbers<[1], [0], [0], [1], [0, 0, 1, 1], [], []>} : vector<2x112xf32>, vector<112x112xf32>, vector<2x112xf32> -> vector<2x112xf32>
    %548 = vector.broadcast %546 : vector<1x112xf32> to vector<2x112xf32>
    %549 = arith.addf %547, %548 : vector<2x112xf32>
    %cst_315 = arith.constant dense<0.000000e+00> : vector<2x112xf32>
    %550 = tpu.matmul %503, %545, %cst_315 {dimension_numbers = #tpu.dot_dimension_numbers<[1], [0], [0], [1], [0, 0, 1, 1], [], []>} : vector<2x112xf32>, vector<112x112xf32>, vector<2x112xf32> -> vector<2x112xf32>
    %cst_316 = arith.constant dense<0.000000e+00> : vector<2x112xf32>
    %551 = tpu.matmul %509, %541, %cst_316 {dimension_numbers = #tpu.dot_dimension_numbers<[1], [0], [0], [1], [0, 0, 1, 1], [], []>} : vector<2x112xf32>, vector<112x112xf32>, vector<2x112xf32> -> vector<2x112xf32>
    %552 = arith.addf %550, %551 : vector<2x112xf32>
    %553 = vector.broadcast %546 : vector<1x112xf32> to vector<2x112xf32>
    %554 = arith.addf %552, %553 : vector<2x112xf32>
    %cst_317 = arith.constant dense<0.000000e+00> : vector<2x112xf32>
    %555 = tpu.matmul %509, %543, %cst_317 {dimension_numbers = #tpu.dot_dimension_numbers<[1], [0], [0], [1], [0, 0, 1, 1], [], []>} : vector<2x112xf32>, vector<112x112xf32>, vector<2x112xf32> -> vector<2x112xf32>
    %556 = vector.broadcast %546 : vector<1x112xf32> to vector<2x112xf32>
    %557 = arith.addf %555, %556 : vector<2x112xf32>
    %cst_318 = arith.constant dense<0.000000e+00> : vector<2x112xf32>
    %558 = tpu.matmul %509, %545, %cst_318 {dimension_numbers = #tpu.dot_dimension_numbers<[1], [0], [0], [1], [0, 0, 1, 1], [], []>} : vector<2x112xf32>, vector<112x112xf32>, vector<2x112xf32> -> vector<2x112xf32>
    %cst_319 = arith.constant dense<0.000000e+00> : vector<2x112xf32>
    %559 = tpu.matmul %515, %541, %cst_319 {dimension_numbers = #tpu.dot_dimension_numbers<[1], [0], [0], [1], [0, 0, 1, 1], [], []>} : vector<2x112xf32>, vector<112x112xf32>, vector<2x112xf32> -> vector<2x112xf32>
    %560 = arith.addf %558, %559 : vector<2x112xf32>
    %561 = vector.broadcast %546 : vector<1x112xf32> to vector<2x112xf32>
    %562 = arith.addf %560, %561 : vector<2x112xf32>
    %cst_320 = arith.constant dense<0.000000e+00> : vector<2x112xf32>
    %563 = tpu.matmul %515, %543, %cst_320 {dimension_numbers = #tpu.dot_dimension_numbers<[1], [0], [0], [1], [0, 0, 1, 1], [], []>} : vector<2x112xf32>, vector<112x112xf32>, vector<2x112xf32> -> vector<2x112xf32>
    %564 = vector.broadcast %546 : vector<1x112xf32> to vector<2x112xf32>
    %565 = arith.addf %563, %564 : vector<2x112xf32>
    %cst_321 = arith.constant dense<0.000000e+00> : vector<2x112xf32>
    %566 = tpu.matmul %515, %545, %cst_321 {dimension_numbers = #tpu.dot_dimension_numbers<[1], [0], [0], [1], [0, 0, 1, 1], [], []>} : vector<2x112xf32>, vector<112x112xf32>, vector<2x112xf32> -> vector<2x112xf32>
    %cst_322 = arith.constant dense<0.000000e+00> : vector<2x112xf32>
    %567 = tpu.matmul %521, %541, %cst_322 {dimension_numbers = #tpu.dot_dimension_numbers<[1], [0], [0], [1], [0, 0, 1, 1], [], []>} : vector<2x112xf32>, vector<112x112xf32>, vector<2x112xf32> -> vector<2x112xf32>
    %568 = arith.addf %566, %567 : vector<2x112xf32>
    %569 = vector.broadcast %546 : vector<1x112xf32> to vector<2x112xf32>
    %570 = arith.addf %568, %569 : vector<2x112xf32>
    %cst_323 = arith.constant dense<0.000000e+00> : vector<2x112xf32>
    %571 = tpu.matmul %521, %543, %cst_323 {dimension_numbers = #tpu.dot_dimension_numbers<[1], [0], [0], [1], [0, 0, 1, 1], [], []>} : vector<2x112xf32>, vector<112x112xf32>, vector<2x112xf32> -> vector<2x112xf32>
    %572 = vector.broadcast %546 : vector<1x112xf32> to vector<2x112xf32>
    %573 = arith.addf %571, %572 : vector<2x112xf32>
    %cst_324 = arith.constant dense<0.000000e+00> : vector<2x112xf32>
    %574 = tpu.matmul %521, %545, %cst_324 {dimension_numbers = #tpu.dot_dimension_numbers<[1], [0], [0], [1], [0, 0, 1, 1], [], []>} : vector<2x112xf32>, vector<112x112xf32>, vector<2x112xf32> -> vector<2x112xf32>
    %cst_325 = arith.constant dense<0.000000e+00> : vector<2x112xf32>
    %575 = tpu.matmul %527, %541, %cst_325 {dimension_numbers = #tpu.dot_dimension_numbers<[1], [0], [0], [1], [0, 0, 1, 1], [], []>} : vector<2x112xf32>, vector<112x112xf32>, vector<2x112xf32> -> vector<2x112xf32>
    %576 = arith.addf %574, %575 : vector<2x112xf32>
    %577 = vector.broadcast %546 : vector<1x112xf32> to vector<2x112xf32>
    %578 = arith.addf %576, %577 : vector<2x112xf32>
    %cst_326 = arith.constant dense<0.000000e+00> : vector<2x112xf32>
    %579 = tpu.matmul %527, %543, %cst_326 {dimension_numbers = #tpu.dot_dimension_numbers<[1], [0], [0], [1], [0, 0, 1, 1], [], []>} : vector<2x112xf32>, vector<112x112xf32>, vector<2x112xf32> -> vector<2x112xf32>
    %580 = vector.broadcast %546 : vector<1x112xf32> to vector<2x112xf32>
    %581 = arith.addf %579, %580 : vector<2x112xf32>
    %cst_327 = arith.constant dense<0.000000e+00> : vector<2x112xf32>
    %582 = tpu.matmul %527, %545, %cst_327 {dimension_numbers = #tpu.dot_dimension_numbers<[1], [0], [0], [1], [0, 0, 1, 1], [], []>} : vector<2x112xf32>, vector<112x112xf32>, vector<2x112xf32> -> vector<2x112xf32>
    %cst_328 = arith.constant dense<0.000000e+00> : vector<2x112xf32>
    %583 = tpu.matmul %533, %541, %cst_328 {dimension_numbers = #tpu.dot_dimension_numbers<[1], [0], [0], [1], [0, 0, 1, 1], [], []>} : vector<2x112xf32>, vector<112x112xf32>, vector<2x112xf32> -> vector<2x112xf32>
    %584 = arith.addf %582, %583 : vector<2x112xf32>
    %585 = vector.broadcast %546 : vector<1x112xf32> to vector<2x112xf32>
    %586 = arith.addf %584, %585 : vector<2x112xf32>
    %cst_329 = arith.constant dense<0.000000e+00> : vector<2x112xf32>
    %587 = tpu.matmul %533, %543, %cst_329 {dimension_numbers = #tpu.dot_dimension_numbers<[1], [0], [0], [1], [0, 0, 1, 1], [], []>} : vector<2x112xf32>, vector<112x112xf32>, vector<2x112xf32> -> vector<2x112xf32>
    %588 = vector.broadcast %546 : vector<1x112xf32> to vector<2x112xf32>
    %589 = arith.addf %587, %588 : vector<2x112xf32>
    %cst_330 = arith.constant dense<0.000000e+00> : vector<2x112xf32>
    %590 = tpu.matmul %533, %545, %cst_330 {dimension_numbers = #tpu.dot_dimension_numbers<[1], [0], [0], [1], [0, 0, 1, 1], [], []>} : vector<2x112xf32>, vector<112x112xf32>, vector<2x112xf32> -> vector<2x112xf32>
    %cst_331 = arith.constant dense<0.000000e+00> : vector<2x112xf32>
    %591 = tpu.matmul %539, %541, %cst_331 {dimension_numbers = #tpu.dot_dimension_numbers<[1], [0], [0], [1], [0, 0, 1, 1], [], []>} : vector<2x112xf32>, vector<112x112xf32>, vector<2x112xf32> -> vector<2x112xf32>
    %592 = arith.addf %590, %591 : vector<2x112xf32>
    %593 = vector.broadcast %546 : vector<1x112xf32> to vector<2x112xf32>
    %594 = arith.addf %592, %593 : vector<2x112xf32>
    %cst_332 = arith.constant dense<0.000000e+00> : vector<2x112xf32>
    %595 = tpu.matmul %539, %543, %cst_332 {dimension_numbers = #tpu.dot_dimension_numbers<[1], [0], [0], [1], [0, 0, 1, 1], [], []>} : vector<2x112xf32>, vector<112x112xf32>, vector<2x112xf32> -> vector<2x112xf32>
    %596 = vector.broadcast %546 : vector<1x112xf32> to vector<2x112xf32>
    %597 = arith.addf %595, %596 : vector<2x112xf32>
    %cst_333 = arith.constant dense<0.000000e+00> : vector<2x112xf32>
    %598 = tpu.matmul %539, %545, %cst_333 {dimension_numbers = #tpu.dot_dimension_numbers<[1], [0], [0], [1], [0, 0, 1, 1], [], []>} : vector<2x112xf32>, vector<112x112xf32>, vector<2x112xf32> -> vector<2x112xf32>
    %599 = vector.broadcast %546 : vector<1x112xf32> to vector<2x112xf32>
    %600 = arith.addf %598, %599 : vector<2x112xf32>
    %601 = arith.mulf %549, %549 : vector<2x112xf32>
    %602 = arith.addf %549, %554 : vector<2x112xf32>
    %603 = arith.mulf %554, %554 : vector<2x112xf32>
    %604 = arith.addf %601, %603 : vector<2x112xf32>
    %605 = arith.addf %602, %557 : vector<2x112xf32>
    %606 = arith.mulf %557, %557 : vector<2x112xf32>
    %607 = arith.addf %604, %606 : vector<2x112xf32>
    %608 = arith.addf %605, %562 : vector<2x112xf32>
    %609 = arith.mulf %562, %562 : vector<2x112xf32>
    %610 = arith.addf %607, %609 : vector<2x112xf32>
    %611 = arith.addf %608, %565 : vector<2x112xf32>
    %612 = arith.mulf %565, %565 : vector<2x112xf32>
    %613 = arith.addf %610, %612 : vector<2x112xf32>
    %614 = arith.addf %611, %570 : vector<2x112xf32>
    %615 = arith.mulf %570, %570 : vector<2x112xf32>
    %616 = arith.addf %613, %615 : vector<2x112xf32>
    %617 = arith.addf %614, %573 : vector<2x112xf32>
    %618 = arith.mulf %573, %573 : vector<2x112xf32>
    %619 = arith.addf %616, %618 : vector<2x112xf32>
    %620 = arith.addf %617, %578 : vector<2x112xf32>
    %621 = arith.mulf %578, %578 : vector<2x112xf32>
    %622 = arith.addf %619, %621 : vector<2x112xf32>
    %623 = arith.addf %620, %581 : vector<2x112xf32>
    %624 = arith.mulf %581, %581 : vector<2x112xf32>
    %625 = arith.addf %622, %624 : vector<2x112xf32>
    %626 = arith.addf %623, %586 : vector<2x112xf32>
    %627 = arith.mulf %586, %586 : vector<2x112xf32>
    %628 = arith.addf %625, %627 : vector<2x112xf32>
    %629 = arith.addf %626, %589 : vector<2x112xf32>
    %630 = arith.mulf %589, %589 : vector<2x112xf32>
    %631 = arith.addf %628, %630 : vector<2x112xf32>
    %632 = arith.addf %629, %594 : vector<2x112xf32>
    %633 = arith.mulf %594, %594 : vector<2x112xf32>
    %634 = arith.addf %631, %633 : vector<2x112xf32>
    %635 = arith.addf %632, %597 : vector<2x112xf32>
    %636 = arith.mulf %597, %597 : vector<2x112xf32>
    %637 = arith.addf %634, %636 : vector<2x112xf32>
    %638 = arith.addf %635, %600 : vector<2x112xf32>
    %639 = arith.mulf %600, %600 : vector<2x112xf32>
    %640 = arith.addf %637, %639 : vector<2x112xf32>
    %cst_334 = arith.constant dense<0.000000e+00> : vector<112xf32>
    %641 = vector.multi_reduction <add>, %638, %cst_334 [0] : vector<2x112xf32> to vector<112xf32>
    %642 = vector.shape_cast %641 : vector<112xf32> to vector<1x112xf32>
    %cst_335 = arith.constant dense<0.000000e+00> : vector<112xf32>
    %643 = vector.multi_reduction <add>, %640, %cst_335 [0] : vector<2x112xf32> to vector<112xf32>
    %644 = vector.shape_cast %643 : vector<112xf32> to vector<1x112xf32>
    %c0_336 = arith.constant 0 : index
    %c0_337 = arith.constant 0 : index
    %645 = vector.load %arg29[%c0_336, %c0_337] : memref<112x8xf32, #tpu.memory_space<vmem>>, vector<112x8xf32>
    %cst_338 = arith.constant dense<0.000000e+00> : vector<1x8xf32>
    %646 = tpu.matmul %642, %645, %cst_338 {dimension_numbers = #tpu.dot_dimension_numbers<[1], [0], [0], [1], [0, 0, 1, 1], [], []>} : vector<1x112xf32>, vector<112x8xf32>, vector<1x8xf32> -> vector<1x8xf32>
    %cst_339 = arith.constant 0.00255102036 : f32
    %647 = vector.broadcast %cst_339 : f32 to vector<1x8xf32>
    %648 = arith.mulf %646, %647 : vector<1x8xf32>
    %c0_340 = arith.constant 0 : index
    %c0_341 = arith.constant 0 : index
    %649 = vector.load %arg29[%c0_340, %c0_341] : memref<112x8xf32, #tpu.memory_space<vmem>>, vector<112x8xf32>
    %cst_342 = arith.constant dense<0.000000e+00> : vector<1x8xf32>
    %650 = tpu.matmul %644, %649, %cst_342 {dimension_numbers = #tpu.dot_dimension_numbers<[1], [0], [0], [1], [0, 0, 1, 1], [], []>} : vector<1x112xf32>, vector<112x8xf32>, vector<1x8xf32> -> vector<1x8xf32>
    %cst_343 = arith.constant 0.00255102036 : f32
    %651 = vector.broadcast %cst_343 : f32 to vector<1x8xf32>
    %652 = arith.mulf %650, %651 : vector<1x8xf32>
    %653 = arith.mulf %648, %648 : vector<1x8xf32>
    %654 = arith.subf %652, %653 : vector<1x8xf32>
    %cst_344 = arith.constant 0.000000e+00 : f32
    %655 = vector.broadcast %cst_344 : f32 to vector<1x8xf32>
    %656 = arith.maximumf %654, %655 : vector<1x8xf32>
    %c0_345 = arith.constant 0 : index
    %c0_346 = arith.constant 0 : index
    %657 = vector.load %arg23[%c0_345, %c0_346] : memref<1x8xf32, #tpu.memory_space<vmem>>, vector<1x8xf32>
    %cst_347 = arith.constant 9.99999974E-6 : f32
    %658 = vector.broadcast %cst_347 : f32 to vector<1x8xf32>
    %659 = arith.addf %656, %658 : vector<1x8xf32>
    %660 = math.rsqrt %659 : vector<1x8xf32>
    %661 = arith.mulf %657, %660 : vector<1x8xf32>
    %c0_348 = arith.constant 0 : index
    %c0_349 = arith.constant 0 : index
    %662 = vector.load %arg24[%c0_348, %c0_349] : memref<1x8xf32, #tpu.memory_space<vmem>>, vector<1x8xf32>
    %663 = arith.mulf %648, %661 : vector<1x8xf32>
    %664 = arith.subf %662, %663 : vector<1x8xf32>
    %c0_350 = arith.constant 0 : index
    %c0_351 = arith.constant 0 : index
    %665 = vector.load %arg30[%c0_350, %c0_351] : memref<8x112xf32, #tpu.memory_space<vmem>>, vector<8x112xf32>
    %cst_352 = arith.constant dense<0.000000e+00> : vector<1x112xf32>
    %666 = tpu.matmul %661, %665, %cst_352 {dimension_numbers = #tpu.dot_dimension_numbers<[1], [0], [0], [1], [0, 0, 1, 1], [], []>} : vector<1x8xf32>, vector<8x112xf32>, vector<1x112xf32> -> vector<1x112xf32>
    %c0_353 = arith.constant 0 : index
    %c0_354 = arith.constant 0 : index
    %667 = vector.load %arg30[%c0_353, %c0_354] : memref<8x112xf32, #tpu.memory_space<vmem>>, vector<8x112xf32>
    %cst_355 = arith.constant dense<0.000000e+00> : vector<1x112xf32>
    %668 = tpu.matmul %664, %667, %cst_355 {dimension_numbers = #tpu.dot_dimension_numbers<[1], [0], [0], [1], [0, 0, 1, 1], [], []>} : vector<1x8xf32>, vector<8x112xf32>, vector<1x112xf32> -> vector<1x112xf32>
    %669 = vector.broadcast %666 : vector<1x112xf32> to vector<2x112xf32>
    %670 = arith.mulf %549, %669 : vector<2x112xf32>
    %671 = vector.broadcast %668 : vector<1x112xf32> to vector<2x112xf32>
    %672 = arith.addf %670, %671 : vector<2x112xf32>
    %cst_356 = arith.constant 0.000000e+00 : f32
    %673 = vector.broadcast %cst_356 : f32 to vector<2x112xf32>
    %674 = arith.maximumf %672, %673 : vector<2x112xf32>
    %675 = vector.broadcast %666 : vector<1x112xf32> to vector<2x112xf32>
    %676 = arith.mulf %554, %675 : vector<2x112xf32>
    %677 = vector.broadcast %668 : vector<1x112xf32> to vector<2x112xf32>
    %678 = arith.addf %676, %677 : vector<2x112xf32>
    %cst_357 = arith.constant 0.000000e+00 : f32
    %679 = vector.broadcast %cst_357 : f32 to vector<2x112xf32>
    %680 = arith.maximumf %678, %679 : vector<2x112xf32>
    %681 = vector.broadcast %666 : vector<1x112xf32> to vector<2x112xf32>
    %682 = arith.mulf %557, %681 : vector<2x112xf32>
    %683 = vector.broadcast %668 : vector<1x112xf32> to vector<2x112xf32>
    %684 = arith.addf %682, %683 : vector<2x112xf32>
    %cst_358 = arith.constant 0.000000e+00 : f32
    %685 = vector.broadcast %cst_358 : f32 to vector<2x112xf32>
    %686 = arith.maximumf %684, %685 : vector<2x112xf32>
    %687 = vector.broadcast %666 : vector<1x112xf32> to vector<2x112xf32>
    %688 = arith.mulf %562, %687 : vector<2x112xf32>
    %689 = vector.broadcast %668 : vector<1x112xf32> to vector<2x112xf32>
    %690 = arith.addf %688, %689 : vector<2x112xf32>
    %cst_359 = arith.constant 0.000000e+00 : f32
    %691 = vector.broadcast %cst_359 : f32 to vector<2x112xf32>
    %692 = arith.maximumf %690, %691 : vector<2x112xf32>
    %693 = vector.broadcast %666 : vector<1x112xf32> to vector<2x112xf32>
    %694 = arith.mulf %565, %693 : vector<2x112xf32>
    %695 = vector.broadcast %668 : vector<1x112xf32> to vector<2x112xf32>
    %696 = arith.addf %694, %695 : vector<2x112xf32>
    %cst_360 = arith.constant 0.000000e+00 : f32
    %697 = vector.broadcast %cst_360 : f32 to vector<2x112xf32>
    %698 = arith.maximumf %696, %697 : vector<2x112xf32>
    %699 = vector.broadcast %666 : vector<1x112xf32> to vector<2x112xf32>
    %700 = arith.mulf %570, %699 : vector<2x112xf32>
    %701 = vector.broadcast %668 : vector<1x112xf32> to vector<2x112xf32>
    %702 = arith.addf %700, %701 : vector<2x112xf32>
    %cst_361 = arith.constant 0.000000e+00 : f32
    %703 = vector.broadcast %cst_361 : f32 to vector<2x112xf32>
    %704 = arith.maximumf %702, %703 : vector<2x112xf32>
    %705 = vector.broadcast %666 : vector<1x112xf32> to vector<2x112xf32>
    %706 = arith.mulf %573, %705 : vector<2x112xf32>
    %707 = vector.broadcast %668 : vector<1x112xf32> to vector<2x112xf32>
    %708 = arith.addf %706, %707 : vector<2x112xf32>
    %cst_362 = arith.constant 0.000000e+00 : f32
    %709 = vector.broadcast %cst_362 : f32 to vector<2x112xf32>
    %710 = arith.maximumf %708, %709 : vector<2x112xf32>
    %711 = vector.broadcast %666 : vector<1x112xf32> to vector<2x112xf32>
    %712 = arith.mulf %578, %711 : vector<2x112xf32>
    %713 = vector.broadcast %668 : vector<1x112xf32> to vector<2x112xf32>
    %714 = arith.addf %712, %713 : vector<2x112xf32>
    %cst_363 = arith.constant 0.000000e+00 : f32
    %715 = vector.broadcast %cst_363 : f32 to vector<2x112xf32>
    %716 = arith.maximumf %714, %715 : vector<2x112xf32>
    %717 = vector.broadcast %666 : vector<1x112xf32> to vector<2x112xf32>
    %718 = arith.mulf %581, %717 : vector<2x112xf32>
    %719 = vector.broadcast %668 : vector<1x112xf32> to vector<2x112xf32>
    %720 = arith.addf %718, %719 : vector<2x112xf32>
    %cst_364 = arith.constant 0.000000e+00 : f32
    %721 = vector.broadcast %cst_364 : f32 to vector<2x112xf32>
    %722 = arith.maximumf %720, %721 : vector<2x112xf32>
    %723 = vector.broadcast %666 : vector<1x112xf32> to vector<2x112xf32>
    %724 = arith.mulf %586, %723 : vector<2x112xf32>
    %725 = vector.broadcast %668 : vector<1x112xf32> to vector<2x112xf32>
    %726 = arith.addf %724, %725 : vector<2x112xf32>
    %cst_365 = arith.constant 0.000000e+00 : f32
    %727 = vector.broadcast %cst_365 : f32 to vector<2x112xf32>
    %728 = arith.maximumf %726, %727 : vector<2x112xf32>
    %729 = vector.broadcast %666 : vector<1x112xf32> to vector<2x112xf32>
    %730 = arith.mulf %589, %729 : vector<2x112xf32>
    %731 = vector.broadcast %668 : vector<1x112xf32> to vector<2x112xf32>
    %732 = arith.addf %730, %731 : vector<2x112xf32>
    %cst_366 = arith.constant 0.000000e+00 : f32
    %733 = vector.broadcast %cst_366 : f32 to vector<2x112xf32>
    %734 = arith.maximumf %732, %733 : vector<2x112xf32>
    %735 = vector.broadcast %666 : vector<1x112xf32> to vector<2x112xf32>
    %736 = arith.mulf %594, %735 : vector<2x112xf32>
    %737 = vector.broadcast %668 : vector<1x112xf32> to vector<2x112xf32>
    %738 = arith.addf %736, %737 : vector<2x112xf32>
    %cst_367 = arith.constant 0.000000e+00 : f32
    %739 = vector.broadcast %cst_367 : f32 to vector<2x112xf32>
    %740 = arith.maximumf %738, %739 : vector<2x112xf32>
    %741 = vector.broadcast %666 : vector<1x112xf32> to vector<2x112xf32>
    %742 = arith.mulf %597, %741 : vector<2x112xf32>
    %743 = vector.broadcast %668 : vector<1x112xf32> to vector<2x112xf32>
    %744 = arith.addf %742, %743 : vector<2x112xf32>
    %cst_368 = arith.constant 0.000000e+00 : f32
    %745 = vector.broadcast %cst_368 : f32 to vector<2x112xf32>
    %746 = arith.maximumf %744, %745 : vector<2x112xf32>
    %747 = vector.broadcast %666 : vector<1x112xf32> to vector<2x112xf32>
    %748 = arith.mulf %600, %747 : vector<2x112xf32>
    %749 = vector.broadcast %668 : vector<1x112xf32> to vector<2x112xf32>
    %750 = arith.addf %748, %749 : vector<2x112xf32>
    %cst_369 = arith.constant 0.000000e+00 : f32
    %751 = vector.broadcast %cst_369 : f32 to vector<2x112xf32>
    %752 = arith.maximumf %750, %751 : vector<2x112xf32>
    %c0_370 = arith.constant 0 : index
    %c0_371 = arith.constant 0 : index
    %c0_372 = arith.constant 0 : index
    %753 = vector.load %arg25[%c0_370, %c0_371, %c0_372] : memref<3x112x28xf32, #tpu.memory_space<vmem>>, vector<1x112x28xf32>
    %754 = vector.shape_cast %753 : vector<1x112x28xf32> to vector<112x28xf32>
    %c1_373 = arith.constant 1 : index
    %c0_374 = arith.constant 0 : index
    %c0_375 = arith.constant 0 : index
    %755 = vector.load %arg25[%c1_373, %c0_374, %c0_375] : memref<3x112x28xf32, #tpu.memory_space<vmem>>, vector<1x112x28xf32>
    %756 = vector.shape_cast %755 : vector<1x112x28xf32> to vector<112x28xf32>
    %c2_376 = arith.constant 2 : index
    %c0_377 = arith.constant 0 : index
    %c0_378 = arith.constant 0 : index
    %757 = vector.load %arg25[%c2_376, %c0_377, %c0_378] : memref<3x112x28xf32, #tpu.memory_space<vmem>>, vector<1x112x28xf32>
    %758 = vector.shape_cast %757 : vector<1x112x28xf32> to vector<112x28xf32>
    %c0_379 = arith.constant 0 : index
    %c0_380 = arith.constant 0 : index
    %759 = vector.load %arg26[%c0_379, %c0_380] : memref<1x28xf32, #tpu.memory_space<vmem>>, vector<1x28xf32>
    %cst_381 = arith.constant dense<0.000000e+00> : vector<2x28xf32>
    %760 = tpu.matmul %674, %756, %cst_381 {dimension_numbers = #tpu.dot_dimension_numbers<[1], [0], [0], [1], [0, 0, 1, 1], [], []>} : vector<2x112xf32>, vector<112x28xf32>, vector<2x28xf32> -> vector<2x28xf32>
    %761 = vector.broadcast %759 : vector<1x28xf32> to vector<2x28xf32>
    %762 = arith.addf %760, %761 : vector<2x28xf32>
    %cst_382 = arith.constant dense<0.000000e+00> : vector<2x28xf32>
    %763 = tpu.matmul %674, %758, %cst_382 {dimension_numbers = #tpu.dot_dimension_numbers<[1], [0], [0], [1], [0, 0, 1, 1], [], []>} : vector<2x112xf32>, vector<112x28xf32>, vector<2x28xf32> -> vector<2x28xf32>
    %cst_383 = arith.constant dense<0.000000e+00> : vector<2x28xf32>
    %764 = tpu.matmul %680, %754, %cst_383 {dimension_numbers = #tpu.dot_dimension_numbers<[1], [0], [0], [1], [0, 0, 1, 1], [], []>} : vector<2x112xf32>, vector<112x28xf32>, vector<2x28xf32> -> vector<2x28xf32>
    %765 = arith.addf %763, %764 : vector<2x28xf32>
    %766 = vector.broadcast %759 : vector<1x28xf32> to vector<2x28xf32>
    %767 = arith.addf %765, %766 : vector<2x28xf32>
    %cst_384 = arith.constant dense<0.000000e+00> : vector<2x28xf32>
    %768 = tpu.matmul %680, %756, %cst_384 {dimension_numbers = #tpu.dot_dimension_numbers<[1], [0], [0], [1], [0, 0, 1, 1], [], []>} : vector<2x112xf32>, vector<112x28xf32>, vector<2x28xf32> -> vector<2x28xf32>
    %769 = vector.broadcast %759 : vector<1x28xf32> to vector<2x28xf32>
    %770 = arith.addf %768, %769 : vector<2x28xf32>
    %cst_385 = arith.constant dense<0.000000e+00> : vector<2x28xf32>
    %771 = tpu.matmul %680, %758, %cst_385 {dimension_numbers = #tpu.dot_dimension_numbers<[1], [0], [0], [1], [0, 0, 1, 1], [], []>} : vector<2x112xf32>, vector<112x28xf32>, vector<2x28xf32> -> vector<2x28xf32>
    %cst_386 = arith.constant dense<0.000000e+00> : vector<2x28xf32>
    %772 = tpu.matmul %686, %754, %cst_386 {dimension_numbers = #tpu.dot_dimension_numbers<[1], [0], [0], [1], [0, 0, 1, 1], [], []>} : vector<2x112xf32>, vector<112x28xf32>, vector<2x28xf32> -> vector<2x28xf32>
    %773 = arith.addf %771, %772 : vector<2x28xf32>
    %774 = vector.broadcast %759 : vector<1x28xf32> to vector<2x28xf32>
    %775 = arith.addf %773, %774 : vector<2x28xf32>
    %cst_387 = arith.constant dense<0.000000e+00> : vector<2x28xf32>
    %776 = tpu.matmul %686, %756, %cst_387 {dimension_numbers = #tpu.dot_dimension_numbers<[1], [0], [0], [1], [0, 0, 1, 1], [], []>} : vector<2x112xf32>, vector<112x28xf32>, vector<2x28xf32> -> vector<2x28xf32>
    %777 = vector.broadcast %759 : vector<1x28xf32> to vector<2x28xf32>
    %778 = arith.addf %776, %777 : vector<2x28xf32>
    %cst_388 = arith.constant dense<0.000000e+00> : vector<2x28xf32>
    %779 = tpu.matmul %686, %758, %cst_388 {dimension_numbers = #tpu.dot_dimension_numbers<[1], [0], [0], [1], [0, 0, 1, 1], [], []>} : vector<2x112xf32>, vector<112x28xf32>, vector<2x28xf32> -> vector<2x28xf32>
    %cst_389 = arith.constant dense<0.000000e+00> : vector<2x28xf32>
    %780 = tpu.matmul %692, %754, %cst_389 {dimension_numbers = #tpu.dot_dimension_numbers<[1], [0], [0], [1], [0, 0, 1, 1], [], []>} : vector<2x112xf32>, vector<112x28xf32>, vector<2x28xf32> -> vector<2x28xf32>
    %781 = arith.addf %779, %780 : vector<2x28xf32>
    %782 = vector.broadcast %759 : vector<1x28xf32> to vector<2x28xf32>
    %783 = arith.addf %781, %782 : vector<2x28xf32>
    %cst_390 = arith.constant dense<0.000000e+00> : vector<2x28xf32>
    %784 = tpu.matmul %692, %756, %cst_390 {dimension_numbers = #tpu.dot_dimension_numbers<[1], [0], [0], [1], [0, 0, 1, 1], [], []>} : vector<2x112xf32>, vector<112x28xf32>, vector<2x28xf32> -> vector<2x28xf32>
    %785 = vector.broadcast %759 : vector<1x28xf32> to vector<2x28xf32>
    %786 = arith.addf %784, %785 : vector<2x28xf32>
    %cst_391 = arith.constant dense<0.000000e+00> : vector<2x28xf32>
    %787 = tpu.matmul %692, %758, %cst_391 {dimension_numbers = #tpu.dot_dimension_numbers<[1], [0], [0], [1], [0, 0, 1, 1], [], []>} : vector<2x112xf32>, vector<112x28xf32>, vector<2x28xf32> -> vector<2x28xf32>
    %cst_392 = arith.constant dense<0.000000e+00> : vector<2x28xf32>
    %788 = tpu.matmul %698, %754, %cst_392 {dimension_numbers = #tpu.dot_dimension_numbers<[1], [0], [0], [1], [0, 0, 1, 1], [], []>} : vector<2x112xf32>, vector<112x28xf32>, vector<2x28xf32> -> vector<2x28xf32>
    %789 = arith.addf %787, %788 : vector<2x28xf32>
    %790 = vector.broadcast %759 : vector<1x28xf32> to vector<2x28xf32>
    %791 = arith.addf %789, %790 : vector<2x28xf32>
    %cst_393 = arith.constant dense<0.000000e+00> : vector<2x28xf32>
    %792 = tpu.matmul %698, %756, %cst_393 {dimension_numbers = #tpu.dot_dimension_numbers<[1], [0], [0], [1], [0, 0, 1, 1], [], []>} : vector<2x112xf32>, vector<112x28xf32>, vector<2x28xf32> -> vector<2x28xf32>
    %793 = vector.broadcast %759 : vector<1x28xf32> to vector<2x28xf32>
    %794 = arith.addf %792, %793 : vector<2x28xf32>
    %cst_394 = arith.constant dense<0.000000e+00> : vector<2x28xf32>
    %795 = tpu.matmul %698, %758, %cst_394 {dimension_numbers = #tpu.dot_dimension_numbers<[1], [0], [0], [1], [0, 0, 1, 1], [], []>} : vector<2x112xf32>, vector<112x28xf32>, vector<2x28xf32> -> vector<2x28xf32>
    %cst_395 = arith.constant dense<0.000000e+00> : vector<2x28xf32>
    %796 = tpu.matmul %704, %754, %cst_395 {dimension_numbers = #tpu.dot_dimension_numbers<[1], [0], [0], [1], [0, 0, 1, 1], [], []>} : vector<2x112xf32>, vector<112x28xf32>, vector<2x28xf32> -> vector<2x28xf32>
    %797 = arith.addf %795, %796 : vector<2x28xf32>
    %798 = vector.broadcast %759 : vector<1x28xf32> to vector<2x28xf32>
    %799 = arith.addf %797, %798 : vector<2x28xf32>
    %cst_396 = arith.constant dense<0.000000e+00> : vector<2x28xf32>
    %800 = tpu.matmul %704, %756, %cst_396 {dimension_numbers = #tpu.dot_dimension_numbers<[1], [0], [0], [1], [0, 0, 1, 1], [], []>} : vector<2x112xf32>, vector<112x28xf32>, vector<2x28xf32> -> vector<2x28xf32>
    %801 = vector.broadcast %759 : vector<1x28xf32> to vector<2x28xf32>
    %802 = arith.addf %800, %801 : vector<2x28xf32>
    %cst_397 = arith.constant dense<0.000000e+00> : vector<2x28xf32>
    %803 = tpu.matmul %704, %758, %cst_397 {dimension_numbers = #tpu.dot_dimension_numbers<[1], [0], [0], [1], [0, 0, 1, 1], [], []>} : vector<2x112xf32>, vector<112x28xf32>, vector<2x28xf32> -> vector<2x28xf32>
    %cst_398 = arith.constant dense<0.000000e+00> : vector<2x28xf32>
    %804 = tpu.matmul %710, %754, %cst_398 {dimension_numbers = #tpu.dot_dimension_numbers<[1], [0], [0], [1], [0, 0, 1, 1], [], []>} : vector<2x112xf32>, vector<112x28xf32>, vector<2x28xf32> -> vector<2x28xf32>
    %805 = arith.addf %803, %804 : vector<2x28xf32>
    %806 = vector.broadcast %759 : vector<1x28xf32> to vector<2x28xf32>
    %807 = arith.addf %805, %806 : vector<2x28xf32>
    %cst_399 = arith.constant dense<0.000000e+00> : vector<2x28xf32>
    %808 = tpu.matmul %710, %756, %cst_399 {dimension_numbers = #tpu.dot_dimension_numbers<[1], [0], [0], [1], [0, 0, 1, 1], [], []>} : vector<2x112xf32>, vector<112x28xf32>, vector<2x28xf32> -> vector<2x28xf32>
    %809 = vector.broadcast %759 : vector<1x28xf32> to vector<2x28xf32>
    %810 = arith.addf %808, %809 : vector<2x28xf32>
    %cst_400 = arith.constant dense<0.000000e+00> : vector<2x28xf32>
    %811 = tpu.matmul %710, %758, %cst_400 {dimension_numbers = #tpu.dot_dimension_numbers<[1], [0], [0], [1], [0, 0, 1, 1], [], []>} : vector<2x112xf32>, vector<112x28xf32>, vector<2x28xf32> -> vector<2x28xf32>
    %cst_401 = arith.constant dense<0.000000e+00> : vector<2x28xf32>
    %812 = tpu.matmul %716, %754, %cst_401 {dimension_numbers = #tpu.dot_dimension_numbers<[1], [0], [0], [1], [0, 0, 1, 1], [], []>} : vector<2x112xf32>, vector<112x28xf32>, vector<2x28xf32> -> vector<2x28xf32>
    %813 = arith.addf %811, %812 : vector<2x28xf32>
    %814 = vector.broadcast %759 : vector<1x28xf32> to vector<2x28xf32>
    %815 = arith.addf %813, %814 : vector<2x28xf32>
    %cst_402 = arith.constant dense<0.000000e+00> : vector<2x28xf32>
    %816 = tpu.matmul %716, %756, %cst_402 {dimension_numbers = #tpu.dot_dimension_numbers<[1], [0], [0], [1], [0, 0, 1, 1], [], []>} : vector<2x112xf32>, vector<112x28xf32>, vector<2x28xf32> -> vector<2x28xf32>
    %817 = vector.broadcast %759 : vector<1x28xf32> to vector<2x28xf32>
    %818 = arith.addf %816, %817 : vector<2x28xf32>
    %cst_403 = arith.constant dense<0.000000e+00> : vector<2x28xf32>
    %819 = tpu.matmul %716, %758, %cst_403 {dimension_numbers = #tpu.dot_dimension_numbers<[1], [0], [0], [1], [0, 0, 1, 1], [], []>} : vector<2x112xf32>, vector<112x28xf32>, vector<2x28xf32> -> vector<2x28xf32>
    %cst_404 = arith.constant dense<0.000000e+00> : vector<2x28xf32>
    %820 = tpu.matmul %722, %754, %cst_404 {dimension_numbers = #tpu.dot_dimension_numbers<[1], [0], [0], [1], [0, 0, 1, 1], [], []>} : vector<2x112xf32>, vector<112x28xf32>, vector<2x28xf32> -> vector<2x28xf32>
    %821 = arith.addf %819, %820 : vector<2x28xf32>
    %822 = vector.broadcast %759 : vector<1x28xf32> to vector<2x28xf32>
    %823 = arith.addf %821, %822 : vector<2x28xf32>
    %cst_405 = arith.constant dense<0.000000e+00> : vector<2x28xf32>
    %824 = tpu.matmul %722, %756, %cst_405 {dimension_numbers = #tpu.dot_dimension_numbers<[1], [0], [0], [1], [0, 0, 1, 1], [], []>} : vector<2x112xf32>, vector<112x28xf32>, vector<2x28xf32> -> vector<2x28xf32>
    %825 = vector.broadcast %759 : vector<1x28xf32> to vector<2x28xf32>
    %826 = arith.addf %824, %825 : vector<2x28xf32>
    %cst_406 = arith.constant dense<0.000000e+00> : vector<2x28xf32>
    %827 = tpu.matmul %722, %758, %cst_406 {dimension_numbers = #tpu.dot_dimension_numbers<[1], [0], [0], [1], [0, 0, 1, 1], [], []>} : vector<2x112xf32>, vector<112x28xf32>, vector<2x28xf32> -> vector<2x28xf32>
    %cst_407 = arith.constant dense<0.000000e+00> : vector<2x28xf32>
    %828 = tpu.matmul %728, %754, %cst_407 {dimension_numbers = #tpu.dot_dimension_numbers<[1], [0], [0], [1], [0, 0, 1, 1], [], []>} : vector<2x112xf32>, vector<112x28xf32>, vector<2x28xf32> -> vector<2x28xf32>
    %829 = arith.addf %827, %828 : vector<2x28xf32>
    %830 = vector.broadcast %759 : vector<1x28xf32> to vector<2x28xf32>
    %831 = arith.addf %829, %830 : vector<2x28xf32>
    %cst_408 = arith.constant dense<0.000000e+00> : vector<2x28xf32>
    %832 = tpu.matmul %728, %756, %cst_408 {dimension_numbers = #tpu.dot_dimension_numbers<[1], [0], [0], [1], [0, 0, 1, 1], [], []>} : vector<2x112xf32>, vector<112x28xf32>, vector<2x28xf32> -> vector<2x28xf32>
    %833 = vector.broadcast %759 : vector<1x28xf32> to vector<2x28xf32>
    %834 = arith.addf %832, %833 : vector<2x28xf32>
    %cst_409 = arith.constant dense<0.000000e+00> : vector<2x28xf32>
    %835 = tpu.matmul %728, %758, %cst_409 {dimension_numbers = #tpu.dot_dimension_numbers<[1], [0], [0], [1], [0, 0, 1, 1], [], []>} : vector<2x112xf32>, vector<112x28xf32>, vector<2x28xf32> -> vector<2x28xf32>
    %cst_410 = arith.constant dense<0.000000e+00> : vector<2x28xf32>
    %836 = tpu.matmul %734, %754, %cst_410 {dimension_numbers = #tpu.dot_dimension_numbers<[1], [0], [0], [1], [0, 0, 1, 1], [], []>} : vector<2x112xf32>, vector<112x28xf32>, vector<2x28xf32> -> vector<2x28xf32>
    %837 = arith.addf %835, %836 : vector<2x28xf32>
    %838 = vector.broadcast %759 : vector<1x28xf32> to vector<2x28xf32>
    %839 = arith.addf %837, %838 : vector<2x28xf32>
    %cst_411 = arith.constant dense<0.000000e+00> : vector<2x28xf32>
    %840 = tpu.matmul %734, %756, %cst_411 {dimension_numbers = #tpu.dot_dimension_numbers<[1], [0], [0], [1], [0, 0, 1, 1], [], []>} : vector<2x112xf32>, vector<112x28xf32>, vector<2x28xf32> -> vector<2x28xf32>
    %841 = vector.broadcast %759 : vector<1x28xf32> to vector<2x28xf32>
    %842 = arith.addf %840, %841 : vector<2x28xf32>
    %cst_412 = arith.constant dense<0.000000e+00> : vector<2x28xf32>
    %843 = tpu.matmul %734, %758, %cst_412 {dimension_numbers = #tpu.dot_dimension_numbers<[1], [0], [0], [1], [0, 0, 1, 1], [], []>} : vector<2x112xf32>, vector<112x28xf32>, vector<2x28xf32> -> vector<2x28xf32>
    %cst_413 = arith.constant dense<0.000000e+00> : vector<2x28xf32>
    %844 = tpu.matmul %740, %754, %cst_413 {dimension_numbers = #tpu.dot_dimension_numbers<[1], [0], [0], [1], [0, 0, 1, 1], [], []>} : vector<2x112xf32>, vector<112x28xf32>, vector<2x28xf32> -> vector<2x28xf32>
    %845 = arith.addf %843, %844 : vector<2x28xf32>
    %846 = vector.broadcast %759 : vector<1x28xf32> to vector<2x28xf32>
    %847 = arith.addf %845, %846 : vector<2x28xf32>
    %cst_414 = arith.constant dense<0.000000e+00> : vector<2x28xf32>
    %848 = tpu.matmul %740, %756, %cst_414 {dimension_numbers = #tpu.dot_dimension_numbers<[1], [0], [0], [1], [0, 0, 1, 1], [], []>} : vector<2x112xf32>, vector<112x28xf32>, vector<2x28xf32> -> vector<2x28xf32>
    %849 = vector.broadcast %759 : vector<1x28xf32> to vector<2x28xf32>
    %850 = arith.addf %848, %849 : vector<2x28xf32>
    %cst_415 = arith.constant dense<0.000000e+00> : vector<2x28xf32>
    %851 = tpu.matmul %740, %758, %cst_415 {dimension_numbers = #tpu.dot_dimension_numbers<[1], [0], [0], [1], [0, 0, 1, 1], [], []>} : vector<2x112xf32>, vector<112x28xf32>, vector<2x28xf32> -> vector<2x28xf32>
    %cst_416 = arith.constant dense<0.000000e+00> : vector<2x28xf32>
    %852 = tpu.matmul %746, %754, %cst_416 {dimension_numbers = #tpu.dot_dimension_numbers<[1], [0], [0], [1], [0, 0, 1, 1], [], []>} : vector<2x112xf32>, vector<112x28xf32>, vector<2x28xf32> -> vector<2x28xf32>
    %853 = arith.addf %851, %852 : vector<2x28xf32>
    %854 = vector.broadcast %759 : vector<1x28xf32> to vector<2x28xf32>
    %855 = arith.addf %853, %854 : vector<2x28xf32>
    %cst_417 = arith.constant dense<0.000000e+00> : vector<2x28xf32>
    %856 = tpu.matmul %746, %756, %cst_417 {dimension_numbers = #tpu.dot_dimension_numbers<[1], [0], [0], [1], [0, 0, 1, 1], [], []>} : vector<2x112xf32>, vector<112x28xf32>, vector<2x28xf32> -> vector<2x28xf32>
    %857 = vector.broadcast %759 : vector<1x28xf32> to vector<2x28xf32>
    %858 = arith.addf %856, %857 : vector<2x28xf32>
    %cst_418 = arith.constant dense<0.000000e+00> : vector<2x28xf32>
    %859 = tpu.matmul %746, %758, %cst_418 {dimension_numbers = #tpu.dot_dimension_numbers<[1], [0], [0], [1], [0, 0, 1, 1], [], []>} : vector<2x112xf32>, vector<112x28xf32>, vector<2x28xf32> -> vector<2x28xf32>
    %cst_419 = arith.constant dense<0.000000e+00> : vector<2x28xf32>
    %860 = tpu.matmul %752, %754, %cst_419 {dimension_numbers = #tpu.dot_dimension_numbers<[1], [0], [0], [1], [0, 0, 1, 1], [], []>} : vector<2x112xf32>, vector<112x28xf32>, vector<2x28xf32> -> vector<2x28xf32>
    %861 = arith.addf %859, %860 : vector<2x28xf32>
    %862 = vector.broadcast %759 : vector<1x28xf32> to vector<2x28xf32>
    %863 = arith.addf %861, %862 : vector<2x28xf32>
    %cst_420 = arith.constant dense<0.000000e+00> : vector<2x28xf32>
    %864 = tpu.matmul %752, %756, %cst_420 {dimension_numbers = #tpu.dot_dimension_numbers<[1], [0], [0], [1], [0, 0, 1, 1], [], []>} : vector<2x112xf32>, vector<112x28xf32>, vector<2x28xf32> -> vector<2x28xf32>
    %865 = vector.broadcast %759 : vector<1x28xf32> to vector<2x28xf32>
    %866 = arith.addf %864, %865 : vector<2x28xf32>
    %cst_421 = arith.constant dense<0.000000e+00> : vector<2x28xf32>
    %867 = tpu.matmul %752, %758, %cst_421 {dimension_numbers = #tpu.dot_dimension_numbers<[1], [0], [0], [1], [0, 0, 1, 1], [], []>} : vector<2x112xf32>, vector<112x28xf32>, vector<2x28xf32> -> vector<2x28xf32>
    %868 = vector.broadcast %759 : vector<1x28xf32> to vector<2x28xf32>
    %869 = arith.addf %867, %868 : vector<2x28xf32>
    %cst_422 = arith.constant 0.000000e+00 : f32
    %870 = vector.broadcast %cst_422 : f32 to vector<2x28xf32>
    %871 = arith.subf %870, %762 : vector<2x28xf32>
    %872 = math.exp %871 : vector<2x28xf32>
    %cst_423 = arith.constant 1.000000e+00 : f32
    %873 = vector.broadcast %cst_423 : f32 to vector<2x28xf32>
    %874 = arith.addf %873, %872 : vector<2x28xf32>
    %cst_424 = arith.constant 1.000000e+00 : f32
    %875 = vector.broadcast %cst_424 : f32 to vector<2x28xf32>
    %876 = arith.divf %875, %874 : vector<2x28xf32>
    %c0_425 = arith.constant 0 : index
    %c0_426 = arith.constant 0 : index
    %c0_427 = arith.constant 0 : index
    %877 = vector.load %arg31[%c0_425, %c0_426, %c0_427] : memref<28x2x28xf32, #tpu.memory_space<vmem>>, vector<1x2x28xf32>
    %878 = vector.shape_cast %877 : vector<1x2x28xf32> to vector<2x28xf32>
    %879 = vector.shape_cast %876 : vector<2x28xf32> to vector<1x2x28xf32>
    tpu.vector_store %arg31[%c0_425, %c0_426, %c0_427], %879 {strides = array<i32>} : memref<28x2x28xf32, #tpu.memory_space<vmem>>, vector<1x2x28xf32>,
    %cst_428 = arith.constant 0.000000e+00 : f32
    %880 = vector.broadcast %cst_428 : f32 to vector<2x28xf32>
    %881 = arith.subf %880, %767 : vector<2x28xf32>
    %882 = math.exp %881 : vector<2x28xf32>
    %cst_429 = arith.constant 1.000000e+00 : f32
    %883 = vector.broadcast %cst_429 : f32 to vector<2x28xf32>
    %884 = arith.addf %883, %882 : vector<2x28xf32>
    %cst_430 = arith.constant 1.000000e+00 : f32
    %885 = vector.broadcast %cst_430 : f32 to vector<2x28xf32>
    %886 = arith.divf %885, %884 : vector<2x28xf32>
    %c1_431 = arith.constant 1 : index
    %c0_432 = arith.constant 0 : index
    %c0_433 = arith.constant 0 : index
    %887 = vector.load %arg31[%c1_431, %c0_432, %c0_433] : memref<28x2x28xf32, #tpu.memory_space<vmem>>, vector<1x2x28xf32>
    %888 = vector.shape_cast %887 : vector<1x2x28xf32> to vector<2x28xf32>
    %889 = vector.shape_cast %886 : vector<2x28xf32> to vector<1x2x28xf32>
    tpu.vector_store %arg31[%c1_431, %c0_432, %c0_433], %889 {strides = array<i32>} : memref<28x2x28xf32, #tpu.memory_space<vmem>>, vector<1x2x28xf32>,
    %cst_434 = arith.constant 0.000000e+00 : f32
    %890 = vector.broadcast %cst_434 : f32 to vector<2x28xf32>
    %891 = arith.subf %890, %770 : vector<2x28xf32>
    %892 = math.exp %891 : vector<2x28xf32>
    %cst_435 = arith.constant 1.000000e+00 : f32
    %893 = vector.broadcast %cst_435 : f32 to vector<2x28xf32>
    %894 = arith.addf %893, %892 : vector<2x28xf32>
    %cst_436 = arith.constant 1.000000e+00 : f32
    %895 = vector.broadcast %cst_436 : f32 to vector<2x28xf32>
    %896 = arith.divf %895, %894 : vector<2x28xf32>
    %c2_437 = arith.constant 2 : index
    %c0_438 = arith.constant 0 : index
    %c0_439 = arith.constant 0 : index
    %897 = vector.load %arg31[%c2_437, %c0_438, %c0_439] : memref<28x2x28xf32, #tpu.memory_space<vmem>>, vector<1x2x28xf32>
    %898 = vector.shape_cast %897 : vector<1x2x28xf32> to vector<2x28xf32>
    %899 = vector.shape_cast %896 : vector<2x28xf32> to vector<1x2x28xf32>
    tpu.vector_store %arg31[%c2_437, %c0_438, %c0_439], %899 {strides = array<i32>} : memref<28x2x28xf32, #tpu.memory_space<vmem>>, vector<1x2x28xf32>,
    %cst_440 = arith.constant 0.000000e+00 : f32
    %900 = vector.broadcast %cst_440 : f32 to vector<2x28xf32>
    %901 = arith.subf %900, %775 : vector<2x28xf32>
    %902 = math.exp %901 : vector<2x28xf32>
    %cst_441 = arith.constant 1.000000e+00 : f32
    %903 = vector.broadcast %cst_441 : f32 to vector<2x28xf32>
    %904 = arith.addf %903, %902 : vector<2x28xf32>
    %cst_442 = arith.constant 1.000000e+00 : f32
    %905 = vector.broadcast %cst_442 : f32 to vector<2x28xf32>
    %906 = arith.divf %905, %904 : vector<2x28xf32>
    %c3_443 = arith.constant 3 : index
    %c0_444 = arith.constant 0 : index
    %c0_445 = arith.constant 0 : index
    %907 = vector.load %arg31[%c3_443, %c0_444, %c0_445] : memref<28x2x28xf32, #tpu.memory_space<vmem>>, vector<1x2x28xf32>
    %908 = vector.shape_cast %907 : vector<1x2x28xf32> to vector<2x28xf32>
    %909 = vector.shape_cast %906 : vector<2x28xf32> to vector<1x2x28xf32>
    tpu.vector_store %arg31[%c3_443, %c0_444, %c0_445], %909 {strides = array<i32>} : memref<28x2x28xf32, #tpu.memory_space<vmem>>, vector<1x2x28xf32>,
    %cst_446 = arith.constant 0.000000e+00 : f32
    %910 = vector.broadcast %cst_446 : f32 to vector<2x28xf32>
    %911 = arith.subf %910, %778 : vector<2x28xf32>
    %912 = math.exp %911 : vector<2x28xf32>
    %cst_447 = arith.constant 1.000000e+00 : f32
    %913 = vector.broadcast %cst_447 : f32 to vector<2x28xf32>
    %914 = arith.addf %913, %912 : vector<2x28xf32>
    %cst_448 = arith.constant 1.000000e+00 : f32
    %915 = vector.broadcast %cst_448 : f32 to vector<2x28xf32>
    %916 = arith.divf %915, %914 : vector<2x28xf32>
    %c4_449 = arith.constant 4 : index
    %c0_450 = arith.constant 0 : index
    %c0_451 = arith.constant 0 : index
    %917 = vector.load %arg31[%c4_449, %c0_450, %c0_451] : memref<28x2x28xf32, #tpu.memory_space<vmem>>, vector<1x2x28xf32>
    %918 = vector.shape_cast %917 : vector<1x2x28xf32> to vector<2x28xf32>
    %919 = vector.shape_cast %916 : vector<2x28xf32> to vector<1x2x28xf32>
    tpu.vector_store %arg31[%c4_449, %c0_450, %c0_451], %919 {strides = array<i32>} : memref<28x2x28xf32, #tpu.memory_space<vmem>>, vector<1x2x28xf32>,
    %cst_452 = arith.constant 0.000000e+00 : f32
    %920 = vector.broadcast %cst_452 : f32 to vector<2x28xf32>
    %921 = arith.subf %920, %783 : vector<2x28xf32>
    %922 = math.exp %921 : vector<2x28xf32>
    %cst_453 = arith.constant 1.000000e+00 : f32
    %923 = vector.broadcast %cst_453 : f32 to vector<2x28xf32>
    %924 = arith.addf %923, %922 : vector<2x28xf32>
    %cst_454 = arith.constant 1.000000e+00 : f32
    %925 = vector.broadcast %cst_454 : f32 to vector<2x28xf32>
    %926 = arith.divf %925, %924 : vector<2x28xf32>
    %c5_455 = arith.constant 5 : index
    %c0_456 = arith.constant 0 : index
    %c0_457 = arith.constant 0 : index
    %927 = vector.load %arg31[%c5_455, %c0_456, %c0_457] : memref<28x2x28xf32, #tpu.memory_space<vmem>>, vector<1x2x28xf32>
    %928 = vector.shape_cast %927 : vector<1x2x28xf32> to vector<2x28xf32>
    %929 = vector.shape_cast %926 : vector<2x28xf32> to vector<1x2x28xf32>
    tpu.vector_store %arg31[%c5_455, %c0_456, %c0_457], %929 {strides = array<i32>} : memref<28x2x28xf32, #tpu.memory_space<vmem>>, vector<1x2x28xf32>,
    %cst_458 = arith.constant 0.000000e+00 : f32
    %930 = vector.broadcast %cst_458 : f32 to vector<2x28xf32>
    %931 = arith.subf %930, %786 : vector<2x28xf32>
    %932 = math.exp %931 : vector<2x28xf32>
    %cst_459 = arith.constant 1.000000e+00 : f32
    %933 = vector.broadcast %cst_459 : f32 to vector<2x28xf32>
    %934 = arith.addf %933, %932 : vector<2x28xf32>
    %cst_460 = arith.constant 1.000000e+00 : f32
    %935 = vector.broadcast %cst_460 : f32 to vector<2x28xf32>
    %936 = arith.divf %935, %934 : vector<2x28xf32>
    %c6_461 = arith.constant 6 : index
    %c0_462 = arith.constant 0 : index
    %c0_463 = arith.constant 0 : index
    %937 = vector.load %arg31[%c6_461, %c0_462, %c0_463] : memref<28x2x28xf32, #tpu.memory_space<vmem>>, vector<1x2x28xf32>
    %938 = vector.shape_cast %937 : vector<1x2x28xf32> to vector<2x28xf32>
    %939 = vector.shape_cast %936 : vector<2x28xf32> to vector<1x2x28xf32>
    tpu.vector_store %arg31[%c6_461, %c0_462, %c0_463], %939 {strides = array<i32>} : memref<28x2x28xf32, #tpu.memory_space<vmem>>, vector<1x2x28xf32>,
    %cst_464 = arith.constant 0.000000e+00 : f32
    %940 = vector.broadcast %cst_464 : f32 to vector<2x28xf32>
    %941 = arith.subf %940, %791 : vector<2x28xf32>
    %942 = math.exp %941 : vector<2x28xf32>
    %cst_465 = arith.constant 1.000000e+00 : f32
    %943 = vector.broadcast %cst_465 : f32 to vector<2x28xf32>
    %944 = arith.addf %943, %942 : vector<2x28xf32>
    %cst_466 = arith.constant 1.000000e+00 : f32
    %945 = vector.broadcast %cst_466 : f32 to vector<2x28xf32>
    %946 = arith.divf %945, %944 : vector<2x28xf32>
    %c7_467 = arith.constant 7 : index
    %c0_468 = arith.constant 0 : index
    %c0_469 = arith.constant 0 : index
    %947 = vector.load %arg31[%c7_467, %c0_468, %c0_469] : memref<28x2x28xf32, #tpu.memory_space<vmem>>, vector<1x2x28xf32>
    %948 = vector.shape_cast %947 : vector<1x2x28xf32> to vector<2x28xf32>
    %949 = vector.shape_cast %946 : vector<2x28xf32> to vector<1x2x28xf32>
    tpu.vector_store %arg31[%c7_467, %c0_468, %c0_469], %949 {strides = array<i32>} : memref<28x2x28xf32, #tpu.memory_space<vmem>>, vector<1x2x28xf32>,
    %cst_470 = arith.constant 0.000000e+00 : f32
    %950 = vector.broadcast %cst_470 : f32 to vector<2x28xf32>
    %951 = arith.subf %950, %794 : vector<2x28xf32>
    %952 = math.exp %951 : vector<2x28xf32>
    %cst_471 = arith.constant 1.000000e+00 : f32
    %953 = vector.broadcast %cst_471 : f32 to vector<2x28xf32>
    %954 = arith.addf %953, %952 : vector<2x28xf32>
    %cst_472 = arith.constant 1.000000e+00 : f32
    %955 = vector.broadcast %cst_472 : f32 to vector<2x28xf32>
    %956 = arith.divf %955, %954 : vector<2x28xf32>
    %c8_473 = arith.constant 8 : index
    %c0_474 = arith.constant 0 : index
    %c0_475 = arith.constant 0 : index
    %957 = vector.load %arg31[%c8_473, %c0_474, %c0_475] : memref<28x2x28xf32, #tpu.memory_space<vmem>>, vector<1x2x28xf32>
    %958 = vector.shape_cast %957 : vector<1x2x28xf32> to vector<2x28xf32>
    %959 = vector.shape_cast %956 : vector<2x28xf32> to vector<1x2x28xf32>
    tpu.vector_store %arg31[%c8_473, %c0_474, %c0_475], %959 {strides = array<i32>} : memref<28x2x28xf32, #tpu.memory_space<vmem>>, vector<1x2x28xf32>,
    %cst_476 = arith.constant 0.000000e+00 : f32
    %960 = vector.broadcast %cst_476 : f32 to vector<2x28xf32>
    %961 = arith.subf %960, %799 : vector<2x28xf32>
    %962 = math.exp %961 : vector<2x28xf32>
    %cst_477 = arith.constant 1.000000e+00 : f32
    %963 = vector.broadcast %cst_477 : f32 to vector<2x28xf32>
    %964 = arith.addf %963, %962 : vector<2x28xf32>
    %cst_478 = arith.constant 1.000000e+00 : f32
    %965 = vector.broadcast %cst_478 : f32 to vector<2x28xf32>
    %966 = arith.divf %965, %964 : vector<2x28xf32>
    %c9_479 = arith.constant 9 : index
    %c0_480 = arith.constant 0 : index
    %c0_481 = arith.constant 0 : index
    %967 = vector.load %arg31[%c9_479, %c0_480, %c0_481] : memref<28x2x28xf32, #tpu.memory_space<vmem>>, vector<1x2x28xf32>
    %968 = vector.shape_cast %967 : vector<1x2x28xf32> to vector<2x28xf32>
    %969 = vector.shape_cast %966 : vector<2x28xf32> to vector<1x2x28xf32>
    tpu.vector_store %arg31[%c9_479, %c0_480, %c0_481], %969 {strides = array<i32>} : memref<28x2x28xf32, #tpu.memory_space<vmem>>, vector<1x2x28xf32>,
    %cst_482 = arith.constant 0.000000e+00 : f32
    %970 = vector.broadcast %cst_482 : f32 to vector<2x28xf32>
    %971 = arith.subf %970, %802 : vector<2x28xf32>
    %972 = math.exp %971 : vector<2x28xf32>
    %cst_483 = arith.constant 1.000000e+00 : f32
    %973 = vector.broadcast %cst_483 : f32 to vector<2x28xf32>
    %974 = arith.addf %973, %972 : vector<2x28xf32>
    %cst_484 = arith.constant 1.000000e+00 : f32
    %975 = vector.broadcast %cst_484 : f32 to vector<2x28xf32>
    %976 = arith.divf %975, %974 : vector<2x28xf32>
    %c10_485 = arith.constant 10 : index
    %c0_486 = arith.constant 0 : index
    %c0_487 = arith.constant 0 : index
    %977 = vector.load %arg31[%c10_485, %c0_486, %c0_487] : memref<28x2x28xf32, #tpu.memory_space<vmem>>, vector<1x2x28xf32>
    %978 = vector.shape_cast %977 : vector<1x2x28xf32> to vector<2x28xf32>
    %979 = vector.shape_cast %976 : vector<2x28xf32> to vector<1x2x28xf32>
    tpu.vector_store %arg31[%c10_485, %c0_486, %c0_487], %979 {strides = array<i32>} : memref<28x2x28xf32, #tpu.memory_space<vmem>>, vector<1x2x28xf32>,
    %cst_488 = arith.constant 0.000000e+00 : f32
    %980 = vector.broadcast %cst_488 : f32 to vector<2x28xf32>
    %981 = arith.subf %980, %807 : vector<2x28xf32>
    %982 = math.exp %981 : vector<2x28xf32>
    %cst_489 = arith.constant 1.000000e+00 : f32
    %983 = vector.broadcast %cst_489 : f32 to vector<2x28xf32>
    %984 = arith.addf %983, %982 : vector<2x28xf32>
    %cst_490 = arith.constant 1.000000e+00 : f32
    %985 = vector.broadcast %cst_490 : f32 to vector<2x28xf32>
    %986 = arith.divf %985, %984 : vector<2x28xf32>
    %c11_491 = arith.constant 11 : index
    %c0_492 = arith.constant 0 : index
    %c0_493 = arith.constant 0 : index
    %987 = vector.load %arg31[%c11_491, %c0_492, %c0_493] : memref<28x2x28xf32, #tpu.memory_space<vmem>>, vector<1x2x28xf32>
    %988 = vector.shape_cast %987 : vector<1x2x28xf32> to vector<2x28xf32>
    %989 = vector.shape_cast %986 : vector<2x28xf32> to vector<1x2x28xf32>
    tpu.vector_store %arg31[%c11_491, %c0_492, %c0_493], %989 {strides = array<i32>} : memref<28x2x28xf32, #tpu.memory_space<vmem>>, vector<1x2x28xf32>,
    %cst_494 = arith.constant 0.000000e+00 : f32
    %990 = vector.broadcast %cst_494 : f32 to vector<2x28xf32>
    %991 = arith.subf %990, %810 : vector<2x28xf32>
    %992 = math.exp %991 : vector<2x28xf32>
    %cst_495 = arith.constant 1.000000e+00 : f32
    %993 = vector.broadcast %cst_495 : f32 to vector<2x28xf32>
    %994 = arith.addf %993, %992 : vector<2x28xf32>
    %cst_496 = arith.constant 1.000000e+00 : f32
    %995 = vector.broadcast %cst_496 : f32 to vector<2x28xf32>
    %996 = arith.divf %995, %994 : vector<2x28xf32>
    %c12_497 = arith.constant 12 : index
    %c0_498 = arith.constant 0 : index
    %c0_499 = arith.constant 0 : index
    %997 = vector.load %arg31[%c12_497, %c0_498, %c0_499] : memref<28x2x28xf32, #tpu.memory_space<vmem>>, vector<1x2x28xf32>
    %998 = vector.shape_cast %997 : vector<1x2x28xf32> to vector<2x28xf32>
    %999 = vector.shape_cast %996 : vector<2x28xf32> to vector<1x2x28xf32>
    tpu.vector_store %arg31[%c12_497, %c0_498, %c0_499], %999 {strides = array<i32>} : memref<28x2x28xf32, #tpu.memory_space<vmem>>, vector<1x2x28xf32>,
    %cst_500 = arith.constant 0.000000e+00 : f32
    %1000 = vector.broadcast %cst_500 : f32 to vector<2x28xf32>
    %1001 = arith.subf %1000, %815 : vector<2x28xf32>
    %1002 = math.exp %1001 : vector<2x28xf32>
    %cst_501 = arith.constant 1.000000e+00 : f32
    %1003 = vector.broadcast %cst_501 : f32 to vector<2x28xf32>
    %1004 = arith.addf %1003, %1002 : vector<2x28xf32>
    %cst_502 = arith.constant 1.000000e+00 : f32
    %1005 = vector.broadcast %cst_502 : f32 to vector<2x28xf32>
    %1006 = arith.divf %1005, %1004 : vector<2x28xf32>
    %c13_503 = arith.constant 13 : index
    %c0_504 = arith.constant 0 : index
    %c0_505 = arith.constant 0 : index
    %1007 = vector.load %arg31[%c13_503, %c0_504, %c0_505] : memref<28x2x28xf32, #tpu.memory_space<vmem>>, vector<1x2x28xf32>
    %1008 = vector.shape_cast %1007 : vector<1x2x28xf32> to vector<2x28xf32>
    %1009 = vector.shape_cast %1006 : vector<2x28xf32> to vector<1x2x28xf32>
    tpu.vector_store %arg31[%c13_503, %c0_504, %c0_505], %1009 {strides = array<i32>} : memref<28x2x28xf32, #tpu.memory_space<vmem>>, vector<1x2x28xf32>,
    %cst_506 = arith.constant 0.000000e+00 : f32
    %1010 = vector.broadcast %cst_506 : f32 to vector<2x28xf32>
    %1011 = arith.subf %1010, %818 : vector<2x28xf32>
    %1012 = math.exp %1011 : vector<2x28xf32>
    %cst_507 = arith.constant 1.000000e+00 : f32
    %1013 = vector.broadcast %cst_507 : f32 to vector<2x28xf32>
    %1014 = arith.addf %1013, %1012 : vector<2x28xf32>
    %cst_508 = arith.constant 1.000000e+00 : f32
    %1015 = vector.broadcast %cst_508 : f32 to vector<2x28xf32>
    %1016 = arith.divf %1015, %1014 : vector<2x28xf32>
    %c14_509 = arith.constant 14 : index
    %c0_510 = arith.constant 0 : index
    %c0_511 = arith.constant 0 : index
    %1017 = vector.load %arg31[%c14_509, %c0_510, %c0_511] : memref<28x2x28xf32, #tpu.memory_space<vmem>>, vector<1x2x28xf32>
    %1018 = vector.shape_cast %1017 : vector<1x2x28xf32> to vector<2x28xf32>
    %1019 = vector.shape_cast %1016 : vector<2x28xf32> to vector<1x2x28xf32>
    tpu.vector_store %arg31[%c14_509, %c0_510, %c0_511], %1019 {strides = array<i32>} : memref<28x2x28xf32, #tpu.memory_space<vmem>>, vector<1x2x28xf32>,
    %cst_512 = arith.constant 0.000000e+00 : f32
    %1020 = vector.broadcast %cst_512 : f32 to vector<2x28xf32>
    %1021 = arith.subf %1020, %823 : vector<2x28xf32>
    %1022 = math.exp %1021 : vector<2x28xf32>
    %cst_513 = arith.constant 1.000000e+00 : f32
    %1023 = vector.broadcast %cst_513 : f32 to vector<2x28xf32>
    %1024 = arith.addf %1023, %1022 : vector<2x28xf32>
    %cst_514 = arith.constant 1.000000e+00 : f32
    %1025 = vector.broadcast %cst_514 : f32 to vector<2x28xf32>
    %1026 = arith.divf %1025, %1024 : vector<2x28xf32>
    %c15_515 = arith.constant 15 : index
    %c0_516 = arith.constant 0 : index
    %c0_517 = arith.constant 0 : index
    %1027 = vector.load %arg31[%c15_515, %c0_516, %c0_517] : memref<28x2x28xf32, #tpu.memory_space<vmem>>, vector<1x2x28xf32>
    %1028 = vector.shape_cast %1027 : vector<1x2x28xf32> to vector<2x28xf32>
    %1029 = vector.shape_cast %1026 : vector<2x28xf32> to vector<1x2x28xf32>
    tpu.vector_store %arg31[%c15_515, %c0_516, %c0_517], %1029 {strides = array<i32>} : memref<28x2x28xf32, #tpu.memory_space<vmem>>, vector<1x2x28xf32>,
    %cst_518 = arith.constant 0.000000e+00 : f32
    %1030 = vector.broadcast %cst_518 : f32 to vector<2x28xf32>
    %1031 = arith.subf %1030, %826 : vector<2x28xf32>
    %1032 = math.exp %1031 : vector<2x28xf32>
    %cst_519 = arith.constant 1.000000e+00 : f32
    %1033 = vector.broadcast %cst_519 : f32 to vector<2x28xf32>
    %1034 = arith.addf %1033, %1032 : vector<2x28xf32>
    %cst_520 = arith.constant 1.000000e+00 : f32
    %1035 = vector.broadcast %cst_520 : f32 to vector<2x28xf32>
    %1036 = arith.divf %1035, %1034 : vector<2x28xf32>
    %c16_521 = arith.constant 16 : index
    %c0_522 = arith.constant 0 : index
    %c0_523 = arith.constant 0 : index
    %1037 = vector.load %arg31[%c16_521, %c0_522, %c0_523] : memref<28x2x28xf32, #tpu.memory_space<vmem>>, vector<1x2x28xf32>
    %1038 = vector.shape_cast %1037 : vector<1x2x28xf32> to vector<2x28xf32>
    %1039 = vector.shape_cast %1036 : vector<2x28xf32> to vector<1x2x28xf32>
    tpu.vector_store %arg31[%c16_521, %c0_522, %c0_523], %1039 {strides = array<i32>} : memref<28x2x28xf32, #tpu.memory_space<vmem>>, vector<1x2x28xf32>,
    %cst_524 = arith.constant 0.000000e+00 : f32
    %1040 = vector.broadcast %cst_524 : f32 to vector<2x28xf32>
    %1041 = arith.subf %1040, %831 : vector<2x28xf32>
    %1042 = math.exp %1041 : vector<2x28xf32>
    %cst_525 = arith.constant 1.000000e+00 : f32
    %1043 = vector.broadcast %cst_525 : f32 to vector<2x28xf32>
    %1044 = arith.addf %1043, %1042 : vector<2x28xf32>
    %cst_526 = arith.constant 1.000000e+00 : f32
    %1045 = vector.broadcast %cst_526 : f32 to vector<2x28xf32>
    %1046 = arith.divf %1045, %1044 : vector<2x28xf32>
    %c17_527 = arith.constant 17 : index
    %c0_528 = arith.constant 0 : index
    %c0_529 = arith.constant 0 : index
    %1047 = vector.load %arg31[%c17_527, %c0_528, %c0_529] : memref<28x2x28xf32, #tpu.memory_space<vmem>>, vector<1x2x28xf32>
    %1048 = vector.shape_cast %1047 : vector<1x2x28xf32> to vector<2x28xf32>
    %1049 = vector.shape_cast %1046 : vector<2x28xf32> to vector<1x2x28xf32>
    tpu.vector_store %arg31[%c17_527, %c0_528, %c0_529], %1049 {strides = array<i32>} : memref<28x2x28xf32, #tpu.memory_space<vmem>>, vector<1x2x28xf32>,
    %cst_530 = arith.constant 0.000000e+00 : f32
    %1050 = vector.broadcast %cst_530 : f32 to vector<2x28xf32>
    %1051 = arith.subf %1050, %834 : vector<2x28xf32>
    %1052 = math.exp %1051 : vector<2x28xf32>
    %cst_531 = arith.constant 1.000000e+00 : f32
    %1053 = vector.broadcast %cst_531 : f32 to vector<2x28xf32>
    %1054 = arith.addf %1053, %1052 : vector<2x28xf32>
    %cst_532 = arith.constant 1.000000e+00 : f32
    %1055 = vector.broadcast %cst_532 : f32 to vector<2x28xf32>
    %1056 = arith.divf %1055, %1054 : vector<2x28xf32>
    %c18_533 = arith.constant 18 : index
    %c0_534 = arith.constant 0 : index
    %c0_535 = arith.constant 0 : index
    %1057 = vector.load %arg31[%c18_533, %c0_534, %c0_535] : memref<28x2x28xf32, #tpu.memory_space<vmem>>, vector<1x2x28xf32>
    %1058 = vector.shape_cast %1057 : vector<1x2x28xf32> to vector<2x28xf32>
    %1059 = vector.shape_cast %1056 : vector<2x28xf32> to vector<1x2x28xf32>
    tpu.vector_store %arg31[%c18_533, %c0_534, %c0_535], %1059 {strides = array<i32>} : memref<28x2x28xf32, #tpu.memory_space<vmem>>, vector<1x2x28xf32>,
    %cst_536 = arith.constant 0.000000e+00 : f32
    %1060 = vector.broadcast %cst_536 : f32 to vector<2x28xf32>
    %1061 = arith.subf %1060, %839 : vector<2x28xf32>
    %1062 = math.exp %1061 : vector<2x28xf32>
    %cst_537 = arith.constant 1.000000e+00 : f32
    %1063 = vector.broadcast %cst_537 : f32 to vector<2x28xf32>
    %1064 = arith.addf %1063, %1062 : vector<2x28xf32>
    %cst_538 = arith.constant 1.000000e+00 : f32
    %1065 = vector.broadcast %cst_538 : f32 to vector<2x28xf32>
    %1066 = arith.divf %1065, %1064 : vector<2x28xf32>
    %c19_539 = arith.constant 19 : index
    %c0_540 = arith.constant 0 : index
    %c0_541 = arith.constant 0 : index
    %1067 = vector.load %arg31[%c19_539, %c0_540, %c0_541] : memref<28x2x28xf32, #tpu.memory_space<vmem>>, vector<1x2x28xf32>
    %1068 = vector.shape_cast %1067 : vector<1x2x28xf32> to vector<2x28xf32>
    %1069 = vector.shape_cast %1066 : vector<2x28xf32> to vector<1x2x28xf32>
    tpu.vector_store %arg31[%c19_539, %c0_540, %c0_541], %1069 {strides = array<i32>} : memref<28x2x28xf32, #tpu.memory_space<vmem>>, vector<1x2x28xf32>,
    %cst_542 = arith.constant 0.000000e+00 : f32
    %1070 = vector.broadcast %cst_542 : f32 to vector<2x28xf32>
    %1071 = arith.subf %1070, %842 : vector<2x28xf32>
    %1072 = math.exp %1071 : vector<2x28xf32>
    %cst_543 = arith.constant 1.000000e+00 : f32
    %1073 = vector.broadcast %cst_543 : f32 to vector<2x28xf32>
    %1074 = arith.addf %1073, %1072 : vector<2x28xf32>
    %cst_544 = arith.constant 1.000000e+00 : f32
    %1075 = vector.broadcast %cst_544 : f32 to vector<2x28xf32>
    %1076 = arith.divf %1075, %1074 : vector<2x28xf32>
    %c20_545 = arith.constant 20 : index
    %c0_546 = arith.constant 0 : index
    %c0_547 = arith.constant 0 : index
    %1077 = vector.load %arg31[%c20_545, %c0_546, %c0_547] : memref<28x2x28xf32, #tpu.memory_space<vmem>>, vector<1x2x28xf32>
    %1078 = vector.shape_cast %1077 : vector<1x2x28xf32> to vector<2x28xf32>
    %1079 = vector.shape_cast %1076 : vector<2x28xf32> to vector<1x2x28xf32>
    tpu.vector_store %arg31[%c20_545, %c0_546, %c0_547], %1079 {strides = array<i32>} : memref<28x2x28xf32, #tpu.memory_space<vmem>>, vector<1x2x28xf32>,
    %cst_548 = arith.constant 0.000000e+00 : f32
    %1080 = vector.broadcast %cst_548 : f32 to vector<2x28xf32>
    %1081 = arith.subf %1080, %847 : vector<2x28xf32>
    %1082 = math.exp %1081 : vector<2x28xf32>
    %cst_549 = arith.constant 1.000000e+00 : f32
    %1083 = vector.broadcast %cst_549 : f32 to vector<2x28xf32>
    %1084 = arith.addf %1083, %1082 : vector<2x28xf32>
    %cst_550 = arith.constant 1.000000e+00 : f32
    %1085 = vector.broadcast %cst_550 : f32 to vector<2x28xf32>
    %1086 = arith.divf %1085, %1084 : vector<2x28xf32>
    %c21_551 = arith.constant 21 : index
    %c0_552 = arith.constant 0 : index
    %c0_553 = arith.constant 0 : index
    %1087 = vector.load %arg31[%c21_551, %c0_552, %c0_553] : memref<28x2x28xf32, #tpu.memory_space<vmem>>, vector<1x2x28xf32>
    %1088 = vector.shape_cast %1087 : vector<1x2x28xf32> to vector<2x28xf32>
    %1089 = vector.shape_cast %1086 : vector<2x28xf32> to vector<1x2x28xf32>
    tpu.vector_store %arg31[%c21_551, %c0_552, %c0_553], %1089 {strides = array<i32>} : memref<28x2x28xf32, #tpu.memory_space<vmem>>, vector<1x2x28xf32>,
    %cst_554 = arith.constant 0.000000e+00 : f32
    %1090 = vector.broadcast %cst_554 : f32 to vector<2x28xf32>
    %1091 = arith.subf %1090, %850 : vector<2x28xf32>
    %1092 = math.exp %1091 : vector<2x28xf32>
    %cst_555 = arith.constant 1.000000e+00 : f32
    %1093 = vector.broadcast %cst_555 : f32 to vector<2x28xf32>
    %1094 = arith.addf %1093, %1092 : vector<2x28xf32>
    %cst_556 = arith.constant 1.000000e+00 : f32
    %1095 = vector.broadcast %cst_556 : f32 to vector<2x28xf32>
    %1096 = arith.divf %1095, %1094 : vector<2x28xf32>
    %c22_557 = arith.constant 22 : index
    %c0_558 = arith.constant 0 : index
    %c0_559 = arith.constant 0 : index
    %1097 = vector.load %arg31[%c22_557, %c0_558, %c0_559] : memref<28x2x28xf32, #tpu.memory_space<vmem>>, vector<1x2x28xf32>
    %1098 = vector.shape_cast %1097 : vector<1x2x28xf32> to vector<2x28xf32>
    %1099 = vector.shape_cast %1096 : vector<2x28xf32> to vector<1x2x28xf32>
    tpu.vector_store %arg31[%c22_557, %c0_558, %c0_559], %1099 {strides = array<i32>} : memref<28x2x28xf32, #tpu.memory_space<vmem>>, vector<1x2x28xf32>,
    %cst_560 = arith.constant 0.000000e+00 : f32
    %1100 = vector.broadcast %cst_560 : f32 to vector<2x28xf32>
    %1101 = arith.subf %1100, %855 : vector<2x28xf32>
    %1102 = math.exp %1101 : vector<2x28xf32>
    %cst_561 = arith.constant 1.000000e+00 : f32
    %1103 = vector.broadcast %cst_561 : f32 to vector<2x28xf32>
    %1104 = arith.addf %1103, %1102 : vector<2x28xf32>
    %cst_562 = arith.constant 1.000000e+00 : f32
    %1105 = vector.broadcast %cst_562 : f32 to vector<2x28xf32>
    %1106 = arith.divf %1105, %1104 : vector<2x28xf32>
    %c23_563 = arith.constant 23 : index
    %c0_564 = arith.constant 0 : index
    %c0_565 = arith.constant 0 : index
    %1107 = vector.load %arg31[%c23_563, %c0_564, %c0_565] : memref<28x2x28xf32, #tpu.memory_space<vmem>>, vector<1x2x28xf32>
    %1108 = vector.shape_cast %1107 : vector<1x2x28xf32> to vector<2x28xf32>
    %1109 = vector.shape_cast %1106 : vector<2x28xf32> to vector<1x2x28xf32>
    tpu.vector_store %arg31[%c23_563, %c0_564, %c0_565], %1109 {strides = array<i32>} : memref<28x2x28xf32, #tpu.memory_space<vmem>>, vector<1x2x28xf32>,
    %cst_566 = arith.constant 0.000000e+00 : f32
    %1110 = vector.broadcast %cst_566 : f32 to vector<2x28xf32>
    %1111 = arith.subf %1110, %858 : vector<2x28xf32>
    %1112 = math.exp %1111 : vector<2x28xf32>
    %cst_567 = arith.constant 1.000000e+00 : f32
    %1113 = vector.broadcast %cst_567 : f32 to vector<2x28xf32>
    %1114 = arith.addf %1113, %1112 : vector<2x28xf32>
    %cst_568 = arith.constant 1.000000e+00 : f32
    %1115 = vector.broadcast %cst_568 : f32 to vector<2x28xf32>
    %1116 = arith.divf %1115, %1114 : vector<2x28xf32>
    %c24_569 = arith.constant 24 : index
    %c0_570 = arith.constant 0 : index
    %c0_571 = arith.constant 0 : index
    %1117 = vector.load %arg31[%c24_569, %c0_570, %c0_571] : memref<28x2x28xf32, #tpu.memory_space<vmem>>, vector<1x2x28xf32>
    %1118 = vector.shape_cast %1117 : vector<1x2x28xf32> to vector<2x28xf32>
    %1119 = vector.shape_cast %1116 : vector<2x28xf32> to vector<1x2x28xf32>
    tpu.vector_store %arg31[%c24_569, %c0_570, %c0_571], %1119 {strides = array<i32>} : memref<28x2x28xf32, #tpu.memory_space<vmem>>, vector<1x2x28xf32>,
    %cst_572 = arith.constant 0.000000e+00 : f32
    %1120 = vector.broadcast %cst_572 : f32 to vector<2x28xf32>
    %1121 = arith.subf %1120, %863 : vector<2x28xf32>
    %1122 = math.exp %1121 : vector<2x28xf32>
    %cst_573 = arith.constant 1.000000e+00 : f32
    %1123 = vector.broadcast %cst_573 : f32 to vector<2x28xf32>
    %1124 = arith.addf %1123, %1122 : vector<2x28xf32>
    %cst_574 = arith.constant 1.000000e+00 : f32
    %1125 = vector.broadcast %cst_574 : f32 to vector<2x28xf32>
    %1126 = arith.divf %1125, %1124 : vector<2x28xf32>
    %c25_575 = arith.constant 25 : index
    %c0_576 = arith.constant 0 : index
    %c0_577 = arith.constant 0 : index
    %1127 = vector.load %arg31[%c25_575, %c0_576, %c0_577] : memref<28x2x28xf32, #tpu.memory_space<vmem>>, vector<1x2x28xf32>
    %1128 = vector.shape_cast %1127 : vector<1x2x28xf32> to vector<2x28xf32>
    %1129 = vector.shape_cast %1126 : vector<2x28xf32> to vector<1x2x28xf32>
    tpu.vector_store %arg31[%c25_575, %c0_576, %c0_577], %1129 {strides = array<i32>} : memref<28x2x28xf32, #tpu.memory_space<vmem>>, vector<1x2x28xf32>,
    %cst_578 = arith.constant 0.000000e+00 : f32
    %1130 = vector.broadcast %cst_578 : f32 to vector<2x28xf32>
    %1131 = arith.subf %1130, %866 : vector<2x28xf32>
    %1132 = math.exp %1131 : vector<2x28xf32>
    %cst_579 = arith.constant 1.000000e+00 : f32
    %1133 = vector.broadcast %cst_579 : f32 to vector<2x28xf32>
    %1134 = arith.addf %1133, %1132 : vector<2x28xf32>
    %cst_580 = arith.constant 1.000000e+00 : f32
    %1135 = vector.broadcast %cst_580 : f32 to vector<2x28xf32>
    %1136 = arith.divf %1135, %1134 : vector<2x28xf32>
    %c26_581 = arith.constant 26 : index
    %c0_582 = arith.constant 0 : index
    %c0_583 = arith.constant 0 : index
    %1137 = vector.load %arg31[%c26_581, %c0_582, %c0_583] : memref<28x2x28xf32, #tpu.memory_space<vmem>>, vector<1x2x28xf32>
    %1138 = vector.shape_cast %1137 : vector<1x2x28xf32> to vector<2x28xf32>
    %1139 = vector.shape_cast %1136 : vector<2x28xf32> to vector<1x2x28xf32>
    tpu.vector_store %arg31[%c26_581, %c0_582, %c0_583], %1139 {strides = array<i32>} : memref<28x2x28xf32, #tpu.memory_space<vmem>>, vector<1x2x28xf32>,
    %cst_584 = arith.constant 0.000000e+00 : f32
    %1140 = vector.broadcast %cst_584 : f32 to vector<2x28xf32>
    %1141 = arith.subf %1140, %869 : vector<2x28xf32>
    %1142 = math.exp %1141 : vector<2x28xf32>
    %cst_585 = arith.constant 1.000000e+00 : f32
    %1143 = vector.broadcast %cst_585 : f32 to vector<2x28xf32>
    %1144 = arith.addf %1143, %1142 : vector<2x28xf32>
    %cst_586 = arith.constant 1.000000e+00 : f32
    %1145 = vector.broadcast %cst_586 : f32 to vector<2x28xf32>
    %1146 = arith.divf %1145, %1144 : vector<2x28xf32>
    %c27_587 = arith.constant 27 : index
    %c0_588 = arith.constant 0 : index
    %c0_589 = arith.constant 0 : index
    %1147 = vector.load %arg31[%c27_587, %c0_588, %c0_589] : memref<28x2x28xf32, #tpu.memory_space<vmem>>, vector<1x2x28xf32>
    %1148 = vector.shape_cast %1147 : vector<1x2x28xf32> to vector<2x28xf32>
    %1149 = vector.shape_cast %1146 : vector<2x28xf32> to vector<1x2x28xf32>
    tpu.vector_store %arg31[%c27_587, %c0_588, %c0_589], %1149 {strides = array<i32>} : memref<28x2x28xf32, #tpu.memory_space<vmem>>, vector<1x2x28xf32>,
    return
  }
}

</mosaic_0001>

<bundles_post_ra>
// kernel: autoencoder_forward.1
= control target key start
LH: loop header
LB: loop body
LE: loop exit
PB: predicated region body
PF: predicated region fallthrough
CT: control target
= control target key end

     0   :  { %v21799_v0 = vmov 0.0|0.0   ;;  %s21800_s3 = smov 1   ;;  %vm21801_vm0 = vmmov 0   ;;  %v21802_v1 = vmov 0.0   ;;  %vm204_vm1 = vcmask 1043456   ;;  %s21804_s10 = smov 3   ;;  %s25311_s0 = inlined_call_operand.smem [shape: u32[32], index: -1, kind: input, shape index: {}] }
   0x1   :  { %19018 = vmatprep.subr.bf16.mxu1 %v21799_v0  ;;  %s21843_s6 = sld [smem:[%s25311_s0 + %s21800_s3]]   ;;  %19046 = vmatprep.subr.bf16.mxu0 %v21799_v0  ;;  %vm21803_vm2 = vmmov 1   ;;  %vm200_vm4 = vcmask 228352   ;;  %s21805_s14 = smov 2   ;;  %vm3257_vm5 = vcmask 916480   ;;  %vm4738_vm6 = vcmask 910336  }
   0x2   :  { %15092 = vmatprep.mubr.msk.f32.mxu1 %vm21801_vm0, %v21802_v1  ;;  %15136 = vmatprep.mubr.msk.f32.mxu0 %vm21801_vm0, %v21802_v1  ;;  %s21853_s9 = sld [smem:[%s25311_s0]]   ;;  %vm21866_vm3 = vmpackc.low %vm204_vm1, %vm21803_vm2  ;;  %s21806_s18 = smov 27   ;;  %vm4927_vm7 = vcmask 130048   ;;  %vm5839_vm8 = vcmask 785408   ;;  %vm6183_vm9 = vcmask 64512   ;;  %vm12479_vm10 = vcmask 222208  }
   0x3   :  { %s22219_s13 = sld [smem:[%s25311_s0 + %s21804_s10]]   ;;  %s21807_s22 = smov 4  }
   0x4   :  { %s12702_s17 = sld [smem:[%s25311_s0 + %s21805_s14]]   ;;  %s21808_s26 = smov 28  }
   0x5   :  { %s22767_s21 = sld [smem:[%s25311_s0 + %s21806_s18]]   ;;  %s21809_s30 = smov 7  }
   0x6   :  { %s12704_s25 = sld [smem:[%s25311_s0 + %s21807_s22]]   ;;  %s21810_s4 = smov 5  }
   0x7   :  { %v12763_v2 = vld [vmem:[%s21843_s6 + $0x40] sm:$0xff]  ;;  %v12764_v3 = vld [vmem:[%s21843_s6 + $0x48] sm:$0xff]  ;;  %v12765_v4 = vld [vmem:[%s21843_s6 + $0x50] sm:$0xff]  ;;  %s12728_s29 = sld [smem:[%s25311_s0 + %s21808_s26]]   ;;  %s21811_s8 = smov 6  }
   0x8   :  { %v21858_v5 = vpack.c.bf16 %v12764_v3, %v12763_v2  ;;  %v12766_v6 = vld [vmem:[%s21843_s6 + $0x58] sm:$0xf]  ;;  %v12759_v9 = vld [vmem:[%s21843_s6 + $0x20] sm:$0xff]  ;;  %v12760_v10 = vld [vmem:[%s21843_s6 + $0x28] sm:$0xff]  ;;  %s22884_s3 = sld [smem:[%s25311_s0 + %s21809_s30]]   ;;  %s21812_s12 = smov 9  }
   0x9   :  { %v21862_v7 = vpack.c.bf16 %v12766_v6, %v12765_v4  ;;  %v12732_v11 = vld [vmem:[%s21853_s9 + $0x2] sm:$0x3]  ;;  %v21877_v12 = vpack.c.bf16 %v12760_v10, %v12759_v9  ;;  %v186_v14 = vld [vmem:[%s21843_s6 + $0x8] sm:$0xff]  ;;  %v12734_v15 = vld [vmem:[%s21853_s9 + $0x6] sm:$0x3]  ;;  %s12705_s7 = sld [smem:[%s25311_s0 + %s21810_s4]]   ;;  %s21813_s16 = smov 8  }
   0xa   :  { %19020 = vmatpush3.bf16.msra.mxu1 %v21858_v5  ;;  %19048 = vmatpush3.bf16.msra.mxu0 %v21858_v5  ;;  %v185_v13 = vld [vmem:[%s21843_s6] sm:$0xff]  ;;  %v12761_v16 = vld [vmem:[%s21843_s6 + $0x30] sm:$0xff]  ;;  %v12762_v17 = vld [vmem:[%s21843_s6 + $0x38] sm:$0xf]  ;;  %s12706_s11 = sld [smem:[%s25311_s0 + %s21811_s8]]   ;;  %s21814_s20 = smov 11  }
   0xb   :  { %19021 = vmatprep.subr.bf16.mxu1 %v21799_v0  ;;  %19049 = vmatprep.subr.bf16.mxu0 %v21799_v0  ;;  %v21890_v18 = vpack.c.bf16 %v186_v14, %v185_v13  ;;  %v21894_v19 = vpack.c.bf16 %v12762_v17, %v12761_v16  ;;  %v187_v20 = vld [vmem:[%s21843_s6 + $0x10] sm:$0xff]  ;;  %v188_v21 = vld [vmem:[%s21843_s6 + $0x18] sm:$0xf]  ;;  %v130_v23 = vld [vmem:[%s21853_s9] sm:$0x3]  ;;  %s23163_s15 = sld [smem:[%s25311_s0 + %s21812_s12]]   ;;  %s21815_s24 = smov 13  }
   0xc   :  { %v21905_v22 = vpack.c.bf16 %v188_v21, %v187_v20  ;;  %v12733_v24 = vld [vmem:[%s21853_s9 + $0x4] sm:$0x3]  ;;  %v12737_v25 = vld [vmem:[%s21853_s9 + $0xc] sm:$0x3]  ;;  %v12738_v26 = vld [vmem:[%s21853_s9 + $0xe] sm:$0x3]  ;;  %s12708_s19 = sld [smem:[%s25311_s0 + %s21813_s16]]  }
   0xd   :  { %v12735_v27 = vld [vmem:[%s21853_s9 + $0x8] sm:$0x3]  ;;  %v12736_v28 = vld [vmem:[%s21853_s9 + $0xa] sm:$0x3]  ;;  %v12741_v29 = vld [vmem:[%s21853_s9 + $0x14] sm:$0x3]  ;;  %s23234_s23 = sld [smem:[%s25311_s0 + %s21814_s20]]  }
   0xe   :  { %19024 = vmatpush3.bf16.msk.msra.mxu1 %vm21866_vm3, %v21862_v7  ;;  %19052 = vmatpush3.bf16.msk.msra.mxu0 %vm21866_vm3, %v21862_v7  ;;  %v12742_v30 = vld [vmem:[%s21853_s9 + $0x16] sm:$0x3]  ;;  %v12739_v31 = vld [vmem:[%s21853_s9 + $0x10] sm:$0x3]  ;;  %v12740_v32 = vld [vmem:[%s21853_s9 + $0x12] sm:$0x3]  ;;  %s12713_s27 = sld [smem:[%s25311_s0 + %s21815_s24]]  }
   0xf   :  { %19025 = vmatprep.subr.bf16.mxu1 %v21799_v0  ;;  %19060 = vmatprep.subr.bf16.mxu0 %v21799_v0  ;;  %v12745_v33 = vld [vmem:[%s21853_s9 + $0x1c] sm:$0x3]  ;;  %v12746_v34 = vld [vmem:[%s21853_s9 + $0x1e] sm:$0x3]  ;;  %v12743_v35 = vld [vmem:[%s21853_s9 + $0x18] sm:$0x3] }
  0x10   :  { %v12744_v36 = vld [vmem:[%s21853_s9 + $0x1a] sm:$0x3]  ;;  %v12749_v37 = vld [vmem:[%s21853_s9 + $0x24] sm:$0x3]  ;;  %v12750_v38 = vld [vmem:[%s21853_s9 + $0x26] sm:$0x3] }
  0x11   :  { %15093 = vmatmul.mubr.msk.f32.vlgmr.msra.gmra.mrb[0].mxu1 %vm200_vm4, %v12732_v11  ;;  %15137 = vmatmul.mubr.msk.f32.vlgmr.msra.gmra.mrb[0].mxu0 %vm200_vm4, %v12734_v15  ;;  %v12747_v39 = vld [vmem:[%s21853_s9 + $0x20] sm:$0x3]  ;;  %v12748_v40 = vld [vmem:[%s21853_s9 + $0x22] sm:$0x3]  ;;  %v12753_v41 = vld [vmem:[%s21853_s9 + $0x2c] sm:$0x3] }
  0x12   :  { %19027 = vmatpush3.bf16.msra.mxu1 %v21877_v12  ;;  %15103 = vmatprep.mubr.msk.f32.mxu1 %vm21801_vm0, %v21802_v1  ;;  %v12754_v42 = vld [vmem:[%s21853_s9 + $0x2e] sm:$0x3]  ;;  %v12751_v43 = vld [vmem:[%s21853_s9 + $0x28] sm:$0x3]  ;;  %v12752_v44 = vld [vmem:[%s21853_s9 + $0x2a] sm:$0x3] }
  0x13   :  { %19028 = vmatprep.subr.bf16.mxu1 %v21799_v0  ;;  %19062 = vmatpush3.bf16.msra.mxu0 %v21890_v18  ;;  %v12757_v45 = vld [vmem:[%s21853_s9 + $0x34] sm:$0x3]  ;;  %v12851_v47 = vld [vmem:[%s22219_s13 + $0x78] sm:$0xff]  ;;  %v12758_v48 = vld [vmem:[%s21853_s9 + $0x36] sm:$0x3]  ;;  %s21816_s28 = smov 10  }
  0x14   :  { %19063 = vmatprep.subr.bf16.mxu0 %v21799_v0  ;;  %15158 = vmatprep.mubr.msk.f32.mxu0 %vm21801_vm0, %v21802_v1  ;;  %v12850_v46 = vld [vmem:[%s22219_s13 + $0x70] sm:$0xff]  ;;  %v12852_v50 = vld [vmem:[%s22219_s13 + $0x80] sm:$0xff]  ;;  %v12853_v51 = vld [vmem:[%s22219_s13 + $0x88] sm:$0xff]  ;;  %s12710_s1 = sld [smem:[%s25311_s0 + %s21816_s28]]   ;;  %s21817_s2 = smov 15  }
  0x15   :  { %v22251_v49 = vpack.c.bf16 %v12851_v47, %v12850_v46  ;;  %v22263_v52 = vpack.c.bf16 %v12853_v51, %v12852_v50  ;;  %v12854_v53 = vld [vmem:[%s22219_s13 + $0x90] sm:$0xff]  ;;  %v12855_v54 = vld [vmem:[%s22219_s13 + $0x98] sm:$0xff]  ;;  %v12856_v57 = vld [vmem:[%s22219_s13 + $0xa0] sm:$0xff]  ;;  %s23272_s5 = sld [smem:[%s25311_s0 + %s21817_s2]]   ;;  %s21818_s6 = smov 12  }
  0x16   :  { %19031 = vmatpush3.bf16.msk.msra.mxu1 %vm21866_vm3, %v21894_v19  ;;  %v12755_v55 = vld [vmem:[%s21853_s9 + $0x30] sm:$0x3]  ;;  %v22276_v56 = vpack.c.bf16 %v12855_v54, %v12854_v53  ;;  %v12857_v58 = vld [vmem:[%s22219_s13 + $0xa8] sm:$0xff]  ;;  %v12859_v61 = vld [vmem:[%s22219_s13 + $0xb8] sm:$0xff]  ;;  %s21819_s10 = smov 14   ;;  %s21820_s14 = smov 17  }
  0x17   :  { %19032 = vmatprep.subr.bf16.mxu1 %v21799_v0  ;;  %19066 = vmatpush3.bf16.msk.msra.mxu0 %vm21866_vm3, %v21905_v22  ;;  %v22287_v59 = vpack.c.bf16 %v12857_v58, %v12856_v57  ;;  %v12858_v60 = vld [vmem:[%s22219_s13 + $0xb0] sm:$0xff]  ;;  %v12860_v2 = vld [vmem:[%s22219_s13 + $0xc0] sm:$0xff]  ;;  %v12861_v3 = vld [vmem:[%s22219_s13 + $0xc8] sm:$0xff]  ;;  %s21821_s18 = smov 16   ;;  %s21822_s22 = smov 18  }
  0x18   :  { %19074 = vmatprep.subr.bf16.mxu0 %v21799_v0  ;;  %v12756_v62 = vld [vmem:[%s21853_s9 + $0x32] sm:$0x3]  ;;  %v22298_v63 = vpack.c.bf16 %v12859_v61, %v12858_v60  ;;  %v12864_v4 = vld [vmem:[%s22219_s13 + $0xe0] sm:$0xff]  ;;  %v22311_v6 = vpack.c.bf16 %v12861_v3, %v12860_v2  ;;  %v12863_v9 = vld [vmem:[%s22219_s13 + $0xd8] sm:$0xff]  ;;  %s12712_s9 = sld [smem:[%s25311_s0 + %s21818_s6]]   ;;  %s21823_s26 = smov 21  }
  0x19   :  { %15104 = vmatmul.mubr.msk.f32.vlgmr.msra.gmra.mrb[2].mxu1 %vm200_vm4, %v130_v23  ;;  %v12868_v14 = vld [vmem:[%s22219_s13 + $0x100] sm:$0xff]  ;;  %v12870_v17 = vld [vmem:[%s22219_s13 + $0x110] sm:$0xff]  ;;  %v12873_v21 = vld [vmem:[%s22219_s13 + $0x128] sm:$0xff]  ;;  %s21824_s30 = smov 19   ;;  %s21825_s4 = smov 20  }
  0x1a   :  { %19034 = vmatpush3.bf16.msra.mxu1 %v21877_v12  ;;  %15114 = vmatprep.mubr.msk.f32.mxu1 %vm21801_vm0, %v21802_v1  ;;  %v12872_v20 = vld [vmem:[%s22219_s13 + $0x120] sm:$0xff]  ;;  %v12874_v23 = vld [vmem:[%s22219_s13 + $0x130] sm:$0xff]  ;;  %v3217_v51 = vld [vmem:[%s22219_s13 + $0x28] sm:$0xff]  ;;  %s21826_s8 = smov 29   ;;  %s21827_s12 = smov 22  }
  0x1b   :  { %19035 = vmatprep.subr.bf16.mxu1 %v21799_v0  ;;  %15159 = vmatmul.mubr.msk.f32.vlgmr.msra.gmra.mrb[2].mxu0 %vm200_vm4, %v12734_v15  ;;  %v12869_v15 = vld [vmem:[%s22219_s13 + $0x108] sm:$0xff]  ;;  %v3216_v50 = vld [vmem:[%s22219_s13 + $0x20] sm:$0xff]  ;;  %v3218_v57 = vld [vmem:[%s22219_s13 + $0x30] sm:$0xff]  ;;  %s21828_s16 = smov 30   ;;  %s21829_s20 = smov 25  }
  0x1c   :  { %19076 = vmatpush3.bf16.msra.mxu0 %v21877_v12  ;;  %15180 = vmatprep.mubr.msk.f32.mxu0 %vm21801_vm0, %v21802_v1  ;;  %v22340_v16 = vpack.c.bf16 %v12869_v15, %v12868_v14  ;;  %v3219_v58 = vld [vmem:[%s22219_s13 + $0x38] sm:$0xff]  ;;  %v3220_v3 = vld [vmem:[%s22219_s13 + $0x40] sm:$0xff]  ;;  %v3222_v14 = vld [vmem:[%s22219_s13 + $0x50] sm:$0xff]  ;;  %s21830_s24 = smov 23   ;;  %s21831_s28 = smov 24  }
  0x1d   :  { %19077 = vmatprep.subr.bf16.mxu0 %v21799_v0  ;;  %v22397_v61 = vpack.c.bf16 %v3219_v58, %v3218_v57  ;;  %v3223_v15 = vld [vmem:[%s22219_s13 + $0x58] sm:$0xff]  ;;  %s21832_s2 = smov 26   ;;  %s21833_s6 = smov 31  }
  0x1e   :  { %19038 = vmatpush3.bf16.msk.msra.mxu1 %vm21866_vm3, %v21894_v19 }
  0x1f   :  { %19039 = vmatprep.subr.bf16.mxu1 %v21799_v0 }
  0x20   :  { %19080 = vmatpush3.bf16.msk.msra.mxu0 %vm21866_vm3, %v21894_v19 }
  0x21   :  { %15115 = vmatmul.mubr.msk.f32.vlgmr.msra.gmra.mrb[4].mxu1 %vm200_vm4, %v12733_v24  ;;  %19088 = vmatprep.subr.bf16.mxu0 %v21799_v0  ;;  %v12875_v24 = vld [vmem:[%s22219_s13 + $0x138] sm:$0xff] }
  0x22   :  { %19041 = vmatpush3.bf16.msra.mxu1 %v21890_v18  ;;  %15125 = vmatprep.mubr.msk.f32.mxu1 %vm21801_vm0, %v21802_v1 }
  0x23   :  { %19042 = vmatprep.subr.bf16.mxu1 %v21799_v0  ;;  %15181 = vmatmul.mubr.msk.f32.vlgmr.msra.gmra.mrb[4].mxu0 %vm200_vm4, %v12737_v25  ;;  %v22358_v25 = vpack.c.bf16 %v12875_v24, %v12874_v23  ;;  %v3225_v23 = vld [vmem:[%s22219_s13 + $0x68] sm:$0xff] }
  0x24   :  { %19090 = vmatpush3.bf16.msra.mxu0 %v21858_v5  ;;  %15202 = vmatprep.mubr.msk.f32.mxu0 %vm21801_vm0, %v21802_v1 }
  0x25   :  { %19091 = vmatprep.subr.bf16.mxu0 %v21799_v0 }
  0x26   :  { %19045 = vmatpush3.bf16.msk.msra.mxu1 %vm21866_vm3, %v21905_v22 }
  0x27   :  { %19053 = vmatprep.subr.bf16.mxu1 %v21799_v0 }
  0x28   :  { %19094 = vmatpush3.bf16.msk.msra.mxu0 %vm21866_vm3, %v21862_v7 }
  0x29   :  { %15126 = vmatmul.mubr.msk.f32.vlgmr.msra.gmra.mrb[6].mxu1 %vm200_vm4, %v12732_v11  ;;  %19102 = vmatprep.subr.bf16.mxu0 %v21799_v0  ;;  %v12866_v11 = vld [vmem:[%s22219_s13 + $0xf0] sm:$0xff] }
  0x2a   :  { %19055 = vmatpush3.bf16.msra.mxu1 %v21877_v12  ;;  %15147 = vmatprep.mubr.msk.f32.mxu1 %vm21801_vm0, %v21802_v1 }
  0x2b   :  { %19056 = vmatprep.subr.bf16.mxu1 %v21799_v0  ;;  %15203 = vmatmul.mubr.msk.f32.vlgmr.msra.gmra.mrb[6].mxu0 %vm200_vm4, %v12738_v26 }
  0x2c   :  { %19104 = vmatpush3.bf16.msra.mxu0 %v21890_v18  ;;  %15224 = vmatprep.mubr.msk.f32.mxu0 %vm21801_vm0, %v21802_v1 }
  0x2d   :  { %19105 = vmatprep.subr.bf16.mxu0 %v21799_v0 }
  0x2e   :  { %19059 = vmatpush3.bf16.msk.msra.mxu1 %vm21866_vm3, %v21894_v19 }
  0x2f   :  { %19067 = vmatprep.subr.bf16.mxu1 %v21799_v0 }
  0x30   :  { %19108 = vmatpush3.bf16.msk.msra.mxu0 %vm21866_vm3, %v21905_v22 }
  0x31   :  { %15148 = vmatmul.mubr.msk.f32.vlgmr.msra.gmra.mrb[8].mxu1 %vm200_vm4, %v12735_v27  ;;  %19116 = vmatprep.subr.bf16.mxu0 %v21799_v0  ;;  %v12877_v27 = vld [vmem:[%s22219_s13 + $0x148] sm:$0xff] }
  0x32   :  { %19069 = vmatpush3.bf16.msra.mxu1 %v21858_v5  ;;  %15169 = vmatprep.mubr.msk.f32.mxu1 %vm21801_vm0, %v21802_v1 }
  0x33   :  { %19070 = vmatprep.subr.bf16.mxu1 %v21799_v0  ;;  %15225 = vmatmul.mubr.msk.f32.vlgmr.msra.gmra.mrb[8].mxu0 %vm200_vm4, %v12738_v26  ;;  %v12876_v26 = vld [vmem:[%s22219_s13 + $0x140] sm:$0xff] }
  0x34   :  { %19118 = vmatpush3.bf16.msra.mxu0 %v21877_v12  ;;  %15246 = vmatprep.mubr.msk.f32.mxu0 %vm21801_vm0, %v21802_v1 }
  0x35   :  { %19119 = vmatprep.subr.bf16.mxu0 %v21799_v0 }
  0x36   :  { %19073 = vmatpush3.bf16.msk.msra.mxu1 %vm21866_vm3, %v21862_v7 }
  0x37   :  { %19081 = vmatprep.subr.bf16.mxu1 %v21799_v0 }
  0x38   :  { %19122 = vmatpush3.bf16.msk.msra.mxu0 %vm21866_vm3, %v21894_v19 }
  0x39   :  { %15170 = vmatmul.mubr.msk.f32.vlgmr.msra.gmra.mrb[10].mxu1 %vm200_vm4, %v12736_v28  ;;  %19130 = vmatprep.subr.bf16.mxu0 %v21799_v0 }
  0x3a   :  { %19083 = vmatpush3.bf16.msra.mxu1 %v21890_v18  ;;  %15191 = vmatprep.mubr.msk.f32.mxu1 %vm21801_vm0, %v21802_v1 }
  0x3b   :  { %19084 = vmatprep.subr.bf16.mxu1 %v21799_v0  ;;  %15247 = vmatmul.mubr.msk.f32.vlgmr.msra.gmra.mrb[10].mxu0 %vm200_vm4, %v12741_v29 }
  0x3c   :  { %19132 = vmatpush3.bf16.msra.mxu0 %v21858_v5  ;;  %15268 = vmatprep.mubr.msk.f32.mxu0 %vm21801_vm0, %v21802_v1 }
  0x3d   :  { %19133 = vmatprep.subr.bf16.mxu0 %v21799_v0 }
  0x3e   :  { %19087 = vmatpush3.bf16.msk.msra.mxu1 %vm21866_vm3, %v21905_v22 }
  0x3f   :  { %19095 = vmatprep.subr.bf16.mxu1 %v21799_v0 }
  0x40   :  { %19136 = vmatpush3.bf16.msk.msra.mxu0 %vm21866_vm3, %v21862_v7 }
  0x41   :  { %15192 = vmatmul.mubr.msk.f32.vlgmr.msra.gmra.mrb[12].mxu1 %vm200_vm4, %v12736_v28  ;;  %19144 = vmatprep.subr.bf16.mxu0 %v21799_v0  ;;  %v22364_v28 = vpack.c.bf16 %v12877_v27, %v12876_v26 }
  0x42   :  { %19097 = vmatpush3.bf16.msra.mxu1 %v21877_v12  ;;  %15213 = vmatprep.mubr.msk.f32.mxu1 %vm21801_vm0, %v21802_v1 }
  0x43   :  { %19098 = vmatprep.subr.bf16.mxu1 %v21799_v0  ;;  %15269 = vmatmul.mubr.msk.f32.vlgmr.msra.gmra.mrb[12].mxu0 %vm200_vm4, %v12742_v30 }
  0x44   :  { %19146 = vmatpush3.bf16.msra.mxu0 %v21890_v18  ;;  %15290 = vmatprep.mubr.msk.f32.mxu0 %vm21801_vm0, %v21802_v1 }
  0x45   :  { %19147 = vmatprep.subr.bf16.mxu0 %v21799_v0 }
  0x46   :  { %19101 = vmatpush3.bf16.msk.msra.mxu1 %vm21866_vm3, %v21894_v19 }
  0x47   :  { %19109 = vmatprep.subr.bf16.mxu1 %v21799_v0 }
  0x48   :  { %19150 = vmatpush3.bf16.msk.msra.mxu0 %vm21866_vm3, %v21905_v22 }
  0x49   :  { %15214 = vmatmul.mubr.msk.f32.vlgmr.msra.gmra.mrb[14].mxu1 %vm200_vm4, %v12739_v31  ;;  %19158 = vmatprep.subr.bf16.mxu0 %v21799_v0 }
  0x4a   :  { %19111 = vmatpush3.bf16.msra.mxu1 %v21858_v5  ;;  %15235 = vmatprep.mubr.msk.f32.mxu1 %vm21801_vm0, %v21802_v1 }
  0x4b   :  { %19112 = vmatprep.subr.bf16.mxu1 %v21799_v0  ;;  %15291 = vmatmul.mubr.msk.f32.vlgmr.msra.gmra.mrb[14].mxu0 %vm200_vm4, %v12742_v30 }
  0x4c   :  { %19160 = vmatpush3.bf16.msra.mxu0 %v21877_v12  ;;  %15312 = vmatprep.mubr.msk.f32.mxu0 %vm21801_vm0, %v21802_v1 }
  0x4d   :  { %19161 = vmatprep.subr.bf16.mxu0 %v21799_v0 }
  0x4e   :  { %19115 = vmatpush3.bf16.msk.msra.mxu1 %vm21866_vm3, %v21862_v7 }
  0x4f   :  { %19123 = vmatprep.subr.bf16.mxu1 %v21799_v0 }
  0x50   :  { %19164 = vmatpush3.bf16.msk.msra.mxu0 %vm21866_vm3, %v21894_v19 }
  0x51   :  { %15236 = vmatmul.mubr.msk.f32.vlgmr.msra.gmra.mrb[16].mxu1 %vm200_vm4, %v12740_v32  ;;  %19172 = vmatprep.subr.bf16.mxu0 %v21799_v0 }
  0x52   :  { %19125 = vmatpush3.bf16.msra.mxu1 %v21890_v18  ;;  %15257 = vmatprep.mubr.msk.f32.mxu1 %vm21801_vm0, %v21802_v1 }
  0x53   :  { %19126 = vmatprep.subr.bf16.mxu1 %v21799_v0  ;;  %15313 = vmatmul.mubr.msk.f32.vlgmr.msra.gmra.mrb[16].mxu0 %vm200_vm4, %v12745_v33  ;;  %v22372_v33 = vld [vmem:[%s12702_s17] ss:$0 sm:$0xff]  ;;  %s23334_s17 = sld [smem:[%s25311_s0 + %s21820_s14]]  }
  0x54   :  { %19174 = vmatpush3.bf16.msra.mxu0 %v21858_v5  ;;  %15334 = vmatprep.mubr.msk.f32.mxu0 %vm21801_vm0, %v21802_v1 }
  0x55   :  { %19175 = vmatprep.subr.bf16.mxu0 %v21799_v0 }
  0x56   :  { %19129 = vmatpush3.bf16.msk.msra.mxu1 %vm21866_vm3, %v21905_v22 }
  0x57   :  { %19137 = vmatprep.subr.bf16.mxu1 %v21799_v0 }
  0x58   :  { %19178 = vmatpush3.bf16.msk.msra.mxu0 %vm21866_vm3, %v21862_v7 }
  0x59   :  { %15258 = vmatmul.mubr.msk.f32.vlgmr.msra.gmra.mrb[18].mxu1 %vm200_vm4, %v12740_v32  ;;  %19186 = vmatprep.subr.bf16.mxu0 %v21799_v0 }
  0x5a   :  { %19139 = vmatpush3.bf16.msra.mxu1 %v21877_v12  ;;  %15279 = vmatprep.mubr.msk.f32.mxu1 %vm21801_vm0, %v21802_v1 }
  0x5b   :  { %19140 = vmatprep.subr.bf16.mxu1 %v21799_v0  ;;  %15335 = vmatmul.mubr.msk.f32.vlgmr.msra.gmra.mrb[18].mxu0 %vm200_vm4, %v12746_v34 }
  0x5c   :  { %19188 = vmatpush3.bf16.msra.mxu0 %v21890_v18  ;;  %15356 = vmatprep.mubr.msk.f32.mxu0 %vm21801_vm0, %v21802_v1 }
  0x5d   :  { %19189 = vmatprep.subr.bf16.mxu0 %v21799_v0 }
  0x5e   :  { %19143 = vmatpush3.bf16.msk.msra.mxu1 %vm21866_vm3, %v21894_v19 }
  0x5f   :  { %19151 = vmatprep.subr.bf16.mxu1 %v21799_v0 }
  0x60   :  { %19192 = vmatpush3.bf16.msk.msra.mxu0 %vm21866_vm3, %v21905_v22 }
  0x61   :  { %15280 = vmatmul.mubr.msk.f32.vlgmr.msra.gmra.mrb[20].mxu1 %vm200_vm4, %v12743_v35  ;;  %19200 = vmatprep.subr.bf16.mxu0 %v21799_v0 }
  0x62   :  { %19153 = vmatpush3.bf16.msra.mxu1 %v21858_v5  ;;  %15301 = vmatprep.mubr.msk.f32.mxu1 %vm21801_vm0, %v21802_v1 }
  0x63   :  { %19154 = vmatprep.subr.bf16.mxu1 %v21799_v0  ;;  %15357 = vmatmul.mubr.msk.f32.vlgmr.msra.gmra.mrb[20].mxu0 %vm200_vm4, %v12746_v34 }
  0x64   :  { %19202 = vmatpush3.bf16.msra.mxu0 %v21877_v12  ;;  %15378 = vmatprep.mubr.msk.f32.mxu0 %vm21801_vm0, %v21802_v1 }
  0x65   :  { %19203 = vmatprep.subr.bf16.mxu0 %v21799_v0 }
  0x66   :  { %19157 = vmatpush3.bf16.msk.msra.mxu1 %vm21866_vm3, %v21862_v7 }
  0x67   :  { %19165 = vmatprep.subr.bf16.mxu1 %v21799_v0 }
  0x68   :  { %19206 = vmatpush3.bf16.msk.msra.mxu0 %vm21866_vm3, %v21894_v19 }
  0x69   :  { %15302 = vmatmul.mubr.msk.f32.vlgmr.msra.gmra.mrb[22].mxu1 %vm200_vm4, %v12744_v36  ;;  %19214 = vmatprep.subr.bf16.mxu0 %v21799_v0 }
  0x6a   :  { %19167 = vmatpush3.bf16.msra.mxu1 %v21890_v18  ;;  %15323 = vmatprep.mubr.msk.f32.mxu1 %vm21801_vm0, %v21802_v1 }
  0x6b   :  { %19168 = vmatprep.subr.bf16.mxu1 %v21799_v0  ;;  %15379 = vmatmul.mubr.msk.f32.vlgmr.msra.gmra.mrb[22].mxu0 %vm200_vm4, %v12749_v37  ;;  %v3212_v37 = vld [vmem:[%s22219_s13] sm:$0xff] }
  0x6c   :  { %19216 = vmatpush3.bf16.msra.mxu0 %v21858_v5  ;;  %15400 = vmatprep.mubr.msk.f32.mxu0 %vm21801_vm0, %v21802_v1 }
  0x6d   :  { %19217 = vmatprep.subr.bf16.mxu0 %v21799_v0 }
  0x6e   :  { %19171 = vmatpush3.bf16.msk.msra.mxu1 %vm21866_vm3, %v21905_v22 }
  0x6f   :  { %19179 = vmatprep.subr.bf16.mxu1 %v21799_v0 }
  0x70   :  { %19220 = vmatpush3.bf16.msk.msra.mxu0 %vm21866_vm3, %v21862_v7 }
  0x71   :  { %15324 = vmatmul.mubr.msk.f32.vlgmr.msra.gmra.mrb[24].mxu1 %vm200_vm4, %v12744_v36  ;;  %19228 = vmatprep.subr.bf16.mxu0 %v21799_v0 }
  0x72   :  { %19181 = vmatpush3.bf16.msra.mxu1 %v21877_v12  ;;  %15345 = vmatprep.mubr.msk.f32.mxu1 %vm21801_vm0, %v21802_v1 }
  0x73   :  { %19182 = vmatprep.subr.bf16.mxu1 %v21799_v0  ;;  %15401 = vmatmul.mubr.msk.f32.vlgmr.msra.gmra.mrb[24].mxu0 %vm200_vm4, %v12750_v38 }
  0x74   :  { %19230 = vmatpush3.bf16.msra.mxu0 %v21890_v18  ;;  %15422 = vmatprep.mubr.msk.f32.mxu0 %vm21801_vm0, %v21802_v1 }
  0x75   :  { %19231 = vmatprep.subr.bf16.mxu0 %v21799_v0 }
  0x76   :  { %19185 = vmatpush3.bf16.msk.msra.mxu1 %vm21866_vm3, %v21894_v19 }
  0x77   :  { %19193 = vmatprep.subr.bf16.mxu1 %v21799_v0 }
  0x78   :  { %19234 = vmatpush3.bf16.msk.msra.mxu0 %vm21866_vm3, %v21905_v22 }
  0x79   :  { %15346 = vmatmul.mubr.msk.f32.vlgmr.msra.gmra.mrb[26].mxu1 %vm200_vm4, %v12747_v39  ;;  %19242 = vmatprep.subr.bf16.mxu0 %v21799_v0 }
  0x7a   :  { %19195 = vmatpush3.bf16.msra.mxu1 %v21858_v5  ;;  %15367 = vmatprep.mubr.msk.f32.mxu1 %vm21801_vm0, %v21802_v1 }
  0x7b   :  { %19196 = vmatprep.subr.bf16.mxu1 %v21799_v0  ;;  %15423 = vmatmul.mubr.msk.f32.vlgmr.msra.gmra.mrb[26].mxu0 %vm200_vm4, %v12750_v38  ;;  %v3213_v38 = vld [vmem:[%s22219_s13 + $0x8] sm:$0xff] }
  0x7c   :  { %19244 = vmatpush3.bf16.msra.mxu0 %v21877_v12  ;;  %15444 = vmatprep.mubr.msk.f32.mxu0 %vm21801_vm0, %v21802_v1 }
  0x7d   :  { %19245 = vmatprep.subr.bf16.mxu0 %v21799_v0 }
  0x7e   :  { %19199 = vmatpush3.bf16.msk.msra.mxu1 %vm21866_vm3, %v21862_v7 }
  0x7f   :  { %19207 = vmatprep.subr.bf16.mxu1 %v21799_v0 }
  0x80   :  { %19248 = vmatpush3.bf16.msk.msra.mxu0 %vm21866_vm3, %v21894_v19 }
  0x81   :  { %15368 = vmatmul.mubr.msk.f32.vlgmr.msra.gmra.mrb[28].mxu1 %vm200_vm4, %v12748_v40  ;;  %19256 = vmatprep.subr.bf16.mxu0 %v21799_v0 }
  0x82   :  { %19209 = vmatpush3.bf16.msra.mxu1 %v21890_v18  ;;  %15389 = vmatprep.mubr.msk.f32.mxu1 %vm21801_vm0, %v21802_v1 }
  0x83   :  { %19210 = vmatprep.subr.bf16.mxu1 %v21799_v0  ;;  %15445 = vmatmul.mubr.msk.f32.vlgmr.msra.gmra.mrb[28].mxu0 %vm200_vm4, %v12753_v41 }
  0x84   :  { %19258 = vmatpush3.bf16.msra.mxu0 %v21858_v5  ;;  %15466 = vmatprep.mubr.msk.f32.mxu0 %vm21801_vm0, %v21802_v1 }
  0x85   :  { %19259 = vmatprep.subr.bf16.mxu0 %v21799_v0 }
  0x86   :  { %19213 = vmatpush3.bf16.msk.msra.mxu1 %vm21866_vm3, %v21905_v22 }
  0x87   :  { %19221 = vmatprep.subr.bf16.mxu1 %v21799_v0 }
  0x88   :  { %19262 = vmatpush3.bf16.msk.msra.mxu0 %vm21866_vm3, %v21862_v7 }
  0x89   :  { %15390 = vmatmul.mubr.msk.f32.vlgmr.msra.gmra.mrb[30].mxu1 %vm200_vm4, %v12748_v40  ;;  %19270 = vmatprep.subr.bf16.mxu0 %v21799_v0 }
  0x8a   :  { %19223 = vmatpush3.bf16.msra.mxu1 %v21877_v12  ;;  %15411 = vmatprep.mubr.msk.f32.mxu1 %vm21801_vm0, %v21802_v1 }
  0x8b   :  { %19224 = vmatprep.subr.bf16.mxu1 %v21799_v0  ;;  %15467 = vmatmul.mubr.msk.f32.vlgmr.msra.gmra.mrb[30].mxu0 %vm200_vm4, %v12754_v42 }
  0x8c   :  { %19272 = vmatpush3.bf16.msra.mxu0 %v21890_v18  ;;  %15488 = vmatprep.mubr.msk.f32.mxu0 %vm21801_vm0, %v21802_v1 }
  0x8d   :  { %19273 = vmatprep.subr.bf16.mxu0 %v21799_v0 }
  0x8e   :  { %19227 = vmatpush3.bf16.msk.msra.mxu1 %vm21866_vm3, %v21894_v19 }
  0x8f   :  { %19235 = vmatprep.subr.bf16.mxu1 %v21799_v0 }
  0x90   :  { %19276 = vmatpush3.bf16.msk.msra.mxu0 %vm21866_vm3, %v21905_v22 }
  0x91   :  { %15412 = vmatmul.mubr.msk.f32.vlgmr.msra.gmra.mrb[32].mxu1 %vm200_vm4, %v12751_v43  ;;  %19284 = vmatprep.subr.bf16.mxu0 %v21799_v0 }
  0x92   :  { %19237 = vmatpush3.bf16.msra.mxu1 %v21858_v5  ;;  %15433 = vmatprep.mubr.msk.f32.mxu1 %vm21801_vm0, %v21802_v1 }
  0x93   :  { %19238 = vmatprep.subr.bf16.mxu1 %v21799_v0  ;;  %15489 = vmatmul.mubr.msk.f32.vlgmr.msra.gmra.mrb[32].mxu0 %vm200_vm4, %v12754_v42  ;;  %v22377_v42 = vpack.c.bf16 %v3213_v38, %v3212_v37 }
  0x94   :  { %19286 = vmatpush3.bf16.msra.mxu0 %v21877_v12  ;;  %15510 = vmatprep.mubr.msk.f32.mxu0 %vm21801_vm0, %v21802_v1 }
  0x95   :  { %19287 = vmatprep.subr.bf16.mxu0 %v21799_v0 }
  0x96   :  { %19241 = vmatpush3.bf16.msk.msra.mxu1 %vm21866_vm3, %v21862_v7 }
  0x97   :  { %19249 = vmatprep.subr.bf16.mxu1 %v21799_v0 }
  0x98   :  { %19290 = vmatpush3.bf16.msk.msra.mxu0 %vm21866_vm3, %v21894_v19 }
  0x99   :  { %15434 = vmatmul.mubr.msk.f32.vlgmr.msra.gmra.mrb[34].mxu1 %vm200_vm4, %v12752_v44  ;;  %19298 = vmatprep.subr.bf16.mxu0 %v21799_v0 }
  0x9a   :  { %19251 = vmatpush3.bf16.msra.mxu1 %v21890_v18  ;;  %15455 = vmatprep.mubr.msk.f32.mxu1 %vm21801_vm0, %v21802_v1 }
  0x9b   :  { %19252 = vmatprep.subr.bf16.mxu1 %v21799_v0  ;;  %15511 = vmatmul.mubr.msk.f32.vlgmr.msra.gmra.mrb[34].mxu0 %vm200_vm4, %v12757_v45  ;;  %v3215_v45 = vld [vmem:[%s22219_s13 + $0x18] sm:$0xff] }
  0x9c   :  { %19300 = vmatpush3.bf16.msra.mxu0 %v21858_v5  ;;  %15532 = vmatprep.mubr.msk.f32.mxu0 %vm21801_vm0, %v21802_v1 }
  0x9d   :  { %19301 = vmatprep.subr.bf16.mxu0 %v21799_v0 }
  0x9e   :  { %19255 = vmatpush3.bf16.msk.msra.mxu1 %vm21866_vm3, %v21905_v22 }
  0x9f   :  { %19263 = vmatprep.subr.bf16.mxu1 %v21799_v0 }
  0xa0   :  { %19304 = vmatpush3.bf16.msk.msra.mxu0 %vm21866_vm3, %v21862_v7 }
  0xa1   :  { %15456 = vmatmul.mubr.msk.f32.vlgmr.msra.gmra.mrb[36].mxu1 %vm200_vm4, %v12752_v44  ;;  %19326 = vmatprep.subr.bf16.mxu0 %v21799_v0  ;;  %v3214_v44 = vld [vmem:[%s22219_s13 + $0x10] sm:$0xff] }
  0xa2   :  { %19265 = vmatpush3.bf16.msra.mxu1 %v21877_v12  ;;  %15477 = vmatprep.mubr.msk.f32.mxu1 %vm21801_vm0, %v21802_v1  ;;  %v12867_v12 = vld [vmem:[%s22219_s13 + $0xf8] sm:$0xff]  ;;  %v22383_v47 = vpack.c.bf16 %v3215_v45, %v3214_v44 }
  0xa3   :  { %19266 = vmatprep.subr.bf16.mxu1 %v21799_v0  ;;  %15533 = vmatmul.mubr.msk.f32.vlgmr.msra.gmra.mrb[36].mxu0 %vm200_vm4, %v12758_v48  ;;  %v22330_v8 = vpack.c.bf16 %v12867_v12, %v12866_v11 }
  0xa4   :  { %19328 = vmatpush3.bf16.msra.mxu0 %v22251_v49  ;;  %15594 = vmatprep.mubr.msk.f32.mxu0 %vm21801_vm0, %v21802_v1 }
  0xa5   :  { %19329 = vmatprep.subr.bf16.mxu0 %v21799_v0 }
  0xa6   :  { %19269 = vmatpush3.bf16.msk.msra.mxu1 %vm21866_vm3, %v21894_v19 }
  0xa7   :  { %19277 = vmatprep.subr.bf16.mxu1 %v21799_v0 }
  0xa8   :  { %19331 = vmatpush3.bf16.msra.mxu0 %v22263_v52 }
  0xa9   :  { %15478 = vmatmul.mubr.msk.f32.vlgmr.msra.gmra.mrb[38].mxu1 %vm200_vm4, %v12755_v55  ;;  %19332 = vmatprep.subr.bf16.mxu0 %v21799_v0  ;;  %v22391_v55 = vpack.c.bf16 %v3217_v51, %v3216_v50 }
  0xaa   :  { %19279 = vmatpush3.bf16.msra.mxu1 %v21858_v5  ;;  %15499 = vmatprep.mubr.msk.f32.mxu1 %vm21801_vm0, %v21802_v1  ;;  %v12865_v5 = vld [vmem:[%s22219_s13 + $0xe8] sm:$0xff] }
  0xab   :  { %19280 = vmatprep.subr.bf16.mxu1 %v21799_v0  ;;  %v22319_v10 = vpack.c.bf16 %v12865_v5, %v12864_v4  ;;  %v3221_v4 = vld [vmem:[%s22219_s13 + $0x48] sm:$0xff] }
  0xac   :  { %19334 = vmatpush3.bf16.msra.mxu0 %v22276_v56  ;;  %v22403_v11 = vpack.c.bf16 %v3221_v4, %v3220_v3 }
  0xad   :  { %19335 = vmatprep.subr.bf16.mxu0 %v21799_v0 }
  0xae   :  { %19283 = vmatpush3.bf16.msk.msra.mxu1 %vm21866_vm3, %v21862_v7  ;;  %v12862_v7 = vld [vmem:[%s22219_s13 + $0xd0] sm:$0xff] }
  0xaf   :  { %19291 = vmatprep.subr.bf16.mxu1 %v21799_v0  ;;  %v22325_v13 = vpack.c.bf16 %v12863_v9, %v12862_v7 }
  0xb0   :  { %19337 = vmatpush3.bf16.msra.mxu0 %v22287_v59 }
  0xb1   :  { %15500 = vmatmul.mubr.msk.f32.vlgmr.msra.gmra.mrb[40].mxu1 %vm200_vm4, %v12756_v62  ;;  %19338 = vmatprep.subr.bf16.mxu0 %v21799_v0 }
  0xb2   :  { %19293 = vmatpush3.bf16.msra.mxu1 %v21890_v18  ;;  %15521 = vmatprep.mubr.msk.f32.mxu1 %vm21801_vm0, %v21802_v1  ;;  %v12871_v18 = vld [vmem:[%s22219_s13 + $0x118] sm:$0xff] }
  0xb3   :  { %19294 = vmatprep.subr.bf16.mxu1 %v21799_v0  ;;  %v22346_v19 = vpack.c.bf16 %v12871_v18, %v12870_v17  ;;  %v22410_v18 = vpack.c.bf16 %v3223_v15, %v3222_v14 }
  0xb4   :  { %19340 = vmatpush3.bf16.msra.mxu0 %v22298_v63 }
  0xb5   :  { %19341 = vmatprep.subr.bf16.mxu0 %v21799_v0 }
  0xb6   :  { %19297 = vmatpush3.bf16.msk.msra.mxu1 %vm21866_vm3, %v21905_v22  ;;  %v22352_v22 = vpack.c.bf16 %v12873_v21, %v12872_v20  ;;  %v3224_v21 = vld [vmem:[%s22219_s13 + $0x60] sm:$0xff]  ;;  %s12714_s13 = sld [smem:[%s25311_s0 + %s21819_s10]]  }
  0xb7   :  { %19305 = vmatprep.subr.bf16.mxu1 %v21799_v0 }
  0xb8   :  { %19343 = vmatpush3.bf16.msra.mxu0 %v22311_v6 }
  0xb9   :  { %15522 = vmatmul.mubr.msk.f32.vlgmr.msra.gmra.mrb[42].mxu1 %vm200_vm4, %v12756_v62  ;;  %19344 = vmatprep.subr.bf16.mxu0 %v21799_v0 }
  0xba   :  { %19307 = vmatpush3.bf16.msra.mxu1 %v22319_v10  ;;  %15563 = vmatprep.mubr.msk.f32.mxu1 %vm21801_vm0, %v21802_v1 }
  0xbb   :  { %19308 = vmatprep.subr.bf16.mxu1 %v21799_v0 }
  0xbc   :  { %19346 = vmatpush3.bf16.msra.mxu0 %v22325_v13 }
  0xbd   :  { %19368 = vmatprep.subr.bf16.mxu0 %v21799_v0 }
  0xbe   :  { %19310 = vmatpush3.bf16.msra.mxu1 %v22330_v8 }
  0xbf   :  { %19311 = vmatprep.subr.bf16.mxu1 %v21799_v0 }
  0xc2   :  { %19313 = vmatpush3.bf16.msra.mxu1 %v22340_v16 }
  0xc3   :  { %19314 = vmatprep.subr.bf16.mxu1 %v21799_v0 }
  0xc6   :  { %19316 = vmatpush3.bf16.msra.mxu1 %v22346_v19 }
  0xc7   :  { %19317 = vmatprep.subr.bf16.mxu1 %v21799_v0 }
  0xca   :  { %19319 = vmatpush3.bf16.msra.mxu1 %v22352_v22 }
  0xcb   :  { %19320 = vmatprep.subr.bf16.mxu1 %v21799_v0 }
  0xce   :  { %19322 = vmatpush3.bf16.msra.mxu1 %v22358_v25 }
  0xcf   :  { %19323 = vmatprep.subr.bf16.mxu1 %v21799_v0 }
  0xd2   :  { %19325 = vmatpush3.bf16.msra.mxu1 %v22364_v28 }
  0xd3   :  { %19347 = vmatprep.subr.bf16.mxu1 %v21799_v0 }
  0xe4   :  { %v274_v29 = vpop.f32.mrb[0].mxu1  ;;  %v576_v30 = vpop.f32.mrb[0].mxu0 }
  0xe5   :  { %v15094_v31 = vpop.f32.mrb[1].mxu1  ;;  %v15138_v32 = vpop.f32.mrb[1].mxu0 }
  0xec   :  { %v350_v34 = vpop.f32.mrb[2].mxu1 }
  0xed   :  { %v351_v35 = vadd.f32 %v350_v34, %v274_v29  ;;  %v15105_v36 = vpop.f32.mrb[3].mxu1 }
  0xee   :  { %v721_v39 = vpop.f32.mrb[2].mxu0 }
  0xef   :  { %v360_v40 = vadd.f32 %v22372_v33, %v351_v35  ;;  %v15160_v41 = vpop.f32.mrb[3].mxu0 }
  0xf1   :  { %v3198_v43 = vmax.f32 %v360_v40, 0.0 }
  0xf3   :  { %15595 = vmatmul.mubr.msk.f32.vlgmr.msra.gmra.mrb[38].mxu0 %vm3257_vm5, %v3198_v43 }
  0xf4   :  { %19370 = vmatpush3.bf16.msra.mxu0 %v22377_v42  ;;  %v430_v46 = vpop.f32.mrb[4].mxu1  ;;  %15656 = vmatprep.mubr.msk.f32.mxu0 %vm21801_vm0, %v21802_v1 }
  0xf5   :  { %v15116_v48 = vpop.f32.mrb[5].mxu1  ;;  %19371 = vmatprep.subr.bf16.mxu0 %v21799_v0 }
  0xf6   :  { %v869_v53 = vpop.f32.mrb[4].mxu0 }
  0xf7   :  { %v15182_v54 = vpop.f32.mrb[5].mxu0 }
  0xf8   :  { %19373 = vmatpush3.bf16.msra.mxu0 %v22383_v47 }
  0xf9   :  { %19374 = vmatprep.subr.bf16.mxu0 %v21799_v0 }
  0xfc   :  { %19376 = vmatpush3.bf16.msra.mxu0 %v22391_v55  ;;  %v503_v60 = vpop.f32.mrb[6].mxu1 }
  0xfd   :  { %v504_v62 = vadd.f32 %v503_v60, %v430_v46  ;;  %v15127_v2 = vpop.f32.mrb[7].mxu1  ;;  %19377 = vmatprep.subr.bf16.mxu0 %v21799_v0 }
  0xfe   :  { %v1012_v5 = vpop.f32.mrb[6].mxu0 }
  0xff   :  { %v580_v7 = vadd.f32 %v576_v30, %v504_v62  ;;  %v15204_v9 = vpop.f32.mrb[7].mxu0  ;;  %v22421_v30 = vpack.c.bf16 %v3225_v23, %v3224_v21 }
 0x100   :  { %19379 = vmatpush3.bf16.msra.mxu0 %v22397_v61 }
 0x101   :  { %v581_v12 = vadd.f32 %v22372_v33, %v580_v7  ;;  %19380 = vmatprep.subr.bf16.mxu0 %v21799_v0 }
 0x103   :  { %v3199_v17 = vmax.f32 %v581_v12, 0.0 }
 0x104   :  { %19382 = vmatpush3.bf16.msra.mxu0 %v22403_v11  ;;  %v651_v20 = vpop.f32.mrb[8].mxu1 }
 0x105   :  { %15564 = vmatmul.mubr.msk.f32.vlgmr.msra.gmra.mrb[44].mxu1 %vm3257_vm5, %v3199_v17  ;;  %19383 = vmatprep.subr.bf16.mxu0 %v21799_v0  ;;  %v15149_v24 = vpop.f32.mrb[9].mxu1  ;;  %v722_v26 = vadd.f32 %v721_v39, %v651_v20 }
 0x106   :  { %19349 = vmatpush3.bf16.msra.mxu1 %v22251_v49  ;;  %15625 = vmatprep.mubr.msk.f32.mxu1 %vm21801_vm0, %v21802_v1  ;;  %v1157_v27 = vpop.f32.mrb[8].mxu0 }
 0x107   :  { %19350 = vmatprep.subr.bf16.mxu1 %v21799_v0  ;;  %v15226_v29 = vpop.f32.mrb[9].mxu0 }
 0x108   :  { %19385 = vmatpush3.bf16.msra.mxu0 %v22410_v18 }
 0x109   :  { %19386 = vmatprep.subr.bf16.mxu0 %v21799_v0 }
 0x10a   :  { %19352 = vmatpush3.bf16.msra.mxu1 %v22263_v52 }
 0x10b   :  { %19353 = vmatprep.subr.bf16.mxu1 %v21799_v0 }
 0x10c   :  { %19388 = vmatpush3.bf16.msra.mxu0 %v22421_v30  ;;  %v794_v31 = vpop.f32.mrb[10].mxu1 }
 0x10d   :  { %19410 = vmatprep.subr.bf16.mxu0 %v21799_v0  ;;  %v798_v32 = vadd.f32 %v794_v31, %v722_v26  ;;  %v15171_v34 = vpop.f32.mrb[11].mxu1 }
 0x10e   :  { %19355 = vmatpush3.bf16.msra.mxu1 %v22276_v56  ;;  %v1305_v35 = vpop.f32.mrb[10].mxu0 }
 0x10f   :  { %15657 = vmatmul.mubr.msk.f32.vlgmr.msra.gmra.mrb[40].mxu0 %vm3257_vm5, %v3199_v17  ;;  %19356 = vmatprep.subr.bf16.mxu1 %v21799_v0  ;;  %v15248_v36 = vpop.f32.mrb[11].mxu0  ;;  %v799_v44 = vadd.f32 %v22372_v33, %v798_v32 }
 0x110   :  { %19412 = vmatpush3.bf16.msra.mxu0 %v22251_v49  ;;  %15718 = vmatprep.mubr.msk.f32.mxu0 %vm21801_vm0, %v21802_v1 }
 0x111   :  { %19413 = vmatprep.subr.bf16.mxu0 %v21799_v0  ;;  %v3200_v51 = vmax.f32 %v799_v44, 0.0 }
 0x112   :  { %19358 = vmatpush3.bf16.msra.mxu1 %v22287_v59 }
 0x113   :  { %19359 = vmatprep.subr.bf16.mxu1 %v21799_v0 }
 0x114   :  { %19415 = vmatpush3.bf16.msra.mxu0 %v22263_v52  ;;  %v939_v37 = vpop.f32.mrb[12].mxu1 }
 0x115   :  { %19416 = vmatprep.subr.bf16.mxu0 %v21799_v0  ;;  %v940_v38 = vadd.f32 %v939_v37, %v869_v53  ;;  %v15193_v39 = vpop.f32.mrb[13].mxu1 }
 0x116   :  { %19361 = vmatpush3.bf16.msra.mxu1 %v22298_v63  ;;  %v1448_v40 = vpop.f32.mrb[12].mxu0 }
 0x117   :  { %19362 = vmatprep.subr.bf16.mxu1 %v21799_v0  ;;  %v1016_v41 = vadd.f32 %v1012_v5, %v940_v38  ;;  %v15270_v43 = vpop.f32.mrb[13].mxu0 }
 0x118   :  { %19418 = vmatpush3.bf16.msra.mxu0 %v22276_v56 }
 0x119   :  { %19419 = vmatprep.subr.bf16.mxu0 %v21799_v0  ;;  %v22481_v23 = vadd.f32 %v22372_v33, %v1016_v41 }
 0x11a   :  { %19364 = vmatpush3.bf16.msra.mxu1 %v22311_v6 }
 0x11b   :  { %19365 = vmatprep.subr.bf16.mxu1 %v21799_v0  ;;  %v3201_v26 = vmax.f32 %v22481_v23, 0.0 }
 0x11c   :  { %19421 = vmatpush3.bf16.msra.mxu0 %v22287_v59  ;;  %v1087_v45 = vpop.f32.mrb[14].mxu1 }
 0x11d   :  { %19422 = vmatprep.subr.bf16.mxu0 %v21799_v0  ;;  %v1158_v46 = vadd.f32 %v1157_v27, %v1087_v45  ;;  %v15215_v48 = vpop.f32.mrb[15].mxu1 }
 0x11e   :  { %19367 = vmatpush3.bf16.msra.mxu1 %v22325_v13  ;;  %v1593_v50 = vpop.f32.mrb[14].mxu0 }
 0x11f   :  { %19389 = vmatprep.subr.bf16.mxu1 %v21799_v0  ;;  %v15292_v53 = vpop.f32.mrb[15].mxu0 }
 0x120   :  { %19424 = vmatpush3.bf16.msra.mxu0 %v22298_v63 }
 0x121   :  { %15626 = vmatmul.mubr.msk.f32.vlgmr.msra.gmra.mrb[46].mxu1 %vm3257_vm5, %v3200_v51  ;;  %19425 = vmatprep.subr.bf16.mxu0 %v21799_v0 }
 0x122   :  { %19391 = vmatpush3.bf16.msra.mxu1 %v22319_v10  ;;  %15687 = vmatprep.mubr.msk.f32.mxu1 %vm21801_vm0, %v21802_v1 }
 0x123   :  { %19392 = vmatprep.subr.bf16.mxu1 %v21799_v0 }
 0x124   :  { %19427 = vmatpush3.bf16.msra.mxu0 %v22311_v6  ;;  %v1230_v54 = vpop.f32.mrb[16].mxu1 }
 0x125   :  { %v1234_v57 = vadd.f32 %v1230_v54, %v1158_v46  ;;  %19428 = vmatprep.subr.bf16.mxu0 %v21799_v0  ;;  %v15237_v58 = vpop.f32.mrb[17].mxu1 }
 0x126   :  { %19394 = vmatpush3.bf16.msra.mxu1 %v22330_v8  ;;  %v1741_v60 = vpop.f32.mrb[16].mxu0 }
 0x127   :  { %v1235_v62 = vadd.f32 %v22372_v33, %v1234_v57  ;;  %19395 = vmatprep.subr.bf16.mxu1 %v21799_v0  ;;  %v15314_v2 = vpop.f32.mrb[17].mxu0 }
 0x128   :  { %19430 = vmatpush3.bf16.msra.mxu0 %v22325_v13 }
 0x129   :  { %v3202_v3 = vmax.f32 %v1235_v62, 0.0  ;;  %19452 = vmatprep.subr.bf16.mxu0 %v21799_v0 }
 0x12a   :  { %19397 = vmatpush3.bf16.msra.mxu1 %v22340_v16 }
 0x12b   :  { %15719 = vmatmul.mubr.msk.f32.vlgmr.msra.gmra.mrb[42].mxu0 %vm3257_vm5, %v3202_v3  ;;  %19398 = vmatprep.subr.bf16.mxu1 %v21799_v0 }
 0x12c   :  { %19454 = vmatpush3.bf16.msra.mxu0 %v22319_v10  ;;  %v1375_v4 = vpop.f32.mrb[18].mxu1  ;;  %15780 = vmatprep.mubr.msk.f32.mxu0 %vm21801_vm0, %v21802_v1 }
 0x12d   :  { %19455 = vmatprep.subr.bf16.mxu0 %v21799_v0  ;;  %v1376_v5 = vadd.f32 %v1375_v4, %v1305_v35  ;;  %v15259_v7 = vpop.f32.mrb[19].mxu1 }
 0x12e   :  { %19400 = vmatpush3.bf16.msra.mxu1 %v22346_v19  ;;  %v1884_v9 = vpop.f32.mrb[18].mxu0 }
 0x12f   :  { %19401 = vmatprep.subr.bf16.mxu1 %v21799_v0  ;;  %v1452_v12 = vadd.f32 %v1448_v40, %v1376_v5  ;;  %v15336_v14 = vpop.f32.mrb[19].mxu0 }
 0x130   :  { %19457 = vmatpush3.bf16.msra.mxu0 %v22330_v8 }
 0x131   :  { %19458 = vmatprep.subr.bf16.mxu0 %v21799_v0  ;;  %v22498_v34 = vadd.f32 %v22372_v33, %v1452_v12 }
 0x132   :  { %19403 = vmatpush3.bf16.msra.mxu1 %v22352_v22 }
 0x133   :  { %19404 = vmatprep.subr.bf16.mxu1 %v21799_v0  ;;  %v3203_v36 = vmax.f32 %v22498_v34, 0.0 }
 0x134   :  { %19460 = vmatpush3.bf16.msra.mxu0 %v22340_v16  ;;  %v1523_v15 = vpop.f32.mrb[20].mxu1 }
 0x135   :  { %19461 = vmatprep.subr.bf16.mxu0 %v21799_v0  ;;  %v15281_v17 = vpop.f32.mrb[21].mxu1  ;;  %v1594_v20 = vadd.f32 %v1593_v50, %v1523_v15 }
 0x136   :  { %19406 = vmatpush3.bf16.msra.mxu1 %v22358_v25  ;;  %v2029_v21 = vpop.f32.mrb[20].mxu0 }
 0x137   :  { %19407 = vmatprep.subr.bf16.mxu1 %v21799_v0  ;;  %v15358_v24 = vpop.f32.mrb[21].mxu0 }
 0x138   :  { %19463 = vmatpush3.bf16.msra.mxu0 %v22346_v19 }
 0x139   :  { %19464 = vmatprep.subr.bf16.mxu0 %v21799_v0 }
 0x13a   :  { %19409 = vmatpush3.bf16.msra.mxu1 %v22364_v28 }
 0x13b   :  { %19431 = vmatprep.subr.bf16.mxu1 %v21799_v0 }
 0x13c   :  { %19466 = vmatpush3.bf16.msra.mxu0 %v22352_v22  ;;  %v1666_v27 = vpop.f32.mrb[22].mxu1 }
 0x13d   :  { %15688 = vmatmul.mubr.msk.f32.vlgmr.msra.gmra.mrb[48].mxu1 %vm3257_vm5, %v3201_v26  ;;  %19467 = vmatprep.subr.bf16.mxu0 %v21799_v0  ;;  %v22492_v29 = vadd.f32 %v1666_v27, %v1594_v20  ;;  %v15303_v31 = vpop.f32.mrb[23].mxu1 }
 0x13e   :  { %19433 = vmatpush3.bf16.msra.mxu1 %v22377_v42  ;;  %15749 = vmatprep.mubr.msk.f32.mxu1 %vm21801_vm0, %v21802_v1  ;;  %v2177_v32 = vpop.f32.mrb[22].mxu0 }
 0x13f   :  { %19434 = vmatprep.subr.bf16.mxu1 %v21799_v0  ;;  %v15380_v35 = vpop.f32.mrb[23].mxu0  ;;  %v1671_v24 = vadd.f32 %v22372_v33, %v22492_v29 }
 0x140   :  { %19469 = vmatpush3.bf16.msra.mxu0 %v22358_v25 }
 0x141   :  { %19470 = vmatprep.subr.bf16.mxu0 %v21799_v0  ;;  %v3204_v27 = vmax.f32 %v1671_v24, 0.0 }
 0x142   :  { %19436 = vmatpush3.bf16.msra.mxu1 %v22383_v47 }
 0x143   :  { %19437 = vmatprep.subr.bf16.mxu1 %v21799_v0 }
 0x144   :  { %19472 = vmatpush3.bf16.msra.mxu0 %v22364_v28  ;;  %v1811_v37 = vpop.f32.mrb[24].mxu1 }
 0x145   :  { %19494 = vmatprep.subr.bf16.mxu0 %v21799_v0  ;;  %v1812_v38 = vadd.f32 %v1811_v37, %v1741_v60  ;;  %v15325_v39 = vpop.f32.mrb[25].mxu1 }
 0x146   :  { %19439 = vmatpush3.bf16.msra.mxu1 %v22391_v55  ;;  %v2320_v40 = vpop.f32.mrb[24].mxu0 }
 0x147   :  { %15781 = vmatmul.mubr.msk.f32.vlgmr.msra.gmra.mrb[44].mxu0 %vm3257_vm5, %v3203_v36  ;;  %19440 = vmatprep.subr.bf16.mxu1 %v21799_v0  ;;  %v22511_v41 = vadd.f32 %v1884_v9, %v1812_v38  ;;  %v15402_v43 = vpop.f32.mrb[25].mxu0 }
 0x148   :  { %19496 = vmatpush3.bf16.msra.mxu0 %v22377_v42  ;;  %15842 = vmatprep.mubr.msk.f32.mxu0 %vm21801_vm0, %v21802_v1 }
 0x149   :  { %19497 = vmatprep.subr.bf16.mxu0 %v21799_v0 }
 0x14a   :  { %19442 = vmatpush3.bf16.msra.mxu1 %v22397_v61 }
 0x14b   :  { %19443 = vmatprep.subr.bf16.mxu1 %v21799_v0 }
 0x14c   :  { %19499 = vmatpush3.bf16.msra.mxu0 %v22383_v47  ;;  %v1959_v44 = vpop.f32.mrb[26].mxu1 }
 0x14d   :  { %19500 = vmatprep.subr.bf16.mxu0 %v21799_v0  ;;  %v2030_v45 = vadd.f32 %v2029_v21, %v1959_v44  ;;  %v15347_v46 = vpop.f32.mrb[27].mxu1 }
 0x14e   :  { %19445 = vmatpush3.bf16.msra.mxu1 %v22403_v11  ;;  %v2465_v48 = vpop.f32.mrb[26].mxu0 }
 0x14f   :  { %19446 = vmatprep.subr.bf16.mxu1 %v21799_v0  ;;  %v15424_v50 = vpop.f32.mrb[27].mxu0 }
 0x150   :  { %19502 = vmatpush3.bf16.msra.mxu0 %v22391_v55 }
 0x151   :  { %19503 = vmatprep.subr.bf16.mxu0 %v21799_v0 }
 0x152   :  { %19448 = vmatpush3.bf16.msra.mxu1 %v22410_v18 }
 0x153   :  { %19449 = vmatprep.subr.bf16.mxu1 %v21799_v0 }
 0x154   :  { %19505 = vmatpush3.bf16.msra.mxu0 %v22397_v61  ;;  %v2102_v51 = vpop.f32.mrb[28].mxu1 }
 0x155   :  { %19506 = vmatprep.subr.bf16.mxu0 %v21799_v0  ;;  %v22529_v53 = vadd.f32 %v2102_v51, %v2030_v45  ;;  %v15369_v54 = vpop.f32.mrb[29].mxu1 }
 0x156   :  { %19451 = vmatpush3.bf16.msra.mxu1 %v22421_v30  ;;  %v2613_v57 = vpop.f32.mrb[28].mxu0 }
 0x157   :  { %19473 = vmatprep.subr.bf16.mxu1 %v21799_v0  ;;  %v15446_v58 = vpop.f32.mrb[29].mxu0  ;;  %v2107_v35 = vadd.f32 %v22372_v33, %v22529_v53 }
 0x158   :  { %19508 = vmatpush3.bf16.msra.mxu0 %v22403_v11 }
 0x159   :  { %15750 = vmatmul.mubr.msk.f32.vlgmr.msra.gmra.mrb[50].mxu1 %vm3257_vm5, %v3201_v26  ;;  %19509 = vmatprep.subr.bf16.mxu0 %v21799_v0  ;;  %v3206_v38 = vmax.f32 %v2107_v35, 0.0 }
 0x15a   :  { %19475 = vmatpush3.bf16.msra.mxu1 %v22251_v49  ;;  %15811 = vmatprep.mubr.msk.f32.mxu1 %vm21801_vm0, %v21802_v1 }
 0x15b   :  { %19476 = vmatprep.subr.bf16.mxu1 %v21799_v0 }
 0x15c   :  { %19511 = vmatpush3.bf16.msra.mxu0 %v22410_v18  ;;  %v2247_v60 = vpop.f32.mrb[30].mxu1 }
 0x15d   :  { %19512 = vmatprep.subr.bf16.mxu0 %v21799_v0  ;;  %v2248_v62 = vadd.f32 %v2247_v60, %v2177_v32  ;;  %v15391_v2 = vpop.f32.mrb[31].mxu1 }
 0x15e   :  { %19478 = vmatpush3.bf16.msra.mxu1 %v22263_v52  ;;  %v2756_v3 = vpop.f32.mrb[30].mxu0 }
 0x15f   :  { %19479 = vmatprep.subr.bf16.mxu1 %v21799_v0  ;;  %v22544_v4 = vadd.f32 %v2320_v40, %v2248_v62  ;;  %v15468_v5 = vpop.f32.mrb[31].mxu0 }
 0x160   :  { %19514 = vmatpush3.bf16.msra.mxu0 %v22421_v30 }
 0x161   :  { %19536 = vmatprep.subr.bf16.mxu0 %v21799_v0 }
 0x162   :  { %19481 = vmatpush3.bf16.msra.mxu1 %v22276_v56 }
 0x163   :  { %15843 = vmatmul.mubr.msk.f32.vlgmr.msra.gmra.mrb[46].mxu0 %vm3257_vm5, %v3203_v36  ;;  %19482 = vmatprep.subr.bf16.mxu1 %v21799_v0 }
 0x164   :  { %19538 = vmatpush3.bf16.msra.mxu0 %v22251_v49  ;;  %15904 = vmatprep.mubr.msk.f32.mxu0 %vm21801_vm0, %v21802_v1  ;;  %v2395_v7 = vpop.f32.mrb[32].mxu1 }
 0x165   :  { %19539 = vmatprep.subr.bf16.mxu0 %v21799_v0  ;;  %v15413_v9 = vpop.f32.mrb[33].mxu1  ;;  %v2466_v12 = vadd.f32 %v2465_v48, %v2395_v7  ;;  %v1889_v48 = vadd.f32 %v22372_v33, %v22511_v41  ;;  %v2325_v41 = vadd.f32 %v22372_v33, %v22544_v4 }
 0x166   :  { %19484 = vmatpush3.bf16.msra.mxu1 %v22287_v59  ;;  %v2901_v14 = vpop.f32.mrb[32].mxu0 }
 0x167   :  { %19485 = vmatprep.subr.bf16.mxu1 %v21799_v0  ;;  %v15490_v15 = vpop.f32.mrb[33].mxu0  ;;  %v3205_v54 = vmax.f32 %v1889_v48, 0.0  ;;  %v3207_v58 = vmax.f32 %v2325_v41, 0.0  ;;  %v4765_v48 = vld [vmem:[%s22767_s21 + $0x60] sm:$0xff] }
 0x168   :  { %19541 = vmatpush3.bf16.msra.mxu0 %v22263_v52 }
 0x169   :  { %19542 = vmatprep.subr.bf16.mxu0 %v21799_v0 }
 0x16a   :  { %19487 = vmatpush3.bf16.msra.mxu1 %v22298_v63 }
 0x16b   :  { %19488 = vmatprep.subr.bf16.mxu1 %v21799_v0 }
 0x16c   :  { %19544 = vmatpush3.bf16.msra.mxu0 %v22276_v56  ;;  %v2538_v17 = vpop.f32.mrb[34].mxu1 }
 0x16d   :  { %19545 = vmatprep.subr.bf16.mxu0 %v21799_v0  ;;  %v22563_v20 = vadd.f32 %v2538_v17, %v2466_v12  ;;  %v15435_v21 = vpop.f32.mrb[35].mxu1 }
 0x16e   :  { %19490 = vmatpush3.bf16.msra.mxu1 %v22311_v6  ;;  %v3049_v23 = vpop.f32.mrb[34].mxu0  ;;  %v4754_v21 = vld [vmem:[%s22767_s21 + $0x8] sm:$0xff] }
 0x16f   :  { %19491 = vmatprep.subr.bf16.mxu1 %v21799_v0  ;;  %v15512_v26 = vpop.f32.mrb[35].mxu0 }
 0x170   :  { %19547 = vmatpush3.bf16.msra.mxu0 %v22287_v59  ;;  %v4756_v26 = vld [vmem:[%s22767_s21 + $0x18] sm:$0xff] }
 0x171   :  { %19548 = vmatprep.subr.bf16.mxu0 %v21799_v0 }
 0x172   :  { %19493 = vmatpush3.bf16.msra.mxu1 %v22325_v13 }
 0x173   :  { %19515 = vmatprep.subr.bf16.mxu1 %v21799_v0 }
 0x174   :  { %19550 = vmatpush3.bf16.msra.mxu0 %v22298_v63  ;;  %v2683_v31 = vpop.f32.mrb[36].mxu1 }
 0x175   :  { %15812 = vmatmul.mubr.msk.f32.vlgmr.msra.gmra.mrb[52].mxu1 %vm3257_vm5, %v3204_v27  ;;  %19551 = vmatprep.subr.bf16.mxu0 %v21799_v0  ;;  %v2684_v29 = vadd.f32 %v2683_v31, %v2613_v57  ;;  %v15457_v32 = vpop.f32.mrb[37].mxu1 }
 0x176   :  { %19517 = vmatpush3.bf16.msra.mxu1 %v22319_v10  ;;  %15873 = vmatprep.mubr.msk.f32.mxu1 %vm21801_vm0, %v21802_v1  ;;  %v3192_v34 = vpop.f32.mrb[36].mxu0  ;;  %v4757_v32 = vld [vmem:[%s22767_s21 + $0x20] sm:$0xff] }
 0x177   :  { %19518 = vmatprep.subr.bf16.mxu1 %v21799_v0  ;;  %v22582_v36 = vadd.f32 %v2756_v3, %v2684_v29  ;;  %v15534_v37 = vpop.f32.mrb[37].mxu0 }
 0x178   :  { %19553 = vmatpush3.bf16.msra.mxu0 %v22311_v6  ;;  %v4760_v37 = vld [vmem:[%s22767_s21 + $0x38] sm:$0xff] }
 0x179   :  { %19554 = vmatprep.subr.bf16.mxu0 %v21799_v0 }
 0x17a   :  { %19520 = vmatpush3.bf16.msra.mxu1 %v22330_v8 }
 0x17b   :  { %19521 = vmatprep.subr.bf16.mxu1 %v21799_v0 }
 0x17c   :  { %19556 = vmatpush3.bf16.msra.mxu0 %v22325_v13  ;;  %v2831_v39 = vpop.f32.mrb[38].mxu1 }
 0x17d   :  { %19578 = vmatprep.subr.bf16.mxu0 %v21799_v0  ;;  %v15479_v40 = vpop.f32.mrb[39].mxu1  ;;  %v2902_v43 = vadd.f32 %v2901_v14, %v2831_v39  ;;  %v4761_v39 = vld [vmem:[%s22767_s21 + $0x40] sm:$0xff] }
 0x17e   :  { %19523 = vmatpush3.bf16.msra.mxu1 %v22340_v16  ;;  %v4762_v40 = vld [vmem:[%s22767_s21 + $0x48] sm:$0xff] }
 0x17f   :  { %15905 = vmatmul.mubr.msk.f32.vlgmr.msra.gmra.mrb[48].mxu0 %vm3257_vm5, %v3206_v38  ;;  %19524 = vmatprep.subr.bf16.mxu1 %v21799_v0 }
 0x180   :  { %19580 = vmatpush3.bf16.msra.mxu0 %v22319_v10  ;;  %15966 = vmatprep.mubr.msk.f32.mxu0 %vm21801_vm0, %v21802_v1 }
 0x181   :  { %19581 = vmatprep.subr.bf16.mxu0 %v21799_v0 }
 0x182   :  { %19526 = vmatpush3.bf16.msra.mxu1 %v22346_v19 }
 0x183   :  { %19527 = vmatprep.subr.bf16.mxu1 %v21799_v0 }
 0x184   :  { %19583 = vmatpush3.bf16.msra.mxu0 %v22330_v8  ;;  %v2974_v44 = vpop.f32.mrb[40].mxu1 }
 0x185   :  { %19584 = vmatprep.subr.bf16.mxu0 %v21799_v0  ;;  %v22601_v45 = vadd.f32 %v2974_v44, %v2902_v43  ;;  %v15501_v46 = vpop.f32.mrb[41].mxu1  ;;  %v22803_v43 = vpack.c.bf16 %v4762_v40, %v4761_v39  ;;  %v4763_v44 = vld [vmem:[%s22767_s21 + $0x50] sm:$0xff] }
 0x186   :  { %19529 = vmatpush3.bf16.msra.mxu1 %v22352_v22 }
 0x187   :  { %19530 = vmatprep.subr.bf16.mxu1 %v21799_v0 }
 0x188   :  { %19586 = vmatpush3.bf16.msra.mxu0 %v22340_v16 }
 0x189   :  { %19587 = vmatprep.subr.bf16.mxu0 %v21799_v0 }
 0x18a   :  { %19532 = vmatpush3.bf16.msra.mxu1 %v22358_v25 }
 0x18b   :  { %19533 = vmatprep.subr.bf16.mxu1 %v21799_v0 }
 0x18c   :  { %19589 = vmatpush3.bf16.msra.mxu0 %v22346_v19  ;;  %v3119_v50 = vpop.f32.mrb[42].mxu1 }
 0x18d   :  { %19590 = vmatprep.subr.bf16.mxu0 %v21799_v0  ;;  %v3120_v51 = vadd.f32 %v3119_v50, %v3049_v23  ;;  %v15523_v53 = vpop.f32.mrb[43].mxu1  ;;  %v4755_v23 = vld [vmem:[%s22767_s21 + $0x10] sm:$0xff]  ;;  %v4766_v50 = vld [vmem:[%s22767_s21 + $0x68] sm:$0xff] }
 0x18e   :  { %19535 = vmatpush3.bf16.msra.mxu1 %v22364_v28  ;;  %v22777_v27 = vpack.c.bf16 %v4756_v26, %v4755_v23 }
 0x18f   :  { %19557 = vmatprep.subr.bf16.mxu1 %v21799_v0  ;;  %v22615_v57 = vadd.f32 %v3192_v34, %v3120_v51  ;;  %v4758_v34 = vld [vmem:[%s22767_s21 + $0x28] sm:$0xff]  ;;  %v22817_v51 = vpack.c.bf16 %v4766_v50, %v4765_v48 }
 0x190   :  { %19592 = vmatpush3.bf16.msra.mxu0 %v22352_v22  ;;  %v22787_v35 = vpack.c.bf16 %v4758_v34, %v4757_v32 }
 0x191   :  { %15874 = vmatmul.mubr.msk.f32.vlgmr.msra.gmra.mrb[54].mxu1 %vm3257_vm5, %v3205_v54  ;;  %19593 = vmatprep.subr.bf16.mxu0 %v21799_v0 }
 0x192   :  { %19559 = vmatpush3.bf16.msra.mxu1 %v22377_v42  ;;  %15935 = vmatprep.mubr.msk.f32.mxu1 %vm21801_vm0, %v21802_v1 }
 0x193   :  { %19560 = vmatprep.subr.bf16.mxu1 %v21799_v0 }
 0x194   :  { %19595 = vmatpush3.bf16.msra.mxu0 %v22358_v25 }
 0x195   :  { %19596 = vmatprep.subr.bf16.mxu0 %v21799_v0 }
 0x196   :  { %19562 = vmatpush3.bf16.msra.mxu1 %v22383_v47 }
 0x197   :  { %19563 = vmatprep.subr.bf16.mxu1 %v21799_v0 }
 0x198   :  { %19598 = vmatpush3.bf16.msra.mxu0 %v22364_v28 }
 0x199   :  { %19620 = vmatprep.subr.bf16.mxu0 %v21799_v0 }
 0x19a   :  { %19565 = vmatpush3.bf16.msra.mxu1 %v22391_v55 }
 0x19b   :  { %15967 = vmatmul.mubr.msk.f32.vlgmr.msra.gmra.mrb[50].mxu0 %vm3257_vm5, %v3207_v58  ;;  %19566 = vmatprep.subr.bf16.mxu1 %v21799_v0 }
 0x19c   :  { %19622 = vmatpush3.bf16.msra.mxu0 %v22377_v42  ;;  %16028 = vmatprep.mubr.msk.f32.mxu0 %vm21801_vm0, %v21802_v1 }
 0x19d   :  { %19623 = vmatprep.subr.bf16.mxu0 %v21799_v0 }
 0x19e   :  { %19568 = vmatpush3.bf16.msra.mxu1 %v22397_v61 }
 0x19f   :  { %19569 = vmatprep.subr.bf16.mxu1 %v21799_v0 }
 0x1a0   :  { %19625 = vmatpush3.bf16.msra.mxu0 %v22383_v47 }
 0x1a1   :  { %19626 = vmatprep.subr.bf16.mxu0 %v21799_v0 }
 0x1a2   :  { %19571 = vmatpush3.bf16.msra.mxu1 %v22403_v11 }
 0x1a3   :  { %19572 = vmatprep.subr.bf16.mxu1 %v21799_v0 }
 0x1a4   :  { %19628 = vmatpush3.bf16.msra.mxu0 %v22391_v55 }
 0x1a5   :  { %19629 = vmatprep.subr.bf16.mxu0 %v21799_v0 }
 0x1a6   :  { %19574 = vmatpush3.bf16.msra.mxu1 %v22410_v18 }
 0x1a7   :  { %19575 = vmatprep.subr.bf16.mxu1 %v21799_v0 }
 0x1a8   :  { %19631 = vmatpush3.bf16.msra.mxu0 %v22397_v61 }
 0x1a9   :  { %19632 = vmatprep.subr.bf16.mxu0 %v21799_v0 }
 0x1aa   :  { %19577 = vmatpush3.bf16.msra.mxu1 %v22421_v30 }
 0x1ab   :  { %19599 = vmatprep.subr.bf16.mxu1 %v21799_v0 }
 0x1ac   :  { %19634 = vmatpush3.bf16.msra.mxu0 %v22403_v11 }
 0x1ad   :  { %15936 = vmatmul.mubr.msk.f32.vlgmr.msra.gmra.mrb[56].mxu1 %vm3257_vm5, %v3205_v54  ;;  %19635 = vmatprep.subr.bf16.mxu0 %v21799_v0 }
 0x1ae   :  { %19601 = vmatpush3.bf16.msra.mxu1 %v22251_v49  ;;  %15997 = vmatprep.mubr.msk.f32.mxu1 %vm21801_vm0, %v21802_v1 }
 0x1af   :  { %19602 = vmatprep.subr.bf16.mxu1 %v21799_v0 }
 0x1b0   :  { %19637 = vmatpush3.bf16.msra.mxu0 %v22410_v18 }
 0x1b1   :  { %19638 = vmatprep.subr.bf16.mxu0 %v21799_v0 }
 0x1b2   :  { %19604 = vmatpush3.bf16.msra.mxu1 %v22263_v52 }
 0x1b3   :  { %19605 = vmatprep.subr.bf16.mxu1 %v21799_v0 }
 0x1b4   :  { %19640 = vmatpush3.bf16.msra.mxu0 %v22421_v30 }
 0x1b5   :  { %19662 = vmatprep.subr.bf16.mxu0 %v21799_v0 }
 0x1b6   :  { %19607 = vmatpush3.bf16.msra.mxu1 %v22276_v56 }
 0x1b7   :  { %16029 = vmatmul.mubr.msk.f32.vlgmr.msra.gmra.mrb[52].mxu0 %vm3257_vm5, %v3207_v58  ;;  %19608 = vmatprep.subr.bf16.mxu1 %v21799_v0 }
 0x1b8   :  { %19664 = vmatpush3.bf16.msra.mxu0 %v22251_v49  ;;  %16090 = vmatprep.mubr.msk.f32.mxu0 %vm21801_vm0, %v21802_v1  ;;  %v2543_v49 = vadd.f32 %v22372_v33, %v22563_v20  ;;  %v4753_v20 = vld [vmem:[%s22767_s21] sm:$0xff] }
 0x1b9   :  { %19665 = vmatprep.subr.bf16.mxu0 %v21799_v0  ;;  %v22772_v24 = vpack.c.bf16 %v4754_v21, %v4753_v20 }
 0x1ba   :  { %19610 = vmatpush3.bf16.msra.mxu1 %v22287_v59  ;;  %v3208_v60 = vmax.f32 %v2543_v49, 0.0 }
 0x1bb   :  { %19611 = vmatprep.subr.bf16.mxu1 %v21799_v0 }
 0x1bc   :  { %19667 = vmatpush3.bf16.msra.mxu0 %v22263_v52 }
 0x1bd   :  { %19668 = vmatprep.subr.bf16.mxu0 %v21799_v0 }
 0x1be   :  { %19613 = vmatpush3.bf16.msra.mxu1 %v22298_v63 }
 0x1bf   :  { %19614 = vmatprep.subr.bf16.mxu1 %v21799_v0 }
 0x1c0   :  { %19670 = vmatpush3.bf16.msra.mxu0 %v22276_v56  ;;  %v2979_v56 = vadd.f32 %v22372_v33, %v22601_v45  ;;  %v4764_v45 = vld [vmem:[%s22767_s21 + $0x58] sm:$0xff] }
 0x1c1   :  { %19671 = vmatprep.subr.bf16.mxu0 %v21799_v0  ;;  %v22811_v46 = vpack.c.bf16 %v4764_v45, %v4763_v44 }
 0x1c2   :  { %19616 = vmatpush3.bf16.msra.mxu1 %v22311_v6 }
 0x1c3   :  { %19617 = vmatprep.subr.bf16.mxu1 %v21799_v0 }
 0x1c4   :  { %19673 = vmatpush3.bf16.msra.mxu0 %v22287_v59  ;;  %v3210_v59 = vmax.f32 %v2979_v56, 0.0 }
 0x1c5   :  { %19674 = vmatprep.subr.bf16.mxu0 %v21799_v0 }
 0x1c6   :  { %19619 = vmatpush3.bf16.msra.mxu1 %v22325_v13  ;;  %v3400_v52 = vpop.f32.mrb[38].mxu0 }
 0x1c7   :  { %v15596_v62 = vpop.f32.mrb[39].mxu0  ;;  %19641 = vmatprep.subr.bf16.mxu1 %v21799_v0 }
 0x1c8   :  { %19676 = vmatpush3.bf16.msra.mxu0 %v22298_v63 }
 0x1c9   :  { %15998 = vmatmul.mubr.msk.f32.vlgmr.msra.gmra.mrb[58].mxu1 %vm3257_vm5, %v3208_v60  ;;  %19677 = vmatprep.subr.bf16.mxu0 %v21799_v0 }
 0x1ca   :  { %19643 = vmatpush3.bf16.msra.mxu1 %v22319_v10  ;;  %16059 = vmatprep.mubr.msk.f32.mxu1 %vm21801_vm0, %v21802_v1 }
 0x1cb   :  { %19644 = vmatprep.subr.bf16.mxu1 %v21799_v0 }
 0x1cc   :  { %19679 = vmatpush3.bf16.msra.mxu0 %v22311_v6 }
 0x1cd   :  { %19680 = vmatprep.subr.bf16.mxu0 %v21799_v0 }
 0x1ce   :  { %19646 = vmatpush3.bf16.msra.mxu1 %v22330_v8 }
 0x1cf   :  { %19647 = vmatprep.subr.bf16.mxu1 %v21799_v0 }
 0x1d0   :  { %19682 = vmatpush3.bf16.msra.mxu0 %v22325_v13 }
 0x1d1   :  { %19704 = vmatprep.subr.bf16.mxu0 %v21799_v0 }
 0x1d2   :  { %19649 = vmatpush3.bf16.msra.mxu1 %v22340_v16 }
 0x1d3   :  { %16091 = vmatmul.mubr.msk.f32.vlgmr.msra.gmra.mrb[54].mxu0 %vm3257_vm5, %v3210_v59  ;;  %19650 = vmatprep.subr.bf16.mxu1 %v21799_v0 }
 0x1d4   :  { %19706 = vmatpush3.bf16.msra.mxu0 %v22319_v10  ;;  %16152 = vmatprep.mubr.msk.f32.mxu0 %vm21801_vm0, %v21802_v1  ;;  %v2761_v10 = vadd.f32 %v22372_v33, %v22582_v36  ;;  %v4759_v36 = vld [vmem:[%s22767_s21 + $0x30] sm:$0xff]  ;;  %s23446_s21 = sld [smem:[%s25311_s0 + %s21821_s18]]  }
 0x1d5   :  { %19707 = vmatprep.subr.bf16.mxu0 %v21799_v0  ;;  %v22795_v38 = vpack.c.bf16 %v4760_v37, %v4759_v36 }
 0x1d6   :  { %19652 = vmatpush3.bf16.msra.mxu1 %v22346_v19  ;;  %v3209_v2 = vmax.f32 %v2761_v10, 0.0 }
 0x1d7   :  { %19653 = vmatprep.subr.bf16.mxu1 %v21799_v0 }
 0x1d8   :  { %19709 = vmatpush3.bf16.msra.mxu0 %v22330_v8  ;;  %v3327_v63 = vpop.f32.mrb[44].mxu1 }
 0x1d9   :  { %v22714_v6 = vadd.f32 %v3400_v52, %v3327_v63  ;;  %v15565_v13 = vpop.f32.mrb[45].mxu1  ;;  %19710 = vmatprep.subr.bf16.mxu0 %v21799_v0 }
 0x1da   :  { %19655 = vmatpush3.bf16.msra.mxu1 %v22352_v22 }
 0x1db   :  { %19656 = vmatprep.subr.bf16.mxu1 %v21799_v0 }
 0x1dc   :  { %19712 = vmatpush3.bf16.msra.mxu0 %v22340_v16  ;;  %v3197_v16 = vadd.f32 %v22372_v33, %v22615_v57 }
 0x1dd   :  { %19713 = vmatprep.subr.bf16.mxu0 %v21799_v0 }
 0x1de   :  { %19658 = vmatpush3.bf16.msra.mxu1 %v22358_v25 }
 0x1df   :  { %19659 = vmatprep.subr.bf16.mxu1 %v21799_v0 }
 0x1e0   :  { %19715 = vmatpush3.bf16.msra.mxu0 %v22346_v19  ;;  %v3211_v19 = vmax.f32 %v3197_v16, 0.0 }
 0x1e1   :  { %19716 = vmatprep.subr.bf16.mxu0 %v21799_v0 }
 0x1e2   :  { %v3550_v8 = vpop.f32.mrb[40].mxu0  ;;  %19661 = vmatpush3.bf16.msra.mxu1 %v22364_v28 }
 0x1e3   :  { %v15658_v3 = vpop.f32.mrb[41].mxu0  ;;  %19683 = vmatprep.subr.bf16.mxu1 %v21799_v0 }
 0x1e4   :  { %19718 = vmatpush3.bf16.msra.mxu0 %v22352_v22 }
 0x1e5   :  { %16060 = vmatmul.mubr.msk.f32.vlgmr.msra.gmra.mrb[60].mxu1 %vm3257_vm5, %v3209_v2  ;;  %19719 = vmatprep.subr.bf16.mxu0 %v21799_v0 }
 0x1e6   :  { %19685 = vmatpush3.bf16.msra.mxu1 %v22377_v42  ;;  %16121 = vmatprep.mubr.msk.f32.mxu1 %vm21801_vm0, %v21802_v1 }
 0x1e7   :  { %19686 = vmatprep.subr.bf16.mxu1 %v21799_v0 }
 0x1e8   :  { %19721 = vmatpush3.bf16.msra.mxu0 %v22358_v25 }
 0x1e9   :  { %19722 = vmatprep.subr.bf16.mxu0 %v21799_v0 }
 0x1ea   :  { %19688 = vmatpush3.bf16.msra.mxu1 %v22383_v47 }
 0x1eb   :  { %19689 = vmatprep.subr.bf16.mxu1 %v21799_v0 }
 0x1ec   :  { %19724 = vmatpush3.bf16.msra.mxu0 %v22364_v28 }
 0x1ed   :  { %19746 = vmatprep.subr.bf16.mxu0 %v21799_v0 }
 0x1ee   :  { %19691 = vmatpush3.bf16.msra.mxu1 %v22391_v55 }
 0x1ef   :  { %16153 = vmatmul.mubr.msk.f32.vlgmr.msra.gmra.mrb[56].mxu0 %vm3257_vm5, %v3211_v19  ;;  %19692 = vmatprep.subr.bf16.mxu1 %v21799_v0 }
 0x1f0   :  { %16214 = vmatprep.mubr.msk.f32.mxu0 %vm21801_vm0, %v21802_v1  ;;  %19748 = vmatpush3.bf16.msra.mxu0 %v22772_v24 }
 0x1f1   :  { %19749 = vmatprep.subr.bf16.mxu0 %v21799_v0 }
 0x1f2   :  { %19694 = vmatpush3.bf16.msra.mxu1 %v22397_v61 }
 0x1f3   :  { %19695 = vmatprep.subr.bf16.mxu1 %v21799_v0 }
 0x1f4   :  { %v3480_v22 = vpop.f32.mrb[46].mxu1  ;;  %19751 = vmatpush3.bf16.msra.mxu0 %v22777_v27 }
 0x1f5   :  { %v3551_v25 = vadd.f32 %v3550_v8, %v3480_v22  ;;  %v15627_v33 = vpop.f32.mrb[47].mxu1  ;;  %19752 = vmatprep.subr.bf16.mxu0 %v21799_v0 }
 0x1f6   :  { %19697 = vmatpush3.bf16.msra.mxu1 %v22403_v11  ;;  %v12880_v33 = vld [vmem:[%s12704_s25] ss:$0 sm:$0xff]  ;;  %s12718_s25 = sld [smem:[%s25311_s0 + %s21822_s22]]  }
 0x1f7   :  { %19698 = vmatprep.subr.bf16.mxu1 %v21799_v0 }
 0x1f8   :  { %19754 = vmatpush3.bf16.msra.mxu0 %v22787_v35 }
 0x1f9   :  { %19755 = vmatprep.subr.bf16.mxu0 %v21799_v0 }
 0x1fa   :  { %19700 = vmatpush3.bf16.msra.mxu1 %v22410_v18 }
 0x1fb   :  { %19701 = vmatprep.subr.bf16.mxu1 %v21799_v0 }
 0x1fc   :  { %19757 = vmatpush3.bf16.msra.mxu0 %v22795_v38 }
 0x1fd   :  { %19758 = vmatprep.subr.bf16.mxu0 %v21799_v0 }
 0x1fe   :  { %19703 = vmatpush3.bf16.msra.mxu1 %v22421_v30  ;;  %v3698_v28 = vpop.f32.mrb[42].mxu0 }
 0x1ff   :  { %v15720_v42 = vpop.f32.mrb[43].mxu0  ;;  %19725 = vmatprep.subr.bf16.mxu1 %v21799_v0 }
 0x200   :  { %19760 = vmatpush3.bf16.msra.mxu0 %v22803_v43  ;;  %v22832_v42 = vadd.f32 %v12880_v33, %v22714_v6 }
 0x201   :  { %16122 = vmatmul.mubr.msk.f32.vlgmr.msra.gmra.mrb[62].mxu1 %vm3257_vm5, %v3209_v2  ;;  %19761 = vmatprep.subr.bf16.mxu0 %v21799_v0 }
 0x202   :  { %16183 = vmatprep.mubr.msk.f32.mxu1 %vm21801_vm0, %v21802_v1  ;;  %19727 = vmatpush3.bf16.msra.mxu1 %v22772_v24 }
 0x203   :  { %19728 = vmatprep.subr.bf16.mxu1 %v21799_v0 }
 0x204   :  { %19763 = vmatpush3.bf16.msra.mxu0 %v22811_v46 }
 0x205   :  { %19764 = vmatprep.subr.bf16.mxu0 %v21799_v0 }
 0x206   :  { %19730 = vmatpush3.bf16.msra.mxu1 %v22777_v27 }
 0x207   :  { %19731 = vmatprep.subr.bf16.mxu1 %v21799_v0 }
 0x208   :  { %19766 = vmatpush3.bf16.msra.mxu0 %v22817_v51 }
 0x209   :  { %19773 = vmatprep.subr.bf16.mxu0 %v21799_v0 }
 0x20a   :  { %19733 = vmatpush3.bf16.msra.mxu1 %v22787_v35 }
 0x20b   :  { %19734 = vmatprep.subr.bf16.mxu1 %v21799_v0 }
 0x20e   :  { %19736 = vmatpush3.bf16.msra.mxu1 %v22795_v38 }
 0x20f   :  { %19737 = vmatprep.subr.bf16.mxu1 %v21799_v0 }
 0x210   :  { %v3623_v47 = vpop.f32.mrb[48].mxu1 }
 0x211   :  { %v22760_v55 = vadd.f32 %v3623_v47, %v3551_v25  ;;  %v15689_v61 = vpop.f32.mrb[49].mxu1 }
 0x212   :  { %19739 = vmatpush3.bf16.msra.mxu1 %v22803_v43 }
 0x213   :  { %19740 = vmatprep.subr.bf16.mxu1 %v21799_v0 }
 0x216   :  { %19742 = vmatpush3.bf16.msra.mxu1 %v22811_v46 }
 0x217   :  { %19743 = vmatprep.subr.bf16.mxu1 %v21799_v0 }
 0x21a   :  { %v3841_v11 = vpop.f32.mrb[44].mxu0  ;;  %19745 = vmatpush3.bf16.msra.mxu1 %v22817_v51 }
 0x21b   :  { %v15782_v4 = vpop.f32.mrb[45].mxu0  ;;  %19767 = vmatprep.subr.bf16.mxu1 %v21799_v0 }
 0x21c   :  { %v4719_v4 = vmul.f32 %v22832_v42, %v22832_v42 }
 0x22c   :  { %v3768_v18 = vpop.f32.mrb[50].mxu1 }
 0x22d   :  { %v3769_v5 = vadd.f32 %v3768_v18, %v3698_v28  ;;  %v15751_v7 = vpop.f32.mrb[51].mxu1  ;;  %v22829_v28 = vadd.f32 %v12880_v33, %v22760_v55 }
 0x22f   :  { %v22762_v9 = vadd.f32 %v3841_v11, %v3769_v5  ;;  %v4721_v61 = vmul.f32 %v22829_v28, %v22829_v28  ;;  %v4720_v18 = vadd.f32 %v22829_v28, %v22832_v42 }
 0x231   :  { %v22835_v47 = vadd.f32 %v12880_v33, %v22762_v9  ;;  %v4722_v6 = vadd.f32 %v4721_v61, %v4719_v4  ;;  %v12909_v4 = vld [vmem:[%s22884_s3 + $0xa0] sm:$0xff] }
 0x233   :  { %v4724_v55 = vmul.f32 %v22835_v47, %v22835_v47  ;;  %v4723_v7 = vadd.f32 %v4720_v18, %v22835_v47  ;;  %v12910_v18 = vld [vmem:[%s22884_s3 + $0xa8] sm:$0xff] }
 0x236   :  { %v3986_v30 = vpop.f32.mrb[46].mxu0 }
 0x237   :  { %v15844_v12 = vpop.f32.mrb[47].mxu0 }
 0x248   :  { %v3916_v14 = vpop.f32.mrb[52].mxu1 }
 0x249   :  { %v3987_v15 = vadd.f32 %v3986_v30, %v3916_v14  ;;  %v15813_v17 = vpop.f32.mrb[53].mxu1  ;;  %v4725_v14 = vadd.f32 %v4724_v55, %v4722_v6  ;;  %v22905_v55 = vpack.c.bf16 %v12910_v18, %v12909_v4  ;;  %v12911_v6 = vld [vmem:[%s22884_s3 + $0xb0] sm:$0xff]  ;;  %v12916_v4 = vld [vmem:[%s22884_s3 + $0xd8] sm:$0xff]  ;;  %v5115_v18 = vld [vmem:[%s22884_s3 + $0x60] sm:$0xff] }
 0x252   :  { %v4134_v31 = vpop.f32.mrb[48].mxu0 }
 0x253   :  { %v15906_v29 = vpop.f32.mrb[49].mxu0 }
 0x264   :  { %v4059_v53 = vpop.f32.mrb[54].mxu1 }
 0x265   :  { %v4063_v54 = vadd.f32 %v4059_v53, %v3987_v15  ;;  %v15875_v57 = vpop.f32.mrb[55].mxu1 }
 0x267   :  { %v22839_v11 = vadd.f32 %v12880_v33, %v4063_v54 }
 0x269   :  { %v4727_v9 = vmul.f32 %v22839_v11, %v22839_v11  ;;  %v4726_v15 = vadd.f32 %v4723_v7, %v22839_v11  ;;  %v12912_v7 = vld [vmem:[%s22884_s3 + $0xb8] sm:$0xff] }
 0x26b   :  { %v4728_v23 = vadd.f32 %v4727_v9, %v4725_v14  ;;  %v22911_v9 = vpack.c.bf16 %v12912_v7, %v12911_v6  ;;  %v5116_v7 = vld [vmem:[%s22884_s3 + $0x68] sm:$0xff] }
 0x26e   :  { %v4277_v41 = vpop.f32.mrb[50].mxu0 }
 0x26f   :  { %v15968_v58 = vpop.f32.mrb[51].mxu0 }
 0x280   :  { %v4204_v49 = vpop.f32.mrb[56].mxu1 }
 0x281   :  { %v4205_v52 = vadd.f32 %v4204_v49, %v4134_v31  ;;  %v15937_v60 = vpop.f32.mrb[57].mxu1 }
 0x283   :  { %v4281_v62 = vadd.f32 %v4277_v41, %v4205_v52 }
 0x285   :  { %v22847_v5 = vadd.f32 %v12880_v33, %v4281_v62 }
 0x287   :  { %v4730_v17 = vmul.f32 %v22847_v5, %v22847_v5  ;;  %v4729_v26 = vadd.f32 %v4726_v15, %v22847_v5 }
 0x289   :  { %v4731_v32 = vadd.f32 %v4730_v17, %v4728_v23 }
 0x28a   :  { %v4422_v56 = vpop.f32.mrb[52].mxu0 }
 0x28b   :  { %v16030_v59 = vpop.f32.mrb[53].mxu0 }
 0x29c   :  { %v4352_v63 = vpop.f32.mrb[58].mxu1 }
 0x29d   :  { %v4423_v13 = vadd.f32 %v4422_v56, %v4352_v63  ;;  %v15999_v10 = vpop.f32.mrb[59].mxu1  ;;  %v4925_v63 = vld [vmem:[%s12728_s29] sm:$0xff] }
 0x2a6   :  { %v4570_v8 = vpop.f32.mrb[54].mxu0 }
 0x2a7   :  { %v16092_v2 = vpop.f32.mrb[55].mxu0 }
 0x2a8   :  { %v12904_v2 = vld [vmem:[%s22884_s3 + $0x78] sm:$0xff] }
 0x2b8   :  { %v4495_v3 = vpop.f32.mrb[60].mxu1 }
 0x2b9   :  { %v4499_v16 = vadd.f32 %v4495_v3, %v4423_v13  ;;  %v16061_v19 = vpop.f32.mrb[61].mxu1  ;;  %v4926_v13 = vld [vmem:[%s12728_s29 + $0x8] sm:$0xff]  ;;  %s23670_s29 = sld [smem:[%s25311_s0 + %s21823_s26]]  }
 0x2ba   :  { %v22877_v10 = vpack.c.bf16 %v4926_v13, %v4925_v63  ;;  %v12906_v19 = vld [vmem:[%s22884_s3 + $0x88] sm:$0xff]  ;;  %v12913_v13 = vld [vmem:[%s22884_s3 + $0xc0] sm:$0xff] }
 0x2bb   :  { %v22852_v30 = vadd.f32 %v12880_v33, %v4499_v16  ;;  %v12905_v16 = vld [vmem:[%s22884_s3 + $0x80] sm:$0xff] }
 0x2bd   :  { %v4733_v31 = vmul.f32 %v22852_v30, %v22852_v30  ;;  %v4732_v34 = vadd.f32 %v4729_v26, %v22852_v30 }
 0x2bf   :  { %v4734_v37 = vadd.f32 %v4733_v31, %v4731_v32  ;;  %v4918_v32 = vld [vmem:[%s12705_s7] sm:$0x1]  ;;  %s12720_s7 = sld [smem:[%s25311_s0 + %s21825_s4]]  }
 0x2c2   :  { %v4713_v22 = vpop.f32.mrb[56].mxu0 }
 0x2c3   :  { %v16154_v25 = vpop.f32.mrb[57].mxu0 }
 0x2c4   :  { %v12907_v25 = vld [vmem:[%s22884_s3 + $0x90] sm:$0xff] }
 0x2d4   :  { %v4640_v12 = vpop.f32.mrb[62].mxu1 }
 0x2d5   :  { %v4641_v20 = vadd.f32 %v4640_v12, %v4570_v8  ;;  %v16123_v21 = vpop.f32.mrb[63].mxu1  ;;  %v12903_v8 = vld [vmem:[%s22884_s3 + $0x70] sm:$0xff] }
 0x2d6   :  { %v22888_v3 = vpack.c.bf16 %v12904_v2, %v12903_v8  ;;  %v12914_v8 = vld [vmem:[%s22884_s3 + $0xc8] sm:$0xff]  ;;  %v5113_v2 = vld [vmem:[%s22884_s3 + $0x50] sm:$0xff] }
 0x2d7   :  { %v4717_v29 = vadd.f32 %v4713_v22, %v4641_v20  ;;  %v22893_v22 = vpack.c.bf16 %v12906_v19, %v12905_v16  ;;  %v22963_v16 = vpack.c.bf16 %v12914_v8, %v12913_v13  ;;  %v5114_v19 = vld [vmem:[%s22884_s3 + $0x58] sm:$0xff]  ;;  %v12922_v13 = vld [vmem:[%s22884_s3 + $0x108] sm:$0xff] }
 0x2d9   :  { %v22861_v36 = vadd.f32 %v12880_v33, %v4717_v29  ;;  %v12908_v33 = vld [vmem:[%s22884_s3 + $0x98] sm:$0xff] }
 0x2da   :  { %v22899_v61 = vpack.c.bf16 %v12908_v33, %v12907_v25  ;;  %v22966_v25 = vpack.c.bf16 %v5114_v19, %v5113_v2  ;;  %v12915_v33 = vld [vmem:[%s22884_s3 + $0xd0] sm:$0xff]  ;;  %v12924_v19 = vld [vmem:[%s22884_s3 + $0x118] sm:$0xff] }
 0x2db   :  { %v4735_v39 = vadd.f32 %v4732_v34, %v22861_v36  ;;  %v4736_v40 = vmul.f32 %v22861_v36, %v22861_v36  ;;  %v22975_v6 = vpack.c.bf16 %v12916_v4, %v12915_v33  ;;  %v12923_v2 = vld [vmem:[%s22884_s3 + $0x110] sm:$0xff]  ;;  %v12925_v4 = vld [vmem:[%s22884_s3 + $0x120] sm:$0xff] }
 0x2dc   :  { %v23033_v33 = vpack.c.bf16 %v12924_v19, %v12923_v2 }
 0x2dd   :  { %v4737_v44 = vadd.f32 %v4736_v40, %v4734_v37  ;;  %v4739_v45 = vsel %vm4738_vm6, %v4735_v39, 0.0  ;;  %v5103_v39 = vld [vmem:[%s22884_s3] sm:$0xff]  ;;  %v5104_v40 = vld [vmem:[%s22884_s3 + $0x8] sm:$0xff] }
 0x2de   :  { %v4740_v48 = vrot.slane %v4739_v45, 4 }
 0x2df   :  { %v4746_v50 = vsel %vm4738_vm6, %v4737_v44, 0.0  ;;  %v4922_v44 = vld [vmem:[%s12706_s11] sm:$0x1]  ;;  %s24172_s11 = sld [smem:[%s25311_s0 + %s21826_s8]]  }
 0x2e0   :  { %v4741_v53 = vadd.f32 %v4740_v48, %v4739_v45  ;;  %v4747_v54 = vrot.slane %v4746_v50, 4  ;;  %v22928_v48 = vpack.c.bf16 %v5104_v40, %v5103_v39  ;;  %v12918_v39 = vld [vmem:[%s22884_s3 + $0xe8] sm:$0xff] }
 0x2e2   :  { %v4742_v57 = vrot.slane %v4741_v53, 2  ;;  %v4748_v41 = vadd.f32 %v4747_v54, %v4746_v50  ;;  %v5106_v54 = vld [vmem:[%s22884_s3 + $0x18] sm:$0xff] }
 0x2e4   :  { %v4743_v58 = vadd.f32 %v4742_v57, %v4741_v53  ;;  %v4749_v49 = vrot.slane %v4748_v41, 2  ;;  %v5105_v53 = vld [vmem:[%s22884_s3 + $0x10] sm:$0xff] }
 0x2e5   :  { %v22935_v57 = vpack.c.bf16 %v5106_v54, %v5105_v53 }
 0x2e6   :  { %v4744_v52 = vrot.slane %v4743_v58, 1  ;;  %v4750_v60 = vadd.f32 %v4749_v49, %v4748_v41  ;;  %v5107_v41 = vld [vmem:[%s22884_s3 + $0x20] sm:$0xff] }
 0x2e8   :  { %v4745_v62 = vadd.f32 %v4744_v52, %v4743_v58  ;;  %v4751_v56 = vrot.slane %v4750_v60, 1  ;;  %v5108_v58 = vld [vmem:[%s22884_s3 + $0x28] sm:$0xff]  ;;  %v5109_v52 = vld [vmem:[%s22884_s3 + $0x30] sm:$0xff] }
 0x2e9   :  { %v22943_v49 = vpack.c.bf16 %v5108_v58, %v5107_v41 }
 0x2ea   :  { %16184 = vmatmul.mubr.msk.f32.vlgmr.msra.gmra.mrb[64].mxu1 %vm3257_vm5, %v4745_v62  ;;  %v4752_v59 = vadd.f32 %v4751_v56, %v4750_v60  ;;  %v5110_v60 = vld [vmem:[%s22884_s3 + $0x38] sm:$0xff]  ;;  %v5111_v56 = vld [vmem:[%s22884_s3 + $0x40] sm:$0xff] }
 0x2eb   :  { %16221 = vmatprep.mubr.msk.f32.mxu1 %vm21801_vm0, %v21802_v1  ;;  %19769 = vmatpush3.bf16.msra.mxu1 %v22877_v10  ;;  %v22949_v62 = vpack.c.bf16 %v5110_v60, %v5109_v52 }
 0x2ec   :  { %16215 = vmatmul.mubr.msk.f32.vlgmr.msra.gmra.mrb[58].mxu0 %vm3257_vm5, %v4752_v59  ;;  %19770 = vmatprep.subr.bf16.mxu1 %v21799_v0  ;;  %v5112_v59 = vld [vmem:[%s22884_s3 + $0x48] sm:$0xff] }
 0x2ed   :  { %16259 = vmatprep.mubr.msk.f32.mxu0 %vm21801_vm0, %v21802_v1  ;;  %19775 = vmatpush3.bf16.msra.mxu0 %v22888_v3  ;;  %v22955_v63 = vpack.c.bf16 %v5112_v59, %v5111_v56  ;;  %v12920_v56 = vld [vmem:[%s22884_s3 + $0xf8] sm:$0xff]  ;;  %v12921_v59 = vld [vmem:[%s22884_s3 + $0x100] sm:$0xff] }
 0x2ee   :  { %19776 = vmatprep.subr.bf16.mxu0 %v21799_v0  ;;  %v23025_v8 = vpack.c.bf16 %v12922_v13, %v12921_v59  ;;  %v12965_v59 = vld [vmem:[%s23163_s15 + $0x110] sm:$0xff]  ;;  %v12966_v13 = vld [vmem:[%s23163_s15 + $0x118] sm:$0xff] }
 0x2f1   :  { %19778 = vmatpush3.bf16.msra.mxu0 %v22893_v22 }
 0x2f2   :  { %19779 = vmatprep.subr.bf16.mxu0 %v21799_v0 }
 0x2f5   :  { %19781 = vmatpush3.bf16.msra.mxu0 %v22899_v61 }
 0x2f6   :  { %19782 = vmatprep.subr.bf16.mxu0 %v21799_v0 }
 0x2f9   :  { %19784 = vmatpush3.bf16.msra.mxu0 %v22905_v55 }
 0x2fa   :  { %19785 = vmatprep.subr.bf16.mxu0 %v21799_v0 }
 0x2fd   :  { %19787 = vmatpush3.bf16.msra.mxu0 %v22911_v9 }
 0x2fe   :  { %19788 = vmatprep.subr.bf16.mxu0 %v21799_v0 }
 0x301   :  { %19790 = vmatpush3.bf16.msra.mxu0 %v22963_v16 }
 0x302   :  { %19791 = vmatprep.subr.bf16.mxu0 %v21799_v0 }
 0x305   :  { %19793 = vmatpush3.bf16.msra.mxu0 %v22975_v6 }
 0x306   :  { %19815 = vmatprep.subr.bf16.mxu0 %v21799_v0 }
 0x3bd   :  { %v4836_v12 = vpop.f32.mrb[64].mxu1 }
 0x3be   :  { %v4840_v14 = vmul.f32 0.010204081, %v4836_v12  ;;  %v16185_v15 = vpop.f32.mrb[65].mxu1  ;;  %v22978_v12 = vpack.c.bf16 %v5116_v7, %v5115_v18  ;;  %v12926_v18 = vld [vmem:[%s22884_s3 + $0x128] sm:$0xff] }
 0x3bf   :  { %v4910_v17 = vpop.f32.mrb[58].mxu0  ;;  %v23041_v7 = vpack.c.bf16 %v12926_v18, %v12925_v4 }
 0x3c0   :  { %v4915_v20 = vmul.f32 %v4840_v14, %v4840_v14  ;;  %v4914_v21 = vmul.f32 0.010204081, %v4910_v17  ;;  %v16216_v23 = vpop.f32.mrb[59].mxu0 }
 0x3c2   :  { %v4916_v26 = vsub.f32 %v4914_v21, %v4915_v20 }
 0x3c4   :  { %v4917_v31 = vmax.f32 %v4916_v26, 0.0 }
 0x3c6   :  { %v4919_v29 = vadd.f32 1e-05, %v4917_v31 }
 0x3c8   :  { %21680 = vrsqrt.f32 %v4919_v29 }
 0x3d2   :  { %v21681_v34 = vpop.eup %21680 }
 0x3d3   :  { %v4921_v37 = vmul.f32 %v21681_v34, %v4918_v32 }
 0x3d5   :  { %16222 = vmatmul.mubr.msk.f32.vlgmr.msra.gmra.mrb[66].mxu1 %vm4927_vm7, %v4921_v37  ;;  %v4923_v45 = vmul.f32 %v4921_v37, %v4840_v14  ;;  %v5074_v14 = vlaneseq  ;;  %v12917_v37 = vld [vmem:[%s22884_s3 + $0xe0] sm:$0xff] }
 0x3d6   :  { %19772 = vmatpush3.bf16.msra.mxu1 %v22877_v10  ;;  %16228 = vmatprep.mubr.msk.f32.mxu1 %vm21801_vm0, %v21802_v1 }
 0x3d7   :  { %v4924_v50 = vsub.f32 %v4922_v44, %v4923_v45  ;;  %19794 = vmatprep.subr.bf16.mxu1 %v21799_v0  ;;  %v5075_v15 = vshrl.u32 %v5074_v14, 7  ;;  %v12927_v14 = vld [vmem:[%s22884_s3 + $0x130] sm:$0xff] }
 0x3d9   :  { %16229 = vmatmul.mubr.msk.f32.vlgmr.msra.gmra.mrb[68].mxu1 %vm4927_vm7, %v4924_v50  ;;  %v22984_v17 = vsub.s32 0, %v5075_v15  ;;  %v12928_v15 = vld [vmem:[%s22884_s3 + $0x138] sm:$0xff] }
 0x3da   :  { %19796 = vmatpush3.bf16.msra.mxu1 %v22928_v48  ;;  %16290 = vmatprep.mubr.msk.f32.mxu1 %vm21801_vm0, %v21802_v1 }
 0x3db   :  { %19797 = vmatprep.subr.bf16.mxu1 %v21799_v0 }
 0x3de   :  { %19799 = vmatpush3.bf16.msra.mxu1 %v22935_v57 }
 0x3df   :  { %19800 = vmatprep.subr.bf16.mxu1 %v21799_v0 }
 0x3e2   :  { %19802 = vmatpush3.bf16.msra.mxu1 %v22943_v49 }
 0x3e3   :  { %19803 = vmatprep.subr.bf16.mxu1 %v21799_v0 }
 0x3e6   :  { %19805 = vmatpush3.bf16.msra.mxu1 %v22949_v62 }
 0x3e7   :  { %19806 = vmatprep.subr.bf16.mxu1 %v21799_v0 }
 0x3ea   :  { %19808 = vmatpush3.bf16.msra.mxu1 %v22955_v63 }
 0x3eb   :  { %19809 = vmatprep.subr.bf16.mxu1 %v21799_v0 }
 0x3ee   :  { %19811 = vmatpush3.bf16.msra.mxu1 %v22966_v25 }
 0x3ef   :  { %19812 = vmatprep.subr.bf16.mxu1 %v21799_v0 }
 0x3f2   :  { %19814 = vmatpush3.bf16.msra.mxu1 %v22978_v12 }
 0x3f3   :  { %19836 = vmatprep.subr.bf16.mxu1 %v21799_v0 }
 0x4a8   :  { %v4997_v20 = vpop.f32.mrb[66].mxu1 }
 0x4a9   :  { %v5077_v21 = vrot.slane %v4997_v20, %v22984_v17  ;;  %v16223_v23 = vpop.f32.mrb[67].mxu1  ;;  %v23049_v20 = vpack.c.bf16 %v12928_v15, %v12927_v14 }
 0x4aa   :  { %v12930_v23 = vld [vmem:[%s22884_s3 + $0x148] sm:$0xff] }
 0x4ab   :  { %v5085_v31 = vmul.f32 %v5077_v21, %v22829_v28  ;;  %v5078_v34 = vmul.f32 %v5077_v21, %v22832_v42  ;;  %v5088_v40 = vmul.f32 %v5077_v21, %v22835_v47  ;;  %v5091_v44 = vmul.f32 %v5077_v21, %v22839_v11 }
 0x4ac   :  { %v5070_v26 = vpop.f32.mrb[68].mxu1  ;;  %v5094_v45 = vmul.f32 %v5077_v21, %v22847_v5  ;;  %v5097_v50 = vmul.f32 %v5077_v21, %v22852_v30  ;;  %v5100_v53 = vmul.f32 %v5077_v21, %v22861_v36  ;;  %v22999_v42 = vpack.c.bf16 %v12918_v39, %v12917_v37  ;;  %v12919_v30 = vld [vmem:[%s22884_s3 + $0xf0] sm:$0xff]  ;;  %v12929_v21 = vld [vmem:[%s22884_s3 + $0x140] sm:$0xff]  ;;  %v12950_v37 = vld [vmem:[%s23163_s15 + $0xa8] sm:$0xff]  ;;  %s12719_s3 = sld [smem:[%s25311_s0 + %s21824_s30]]  }
 0x4ad   :  { %v5082_v29 = vrot.slane %v5070_v26, %v22984_v17  ;;  %v16230_v32 = vpop.f32.mrb[69].mxu1  ;;  %v23013_v36 = vpack.c.bf16 %v12920_v56, %v12919_v30  ;;  %v23057_v26 = vpack.c.bf16 %v12930_v23, %v12929_v21  ;;  %v12963_v30 = vld [vmem:[%s23163_s15 + $0x100] sm:$0xff]  ;;  %v12964_v56 = vld [vmem:[%s23163_s15 + $0x108] sm:$0xff] }
 0x4af   :  { %v5086_v28 = vadd.f32 %v5085_v31, %v5082_v29  ;;  %v5083_v54 = vadd.f32 %v5082_v29, %v5078_v34  ;;  %v22997_v41 = vadd.f32 %v5088_v40, %v5082_v29  ;;  %v5092_v58 = vadd.f32 %v5091_v44, %v5082_v29  ;;  %v12949_v34 = vld [vmem:[%s23163_s15 + $0xa0] sm:$0xff]  ;;  %v12951_v40 = vld [vmem:[%s23163_s15 + $0xb0] sm:$0xff]  ;;  %v12952_v44 = vld [vmem:[%s23163_s15 + $0xb8] sm:$0xff] }
 0x4b0   :  { %v23001_v52 = vadd.f32 %v5094_v45, %v5082_v29  ;;  %v23003_v47 = vadd.f32 %v5097_v50, %v5082_v29  ;;  %v23005_v11 = vadd.f32 %v5100_v53, %v5082_v29  ;;  %v19975_v39 = vpack.c.bf16 %v12950_v37, %v12949_v34  ;;  %v12955_v50 = vld [vmem:[%s23163_s15 + $0xc0] sm:$0xff]  ;;  %v12956_v53 = vld [vmem:[%s23163_s15 + $0xc8] sm:$0xff]  ;;  %v5821_v34 = vld [vmem:[%s23163_s15 + $0x38] sm:$0xff] }
 0x4b1   :  { %v5087_v5 = vmax.f32 %v5086_v28, 0.0  ;;  %v5084_v60 = vmax.f32 %v5083_v54, 0.0  ;;  %v5090_v31 = vmax.f32 %v22997_v41, 0.0  ;;  %v5093_v29 = vmax.f32 %v5092_v58, 0.0  ;;  %v12957_v28 = vld [vmem:[%s23163_s15 + $0xd0] sm:$0xff]  ;;  %v12958_v41 = vld [vmem:[%s23163_s15 + $0xd8] sm:$0xff] }
 0x4b2   :  { %v5096_v32 = vmax.f32 %v23001_v52, 0.0  ;;  %v19978_v45 = vpack.c.bf16 %v12952_v44, %v12951_v40  ;;  %v19999_v54 = vpack.c.bf16 %v12956_v53, %v12955_v50  ;;  %v20002_v58 = vpack.c.bf16 %v12958_v41, %v12957_v28  ;;  %v12960_v52 = vld [vmem:[%s23163_s15 + $0xe8] sm:$0xff]  ;;  %v5825_v50 = vld [vmem:[%s23163_s15 + $0x58] sm:$0xff] }
 0x4b3   :  { %16260 = vmatmul.mubr.msk.f32.vlgmr.msra.gmra.mrb[60].mxu0 %vm3257_vm5, %v5087_v5  ;;  %16291 = vmatmul.mubr.msk.f32.vlgmr.msra.gmra.mrb[70].mxu1 %vm3257_vm5, %v5084_v60  ;;  %v12962_v5 = vld [vmem:[%s23163_s15 + $0xf8] sm:$0xff]  ;;  %v5823_v40 = vld [vmem:[%s23163_s15 + $0x48] sm:$0xff] }
 0x4b4   :  { %19817 = vmatpush3.bf16.msra.mxu0 %v22999_v42  ;;  %19838 = vmatpush3.bf16.msra.mxu1 %v22888_v3 }
 0x4b5   :  { %19818 = vmatprep.subr.bf16.mxu0 %v21799_v0  ;;  %19839 = vmatprep.subr.bf16.mxu1 %v21799_v0 }
 0x4b6   :  { %16321 = vmatprep.mubr.msk.f32.mxu0 %vm21801_vm0, %v21802_v1  ;;  %16352 = vmatprep.mubr.msk.f32.mxu1 %vm21801_vm0, %v21802_v1 }
 0x4b8   :  { %19820 = vmatpush3.bf16.msra.mxu0 %v23013_v36  ;;  %19841 = vmatpush3.bf16.msra.mxu1 %v22893_v22 }
 0x4b9   :  { %19821 = vmatprep.subr.bf16.mxu0 %v21799_v0  ;;  %19842 = vmatprep.subr.bf16.mxu1 %v21799_v0 }
 0x4bc   :  { %19823 = vmatpush3.bf16.msra.mxu0 %v23025_v8  ;;  %19844 = vmatpush3.bf16.msra.mxu1 %v22899_v61 }
 0x4bd   :  { %19824 = vmatprep.subr.bf16.mxu0 %v21799_v0  ;;  %19845 = vmatprep.subr.bf16.mxu1 %v21799_v0 }
 0x4c0   :  { %19826 = vmatpush3.bf16.msra.mxu0 %v23033_v33  ;;  %19847 = vmatpush3.bf16.msra.mxu1 %v22905_v55 }
 0x4c1   :  { %19827 = vmatprep.subr.bf16.mxu0 %v21799_v0  ;;  %19848 = vmatprep.subr.bf16.mxu1 %v21799_v0 }
 0x4c4   :  { %19829 = vmatpush3.bf16.msra.mxu0 %v23041_v7  ;;  %19850 = vmatpush3.bf16.msra.mxu1 %v22911_v9 }
 0x4c5   :  { %19830 = vmatprep.subr.bf16.mxu0 %v21799_v0  ;;  %19851 = vmatprep.subr.bf16.mxu1 %v21799_v0 }
 0x4c8   :  { %19832 = vmatpush3.bf16.msra.mxu0 %v23049_v20  ;;  %19853 = vmatpush3.bf16.msra.mxu1 %v22963_v16 }
 0x4c9   :  { %19833 = vmatprep.subr.bf16.mxu0 %v21799_v0  ;;  %19854 = vmatprep.subr.bf16.mxu1 %v21799_v0 }
 0x4cc   :  { %19835 = vmatpush3.bf16.msra.mxu0 %v23057_v26  ;;  %19856 = vmatpush3.bf16.msra.mxu1 %v22975_v6 }
 0x4cd   :  { %19857 = vmatprep.subr.bf16.mxu0 %v21799_v0  ;;  %19878 = vmatprep.subr.bf16.mxu1 %v21799_v0 }
 0x4cf   :  { %16322 = vmatmul.mubr.msk.f32.vlgmr.msra.gmra.mrb[62].mxu0 %vm3257_vm5, %v5090_v31  ;;  %16353 = vmatmul.mubr.msk.f32.vlgmr.msra.gmra.mrb[72].mxu1 %vm3257_vm5, %v5093_v29 }
 0x4d0   :  { %19859 = vmatpush3.bf16.msra.mxu0 %v22928_v48  ;;  %19880 = vmatpush3.bf16.msra.mxu1 %v22999_v42 }
 0x4d1   :  { %19860 = vmatprep.subr.bf16.mxu0 %v21799_v0  ;;  %19881 = vmatprep.subr.bf16.mxu1 %v21799_v0 }
 0x4d2   :  { %16383 = vmatprep.mubr.msk.f32.mxu0 %vm21801_vm0, %v21802_v1  ;;  %16414 = vmatprep.mubr.msk.f32.mxu1 %vm21801_vm0, %v21802_v1 }
 0x4d4   :  { %19862 = vmatpush3.bf16.msra.mxu0 %v22935_v57  ;;  %19883 = vmatpush3.bf16.msra.mxu1 %v23013_v36 }
 0x4d5   :  { %19863 = vmatprep.subr.bf16.mxu0 %v21799_v0  ;;  %19884 = vmatprep.subr.bf16.mxu1 %v21799_v0 }
 0x4d8   :  { %19865 = vmatpush3.bf16.msra.mxu0 %v22943_v49  ;;  %19886 = vmatpush3.bf16.msra.mxu1 %v23025_v8 }
 0x4d9   :  { %19866 = vmatprep.subr.bf16.mxu0 %v21799_v0  ;;  %19887 = vmatprep.subr.bf16.mxu1 %v21799_v0 }
 0x4dc   :  { %19868 = vmatpush3.bf16.msra.mxu0 %v22949_v62  ;;  %19889 = vmatpush3.bf16.msra.mxu1 %v23033_v33 }
 0x4dd   :  { %19869 = vmatprep.subr.bf16.mxu0 %v21799_v0  ;;  %19890 = vmatprep.subr.bf16.mxu1 %v21799_v0 }
 0x4e0   :  { %19871 = vmatpush3.bf16.msra.mxu0 %v22955_v63  ;;  %19892 = vmatpush3.bf16.msra.mxu1 %v23041_v7 }
 0x4e1   :  { %19872 = vmatprep.subr.bf16.mxu0 %v21799_v0  ;;  %19893 = vmatprep.subr.bf16.mxu1 %v21799_v0 }
 0x4e4   :  { %19874 = vmatpush3.bf16.msra.mxu0 %v22966_v25  ;;  %19895 = vmatpush3.bf16.msra.mxu1 %v23049_v20 }
 0x4e5   :  { %19875 = vmatprep.subr.bf16.mxu0 %v21799_v0  ;;  %19896 = vmatprep.subr.bf16.mxu1 %v21799_v0 }
 0x4e8   :  { %19877 = vmatpush3.bf16.msra.mxu0 %v22978_v12  ;;  %19898 = vmatpush3.bf16.msra.mxu1 %v23057_v26 }
 0x4e9   :  { %19899 = vmatprep.subr.bf16.mxu0 %v21799_v0  ;;  %19920 = vmatprep.subr.bf16.mxu1 %v21799_v0 }
 0x4eb   :  { %16384 = vmatmul.mubr.msk.f32.vlgmr.msra.gmra.mrb[64].mxu0 %vm3257_vm5, %v5090_v31  ;;  %16415 = vmatmul.mubr.msk.f32.vlgmr.msra.gmra.mrb[74].mxu1 %vm3257_vm5, %v5096_v32 }
 0x4ec   :  { %19901 = vmatpush3.bf16.msra.mxu0 %v22888_v3  ;;  %19922 = vmatpush3.bf16.msra.mxu1 %v22928_v48  ;;  %v5099_v3 = vmax.f32 %v23003_v47, 0.0 }
 0x4ed   :  { %19902 = vmatprep.subr.bf16.mxu0 %v21799_v0  ;;  %19923 = vmatprep.subr.bf16.mxu1 %v21799_v0 }
 0x4ee   :  { %16445 = vmatprep.mubr.msk.f32.mxu0 %vm21801_vm0, %v21802_v1  ;;  %16476 = vmatprep.mubr.msk.f32.mxu1 %vm21801_vm0, %v21802_v1 }
 0x4f0   :  { %19904 = vmatpush3.bf16.msra.mxu0 %v22893_v22  ;;  %19925 = vmatpush3.bf16.msra.mxu1 %v22935_v57  ;;  %v5102_v22 = vmax.f32 %v23005_v11, 0.0  ;;  %v12944_v57 = vld [vmem:[%s23163_s15 + $0x78] sm:$0xff]  ;;  %v12961_v11 = vld [vmem:[%s23163_s15 + $0xf0] sm:$0xff] }
 0x4f1   :  { %19905 = vmatprep.subr.bf16.mxu0 %v21799_v0  ;;  %19926 = vmatprep.subr.bf16.mxu1 %v21799_v0  ;;  %v20008_v60 = vpack.c.bf16 %v12962_v5, %v12961_v11 }
 0x4f4   :  { %19907 = vmatpush3.bf16.msra.mxu0 %v22899_v61  ;;  %19928 = vmatpush3.bf16.msra.mxu1 %v22943_v49  ;;  %v12941_v61 = vld [vmem:[%s23163_s15 + $0x60] sm:$0xff] }
 0x4f5   :  { %19908 = vmatprep.subr.bf16.mxu0 %v21799_v0  ;;  %19929 = vmatprep.subr.bf16.mxu1 %v21799_v0 }
 0x4f8   :  { %19910 = vmatpush3.bf16.msra.mxu0 %v22905_v55  ;;  %19931 = vmatpush3.bf16.msra.mxu1 %v22949_v62  ;;  %v12942_v55 = vld [vmem:[%s23163_s15 + $0x68] sm:$0xff]  ;;  %v12945_v62 = vld [vmem:[%s23163_s15 + $0x80] sm:$0xff] }
 0x4f9   :  { %19911 = vmatprep.subr.bf16.mxu0 %v21799_v0  ;;  %19932 = vmatprep.subr.bf16.mxu1 %v21799_v0  ;;  %v19963_v48 = vpack.c.bf16 %v12942_v55, %v12941_v61  ;;  %v5815_v61 = vld [vmem:[%s23163_s15 + $0x8] sm:$0xff]  ;;  %v12934_v55 = vld [vmem:[%s12708_s19] ss:$0 sm:$0xff]  ;;  %s12730_s19 = sld [smem:[%s25311_s0 + %s21828_s16]]  }
 0x4fc   :  { %19913 = vmatpush3.bf16.msra.mxu0 %v22911_v9  ;;  %19934 = vmatpush3.bf16.msra.mxu1 %v22955_v63  ;;  %v12943_v9 = vld [vmem:[%s23163_s15 + $0x70] sm:$0xff]  ;;  %v12946_v63 = vld [vmem:[%s23163_s15 + $0x88] sm:$0xff] }
 0x4fd   :  { %19914 = vmatprep.subr.bf16.mxu0 %v21799_v0  ;;  %19935 = vmatprep.subr.bf16.mxu1 %v21799_v0  ;;  %v19966_v49 = vpack.c.bf16 %v12944_v57, %v12943_v9 }
 0x500   :  { %19916 = vmatpush3.bf16.msra.mxu0 %v22963_v16  ;;  %19937 = vmatpush3.bf16.msra.mxu1 %v22966_v25  ;;  %v19969_v16 = vpack.c.bf16 %v12946_v63, %v12945_v62  ;;  %v12947_v25 = vld [vmem:[%s23163_s15 + $0x90] sm:$0xff]  ;;  %v5817_v62 = vld [vmem:[%s23163_s15 + $0x18] sm:$0xff] }
 0x501   :  { %19917 = vmatprep.subr.bf16.mxu0 %v21799_v0  ;;  %19938 = vmatprep.subr.bf16.mxu1 %v21799_v0 }
 0x504   :  { %19919 = vmatpush3.bf16.msra.mxu0 %v22975_v6  ;;  %19940 = vmatpush3.bf16.msra.mxu1 %v22978_v12  ;;  %v12948_v6 = vld [vmem:[%s23163_s15 + $0x98] sm:$0xff] }
 0x505   :  { %19941 = vmatprep.subr.bf16.mxu0 %v21799_v0  ;;  %19962 = vmatprep.subr.bf16.mxu1 %v21799_v0  ;;  %v19972_v12 = vpack.c.bf16 %v12948_v6, %v12947_v25  ;;  %v5819_v25 = vld [vmem:[%s23163_s15 + $0x28] sm:$0xff] }
 0x507   :  { %16446 = vmatmul.mubr.msk.f32.vlgmr.msra.gmra.mrb[66].mxu0 %vm3257_vm5, %v5099_v3  ;;  %16477 = vmatmul.mubr.msk.f32.vlgmr.msra.gmra.mrb[76].mxu1 %vm3257_vm5, %v5096_v32 }
 0x508   :  { %19943 = vmatpush3.bf16.msra.mxu0 %v22999_v42  ;;  %16507 = vmatprep.mubr.msk.f32.mxu0 %vm21801_vm0, %v21802_v1  ;;  %v12959_v42 = vld [vmem:[%s23163_s15 + $0xe0] sm:$0xff] }
 0x509   :  { %19944 = vmatprep.subr.bf16.mxu0 %v21799_v0  ;;  %16534 = vmatprep.mubr.msk.f32.mxu1 %vm21801_vm0, %v21802_v1  ;;  %v20005_v47 = vpack.c.bf16 %v12960_v52, %v12959_v42 }
 0x50a   :  { %19964 = vmatpush3.bf16.msra.mxu1 %v19963_v48 }
 0x50b   :  { %19965 = vmatprep.subr.bf16.mxu1 %v21799_v0 }
 0x50c   :  { %19946 = vmatpush3.bf16.msra.mxu0 %v23013_v36  ;;  %v20011_v36 = vpack.c.bf16 %v12964_v56, %v12963_v30 }
 0x50d   :  { %19947 = vmatprep.subr.bf16.mxu0 %v21799_v0 }
 0x50e   :  { %19967 = vmatpush3.bf16.msra.mxu1 %v19966_v49  ;;  %v5816_v49 = vld [vmem:[%s23163_s15 + $0x10] sm:$0xff] }
 0x50f   :  { %19968 = vmatprep.subr.bf16.mxu1 %v21799_v0  ;;  %v19984_v63 = vpack.c.bf16 %v5817_v62, %v5816_v49 }
 0x510   :  { %19949 = vmatpush3.bf16.msra.mxu0 %v23025_v8  ;;  %v20014_v8 = vpack.c.bf16 %v12966_v13, %v12965_v59  ;;  %v6083_v59 = vld [vmem:[%s23234_s23 + $0x8] sm:$0xff]  ;;  %v6084_v13 = vld [vmem:[%s23234_s23 + $0x10] sm:$0xff] }
 0x511   :  { %19950 = vmatprep.subr.bf16.mxu0 %v21799_v0 }
 0x512   :  { %19970 = vmatpush3.bf16.msra.mxu1 %v19969_v16  ;;  %v5818_v16 = vld [vmem:[%s23163_s15 + $0x20] sm:$0xff] }
 0x513   :  { %19971 = vmatprep.subr.bf16.mxu1 %v21799_v0  ;;  %v19987_v6 = vpack.c.bf16 %v5819_v25, %v5818_v16 }
 0x514   :  { %19952 = vmatpush3.bf16.msra.mxu0 %v23033_v33 }
 0x515   :  { %19953 = vmatprep.subr.bf16.mxu0 %v21799_v0 }
 0x516   :  { %19973 = vmatpush3.bf16.msra.mxu1 %v19972_v12  ;;  %v5820_v12 = vld [vmem:[%s23163_s15 + $0x30] sm:$0xff] }
 0x517   :  { %19974 = vmatprep.subr.bf16.mxu1 %v21799_v0  ;;  %v19990_v37 = vpack.c.bf16 %v5821_v34, %v5820_v12 }
 0x518   :  { %19955 = vmatpush3.bf16.msra.mxu0 %v23041_v7 }
 0x519   :  { %19956 = vmatprep.subr.bf16.mxu0 %v21799_v0 }
 0x51a   :  { %19976 = vmatpush3.bf16.msra.mxu1 %v19975_v39  ;;  %v5822_v39 = vld [vmem:[%s23163_s15 + $0x40] sm:$0xff] }
 0x51b   :  { %19977 = vmatprep.subr.bf16.mxu1 %v21799_v0  ;;  %v19993_v44 = vpack.c.bf16 %v5823_v40, %v5822_v39  ;;  %v12973_v40 = vld [vmem:[%s23272_s5 + $0x80] sm:$0xff] }
 0x51c   :  { %19958 = vmatpush3.bf16.msra.mxu0 %v23049_v20 }
 0x51d   :  { %19959 = vmatprep.subr.bf16.mxu0 %v21799_v0 }
 0x51e   :  { %19979 = vmatpush3.bf16.msra.mxu1 %v19978_v45  ;;  %v5824_v45 = vld [vmem:[%s23163_s15 + $0x50] sm:$0xff] }
 0x51f   :  { %19980 = vmatprep.subr.bf16.mxu1 %v21799_v0  ;;  %v19996_v53 = vpack.c.bf16 %v5825_v50, %v5824_v45  ;;  %v12975_v50 = vld [vmem:[%s23272_s5 + $0x90] sm:$0xff] }
 0x520   :  { %19961 = vmatpush3.bf16.msra.mxu0 %v23057_v26 }
 0x521   :  { %19998 = vmatprep.subr.bf16.mxu0 %v21799_v0 }
 0x523   :  { %16508 = vmatmul.mubr.msk.f32.vlgmr.msra.gmra.mrb[68].mxu0 %vm3257_vm5, %v5102_v22  ;;  %v5814_v22 = vld [vmem:[%s23163_s15] sm:$0xff]  ;;  %s12722_s15 = sld [smem:[%s25311_s0 + %s21827_s12]]  }
 0x524   :  { %16588 = vmatprep.mubr.msk.f32.mxu0 %vm21801_vm0, %v21802_v1  ;;  %20000 = vmatpush3.bf16.msra.mxu0 %v19999_v54  ;;  %v19981_v48 = vpack.c.bf16 %v5815_v61, %v5814_v22  ;;  %v6096_v61 = vld [vmem:[%s23234_s23 + $0x70] sm:$0xff] }
 0x525   :  { %20001 = vmatprep.subr.bf16.mxu0 %v21799_v0 }
 0x528   :  { %20003 = vmatpush3.bf16.msra.mxu0 %v20002_v58 }
 0x529   :  { %20004 = vmatprep.subr.bf16.mxu0 %v21799_v0 }
 0x52c   :  { %20006 = vmatpush3.bf16.msra.mxu0 %v20005_v47 }
 0x52d   :  { %20007 = vmatprep.subr.bf16.mxu0 %v21799_v0 }
 0x530   :  { %20009 = vmatpush3.bf16.msra.mxu0 %v20008_v60 }
 0x531   :  { %20010 = vmatprep.subr.bf16.mxu0 %v21799_v0 }
 0x534   :  { %20012 = vmatpush3.bf16.msra.mxu0 %v20011_v36  ;;  %v6082_v36 = vld [vmem:[%s23234_s23] sm:$0xff] }
 0x535   :  { %20013 = vmatprep.subr.bf16.mxu0 %v21799_v0 }
 0x538   :  { %20015 = vmatpush3.bf16.msra.mxu0 %v20014_v8  ;;  %v20017_v8 = vpack.c.bf16 %v6083_v59, %v6082_v36  ;;  %v12985_v59 = vld [vmem:[%s23272_s5 + $0xe0] sm:$0xff] }
 0x539   :  { %16626 = vmatprep.subr.mxu0 %v21802_v1 }
 0x586   :  { %v5217_v2 = vpop.f32.mrb[60].mxu0  ;;  %v5290_v19 = vpop.f32.mrb[70].mxu1 }
 0x587   :  { %v5291_v33 = vadd.f32 %v5290_v19, %v5217_v2  ;;  %v16261_v4 = vpop.f32.mrb[61].mxu0  ;;  %v16292_v18 = vpop.f32.mrb[71].mxu1  ;;  %v6085_v2 = vld [vmem:[%s23234_s23 + $0x18] sm:$0xff] }
 0x588   :  { %v20020_v19 = vpack.c.bf16 %v6085_v2, %v6084_v13  ;;  %v6087_v4 = vld [vmem:[%s23234_s23 + $0x28] sm:$0xff]  ;;  %v6258_v2 = vld [vmem:[%s23272_s5] sm:$0xff] }
 0x589   :  { %v12986_v13 = vld [vmem:[%s23272_s5 + $0xe8] sm:$0xff] }
 0x5a2   :  { %v5363_v7 = vpop.f32.mrb[62].mxu0  ;;  %v5444_v14 = vpop.f32.mrb[72].mxu1 }
 0x5a3   :  { %v5367_v15 = vadd.f32 %v5363_v7, %v5291_v33  ;;  %v16323_v20 = vpop.f32.mrb[63].mxu0  ;;  %v16354_v21 = vpop.f32.mrb[73].mxu1  ;;  %v6086_v33 = vld [vmem:[%s23234_s23 + $0x20] sm:$0xff]  ;;  %v6088_v7 = vld [vmem:[%s23234_s23 + $0x30] sm:$0xff] }
 0x5a4   :  { %v20023_v18 = vpack.c.bf16 %v6087_v4, %v6086_v33  ;;  %v6090_v20 = vld [vmem:[%s23234_s23 + $0x40] sm:$0xff]  ;;  %v6091_v21 = vld [vmem:[%s23234_s23 + $0x48] sm:$0xff] }
 0x5a5   :  { %v5374_v28 = vadd.f32 %v12934_v55, %v5367_v15  ;;  %v12969_v33 = vld [vmem:[%s12712_s9] ss:$0 sm:$0xff]  ;;  %s24804_s9 = sld [smem:[%s25311_s0 + %s21833_s6]]  }
 0x5a7   :  { %v5811_v47 = vmax.f32 %v5374_v28, 0.0 }
 0x5be   :  { %v5514_v23 = vpop.f32.mrb[64].mxu0  ;;  %v5587_v26 = vpop.f32.mrb[74].mxu1 }
 0x5bf   :  { %v5515_v31 = vadd.f32 %v5514_v23, %v5444_v14  ;;  %v16385_v29 = vpop.f32.mrb[65].mxu0  ;;  %v16416_v32 = vpop.f32.mrb[75].mxu1  ;;  %v6089_v14 = vld [vmem:[%s23234_s23 + $0x38] sm:$0xff]  ;;  %v20029_v23 = vpack.c.bf16 %v6091_v21, %v6090_v20 }
 0x5c0   :  { %v20026_v15 = vpack.c.bf16 %v6089_v14, %v6088_v7  ;;  %v6094_v32 = vld [vmem:[%s23234_s23 + $0x60] sm:$0xff]  ;;  %v6261_v20 = vld [vmem:[%s23272_s5 + $0x18] sm:$0xff] }
 0x5c1   :  { %v5591_v3 = vadd.f32 %v5587_v26, %v5515_v31  ;;  %v6092_v26 = vld [vmem:[%s23234_s23 + $0x50] sm:$0xff]  ;;  %v6093_v31 = vld [vmem:[%s23234_s23 + $0x58] sm:$0xff] }
 0x5c2   :  { %v20032_v29 = vpack.c.bf16 %v6093_v31, %v6092_v26  ;;  %v6263_v26 = vld [vmem:[%s23272_s5 + $0x28] sm:$0xff] }
 0x5c3   :  { %v5592_v9 = vadd.f32 %v12934_v55, %v5591_v3  ;;  %v6095_v3 = vld [vmem:[%s23234_s23 + $0x68] sm:$0xff] }
 0x5c4   :  { %v20035_v22 = vpack.c.bf16 %v6095_v3, %v6094_v32  ;;  %v6265_v32 = vld [vmem:[%s23272_s5 + $0x38] sm:$0xff] }
 0x5c5   :  { %v5812_v57 = vmax.f32 %v5592_v9, 0.0 }
 0x5c7   :  { %16535 = vmatmul.mubr.msk.f32.vlgmr.msra.gmra.mrb[78].mxu1 %vm5839_vm8, %v5812_v57 }
 0x5c8   :  { %19982 = vmatpush3.bf16.msra.mxu1 %v19981_v48  ;;  %16561 = vmatprep.mubr.msk.f32.mxu1 %vm21801_vm0, %v21802_v1  ;;  %v6175_v48 = vld [vmem:[%s12713_s27] sm:$0xff]  ;;  %s12723_s27 = sld [smem:[%s25311_s0 + %s21830_s24]]  }
 0x5c9   :  { %19983 = vmatprep.subr.bf16.mxu1 %v21799_v0 }
 0x5cc   :  { %19985 = vmatpush3.bf16.msra.mxu1 %v19984_v63 }
 0x5cd   :  { %19986 = vmatprep.subr.bf16.mxu1 %v21799_v0 }
 0x5d0   :  { %19988 = vmatpush3.bf16.msra.mxu1 %v19987_v6  ;;  %v12968_v6 = vld [vmem:[%s12710_s1] ss:$0 sm:$0xff]  ;;  %s12724_s1 = sld [smem:[%s25311_s0 + %s21831_s28]]  }
 0x5d1   :  { %19989 = vmatprep.subr.bf16.mxu1 %v21799_v0 }
 0x5d4   :  { %19991 = vmatpush3.bf16.msra.mxu1 %v19990_v37 }
 0x5d5   :  { %19992 = vmatprep.subr.bf16.mxu1 %v21799_v0 }
 0x5d8   :  { %19994 = vmatpush3.bf16.msra.mxu1 %v19993_v44  ;;  %v12974_v44 = vld [vmem:[%s23272_s5 + $0x88] sm:$0xff] }
 0x5d9   :  { %19995 = vmatprep.subr.bf16.mxu1 %v21799_v0  ;;  %v20065_v45 = vpack.c.bf16 %v12974_v44, %v12973_v40  ;;  %v12991_v40 = vld [vmem:[%s23272_s5 + $0x100] sm:$0xff]  ;;  %v12992_v44 = vld [vmem:[%s23272_s5 + $0x108] sm:$0xff] }
 0x5da   :  { %v5662_v54 = vpop.f32.mrb[66].mxu0  ;;  %v5732_v41 = vpop.f32.mrb[76].mxu1 }
 0x5db   :  { %v5733_v58 = vadd.f32 %v5732_v41, %v5662_v54  ;;  %v16447_v42 = vpop.f32.mrb[67].mxu0  ;;  %v16478_v52 = vpop.f32.mrb[77].mxu1  ;;  %v12977_v54 = vld [vmem:[%s23272_s5 + $0xa0] sm:$0xff]  ;;  %v12978_v41 = vld [vmem:[%s23272_s5 + $0xa8] sm:$0xff] }
 0x5dc   :  { %19997 = vmatpush3.bf16.msra.mxu1 %v19996_v53  ;;  %v12976_v53 = vld [vmem:[%s23272_s5 + $0x98] sm:$0xff]  ;;  %v12979_v42 = vld [vmem:[%s23272_s5 + $0xb0] sm:$0xff] }
 0x5dd   :  { %20016 = vmatprep.subr.bf16.mxu1 %v21799_v0  ;;  %v20068_v28 = vpack.c.bf16 %v12976_v53, %v12975_v50  ;;  %v12980_v52 = vld [vmem:[%s23272_s5 + $0xb8] sm:$0xff]  ;;  %v6544_v50 = vld [vmem:[%s23334_s17] sm:$0xff]  ;;  %v6545_v53 = vld [vmem:[%s23334_s17 + $0x8] sm:$0xff] }
 0x5df   :  { %16562 = vmatmul.mubr.msk.f32.vlgmr.msra.gmra.mrb[80].mxu1 %vm5839_vm8, %v5811_v47  ;;  %v20074_v47 = vpack.c.bf16 %v12980_v52, %v12979_v42  ;;  %v12993_v42 = vld [vmem:[%s23272_s5 + $0x110] sm:$0xff]  ;;  %v12994_v52 = vld [vmem:[%s23272_s5 + $0x118] sm:$0xff] }
 0x5e0   :  { %16623 = vmatprep.mubr.msk.f32.mxu1 %vm21801_vm0, %v21802_v1  ;;  %20018 = vmatpush3.bf16.msra.mxu1 %v20017_v8  ;;  %v20083_v8 = vpack.c.bf16 %v12986_v13, %v12985_v59  ;;  %v6548_v59 = vld [vmem:[%s23334_s17 + $0x20] sm:$0xff]  ;;  %v6549_v13 = vld [vmem:[%s23334_s17 + $0x28] sm:$0xff] }
 0x5e1   :  { %20019 = vmatprep.subr.bf16.mxu1 %v21799_v0 }
 0x5e4   :  { %20021 = vmatpush3.bf16.msra.mxu1 %v20020_v19  ;;  %v6259_v19 = vld [vmem:[%s23272_s5 + $0x8] sm:$0xff] }
 0x5e5   :  { %20022 = vmatprep.subr.bf16.mxu1 %v21799_v0 }
 0x5e8   :  { %20024 = vmatpush3.bf16.msra.mxu1 %v20023_v18  ;;  %v20041_v18 = vpack.c.bf16 %v6259_v19, %v6258_v2  ;;  %v12997_v2 = vld [vmem:[%s23272_s5 + $0x130] sm:$0xff]  ;;  %v12998_v19 = vld [vmem:[%s23272_s5 + $0x138] sm:$0xff] }
 0x5e9   :  { %20025 = vmatprep.subr.bf16.mxu1 %v21799_v0 }
 0x5ec   :  { %20027 = vmatpush3.bf16.msra.mxu1 %v20026_v15  ;;  %v6260_v15 = vld [vmem:[%s23272_s5 + $0x10] sm:$0xff] }
 0x5ed   :  { %20028 = vmatprep.subr.bf16.mxu1 %v21799_v0  ;;  %v20044_v21 = vpack.c.bf16 %v6261_v20, %v6260_v15  ;;  %v13000_v15 = vld [vmem:[%s23272_s5 + $0x148] sm:$0xff] }
 0x5f0   :  { %20030 = vmatpush3.bf16.msra.mxu1 %v20029_v23  ;;  %v6262_v23 = vld [vmem:[%s23272_s5 + $0x20] sm:$0xff] }
 0x5f1   :  { %20031 = vmatprep.subr.bf16.mxu1 %v21799_v0  ;;  %v20047_v31 = vpack.c.bf16 %v6263_v26, %v6262_v23  ;;  %v6553_v23 = vld [vmem:[%s23334_s17 + $0x48] sm:$0xff] }
 0x5f4   :  { %20033 = vmatpush3.bf16.msra.mxu1 %v20032_v29  ;;  %v6264_v29 = vld [vmem:[%s23272_s5 + $0x30] sm:$0xff] }
 0x5f5   :  { %20034 = vmatprep.subr.bf16.mxu1 %v21799_v0  ;;  %v20050_v3 = vpack.c.bf16 %v6265_v32, %v6264_v29  ;;  %v13002_v29 = vld [vmem:[%s23272_s5 + $0x158] sm:$0xff] }
 0x5f6   :  { %v5805_v11 = vpop.f32.mrb[68].mxu0 }
 0x5f7   :  { %v5809_v5 = vadd.f32 %v5805_v11, %v5733_v58  ;;  %v16509_v60 = vpop.f32.mrb[69].mxu0  ;;  %v20071_v58 = vpack.c.bf16 %v12978_v41, %v12977_v54  ;;  %v12981_v11 = vld [vmem:[%s23272_s5 + $0xc0] sm:$0xff]  ;;  %v20089_v41 = vpack.c.bf16 %v12992_v44, %v12991_v40  ;;  %v13016_v40 = vld [vmem:[%s23334_s17 + $0x98] sm:$0xff] }
 0x5f8   :  { %20036 = vmatpush3.bf16.msra.mxu1 %v20035_v22  ;;  %v6266_v22 = vld [vmem:[%s23272_s5 + $0x40] sm:$0xff] }
 0x5f9   :  { %v5810_v30 = vadd.f32 %v12934_v55, %v5809_v5  ;;  %20037 = vmatprep.subr.bf16.mxu1 %v21799_v0  ;;  %v6097_v55 = vld [vmem:[%s23234_s23 + $0x78] sm:$0xff]  ;;  %v12982_v5 = vld [vmem:[%s23272_s5 + $0xc8] sm:$0xff]  ;;  %s24301_s23 = sld [smem:[%s25311_s0 + %s21829_s20]]  }
 0x5fa   :  { %v20038_v9 = vpack.c.bf16 %v6097_v55, %v6096_v61  ;;  %v20077_v60 = vpack.c.bf16 %v12982_v5, %v12981_v11  ;;  %v6267_v61 = vld [vmem:[%s23272_s5 + $0x48] sm:$0xff]  ;;  %v6546_v11 = vld [vmem:[%s23334_s17 + $0x10] sm:$0xff]  ;;  %v6547_v5 = vld [vmem:[%s23334_s17 + $0x18] sm:$0xff] }
 0x5fb   :  { %v5813_v56 = vmax.f32 %v5810_v30, 0.0  ;;  %v12983_v30 = vld [vmem:[%s23272_s5 + $0xd0] sm:$0xff]  ;;  %v20053_v55 = vpack.c.bf16 %v6267_v61, %v6266_v22  ;;  %v13003_v22 = vld [vmem:[%s23272_s5 + $0x160] sm:$0xff]  ;;  %v13004_v61 = vld [vmem:[%s23272_s5 + $0x168] sm:$0xff] }
 0x5fc   :  { %20039 = vmatpush3.bf16.msra.mxu1 %v20038_v9  ;;  %v6268_v9 = vld [vmem:[%s23272_s5 + $0x50] sm:$0xff] }
 0x5fd   :  { %16589 = vmatmul.mubr.msk.f32.vlgmr.msra.gmra.mrb[70].mxu0 %vm5839_vm8, %v5813_v56  ;;  %20064 = vmatprep.subr.bf16.mxu1 %v21799_v0  ;;  %v12984_v56 = vld [vmem:[%s23272_s5 + $0xd8] sm:$0xff] }
 0x5fe   :  { %16628 = vmatprep.mubr.msk.f32.mxu0 %vm21801_vm0, %v21802_v1  ;;  %16627 = vmatpush3.msra.mxu0 %v6175_v48  ;;  %v20080_v36 = vpack.c.bf16 %v12984_v56, %v12983_v30  ;;  %v6269_v48 = vld [vmem:[%s23272_s5 + $0x58] sm:$0xff]  ;;  %v12995_v30 = vld [vmem:[%s23272_s5 + $0x120] sm:$0xff]  ;;  %v12996_v56 = vld [vmem:[%s23272_s5 + $0x128] sm:$0xff] }
 0x5ff   :  { %20040 = vmatprep.subr.bf16.mxu0 %v21799_v0 }
 0x69a   :  { %v5909_v57 = vpop.f32.mrb[78].mxu1 }
 0x69b   :  { %v16536_v49 = vpop.f32.mrb[79].mxu1 }
 0x69c   :  { %v6270_v49 = vld [vmem:[%s23272_s5 + $0x60] sm:$0xff] }
 0x6b2   :  { %v5982_v62 = vpop.f32.mrb[80].mxu1 }
 0x6b3   :  { %v5983_v63 = vadd.f32 %v5982_v62, %v5909_v57  ;;  %v16563_v16 = vpop.f32.mrb[81].mxu1  ;;  %v20056_v57 = vpack.c.bf16 %v6269_v48, %v6268_v9  ;;  %v6271_v62 = vld [vmem:[%s23272_s5 + $0x68] sm:$0xff]  ;;  %v13005_v9 = vld [vmem:[%s23272_s5 + $0x170] sm:$0xff]  ;;  %v13006_v48 = vld [vmem:[%s23272_s5 + $0x178] sm:$0xff] }
 0x6b4   :  { %v6272_v16 = vld [vmem:[%s23272_s5 + $0x70] sm:$0xff] }
 0x6d0   :  { %v6068_v25 = vpop.f32.mrb[70].mxu0 }
 0x6d1   :  { %v6072_v12 = vadd.f32 %v6068_v25, %v5983_v63  ;;  %v16590_v34 = vpop.f32.mrb[71].mxu0  ;;  %v20059_v63 = vpack.c.bf16 %v6271_v62, %v6270_v49  ;;  %v6273_v25 = vld [vmem:[%s23272_s5 + $0x78] sm:$0xff]  ;;  %v13009_v49 = vld [vmem:[%s23334_s17 + $0x60] sm:$0xff]  ;;  %v13010_v62 = vld [vmem:[%s23334_s17 + $0x68] sm:$0xff] }
 0x6d2   :  { %v12988_v34 = vld [vmem:[%s23272_s5 + $0xf8] sm:$0xff] }
 0x6d3   :  { %v6080_v37 = vadd.f32 %v12968_v6, %v6072_v12  ;;  %v20062_v6 = vpack.c.bf16 %v6273_v25, %v6272_v16  ;;  %v12987_v12 = vld [vmem:[%s23272_s5 + $0xf0] sm:$0xff]  ;;  %v13012_v25 = vld [vmem:[%s23334_s17 + $0x78] sm:$0xff] }
 0x6d4   :  { %v13011_v16 = vld [vmem:[%s23334_s17 + $0x70] sm:$0xff] }
 0x6d5   :  { %v6081_v39 = vmax.f32 %v6080_v37, 0.0  ;;  %v20086_v37 = vpack.c.bf16 %v12988_v34, %v12987_v12  ;;  %v13013_v12 = vld [vmem:[%s23334_s17 + $0x80] sm:$0xff]  ;;  %v13014_v34 = vld [vmem:[%s23334_s17 + $0x88] sm:$0xff] }
 0x6d7   :  { %16624 = vmatmul.mubr.f32.vlgmr.msra.gmra.mrb[82].mxu1 %v6081_v39  ;;  %v12970_v39 = vld [vmem:[%s12714_s13] ss:$0 sm:$0xff] }
 0x6d8   :  { %16698 = vmatprep.mubr.msk.f32.mxu1 %vm21801_vm0, %v21802_v1  ;;  %20066 = vmatpush3.bf16.msra.mxu1 %v20065_v45 }
 0x6d9   :  { %20067 = vmatprep.subr.bf16.mxu1 %v21799_v0 }
 0x6dc   :  { %20069 = vmatpush3.bf16.msra.mxu1 %v20068_v28 }
 0x6dd   :  { %20070 = vmatprep.subr.bf16.mxu1 %v21799_v0 }
 0x6e0   :  { %20072 = vmatpush3.bf16.msra.mxu1 %v20071_v58 }
 0x6e1   :  { %20073 = vmatprep.subr.bf16.mxu1 %v21799_v0 }
 0x6e4   :  { %20075 = vmatpush3.bf16.msra.mxu1 %v20074_v47  ;;  %v23344_v47 = vpack.c.bf16 %v6545_v53, %v6544_v50  ;;  %v13018_v50 = vld [vmem:[%s23334_s17 + $0xa8] sm:$0xff] }
 0x6e5   :  { %20076 = vmatprep.subr.bf16.mxu1 %v21799_v0 }
 0x6e8   :  { %20078 = vmatpush3.bf16.msra.mxu1 %v20077_v60  ;;  %v20092_v60 = vpack.c.bf16 %v12994_v52, %v12993_v42  ;;  %v13020_v42 = vld [vmem:[%s23334_s17 + $0xb8] sm:$0xff] }
 0x6e9   :  { %20079 = vmatprep.subr.bf16.mxu1 %v21799_v0 }
 0x6ec   :  { %20081 = vmatpush3.bf16.msra.mxu1 %v20080_v36  ;;  %v23356_v36 = vpack.c.bf16 %v6547_v5, %v6546_v11  ;;  %v12972_v11 = vld [vmem:[%s23446_s21] ss:$0 sm:$0xff] }
 0x6ed   :  { %20082 = vmatprep.subr.bf16.mxu1 %v21799_v0  ;;  %v13021_v5 = vld [vmem:[%s23334_s17 + $0xc0] sm:$0xff] }
 0x6f0   :  { %20084 = vmatpush3.bf16.msra.mxu1 %v20083_v8  ;;  %v20095_v8 = vpack.c.bf16 %v12996_v56, %v12995_v30 }
 0x6f1   :  { %20085 = vmatprep.subr.bf16.mxu1 %v21799_v0 }
 0x6f4   :  { %20087 = vmatpush3.bf16.msra.mxu1 %v20086_v37  ;;  %v23414_v37 = vpack.c.bf16 %v13014_v34, %v13013_v12 }
 0x6f5   :  { %20112 = vmatprep.subr.bf16.mxu1 %v21799_v0 }
 0x7aa   :  { %v6171_v4 = vpop.f32.mrb[82].mxu1 }
 0x7ab   :  { %v6172_v7 = vadd.f32 %v12969_v33, %v6171_v4  ;;  %v16625_v14 = vpop.f32.mrb[83].mxu1  ;;  %v23367_v33 = vpack.c.bf16 %v6549_v13, %v6548_v59  ;;  %v6550_v4 = vld [vmem:[%s23334_s17 + $0x30] sm:$0xff] }
 0x7ac   :  { %v12999_v14 = vld [vmem:[%s23272_s5 + $0x140] sm:$0xff] }
 0x7ad   :  { %16629 = vmatmul.mubr.msk.f32.vlgmr.msra.gmra.mrb[72].mxu0 %vm6183_vm9, %v6172_v7  ;;  %v20098_v7 = vpack.c.bf16 %v12998_v19, %v12997_v2  ;;  %v20101_v26 = vpack.c.bf16 %v13000_v15, %v12999_v14  ;;  %v13025_v14 = vld [vmem:[%s23334_s17 + $0xe0] sm:$0xff]  ;;  %v13026_v15 = vld [vmem:[%s23334_s17 + $0xe8] sm:$0xff] }
 0x7ae   :  { %20042 = vmatpush3.bf16.msra.mxu0 %v20041_v18  ;;  %16663 = vmatprep.mubr.msk.f32.mxu0 %vm21801_vm0, %v21802_v1  ;;  %v6551_v18 = vld [vmem:[%s23334_s17 + $0x38] sm:$0xff] }
 0x7af   :  { %20043 = vmatprep.subr.bf16.mxu0 %v21799_v0  ;;  %v23376_v20 = vpack.c.bf16 %v6551_v18, %v6550_v4  ;;  %v13023_v4 = vld [vmem:[%s23334_s17 + $0xd0] sm:$0xff]  ;;  %v13024_v18 = vld [vmem:[%s23334_s17 + $0xd8] sm:$0xff] }
 0x7b2   :  { %20045 = vmatpush3.bf16.msra.mxu0 %v20044_v21  ;;  %v6552_v21 = vld [vmem:[%s23334_s17 + $0x40] sm:$0xff] }
 0x7b3   :  { %20046 = vmatprep.subr.bf16.mxu0 %v21799_v0  ;;  %v23385_v32 = vpack.c.bf16 %v6553_v23, %v6552_v21  ;;  %v23471_v21 = vpack.c.bf16 %v13026_v15, %v13025_v14  ;;  %v13027_v23 = vld [vmem:[%s23334_s17 + $0xf0] sm:$0xff] }
 0x7b6   :  { %20048 = vmatpush3.bf16.msra.mxu0 %v20047_v31  ;;  %v13001_v31 = vld [vmem:[%s23272_s5 + $0x150] sm:$0xff]  ;;  %s24752_s5 = sld [smem:[%s25311_s0 + %s21832_s2]]  }
 0x7b7   :  { %20049 = vmatprep.subr.bf16.mxu0 %v21799_v0 }
 0x7ba   :  { %20051 = vmatpush3.bf16.msra.mxu0 %v20050_v3  ;;  %v20104_v3 = vpack.c.bf16 %v13002_v29, %v13001_v31  ;;  %v13029_v29 = vld [vmem:[%s23334_s17 + $0x100] sm:$0xff] }
 0x7bb   :  { %20052 = vmatprep.subr.bf16.mxu0 %v21799_v0 }
 0x7be   :  { %20054 = vmatpush3.bf16.msra.mxu0 %v20053_v55  ;;  %v20107_v55 = vpack.c.bf16 %v13004_v61, %v13003_v22  ;;  %v13031_v61 = vld [vmem:[%s23334_s17 + $0x110] sm:$0xff] }
 0x7bf   :  { %20055 = vmatprep.subr.bf16.mxu0 %v21799_v0 }
 0x7c2   :  { %20057 = vmatpush3.bf16.msra.mxu0 %v20056_v57  ;;  %v20110_v57 = vpack.c.bf16 %v13006_v48, %v13005_v9  ;;  %v12990_v9 = vld [vmem:[%s23446_s21 + $0x1] ss:$0 sm:$0xff] }
 0x7c3   :  { %20058 = vmatprep.subr.bf16.mxu0 %v21799_v0 }
 0x7c6   :  { %20060 = vmatpush3.bf16.msra.mxu0 %v20059_v63  ;;  %v23399_v63 = vpack.c.bf16 %v13010_v62, %v13009_v49 }
 0x7c7   :  { %20061 = vmatprep.subr.bf16.mxu0 %v21799_v0 }
 0x7ca   :  { %20063 = vmatpush3.bf16.msra.mxu0 %v20062_v6  ;;  %v23406_v6 = vpack.c.bf16 %v13012_v25, %v13011_v16 }
 0x7cb   :  { %20088 = vmatprep.subr.bf16.mxu0 %v21799_v0 }
 0x880   :  { %v6253_v45 = vpop.f32.mrb[72].mxu0 }
 0x881   :  { %v6254_v28 = vadd.f32 %v12970_v39, %v6253_v45  ;;  %v16630_v54 = vpop.f32.mrb[73].mxu0  ;;  %v13015_v39 = vld [vmem:[%s23334_s17 + $0x90] sm:$0xff]  ;;  %v13017_v45 = vld [vmem:[%s23334_s17 + $0xa0] sm:$0xff] }
 0x882   :  { %v23420_v44 = vpack.c.bf16 %v13016_v40, %v13015_v39  ;;  %v23426_v53 = vpack.c.bf16 %v13018_v50, %v13017_v45  ;;  %v6555_v54 = vld [vmem:[%s23334_s17 + $0x58] sm:$0xff]  ;;  %v13033_v45 = vld [vmem:[%s12718_s25] ss:$0 sm:$0xff] }
 0x883   :  { %v23340_v58 = vmax.f32 %v6254_v28, 0.0  ;;  %v6554_v28 = vld [vmem:[%s23334_s17 + $0x50] sm:$0xff] }
 0x885   :  { %16664 = vmatmul.mubr.f32.vlgmr.msra.gmra.mrb[74].mxu0 %v23340_v58  ;;  %16699 = vmatmul.mubr.f32.vlgmr.msra.gmra.mrb[84].mxu1 %v23340_v58 }
 0x886   :  { %20090 = vmatpush3.bf16.msra.mxu0 %v20089_v41  ;;  %16733 = vmatprep.mubr.msk.f32.mxu0 %vm21801_vm0, %v21802_v1  ;;  %v13019_v41 = vld [vmem:[%s23334_s17 + $0xb0] sm:$0xff] }
 0x887   :  { %20091 = vmatprep.subr.bf16.mxu0 %v21799_v0  ;;  %20114 = vmatpush3.bf16.msra.mxu1 %v23344_v47  ;;  %v23437_v52 = vpack.c.bf16 %v13020_v42, %v13019_v41 }
 0x888   :  { %20115 = vmatprep.subr.bf16.mxu1 %v21799_v0  ;;  %16760 = vmatprep.mubr.msk.f32.mxu1 %vm21801_vm0, %v21802_v1 }
 0x88a   :  { %20093 = vmatpush3.bf16.msra.mxu0 %v20092_v60  ;;  %v13022_v60 = vld [vmem:[%s23334_s17 + $0xc8] sm:$0xff] }
 0x88b   :  { %20094 = vmatprep.subr.bf16.mxu0 %v21799_v0  ;;  %20117 = vmatpush3.bf16.msra.mxu1 %v23356_v36  ;;  %v23451_v2 = vpack.c.bf16 %v13022_v60, %v13021_v5 }
 0x88c   :  { %20118 = vmatprep.subr.bf16.mxu1 %v21799_v0 }
 0x88e   :  { %20096 = vmatpush3.bf16.msra.mxu0 %v20095_v8 }
 0x88f   :  { %20097 = vmatprep.subr.bf16.mxu0 %v21799_v0  ;;  %20120 = vmatpush3.bf16.msra.mxu1 %v23367_v33 }
 0x890   :  { %20121 = vmatprep.subr.bf16.mxu1 %v21799_v0 }
 0x892   :  { %20099 = vmatpush3.bf16.msra.mxu0 %v20098_v7  ;;  %v23459_v7 = vpack.c.bf16 %v13024_v18, %v13023_v4 }
 0x893   :  { %20100 = vmatprep.subr.bf16.mxu0 %v21799_v0  ;;  %20123 = vmatpush3.bf16.msra.mxu1 %v23376_v20 }
 0x894   :  { %20124 = vmatprep.subr.bf16.mxu1 %v21799_v0 }
 0x896   :  { %20102 = vmatpush3.bf16.msra.mxu0 %v20101_v26  ;;  %v13028_v26 = vld [vmem:[%s23334_s17 + $0xf8] sm:$0xff] }
 0x897   :  { %20103 = vmatprep.subr.bf16.mxu0 %v21799_v0  ;;  %20126 = vmatpush3.bf16.msra.mxu1 %v23385_v32  ;;  %v23479_v31 = vpack.c.bf16 %v13028_v26, %v13027_v23 }
 0x898   :  { %20127 = vmatprep.subr.bf16.mxu1 %v21799_v0 }
 0x89a   :  { %20105 = vmatpush3.bf16.msra.mxu0 %v20104_v3  ;;  %v13030_v3 = vld [vmem:[%s23334_s17 + $0x108] sm:$0xff] }
 0x89b   :  { %20106 = vmatprep.subr.bf16.mxu0 %v21799_v0  ;;  %v23487_v22 = vpack.c.bf16 %v13030_v3, %v13029_v29 }
 0x89e   :  { %20108 = vmatpush3.bf16.msra.mxu0 %v20107_v55  ;;  %v13032_v55 = vld [vmem:[%s23334_s17 + $0x118] sm:$0xff] }
 0x89f   :  { %20109 = vmatprep.subr.bf16.mxu0 %v21799_v0  ;;  %v23496_v48 = vpack.c.bf16 %v13032_v55, %v13031_v61 }
 0x8a2   :  { %20111 = vmatpush3.bf16.msra.mxu0 %v20110_v57 }
 0x8a3   :  { %20130 = vmatprep.subr.bf16.mxu0 %v21799_v0 }
 0x8a5   :  { %16734 = vmatmul.mubr.f32.vlgmr.msra.gmra.mrb[76].mxu0 %v23340_v58  ;;  %v23434_v58 = vpack.c.bf16 %v6555_v54, %v6554_v28 }
 0x8a6   :  { %20132 = vmatpush3.bf16.msra.mxu0 %v23399_v63  ;;  %16787 = vmatprep.mubr.msk.f32.mxu0 %vm21801_vm0, %v21802_v1 }
 0x8a7   :  { %20133 = vmatprep.subr.bf16.mxu0 %v21799_v0  ;;  %20129 = vmatpush3.bf16.msra.mxu1 %v23434_v58 }
 0x8a8   :  { %20148 = vmatprep.subr.bf16.mxu1 %v21799_v0 }
 0x8aa   :  { %20135 = vmatpush3.bf16.msra.mxu0 %v23406_v6 }
 0x8ab   :  { %20136 = vmatprep.subr.bf16.mxu0 %v21799_v0 }
 0x8ae   :  { %20138 = vmatpush3.bf16.msra.mxu0 %v23414_v37 }
 0x8af   :  { %20139 = vmatprep.subr.bf16.mxu0 %v21799_v0 }
 0x8b2   :  { %20141 = vmatpush3.bf16.msra.mxu0 %v23420_v44 }
 0x8b3   :  { %20142 = vmatprep.subr.bf16.mxu0 %v21799_v0 }
 0x8b6   :  { %20144 = vmatpush3.bf16.msra.mxu0 %v23426_v53 }
 0x8b7   :  { %20145 = vmatprep.subr.bf16.mxu0 %v21799_v0 }
 0x8ba   :  { %20147 = vmatpush3.bf16.msra.mxu0 %v23437_v52 }
 0x8bb   :  { %20166 = vmatprep.subr.bf16.mxu0 %v21799_v0 }
 0x958   :  { %v6347_v30 = vpop.f32.mrb[74].mxu0  ;;  %v6443_v56 = vpop.f32.mrb[84].mxu1 }
 0x959   :  { %v6348_v59 = vadd.f32 %v12972_v11, %v6347_v30  ;;  %v16665_v13 = vpop.f32.mrb[75].mxu0  ;;  %v16700_v8 = vpop.f32.mrb[85].mxu1  ;;  %v6444_v57 = vadd.f32 %v12990_v9, %v6443_v56 }
 0x95b   :  { %v6351_v19 = vmax.f32 %v6348_v59, 0.0  ;;  %v23502_v49 = vmax.f32 %v6444_v57, 0.0 }
 0x95d   :  { %16761 = vmatmul.mubr.msk.f32.vlgmr.msra.gmra.mrb[86].mxu1 %vm5839_vm8, %v6351_v19  ;;  %16788 = vmatmul.mubr.msk.f32.vlgmr.msra.gmra.mrb[78].mxu0 %vm5839_vm8, %v6351_v19 }
 0x95e   :  { %20150 = vmatpush3.bf16.msra.mxu1 %v23344_v47  ;;  %20168 = vmatpush3.bf16.msra.mxu0 %v23451_v2 }
 0x95f   :  { %20151 = vmatprep.subr.bf16.mxu1 %v21799_v0  ;;  %20169 = vmatprep.subr.bf16.mxu0 %v21799_v0 }
 0x960   :  { %16814 = vmatprep.mubr.msk.f32.mxu1 %vm21801_vm0, %v21802_v1  ;;  %16841 = vmatprep.mubr.msk.f32.mxu0 %vm21801_vm0, %v21802_v1 }
 0x962   :  { %20153 = vmatpush3.bf16.msra.mxu1 %v23356_v36  ;;  %20171 = vmatpush3.bf16.msra.mxu0 %v23459_v7 }
 0x963   :  { %20154 = vmatprep.subr.bf16.mxu1 %v21799_v0  ;;  %20172 = vmatprep.subr.bf16.mxu0 %v21799_v0 }
 0x966   :  { %20156 = vmatpush3.bf16.msra.mxu1 %v23367_v33  ;;  %20174 = vmatpush3.bf16.msra.mxu0 %v23471_v21 }
 0x967   :  { %20157 = vmatprep.subr.bf16.mxu1 %v21799_v0  ;;  %20175 = vmatprep.subr.bf16.mxu0 %v21799_v0 }
 0x96a   :  { %20159 = vmatpush3.bf16.msra.mxu1 %v23376_v20  ;;  %20177 = vmatpush3.bf16.msra.mxu0 %v23479_v31 }
 0x96b   :  { %20160 = vmatprep.subr.bf16.mxu1 %v21799_v0  ;;  %20178 = vmatprep.subr.bf16.mxu0 %v21799_v0 }
 0x96e   :  { %20162 = vmatpush3.bf16.msra.mxu1 %v23385_v32  ;;  %20180 = vmatpush3.bf16.msra.mxu0 %v23487_v22 }
 0x96f   :  { %20163 = vmatprep.subr.bf16.mxu1 %v21799_v0  ;;  %20181 = vmatprep.subr.bf16.mxu0 %v21799_v0 }
 0x972   :  { %20165 = vmatpush3.bf16.msra.mxu1 %v23434_v58  ;;  %20183 = vmatpush3.bf16.msra.mxu0 %v23496_v48 }
 0x973   :  { %20184 = vmatprep.subr.bf16.mxu1 %v21799_v0  ;;  %20202 = vmatprep.subr.bf16.mxu0 %v21799_v0 }
 0x975   :  { %16815 = vmatmul.mubr.msk.f32.vlgmr.msra.gmra.mrb[88].mxu1 %vm5839_vm8, %v23502_v49  ;;  %16842 = vmatmul.mubr.msk.f32.vlgmr.msra.gmra.mrb[80].mxu0 %vm5839_vm8, %v6351_v19 }
 0x976   :  { %20186 = vmatpush3.bf16.msra.mxu1 %v23399_v63  ;;  %20204 = vmatpush3.bf16.msra.mxu0 %v23344_v47  ;;  %v13008_v47 = vld [vmem:[%s23446_s21 + $0x2] ss:$0 sm:$0xff] }
 0x977   :  { %20187 = vmatprep.subr.bf16.mxu1 %v21799_v0  ;;  %20205 = vmatprep.subr.bf16.mxu0 %v21799_v0 }
 0x978   :  { %v6539_v62 = vpop.f32.mrb[76].mxu0  ;;  %16868 = vmatprep.mubr.msk.f32.mxu1 %vm21801_vm0, %v21802_v1  ;;  %16895 = vmatprep.mubr.msk.f32.mxu0 %vm21801_vm0, %v21802_v1 }
 0x979   :  { %v16735_v16 = vpop.f32.mrb[77].mxu0 }
 0x97a   :  { %20189 = vmatpush3.bf16.msra.mxu1 %v23406_v6  ;;  %20207 = vmatpush3.bf16.msra.mxu0 %v23356_v36  ;;  %v6540_v36 = vadd.f32 %v13008_v47, %v6539_v62 }
 0x97b   :  { %20190 = vmatprep.subr.bf16.mxu1 %v21799_v0  ;;  %20208 = vmatprep.subr.bf16.mxu0 %v21799_v0 }
 0x97e   :  { %20192 = vmatpush3.bf16.msra.mxu1 %v23414_v37  ;;  %20210 = vmatpush3.bf16.msra.mxu0 %v23367_v33  ;;  %v6543_v33 = vmax.f32 %v6540_v36, 0.0 }
 0x97f   :  { %20193 = vmatprep.subr.bf16.mxu1 %v21799_v0  ;;  %20211 = vmatprep.subr.bf16.mxu0 %v21799_v0 }
 0x982   :  { %20195 = vmatpush3.bf16.msra.mxu1 %v23420_v44  ;;  %20213 = vmatpush3.bf16.msra.mxu0 %v23376_v20 }
 0x983   :  { %20196 = vmatprep.subr.bf16.mxu1 %v21799_v0  ;;  %20214 = vmatprep.subr.bf16.mxu0 %v21799_v0 }
 0x986   :  { %20198 = vmatpush3.bf16.msra.mxu1 %v23426_v53  ;;  %20216 = vmatpush3.bf16.msra.mxu0 %v23385_v32 }
 0x987   :  { %20199 = vmatprep.subr.bf16.mxu1 %v21799_v0  ;;  %20217 = vmatprep.subr.bf16.mxu0 %v21799_v0 }
 0x98a   :  { %20201 = vmatpush3.bf16.msra.mxu1 %v23437_v52  ;;  %20219 = vmatpush3.bf16.msra.mxu0 %v23434_v58 }
 0x98b   :  { %20220 = vmatprep.subr.bf16.mxu1 %v21799_v0  ;;  %20238 = vmatprep.subr.bf16.mxu0 %v21799_v0 }
 0x98d   :  { %16869 = vmatmul.mubr.msk.f32.vlgmr.msra.gmra.mrb[90].mxu1 %vm5839_vm8, %v23502_v49  ;;  %16896 = vmatmul.mubr.msk.f32.vlgmr.msra.gmra.mrb[82].mxu0 %vm5839_vm8, %v6543_v33 }
 0x98e   :  { %20222 = vmatpush3.bf16.msra.mxu1 %v23451_v2  ;;  %20240 = vmatpush3.bf16.msra.mxu0 %v23399_v63 }
 0x98f   :  { %20223 = vmatprep.subr.bf16.mxu1 %v21799_v0  ;;  %20241 = vmatprep.subr.bf16.mxu0 %v21799_v0 }
 0x990   :  { %16922 = vmatprep.mubr.msk.f32.mxu1 %vm21801_vm0, %v21802_v1  ;;  %16949 = vmatprep.mubr.msk.f32.mxu0 %vm21801_vm0, %v21802_v1 }
 0x992   :  { %20225 = vmatpush3.bf16.msra.mxu1 %v23459_v7  ;;  %20243 = vmatpush3.bf16.msra.mxu0 %v23406_v6 }
 0x993   :  { %20226 = vmatprep.subr.bf16.mxu1 %v21799_v0  ;;  %20244 = vmatprep.subr.bf16.mxu0 %v21799_v0 }
 0x996   :  { %20228 = vmatpush3.bf16.msra.mxu1 %v23471_v21  ;;  %20246 = vmatpush3.bf16.msra.mxu0 %v23414_v37 }
 0x997   :  { %20229 = vmatprep.subr.bf16.mxu1 %v21799_v0  ;;  %20247 = vmatprep.subr.bf16.mxu0 %v21799_v0 }
 0x99a   :  { %20231 = vmatpush3.bf16.msra.mxu1 %v23479_v31  ;;  %20249 = vmatpush3.bf16.msra.mxu0 %v23420_v44 }
 0x99b   :  { %20232 = vmatprep.subr.bf16.mxu1 %v21799_v0  ;;  %20250 = vmatprep.subr.bf16.mxu0 %v21799_v0 }
 0x99e   :  { %20234 = vmatpush3.bf16.msra.mxu1 %v23487_v22  ;;  %20252 = vmatpush3.bf16.msra.mxu0 %v23426_v53 }
 0x99f   :  { %20235 = vmatprep.subr.bf16.mxu1 %v21799_v0  ;;  %20253 = vmatprep.subr.bf16.mxu0 %v21799_v0 }
 0x9a2   :  { %20237 = vmatpush3.bf16.msra.mxu1 %v23496_v48  ;;  %20255 = vmatpush3.bf16.msra.mxu0 %v23437_v52 }
 0x9a3   :  { %20256 = vmatprep.subr.bf16.mxu1 %v21799_v0  ;;  %20274 = vmatprep.subr.bf16.mxu0 %v21799_v0 }
 0x9a5   :  { %16923 = vmatmul.mubr.msk.f32.vlgmr.msra.gmra.mrb[92].mxu1 %vm5839_vm8, %v23502_v49  ;;  %16950 = vmatmul.mubr.msk.f32.vlgmr.msra.gmra.mrb[84].mxu0 %vm5839_vm8, %v6543_v33 }
 0x9a6   :  { %20258 = vmatpush3.bf16.msra.mxu1 %v23451_v2  ;;  %16976 = vmatprep.mubr.msk.f32.mxu1 %vm21801_vm0, %v21802_v1 }
 0x9a7   :  { %20259 = vmatprep.subr.bf16.mxu1 %v21799_v0  ;;  %20276 = vmatpush3.bf16.msra.mxu0 %v22772_v24 }
 0x9a8   :  { %20277 = vmatprep.subr.bf16.mxu0 %v21799_v0  ;;  %17007 = vmatprep.mubr.msk.f32.mxu0 %vm21801_vm0, %v21802_v1 }
 0x9aa   :  { %20261 = vmatpush3.bf16.msra.mxu1 %v23459_v7 }
 0x9ab   :  { %20262 = vmatprep.subr.bf16.mxu1 %v21799_v0  ;;  %20279 = vmatpush3.bf16.msra.mxu0 %v22777_v27 }
 0x9ac   :  { %20280 = vmatprep.subr.bf16.mxu0 %v21799_v0 }
 0x9ae   :  { %20264 = vmatpush3.bf16.msra.mxu1 %v23471_v21 }
 0x9af   :  { %20265 = vmatprep.subr.bf16.mxu1 %v21799_v0  ;;  %20282 = vmatpush3.bf16.msra.mxu0 %v22787_v35 }
 0x9b0   :  { %20283 = vmatprep.subr.bf16.mxu0 %v21799_v0 }
 0x9b2   :  { %20267 = vmatpush3.bf16.msra.mxu1 %v23479_v31 }
 0x9b3   :  { %20268 = vmatprep.subr.bf16.mxu1 %v21799_v0  ;;  %20285 = vmatpush3.bf16.msra.mxu0 %v22795_v38 }
 0x9b4   :  { %20286 = vmatprep.subr.bf16.mxu0 %v21799_v0 }
 0x9b6   :  { %20270 = vmatpush3.bf16.msra.mxu1 %v23487_v22 }
 0x9b7   :  { %20271 = vmatprep.subr.bf16.mxu1 %v21799_v0  ;;  %20288 = vmatpush3.bf16.msra.mxu0 %v22803_v43 }
 0x9b8   :  { %20289 = vmatprep.subr.bf16.mxu0 %v21799_v0 }
 0x9ba   :  { %20273 = vmatpush3.bf16.msra.mxu1 %v23496_v48 }
 0x9bb   :  { %20295 = vmatprep.subr.bf16.mxu1 %v21799_v0  ;;  %20291 = vmatpush3.bf16.msra.mxu0 %v22811_v46 }
 0x9bc   :  { %20292 = vmatprep.subr.bf16.mxu0 %v21799_v0 }
 0x9bd   :  { %16977 = vmatmul.mubr.msk.f32.vlgmr.msra.gmra.mrb[94].mxu1 %vm5839_vm8, %v6543_v33 }
 0x9be   :  { %20297 = vmatpush3.bf16.msra.mxu1 %v22772_v24  ;;  %17038 = vmatprep.mubr.msk.f32.mxu1 %vm21801_vm0, %v21802_v1 }
 0x9bf   :  { %20298 = vmatprep.subr.bf16.mxu1 %v21799_v0  ;;  %20294 = vmatpush3.bf16.msra.mxu0 %v22817_v51 }
 0x9c0   :  { %20316 = vmatprep.subr.bf16.mxu0 %v21799_v0 }
 0x9c2   :  { %20300 = vmatpush3.bf16.msra.mxu1 %v22777_v27 }
 0x9c3   :  { %20301 = vmatprep.subr.bf16.mxu1 %v21799_v0 }
 0x9c6   :  { %20303 = vmatpush3.bf16.msra.mxu1 %v22787_v35 }
 0x9c7   :  { %20304 = vmatprep.subr.bf16.mxu1 %v21799_v0 }
 0x9ca   :  { %20306 = vmatpush3.bf16.msra.mxu1 %v22795_v38 }
 0x9cb   :  { %20307 = vmatprep.subr.bf16.mxu1 %v21799_v0 }
 0x9ce   :  { %20309 = vmatpush3.bf16.msra.mxu1 %v22803_v43 }
 0x9cf   :  { %20310 = vmatprep.subr.bf16.mxu1 %v21799_v0 }
 0x9d2   :  { %20312 = vmatpush3.bf16.msra.mxu1 %v22811_v46 }
 0x9d3   :  { %20313 = vmatprep.subr.bf16.mxu1 %v21799_v0 }
 0x9d6   :  { %20315 = vmatpush3.bf16.msra.mxu1 %v22817_v51 }
 0x9d7   :  { %20343 = vmatprep.subr.bf16.mxu1 %v21799_v0 }
 0xa30   :  { %v6658_v24 = vpop.f32.mrb[86].mxu1  ;;  %v6728_v27 = vpop.f32.mrb[78].mxu0 }
 0xa31   :  { %v16762_v35 = vpop.f32.mrb[87].mxu1  ;;  %v16789_v20 = vpop.f32.mrb[79].mxu0  ;;  %v23622_v50 = vadd.f32 %v13033_v45, %v6658_v24  ;;  %v23624_v53 = vadd.f32 %v13033_v45, %v6728_v27  ;;  %v7596_v27 = vld [vmem:[%s23670_s29] sm:$0xff] }
 0xa32   :  { %v7597_v35 = vld [vmem:[%s23670_s29 + $0x8] sm:$0xff] }
 0xa33   :  { %v7230_v54 = vmul.f32 %v23622_v50, %v23622_v50  ;;  %v7232_v41 = vmul.f32 %v23624_v53, %v23624_v53  ;;  %v7231_v42 = vadd.f32 %v23624_v53, %v23622_v50  ;;  %v23674_v20 = vpack.c.bf16 %v7597_v35, %v7596_v27  ;;  %v7608_v27 = vld [vmem:[%s23670_s29 + $0x60] sm:$0xff] }
 0xa35   :  { %v7233_v5 = vadd.f32 %v7232_v41, %v7230_v54 }
 0xa48   :  { %v6801_v32 = vpop.f32.mrb[88].mxu1  ;;  %v6871_v38 = vpop.f32.mrb[80].mxu0 }
 0xa49   :  { %v6872_v63 = vadd.f32 %v6871_v38, %v6801_v32  ;;  %v16816_v25 = vpop.f32.mrb[89].mxu1  ;;  %v16843_v6 = vpop.f32.mrb[81].mxu0  ;;  %v7598_v32 = vld [vmem:[%s23670_s29 + $0x10] sm:$0xff]  ;;  %v7599_v38 = vld [vmem:[%s23670_s29 + $0x18] sm:$0xff] }
 0xa4a   :  { %v7600_v25 = vld [vmem:[%s23670_s29 + $0x20] sm:$0xff]  ;;  %v7601_v6 = vld [vmem:[%s23670_s29 + $0x28] sm:$0xff] }
 0xa4b   :  { %v23626_v28 = vadd.f32 %v13033_v45, %v6872_v63  ;;  %v23679_v63 = vpack.c.bf16 %v7599_v38, %v7598_v32  ;;  %v7609_v32 = vld [vmem:[%s23670_s29 + $0x68] sm:$0xff] }
 0xa4c   :  { %v23764_v38 = vpack.c.bf16 %v7609_v32, %v7608_v27 }
 0xa4d   :  { %v7235_v52 = vmul.f32 %v23626_v28, %v23626_v28  ;;  %v7234_v60 = vadd.f32 %v7231_v42, %v23626_v28 }
 0xa4f   :  { %v7236_v56 = vadd.f32 %v7235_v52, %v7233_v5 }
 0xa60   :  { %v6942_v43 = vpop.f32.mrb[90].mxu1  ;;  %v7015_v12 = vpop.f32.mrb[82].mxu0 }
 0xa61   :  { %v16870_v34 = vpop.f32.mrb[91].mxu1  ;;  %v16897_v37 = vpop.f32.mrb[83].mxu0  ;;  %v23632_v58 = vadd.f32 %v13033_v45, %v6942_v43  ;;  %v23685_v43 = vpack.c.bf16 %v7601_v6, %v7600_v25 }
 0xa62   :  { %v7603_v34 = vld [vmem:[%s23670_s29 + $0x38] sm:$0xff] }
 0xa63   :  { %v7238_v30 = vmul.f32 %v23632_v58, %v23632_v58  ;;  %v7237_v59 = vadd.f32 %v7234_v60, %v23632_v58 }
 0xa65   :  { %v7239_v8 = vadd.f32 %v7238_v30, %v7236_v56  ;;  %v7414_v56 = vld [vmem:[%s12719_s3] sm:$0x1] }
 0xa78   :  { %v7085_v46 = vpop.f32.mrb[92].mxu1  ;;  %v7156_v51 = vpop.f32.mrb[84].mxu0 }
 0xa79   :  { %v7086_v39 = vadd.f32 %v7085_v46, %v7015_v12  ;;  %v16924_v40 = vpop.f32.mrb[93].mxu1  ;;  %v16951_v44 = vpop.f32.mrb[85].mxu0  ;;  %v23646_v2 = vadd.f32 %v13033_v45, %v7156_v51  ;;  %v7602_v12 = vld [vmem:[%s23670_s29 + $0x30] sm:$0xff]  ;;  %v7604_v46 = vld [vmem:[%s23670_s29 + $0x40] sm:$0xff]  ;;  %v7605_v51 = vld [vmem:[%s23670_s29 + $0x48] sm:$0xff] }
 0xa7a   :  { %v23691_v37 = vpack.c.bf16 %v7603_v34, %v7602_v12 }
 0xa7b   :  { %v23638_v11 = vadd.f32 %v13033_v45, %v7086_v39  ;;  %v7244_v14 = vmul.f32 %v23646_v2, %v23646_v2  ;;  %v23697_v39 = vpack.c.bf16 %v7605_v51, %v7604_v46 }
 0xa7d   :  { %v7241_v13 = vmul.f32 %v23638_v11, %v23638_v11  ;;  %v7240_v19 = vadd.f32 %v7237_v59, %v23638_v11 }
 0xa7f   :  { %v7242_v4 = vadd.f32 %v7241_v13, %v7239_v8  ;;  %v7243_v7 = vadd.f32 %v7240_v19, %v23646_v2  ;;  %v13047_v8 = vld [vmem:[%s23670_s29 + $0x70] sm:$0xff]  ;;  %v13048_v19 = vld [vmem:[%s23670_s29 + $0x78] sm:$0xff] }
 0xa81   :  { %v7245_v23 = vadd.f32 %v7244_v14, %v7242_v4  ;;  %v7418_v4 = vld [vmem:[%s12720_s7] sm:$0x1] }
 0xa90   :  { %v7226_v18 = vpop.f32.mrb[94].mxu1 }
 0xa91   :  { %v23652_v15 = vadd.f32 %v13033_v45, %v7226_v18  ;;  %v16978_v21 = vpop.f32.mrb[95].mxu1 }
 0xa92   :  { %v13049_v21 = vld [vmem:[%s23670_s29 + $0x80] sm:$0xff] }
 0xa93   :  { %v7246_v26 = vadd.f32 %v7243_v7, %v23652_v15  ;;  %v7247_v31 = vmul.f32 %v23652_v15, %v23652_v15  ;;  %v23714_v7 = vpack.c.bf16 %v13048_v19, %v13047_v8  ;;  %v13064_v8 = vld [vmem:[%s23670_s29 + $0xf8] sm:$0xff] }
 0xa95   :  { %v7248_v29 = vadd.f32 %v7247_v31, %v7245_v23  ;;  %v7249_v3 = vsel %vm4738_vm6, %v7246_v26, 0.0  ;;  %v13050_v23 = vld [vmem:[%s23670_s29 + $0x88] sm:$0xff]  ;;  %v13052_v31 = vld [vmem:[%s23670_s29 + $0x98] sm:$0xff] }
 0xa96   :  { %v7250_v22 = vrot.slane %v7249_v3, 4  ;;  %v23721_v26 = vpack.c.bf16 %v13050_v23, %v13049_v21  ;;  %v13067_v21 = vld [vmem:[%s23670_s29 + $0x110] sm:$0xff]  ;;  %v13068_v23 = vld [vmem:[%s23670_s29 + $0x118] sm:$0xff] }
 0xa97   :  { %v7256_v61 = vsel %vm4738_vm6, %v7248_v29, 0.0 }
 0xa98   :  { %v7251_v55 = vadd.f32 %v7250_v22, %v7249_v3  ;;  %v7257_v9 = vrot.slane %v7256_v61, 4  ;;  %v13053_v3 = vld [vmem:[%s23670_s29 + $0xa0] sm:$0xff]  ;;  %v13054_v22 = vld [vmem:[%s23670_s29 + $0xa8] sm:$0xff] }
 0xa9a   :  { %v7252_v48 = vrot.slane %v7251_v55, 2  ;;  %v7258_v57 = vadd.f32 %v7257_v9, %v7256_v61  ;;  %v23735_v61 = vpack.c.bf16 %v13054_v22, %v13053_v3  ;;  %v13056_v9 = vld [vmem:[%s23670_s29 + $0xb8] sm:$0xff]  ;;  %v13070_v3 = vld [vmem:[%s23670_s29 + $0x128] sm:$0xff] }
 0xa9c   :  { %v7253_v49 = vadd.f32 %v7252_v48, %v7251_v55  ;;  %v7259_v62 = vrot.slane %v7258_v57, 2  ;;  %v13055_v55 = vld [vmem:[%s23670_s29 + $0xb0] sm:$0xff] }
 0xa9d   :  { %v23741_v48 = vpack.c.bf16 %v13056_v9, %v13055_v55  ;;  %v13071_v55 = vld [vmem:[%s23670_s29 + $0x130] sm:$0xff]  ;;  %v13072_v9 = vld [vmem:[%s23670_s29 + $0x138] sm:$0xff] }
 0xa9e   :  { %v7254_v16 = vrot.slane %v7253_v49, 1  ;;  %v7260_v47 = vadd.f32 %v7259_v62, %v7258_v57  ;;  %v13057_v57 = vld [vmem:[%s23670_s29 + $0xc0] sm:$0xff]  ;;  %v7606_v62 = vld [vmem:[%s23670_s29 + $0x50] sm:$0xff] }
 0xaa0   :  { %v7255_v36 = vadd.f32 %v7254_v16, %v7253_v49  ;;  %v7261_v33 = vrot.slane %v7260_v47, 1  ;;  %v13058_v49 = vld [vmem:[%s23670_s29 + $0xc8] sm:$0xff] }
 0xaa1   :  { %v23749_v16 = vpack.c.bf16 %v13058_v49, %v13057_v57  ;;  %v23838_v57 = vpack.c.bf16 %v13072_v9, %v13071_v55  ;;  %v13073_v49 = vld [vmem:[%s23670_s29 + $0x140] sm:$0xff] }
 0xaa2   :  { %17008 = vmatmul.mubr.msk.f32.vlgmr.msra.gmra.mrb[86].mxu0 %vm3257_vm5, %v7255_v36  ;;  %v7262_v24 = vadd.f32 %v7261_v33, %v7260_v47  ;;  %v7607_v47 = vld [vmem:[%s23670_s29 + $0x58] sm:$0xff]  ;;  %v13059_v33 = vld [vmem:[%s23670_s29 + $0xd0] sm:$0xff] }
 0xaa3   :  { %20318 = vmatpush3.bf16.msra.mxu0 %v22877_v10  ;;  %17045 = vmatprep.mubr.msk.f32.mxu0 %vm21801_vm0, %v21802_v1  ;;  %v23752_v36 = vpack.c.bf16 %v7607_v47, %v7606_v62  ;;  %v13074_v62 = vld [vmem:[%s23670_s29 + $0x148] sm:$0xff] }
 0xaa4   :  { %17039 = vmatmul.mubr.msk.f32.vlgmr.msra.gmra.mrb[96].mxu1 %vm3257_vm5, %v7262_v24  ;;  %20319 = vmatprep.subr.bf16.mxu0 %v21799_v0  ;;  %v13060_v24 = vld [vmem:[%s23670_s29 + $0xd8] sm:$0xff]  ;;  %v23846_v47 = vpack.c.bf16 %v13074_v62, %v13073_v49 }
 0xaa5   :  { %17114 = vmatprep.mubr.msk.f32.mxu1 %vm21801_vm0, %v21802_v1  ;;  %20345 = vmatpush3.bf16.msra.mxu1 %v23674_v20  ;;  %v23761_v35 = vpack.c.bf16 %v13060_v24, %v13059_v33 }
 0xaa6   :  { %20346 = vmatprep.subr.bf16.mxu1 %v21799_v0 }
 0xaa9   :  { %20348 = vmatpush3.bf16.msra.mxu1 %v23679_v63 }
 0xaaa   :  { %20349 = vmatprep.subr.bf16.mxu1 %v21799_v0 }
 0xaad   :  { %20351 = vmatpush3.bf16.msra.mxu1 %v23685_v43 }
 0xaae   :  { %20352 = vmatprep.subr.bf16.mxu1 %v21799_v0 }
 0xab1   :  { %20354 = vmatpush3.bf16.msra.mxu1 %v23691_v37 }
 0xab2   :  { %20355 = vmatprep.subr.bf16.mxu1 %v21799_v0 }
 0xab5   :  { %20357 = vmatpush3.bf16.msra.mxu1 %v23697_v39 }
 0xab6   :  { %20358 = vmatprep.subr.bf16.mxu1 %v21799_v0 }
 0xab9   :  { %20360 = vmatpush3.bf16.msra.mxu1 %v23752_v36 }
 0xaba   :  { %20361 = vmatprep.subr.bf16.mxu1 %v21799_v0 }
 0xabd   :  { %20363 = vmatpush3.bf16.msra.mxu1 %v23764_v38 }
 0xabe   :  { %20385 = vmatprep.subr.bf16.mxu1 %v21799_v0 }
 0xb75   :  { %v7332_v40 = vpop.f32.mrb[86].mxu0 }
 0xb76   :  { %v7336_v44 = vmul.f32 0.010204081, %v7332_v40  ;;  %v17009_v45 = vpop.f32.mrb[87].mxu0 }
 0xb77   :  { %v7406_v54 = vpop.f32.mrb[96].mxu1  ;;  %v13061_v45 = vld [vmem:[%s23670_s29 + $0xe0] sm:$0xff] }
 0xb78   :  { %v7411_v41 = vmul.f32 %v7336_v44, %v7336_v44  ;;  %v7410_v42 = vmul.f32 0.010204081, %v7406_v54  ;;  %v17040_v52 = vpop.f32.mrb[97].mxu1  ;;  %v13062_v54 = vld [vmem:[%s23670_s29 + $0xe8] sm:$0xff] }
 0xb7a   :  { %v7412_v5 = vsub.f32 %v7410_v42, %v7411_v41 }
 0xb7c   :  { %v7413_v60 = vmax.f32 %v7412_v5, 0.0 }
 0xb7e   :  { %v7415_v30 = vadd.f32 1e-05, %v7413_v60 }
 0xb80   :  { %21682 = vrsqrt.f32 %v7415_v30 }
 0xb8a   :  { %v21683_v59 = vpop.eup %21682 }
 0xb8b   :  { %v7417_v13 = vmul.f32 %v21683_v59, %v7414_v56 }
 0xb8d   :  { %17046 = vmatmul.mubr.msk.f32.vlgmr.msra.gmra.mrb[88].mxu0 %vm4927_vm7, %v7417_v13  ;;  %v7419_v18 = vmul.f32 %v7417_v13, %v7336_v44 }
 0xb8e   :  { %20321 = vmatpush3.bf16.msra.mxu0 %v22877_v10  ;;  %17052 = vmatprep.mubr.msk.f32.mxu0 %vm21801_vm0, %v21802_v1  ;;  %v13051_v10 = vld [vmem:[%s23670_s29 + $0x90] sm:$0xff] }
 0xb8f   :  { %v7420_v14 = vsub.f32 %v7418_v4, %v7419_v18  ;;  %20322 = vmatprep.subr.bf16.mxu0 %v21799_v0  ;;  %v23729_v29 = vpack.c.bf16 %v13052_v31, %v13051_v10  ;;  %v13065_v4 = vld [vmem:[%s23670_s29 + $0x100] sm:$0xff]  ;;  %v13066_v18 = vld [vmem:[%s23670_s29 + $0x108] sm:$0xff]  ;;  %v23822_v10 = vpack.c.bf16 %v13068_v23, %v13067_v21 }
 0xb90   :  { %v13069_v31 = vld [vmem:[%s23670_s29 + $0x120] sm:$0xff] }
 0xb91   :  { %17053 = vmatmul.mubr.msk.f32.vlgmr.msra.gmra.mrb[90].mxu0 %vm4927_vm7, %v7420_v14  ;;  %v23814_v14 = vpack.c.bf16 %v13066_v18, %v13065_v4  ;;  %v23830_v22 = vpack.c.bf16 %v13070_v3, %v13069_v31  ;;  %v9140_v4 = vld [vmem:[%s24172_s11 + $0x60] sm:$0xff]  ;;  %v9141_v18 = vld [vmem:[%s24172_s11 + $0x68] sm:$0xff] }
 0xb92   :  { %20324 = vmatpush3.bf16.msra.mxu0 %v23714_v7  ;;  %17083 = vmatprep.mubr.msk.f32.mxu0 %vm21801_vm0, %v21802_v1 }
 0xb93   :  { %20325 = vmatprep.subr.bf16.mxu0 %v21799_v0 }
 0xb96   :  { %20327 = vmatpush3.bf16.msra.mxu0 %v23721_v26 }
 0xb97   :  { %20328 = vmatprep.subr.bf16.mxu0 %v21799_v0 }
 0xb9a   :  { %20330 = vmatpush3.bf16.msra.mxu0 %v23729_v29 }
 0xb9b   :  { %20331 = vmatprep.subr.bf16.mxu0 %v21799_v0 }
 0xb9e   :  { %20333 = vmatpush3.bf16.msra.mxu0 %v23735_v61 }
 0xb9f   :  { %20334 = vmatprep.subr.bf16.mxu0 %v21799_v0 }
 0xba2   :  { %20336 = vmatpush3.bf16.msra.mxu0 %v23741_v48 }
 0xba3   :  { %20337 = vmatprep.subr.bf16.mxu0 %v21799_v0 }
 0xba6   :  { %20339 = vmatpush3.bf16.msra.mxu0 %v23749_v16 }
 0xba7   :  { %20340 = vmatprep.subr.bf16.mxu0 %v21799_v0 }
 0xbaa   :  { %20342 = vmatpush3.bf16.msra.mxu0 %v23761_v35 }
 0xbab   :  { %20364 = vmatprep.subr.bf16.mxu0 %v21799_v0 }
 0xc60   :  { %v7490_v25 = vpop.f32.mrb[88].mxu0 }
 0xc61   :  { %v7570_v6 = vrot.slane %v7490_v25, %v22984_v17  ;;  %v17047_v12 = vpop.f32.mrb[89].mxu0 }
 0xc63   :  { %v7571_v46 = vmul.f32 %v7570_v6, %v23622_v50  ;;  %v7578_v44 = vmul.f32 %v7570_v6, %v23624_v53  ;;  %v7581_v41 = vmul.f32 %v7570_v6, %v23626_v28  ;;  %v7584_v42 = vmul.f32 %v7570_v6, %v23632_v58 }
 0xc64   :  { %v7563_v34 = vpop.f32.mrb[90].mxu0  ;;  %v7587_v52 = vmul.f32 %v7570_v6, %v23638_v11  ;;  %v7590_v5 = vmul.f32 %v7570_v6, %v23646_v2  ;;  %v7593_v60 = vmul.f32 %v7570_v6, %v23652_v15  ;;  %v23785_v53 = vpack.c.bf16 %v13062_v54, %v13061_v45  ;;  %v13063_v15 = vld [vmem:[%s23670_s29 + $0xf0] sm:$0xff]  ;;  %v9131_v54 = vld [vmem:[%s24172_s11 + $0x18] sm:$0xff] }
 0xc65   :  { %v7575_v51 = vrot.slane %v7563_v34, %v22984_v17  ;;  %v17054_v40 = vpop.f32.mrb[91].mxu0  ;;  %v23802_v19 = vpack.c.bf16 %v13064_v8, %v13063_v15  ;;  %v9138_v15 = vld [vmem:[%s24172_s11 + $0x50] sm:$0xff]  ;;  %v9139_v8 = vld [vmem:[%s24172_s11 + $0x58] sm:$0xff] }
 0xc66   :  { %v9129_v40 = vld [vmem:[%s24172_s11 + $0x8] sm:$0xff] }
 0xc67   :  { %v7576_v50 = vadd.f32 %v7575_v51, %v7571_v46  ;;  %v7579_v30 = vadd.f32 %v7578_v44, %v7575_v51  ;;  %v23781_v56 = vadd.f32 %v7581_v41, %v7575_v51  ;;  %v23783_v59 = vadd.f32 %v7584_v42, %v7575_v51  ;;  %v9130_v44 = vld [vmem:[%s24172_s11 + $0x10] sm:$0xff] }
 0xc68   :  { %v23787_v28 = vadd.f32 %v7587_v52, %v7575_v51  ;;  %v23789_v13 = vadd.f32 %v7590_v5, %v7575_v51  ;;  %v23791_v58 = vadd.f32 %v7593_v60, %v7575_v51  ;;  %v9128_v51 = vld [vmem:[%s24172_s11] sm:$0xff]  ;;  %v20746_v41 = vpack.c.bf16 %v9131_v54, %v9130_v44 }
 0xc69   :  { %v7577_v11 = vmax.f32 %v7576_v50, 0.0  ;;  %v23793_v2 = vmax.f32 %v7579_v30, 0.0  ;;  %v23888_v33 = vmax.f32 %v23781_v56, 0.0  ;;  %v23927_v24 = vmax.f32 %v23783_v59, 0.0  ;;  %v9132_v30 = vld [vmem:[%s24172_s11 + $0x20] sm:$0xff]  ;;  %v9133_v56 = vld [vmem:[%s24172_s11 + $0x28] sm:$0xff] }
 0xc6a   :  { %v24002_v27 = vmax.f32 %v23787_v28, 0.0  ;;  %v24041_v32 = vmax.f32 %v23789_v13, 0.0  ;;  %v20743_v45 = vpack.c.bf16 %v9129_v40, %v9128_v51  ;;  %v20749_v59 = vpack.c.bf16 %v9133_v56, %v9132_v30  ;;  %v9135_v28 = vld [vmem:[%s24172_s11 + $0x38] sm:$0xff] }
 0xc6b   :  { %17084 = vmatmul.mubr.msk.f32.vlgmr.msra.gmra.mrb[92].mxu0 %vm3257_vm5, %v7577_v11  ;;  %17115 = vmatmul.mubr.msk.f32.vlgmr.msra.gmra.mrb[98].mxu1 %vm3257_vm5, %v23793_v2 }
 0xc6c   :  { %20366 = vmatpush3.bf16.msra.mxu0 %v23785_v53  ;;  %20387 = vmatpush3.bf16.msra.mxu1 %v23714_v7 }
 0xc6d   :  { %20367 = vmatprep.subr.bf16.mxu0 %v21799_v0  ;;  %20388 = vmatprep.subr.bf16.mxu1 %v21799_v0 }
 0xc6e   :  { %17145 = vmatprep.mubr.msk.f32.mxu0 %vm21801_vm0, %v21802_v1  ;;  %17176 = vmatprep.mubr.msk.f32.mxu1 %vm21801_vm0, %v21802_v1 }
 0xc70   :  { %20369 = vmatpush3.bf16.msra.mxu0 %v23802_v19  ;;  %20390 = vmatpush3.bf16.msra.mxu1 %v23721_v26 }
 0xc71   :  { %20370 = vmatprep.subr.bf16.mxu0 %v21799_v0  ;;  %20391 = vmatprep.subr.bf16.mxu1 %v21799_v0 }
 0xc74   :  { %20372 = vmatpush3.bf16.msra.mxu0 %v23814_v14  ;;  %20393 = vmatpush3.bf16.msra.mxu1 %v23729_v29 }
 0xc75   :  { %20373 = vmatprep.subr.bf16.mxu0 %v21799_v0  ;;  %20394 = vmatprep.subr.bf16.mxu1 %v21799_v0 }
 0xc78   :  { %20375 = vmatpush3.bf16.msra.mxu0 %v23822_v10  ;;  %20396 = vmatpush3.bf16.msra.mxu1 %v23735_v61 }
 0xc79   :  { %20376 = vmatprep.subr.bf16.mxu0 %v21799_v0  ;;  %20397 = vmatprep.subr.bf16.mxu1 %v21799_v0 }
 0xc7c   :  { %20378 = vmatpush3.bf16.msra.mxu0 %v23830_v22  ;;  %20399 = vmatpush3.bf16.msra.mxu1 %v23741_v48 }
 0xc7d   :  { %20379 = vmatprep.subr.bf16.mxu0 %v21799_v0  ;;  %20400 = vmatprep.subr.bf16.mxu1 %v21799_v0 }
 0xc80   :  { %20381 = vmatpush3.bf16.msra.mxu0 %v23838_v57  ;;  %20402 = vmatpush3.bf16.msra.mxu1 %v23749_v16 }
 0xc81   :  { %20382 = vmatprep.subr.bf16.mxu0 %v21799_v0  ;;  %20403 = vmatprep.subr.bf16.mxu1 %v21799_v0 }
 0xc84   :  { %20384 = vmatpush3.bf16.msra.mxu0 %v23846_v47  ;;  %20405 = vmatpush3.bf16.msra.mxu1 %v23761_v35 }
 0xc85   :  { %20406 = vmatprep.subr.bf16.mxu0 %v21799_v0  ;;  %20427 = vmatprep.subr.bf16.mxu1 %v21799_v0 }
 0xc87   :  { %17146 = vmatmul.mubr.msk.f32.vlgmr.msra.gmra.mrb[94].mxu0 %vm3257_vm5, %v7577_v11  ;;  %17177 = vmatmul.mubr.msk.f32.vlgmr.msra.gmra.mrb[100].mxu1 %vm3257_vm5, %v23793_v2  ;;  %v9137_v11 = vld [vmem:[%s24172_s11 + $0x48] sm:$0xff] }
 0xc88   :  { %20408 = vmatpush3.bf16.msra.mxu0 %v23674_v20  ;;  %20429 = vmatpush3.bf16.msra.mxu1 %v23785_v53 }
 0xc89   :  { %20409 = vmatprep.subr.bf16.mxu0 %v21799_v0  ;;  %20430 = vmatprep.subr.bf16.mxu1 %v21799_v0 }
 0xc8a   :  { %17207 = vmatprep.mubr.msk.f32.mxu0 %vm21801_vm0, %v21802_v1  ;;  %17238 = vmatprep.mubr.msk.f32.mxu1 %vm21801_vm0, %v21802_v1 }
 0xc8c   :  { %20411 = vmatpush3.bf16.msra.mxu0 %v23679_v63  ;;  %20432 = vmatpush3.bf16.msra.mxu1 %v23802_v19 }
 0xc8d   :  { %20412 = vmatprep.subr.bf16.mxu0 %v21799_v0  ;;  %20433 = vmatprep.subr.bf16.mxu1 %v21799_v0 }
 0xc90   :  { %20414 = vmatpush3.bf16.msra.mxu0 %v23685_v43  ;;  %20435 = vmatpush3.bf16.msra.mxu1 %v23814_v14 }
 0xc91   :  { %20415 = vmatprep.subr.bf16.mxu0 %v21799_v0  ;;  %20436 = vmatprep.subr.bf16.mxu1 %v21799_v0 }
 0xc94   :  { %20417 = vmatpush3.bf16.msra.mxu0 %v23691_v37  ;;  %20438 = vmatpush3.bf16.msra.mxu1 %v23822_v10 }
 0xc95   :  { %20418 = vmatprep.subr.bf16.mxu0 %v21799_v0  ;;  %20439 = vmatprep.subr.bf16.mxu1 %v21799_v0 }
 0xc98   :  { %20420 = vmatpush3.bf16.msra.mxu0 %v23697_v39  ;;  %20441 = vmatpush3.bf16.msra.mxu1 %v23830_v22 }
 0xc99   :  { %20421 = vmatprep.subr.bf16.mxu0 %v21799_v0  ;;  %20442 = vmatprep.subr.bf16.mxu1 %v21799_v0 }
 0xc9c   :  { %20423 = vmatpush3.bf16.msra.mxu0 %v23752_v36  ;;  %20444 = vmatpush3.bf16.msra.mxu1 %v23838_v57 }
 0xc9d   :  { %20424 = vmatprep.subr.bf16.mxu0 %v21799_v0  ;;  %20445 = vmatprep.subr.bf16.mxu1 %v21799_v0 }
 0xca0   :  { %20426 = vmatpush3.bf16.msra.mxu0 %v23764_v38  ;;  %20447 = vmatpush3.bf16.msra.mxu1 %v23846_v47 }
 0xca1   :  { %20448 = vmatprep.subr.bf16.mxu0 %v21799_v0  ;;  %20469 = vmatprep.subr.bf16.mxu1 %v21799_v0 }
 0xca3   :  { %17208 = vmatmul.mubr.msk.f32.vlgmr.msra.gmra.mrb[96].mxu0 %vm3257_vm5, %v23888_v33  ;;  %17239 = vmatmul.mubr.msk.f32.vlgmr.msra.gmra.mrb[102].mxu1 %vm3257_vm5, %v23793_v2 }
 0xca4   :  { %20450 = vmatpush3.bf16.msra.mxu0 %v23714_v7  ;;  %20471 = vmatpush3.bf16.msra.mxu1 %v23674_v20 }
 0xca5   :  { %20451 = vmatprep.subr.bf16.mxu0 %v21799_v0  ;;  %20472 = vmatprep.subr.bf16.mxu1 %v21799_v0 }
 0xca6   :  { %17269 = vmatprep.mubr.msk.f32.mxu0 %vm21801_vm0, %v21802_v1  ;;  %17300 = vmatprep.mubr.msk.f32.mxu1 %vm21801_vm0, %v21802_v1 }
 0xca8   :  { %20453 = vmatpush3.bf16.msra.mxu0 %v23721_v26  ;;  %20474 = vmatpush3.bf16.msra.mxu1 %v23679_v63 }
 0xca9   :  { %20454 = vmatprep.subr.bf16.mxu0 %v21799_v0  ;;  %20475 = vmatprep.subr.bf16.mxu1 %v21799_v0 }
 0xcac   :  { %20456 = vmatpush3.bf16.msra.mxu0 %v23729_v29  ;;  %20477 = vmatpush3.bf16.msra.mxu1 %v23685_v43 }
 0xcad   :  { %20457 = vmatprep.subr.bf16.mxu0 %v21799_v0  ;;  %20478 = vmatprep.subr.bf16.mxu1 %v21799_v0 }
 0xcb0   :  { %20459 = vmatpush3.bf16.msra.mxu0 %v23735_v61  ;;  %20480 = vmatpush3.bf16.msra.mxu1 %v23691_v37 }
 0xcb1   :  { %20460 = vmatprep.subr.bf16.mxu0 %v21799_v0  ;;  %20481 = vmatprep.subr.bf16.mxu1 %v21799_v0 }
 0xcb4   :  { %20462 = vmatpush3.bf16.msra.mxu0 %v23741_v48  ;;  %20483 = vmatpush3.bf16.msra.mxu1 %v23697_v39 }
 0xcb5   :  { %20463 = vmatprep.subr.bf16.mxu0 %v21799_v0  ;;  %20484 = vmatprep.subr.bf16.mxu1 %v21799_v0 }
 0xcb8   :  { %20465 = vmatpush3.bf16.msra.mxu0 %v23749_v16  ;;  %20486 = vmatpush3.bf16.msra.mxu1 %v23752_v36 }
 0xcb9   :  { %20466 = vmatprep.subr.bf16.mxu0 %v21799_v0  ;;  %20487 = vmatprep.subr.bf16.mxu1 %v21799_v0 }
 0xcbc   :  { %20468 = vmatpush3.bf16.msra.mxu0 %v23761_v35  ;;  %20489 = vmatpush3.bf16.msra.mxu1 %v23764_v38 }
 0xcbd   :  { %20490 = vmatprep.subr.bf16.mxu0 %v21799_v0  ;;  %20511 = vmatprep.subr.bf16.mxu1 %v21799_v0 }
 0xcbf   :  { %17270 = vmatmul.mubr.msk.f32.vlgmr.msra.gmra.mrb[98].mxu0 %vm3257_vm5, %v23888_v33  ;;  %17301 = vmatmul.mubr.msk.f32.vlgmr.msra.gmra.mrb[104].mxu1 %vm3257_vm5, %v23927_v24 }
 0xcc0   :  { %20492 = vmatpush3.bf16.msra.mxu0 %v23785_v53  ;;  %20513 = vmatpush3.bf16.msra.mxu1 %v23714_v7 }
 0xcc1   :  { %20493 = vmatprep.subr.bf16.mxu0 %v21799_v0  ;;  %20514 = vmatprep.subr.bf16.mxu1 %v21799_v0 }
 0xcc2   :  { %17331 = vmatprep.mubr.msk.f32.mxu0 %vm21801_vm0, %v21802_v1  ;;  %17362 = vmatprep.mubr.msk.f32.mxu1 %vm21801_vm0, %v21802_v1 }
 0xcc4   :  { %20495 = vmatpush3.bf16.msra.mxu0 %v23802_v19  ;;  %20516 = vmatpush3.bf16.msra.mxu1 %v23721_v26 }
 0xcc5   :  { %20496 = vmatprep.subr.bf16.mxu0 %v21799_v0  ;;  %20517 = vmatprep.subr.bf16.mxu1 %v21799_v0 }
 0xcc8   :  { %20498 = vmatpush3.bf16.msra.mxu0 %v23814_v14  ;;  %20519 = vmatpush3.bf16.msra.mxu1 %v23729_v29 }
 0xcc9   :  { %20499 = vmatprep.subr.bf16.mxu0 %v21799_v0  ;;  %20520 = vmatprep.subr.bf16.mxu1 %v21799_v0 }
 0xccc   :  { %20501 = vmatpush3.bf16.msra.mxu0 %v23822_v10  ;;  %20522 = vmatpush3.bf16.msra.mxu1 %v23735_v61 }
 0xccd   :  { %20502 = vmatprep.subr.bf16.mxu0 %v21799_v0  ;;  %20523 = vmatprep.subr.bf16.mxu1 %v21799_v0 }
 0xcd0   :  { %20504 = vmatpush3.bf16.msra.mxu0 %v23830_v22  ;;  %20525 = vmatpush3.bf16.msra.mxu1 %v23741_v48 }
 0xcd1   :  { %20505 = vmatprep.subr.bf16.mxu0 %v21799_v0  ;;  %20526 = vmatprep.subr.bf16.mxu1 %v21799_v0 }
 0xcd4   :  { %20507 = vmatpush3.bf16.msra.mxu0 %v23838_v57  ;;  %20528 = vmatpush3.bf16.msra.mxu1 %v23749_v16 }
 0xcd5   :  { %20508 = vmatprep.subr.bf16.mxu0 %v21799_v0  ;;  %20529 = vmatprep.subr.bf16.mxu1 %v21799_v0 }
 0xcd8   :  { %20510 = vmatpush3.bf16.msra.mxu0 %v23846_v47  ;;  %20531 = vmatpush3.bf16.msra.mxu1 %v23761_v35 }
 0xcd9   :  { %20532 = vmatprep.subr.bf16.mxu0 %v21799_v0  ;;  %20553 = vmatprep.subr.bf16.mxu1 %v21799_v0 }
 0xcdb   :  { %17332 = vmatmul.mubr.msk.f32.vlgmr.msra.gmra.mrb[100].mxu0 %vm3257_vm5, %v23888_v33  ;;  %17363 = vmatmul.mubr.msk.f32.vlgmr.msra.gmra.mrb[106].mxu1 %vm3257_vm5, %v23927_v24 }
 0xcdc   :  { %20534 = vmatpush3.bf16.msra.mxu0 %v23674_v20  ;;  %20555 = vmatpush3.bf16.msra.mxu1 %v23785_v53 }
 0xcdd   :  { %20535 = vmatprep.subr.bf16.mxu0 %v21799_v0  ;;  %20556 = vmatprep.subr.bf16.mxu1 %v21799_v0 }
 0xcde   :  { %17393 = vmatprep.mubr.msk.f32.mxu0 %vm21801_vm0, %v21802_v1  ;;  %17424 = vmatprep.mubr.msk.f32.mxu1 %vm21801_vm0, %v21802_v1 }
 0xce0   :  { %20537 = vmatpush3.bf16.msra.mxu0 %v23679_v63  ;;  %20558 = vmatpush3.bf16.msra.mxu1 %v23802_v19 }
 0xce1   :  { %20538 = vmatprep.subr.bf16.mxu0 %v21799_v0  ;;  %20559 = vmatprep.subr.bf16.mxu1 %v21799_v0 }
 0xce4   :  { %20540 = vmatpush3.bf16.msra.mxu0 %v23685_v43  ;;  %20561 = vmatpush3.bf16.msra.mxu1 %v23814_v14 }
 0xce5   :  { %20541 = vmatprep.subr.bf16.mxu0 %v21799_v0  ;;  %20562 = vmatprep.subr.bf16.mxu1 %v21799_v0 }
 0xce8   :  { %20543 = vmatpush3.bf16.msra.mxu0 %v23691_v37  ;;  %20564 = vmatpush3.bf16.msra.mxu1 %v23822_v10 }
 0xce9   :  { %20544 = vmatprep.subr.bf16.mxu0 %v21799_v0  ;;  %20565 = vmatprep.subr.bf16.mxu1 %v21799_v0 }
 0xcec   :  { %20546 = vmatpush3.bf16.msra.mxu0 %v23697_v39  ;;  %20567 = vmatpush3.bf16.msra.mxu1 %v23830_v22 }
 0xced   :  { %20547 = vmatprep.subr.bf16.mxu0 %v21799_v0  ;;  %20568 = vmatprep.subr.bf16.mxu1 %v21799_v0 }
 0xcf0   :  { %20549 = vmatpush3.bf16.msra.mxu0 %v23752_v36  ;;  %20570 = vmatpush3.bf16.msra.mxu1 %v23838_v57 }
 0xcf1   :  { %20550 = vmatprep.subr.bf16.mxu0 %v21799_v0  ;;  %20571 = vmatprep.subr.bf16.mxu1 %v21799_v0 }
 0xcf4   :  { %20552 = vmatpush3.bf16.msra.mxu0 %v23764_v38  ;;  %20573 = vmatpush3.bf16.msra.mxu1 %v23846_v47 }
 0xcf5   :  { %20574 = vmatprep.subr.bf16.mxu0 %v21799_v0  ;;  %20595 = vmatprep.subr.bf16.mxu1 %v21799_v0 }
 0xcf7   :  { %17394 = vmatmul.mubr.msk.f32.vlgmr.msra.gmra.mrb[102].mxu0 %vm3257_vm5, %v24002_v27  ;;  %17425 = vmatmul.mubr.msk.f32.vlgmr.msra.gmra.mrb[108].mxu1 %vm3257_vm5, %v23927_v24 }
 0xcf8   :  { %20576 = vmatpush3.bf16.msra.mxu0 %v23714_v7  ;;  %20597 = vmatpush3.bf16.msra.mxu1 %v23674_v20 }
 0xcf9   :  { %20577 = vmatprep.subr.bf16.mxu0 %v21799_v0  ;;  %20598 = vmatprep.subr.bf16.mxu1 %v21799_v0 }
 0xcfa   :  { %17455 = vmatprep.mubr.msk.f32.mxu0 %vm21801_vm0, %v21802_v1  ;;  %17486 = vmatprep.mubr.msk.f32.mxu1 %vm21801_vm0, %v21802_v1 }
 0xcfc   :  { %20579 = vmatpush3.bf16.msra.mxu0 %v23721_v26  ;;  %20600 = vmatpush3.bf16.msra.mxu1 %v23679_v63 }
 0xcfd   :  { %20580 = vmatprep.subr.bf16.mxu0 %v21799_v0  ;;  %20601 = vmatprep.subr.bf16.mxu1 %v21799_v0 }
 0xd00   :  { %20582 = vmatpush3.bf16.msra.mxu0 %v23729_v29  ;;  %20603 = vmatpush3.bf16.msra.mxu1 %v23685_v43 }
 0xd01   :  { %20583 = vmatprep.subr.bf16.mxu0 %v21799_v0  ;;  %20604 = vmatprep.subr.bf16.mxu1 %v21799_v0 }
 0xd04   :  { %20585 = vmatpush3.bf16.msra.mxu0 %v23735_v61  ;;  %20606 = vmatpush3.bf16.msra.mxu1 %v23691_v37 }
 0xd05   :  { %20586 = vmatprep.subr.bf16.mxu0 %v21799_v0  ;;  %20607 = vmatprep.subr.bf16.mxu1 %v21799_v0 }
 0xd08   :  { %20588 = vmatpush3.bf16.msra.mxu0 %v23741_v48  ;;  %20609 = vmatpush3.bf16.msra.mxu1 %v23697_v39 }
 0xd09   :  { %20589 = vmatprep.subr.bf16.mxu0 %v21799_v0  ;;  %20610 = vmatprep.subr.bf16.mxu1 %v21799_v0 }
 0xd0c   :  { %20591 = vmatpush3.bf16.msra.mxu0 %v23749_v16  ;;  %20612 = vmatpush3.bf16.msra.mxu1 %v23752_v36 }
 0xd0d   :  { %20592 = vmatprep.subr.bf16.mxu0 %v21799_v0  ;;  %20613 = vmatprep.subr.bf16.mxu1 %v21799_v0 }
 0xd10   :  { %20594 = vmatpush3.bf16.msra.mxu0 %v23761_v35  ;;  %20615 = vmatpush3.bf16.msra.mxu1 %v23764_v38 }
 0xd11   :  { %20616 = vmatprep.subr.bf16.mxu0 %v21799_v0  ;;  %20637 = vmatprep.subr.bf16.mxu1 %v21799_v0 }
 0xd13   :  { %17456 = vmatmul.mubr.msk.f32.vlgmr.msra.gmra.mrb[104].mxu0 %vm3257_vm5, %v24002_v27  ;;  %17487 = vmatmul.mubr.msk.f32.vlgmr.msra.gmra.mrb[110].mxu1 %vm3257_vm5, %v24041_v32 }
 0xd14   :  { %20618 = vmatpush3.bf16.msra.mxu0 %v23785_v53  ;;  %20639 = vmatpush3.bf16.msra.mxu1 %v23714_v7 }
 0xd15   :  { %20619 = vmatprep.subr.bf16.mxu0 %v21799_v0  ;;  %20640 = vmatprep.subr.bf16.mxu1 %v21799_v0 }
 0xd16   :  { %17517 = vmatprep.mubr.msk.f32.mxu0 %vm21801_vm0, %v21802_v1  ;;  %17548 = vmatprep.mubr.msk.f32.mxu1 %vm21801_vm0, %v21802_v1 }
 0xd18   :  { %20621 = vmatpush3.bf16.msra.mxu0 %v23802_v19  ;;  %20642 = vmatpush3.bf16.msra.mxu1 %v23721_v26 }
 0xd19   :  { %20622 = vmatprep.subr.bf16.mxu0 %v21799_v0  ;;  %20643 = vmatprep.subr.bf16.mxu1 %v21799_v0 }
 0xd1c   :  { %20624 = vmatpush3.bf16.msra.mxu0 %v23814_v14  ;;  %20645 = vmatpush3.bf16.msra.mxu1 %v23729_v29 }
 0xd1d   :  { %20625 = vmatprep.subr.bf16.mxu0 %v21799_v0  ;;  %20646 = vmatprep.subr.bf16.mxu1 %v21799_v0 }
 0xd20   :  { %20627 = vmatpush3.bf16.msra.mxu0 %v23822_v10  ;;  %20648 = vmatpush3.bf16.msra.mxu1 %v23735_v61 }
 0xd21   :  { %20628 = vmatprep.subr.bf16.mxu0 %v21799_v0  ;;  %20649 = vmatprep.subr.bf16.mxu1 %v21799_v0 }
 0xd24   :  { %20630 = vmatpush3.bf16.msra.mxu0 %v23830_v22  ;;  %20651 = vmatpush3.bf16.msra.mxu1 %v23741_v48 }
 0xd25   :  { %20631 = vmatprep.subr.bf16.mxu0 %v21799_v0  ;;  %20652 = vmatprep.subr.bf16.mxu1 %v21799_v0 }
 0xd28   :  { %20633 = vmatpush3.bf16.msra.mxu0 %v23838_v57  ;;  %20654 = vmatpush3.bf16.msra.mxu1 %v23749_v16 }
 0xd29   :  { %20634 = vmatprep.subr.bf16.mxu0 %v21799_v0  ;;  %20655 = vmatprep.subr.bf16.mxu1 %v21799_v0 }
 0xd2c   :  { %20636 = vmatpush3.bf16.msra.mxu0 %v23846_v47  ;;  %20657 = vmatpush3.bf16.msra.mxu1 %v23761_v35 }
 0xd2d   :  { %20658 = vmatprep.subr.bf16.mxu0 %v21799_v0  ;;  %20679 = vmatprep.subr.bf16.mxu1 %v21799_v0 }
 0xd2f   :  { %17518 = vmatmul.mubr.msk.f32.vlgmr.msra.gmra.mrb[106].mxu0 %vm3257_vm5, %v24002_v27  ;;  %17549 = vmatmul.mubr.msk.f32.vlgmr.msra.gmra.mrb[112].mxu1 %vm3257_vm5, %v24041_v32  ;;  %v13075_v27 = vld [vmem:[%s12722_s15] ss:$0 sm:$0xff] }
 0xd30   :  { %20660 = vmatpush3.bf16.msra.mxu0 %v23674_v20  ;;  %20681 = vmatpush3.bf16.msra.mxu1 %v23785_v53 }
 0xd31   :  { %20661 = vmatprep.subr.bf16.mxu0 %v21799_v0  ;;  %20682 = vmatprep.subr.bf16.mxu1 %v21799_v0 }
 0xd32   :  { %17579 = vmatprep.mubr.msk.f32.mxu0 %vm21801_vm0, %v21802_v1  ;;  %17610 = vmatprep.mubr.msk.f32.mxu1 %vm21801_vm0, %v21802_v1 }
 0xd34   :  { %20663 = vmatpush3.bf16.msra.mxu0 %v23679_v63  ;;  %20684 = vmatpush3.bf16.msra.mxu1 %v23802_v19 }
 0xd35   :  { %20664 = vmatprep.subr.bf16.mxu0 %v21799_v0  ;;  %20685 = vmatprep.subr.bf16.mxu1 %v21799_v0 }
 0xd38   :  { %20666 = vmatpush3.bf16.msra.mxu0 %v23685_v43  ;;  %20687 = vmatpush3.bf16.msra.mxu1 %v23814_v14  ;;  %v7595_v43 = vmax.f32 %v23791_v58, 0.0  ;;  %v9136_v58 = vld [vmem:[%s24172_s11 + $0x40] sm:$0xff] }
 0xd39   :  { %20667 = vmatprep.subr.bf16.mxu0 %v21799_v0  ;;  %20688 = vmatprep.subr.bf16.mxu1 %v21799_v0  ;;  %v20755_v2 = vpack.c.bf16 %v9137_v11, %v9136_v58 }
 0xd3c   :  { %20669 = vmatpush3.bf16.msra.mxu0 %v23691_v37  ;;  %20690 = vmatpush3.bf16.msra.mxu1 %v23822_v10 }
 0xd3d   :  { %20670 = vmatprep.subr.bf16.mxu0 %v21799_v0  ;;  %20691 = vmatprep.subr.bf16.mxu1 %v21799_v0 }
 0xd3e   :  { %v24105_v20 = vpop.f32.mrb[92].mxu0  ;;  %v7789_v63 = vpop.f32.mrb[98].mxu1 }
 0xd3f   :  { %v17085_v25 = vpop.f32.mrb[93].mxu0  ;;  %v17116_v6 = vpop.f32.mrb[99].mxu1 }
 0xd40   :  { %20672 = vmatpush3.bf16.msra.mxu0 %v23697_v39  ;;  %20693 = vmatpush3.bf16.msra.mxu1 %v23830_v22 }
 0xd41   :  { %20673 = vmatprep.subr.bf16.mxu0 %v21799_v0  ;;  %20694 = vmatprep.subr.bf16.mxu1 %v21799_v0 }
 0xd44   :  { %20675 = vmatpush3.bf16.msra.mxu0 %v23752_v36  ;;  %20696 = vmatpush3.bf16.msra.mxu1 %v23838_v57 }
 0xd45   :  { %20676 = vmatprep.subr.bf16.mxu0 %v21799_v0  ;;  %20697 = vmatprep.subr.bf16.mxu1 %v21799_v0 }
 0xd48   :  { %20678 = vmatpush3.bf16.msra.mxu0 %v23764_v38  ;;  %20699 = vmatpush3.bf16.msra.mxu1 %v23846_v47 }
 0xd49   :  { %20700 = vmatprep.subr.bf16.mxu0 %v21799_v0  ;;  %20721 = vmatprep.subr.bf16.mxu1 %v21799_v0 }
 0xd4b   :  { %17580 = vmatmul.mubr.msk.f32.vlgmr.msra.gmra.mrb[108].mxu0 %vm3257_vm5, %v7595_v43  ;;  %17611 = vmatmul.mubr.msk.f32.vlgmr.msra.gmra.mrb[114].mxu1 %vm3257_vm5, %v24041_v32 }
 0xd4c   :  { %20702 = vmatpush3.bf16.msra.mxu0 %v23714_v7  ;;  %20723 = vmatpush3.bf16.msra.mxu1 %v23785_v53  ;;  %v9134_v53 = vld [vmem:[%s24172_s11 + $0x30] sm:$0xff] }
 0xd4d   :  { %20703 = vmatprep.subr.bf16.mxu0 %v21799_v0  ;;  %20724 = vmatprep.subr.bf16.mxu1 %v21799_v0  ;;  %v20752_v13 = vpack.c.bf16 %v9135_v28, %v9134_v53 }
 0xd4e   :  { %17641 = vmatprep.mubr.msk.f32.mxu0 %vm21801_vm0, %v21802_v1  ;;  %17672 = vmatprep.mubr.msk.f32.mxu1 %vm21801_vm0, %v21802_v1 }
 0xd50   :  { %20705 = vmatpush3.bf16.msra.mxu0 %v23721_v26  ;;  %20726 = vmatpush3.bf16.msra.mxu1 %v23802_v19  ;;  %v20758_v19 = vpack.c.bf16 %v9139_v8, %v9138_v15 }
 0xd51   :  { %20706 = vmatprep.subr.bf16.mxu0 %v21799_v0  ;;  %20727 = vmatprep.subr.bf16.mxu1 %v21799_v0 }
 0xd54   :  { %20708 = vmatpush3.bf16.msra.mxu0 %v23729_v29  ;;  %20729 = vmatpush3.bf16.msra.mxu1 %v23814_v14  ;;  %v20761_v14 = vpack.c.bf16 %v9141_v18, %v9140_v4 }
 0xd55   :  { %20709 = vmatprep.subr.bf16.mxu0 %v21799_v0  ;;  %20730 = vmatprep.subr.bf16.mxu1 %v21799_v0 }
 0xd58   :  { %20711 = vmatpush3.bf16.msra.mxu0 %v23735_v61  ;;  %20732 = vmatpush3.bf16.msra.mxu1 %v23822_v10 }
 0xd59   :  { %20712 = vmatprep.subr.bf16.mxu0 %v21799_v0  ;;  %20733 = vmatprep.subr.bf16.mxu1 %v21799_v0 }
 0xd5a   :  { %v7859_v37 = vpop.f32.mrb[94].mxu0  ;;  %v24143_v39 = vpop.f32.mrb[100].mxu1 }
 0xd5b   :  { %v24145_v7 = vadd.f32 %v7859_v37, %v7789_v63  ;;  %v17147_v26 = vpop.f32.mrb[95].mxu0  ;;  %v17178_v29 = vpop.f32.mrb[101].mxu1  ;;  %v24213_v63 = vadd.f32 %v13075_v27, %v24105_v20 }
 0xd5c   :  { %20714 = vmatpush3.bf16.msra.mxu0 %v23741_v48  ;;  %20735 = vmatpush3.bf16.msra.mxu1 %v23830_v22 }
 0xd5d   :  { %20715 = vmatprep.subr.bf16.mxu0 %v21799_v0  ;;  %20736 = vmatprep.subr.bf16.mxu1 %v21799_v0  ;;  %v24210_v32 = vadd.f32 %v13075_v27, %v24145_v7 }
 0xd5f   :  { %v9075_v7 = vadd.f32 %v24210_v32, %v24213_v63 }
 0xd60   :  { %20717 = vmatpush3.bf16.msra.mxu0 %v23749_v16  ;;  %20738 = vmatpush3.bf16.msra.mxu1 %v23838_v57 }
 0xd61   :  { %20718 = vmatprep.subr.bf16.mxu0 %v21799_v0  ;;  %20739 = vmatprep.subr.bf16.mxu1 %v21799_v0 }
 0xd64   :  { %20720 = vmatpush3.bf16.msra.mxu0 %v23761_v35  ;;  %20741 = vmatpush3.bf16.msra.mxu1 %v23846_v47 }
 0xd65   :  { %20742 = vmatprep.subr.bf16.mxu0 %v21799_v0  ;;  %20763 = vmatprep.subr.bf16.mxu1 %v21799_v0 }
 0xd67   :  { %17642 = vmatmul.mubr.msk.f32.vlgmr.msra.gmra.mrb[110].mxu0 %vm3257_vm5, %v7595_v43  ;;  %17673 = vmatmul.mubr.msk.f32.vlgmr.msra.gmra.mrb[116].mxu1 %vm3257_vm5, %v7595_v43  ;;  %v9076_v43 = vmul.f32 %v24210_v32, %v24210_v32 }
 0xd68   :  { %17703 = vmatprep.mubr.msk.f32.mxu0 %vm21801_vm0, %v21802_v1  ;;  %17734 = vmatprep.mubr.msk.f32.mxu1 %vm21801_vm0, %v21802_v1 }
 0xd69   :  { %20744 = vmatpush3.bf16.msra.mxu0 %v20743_v45  ;;  %20765 = vmatpush3.bf16.msra.mxu1 %v20743_v45 }
 0xd6a   :  { %20745 = vmatprep.subr.bf16.mxu0 %v21799_v0  ;;  %20766 = vmatprep.subr.bf16.mxu1 %v21799_v0 }
 0xd6d   :  { %20747 = vmatpush3.bf16.msra.mxu0 %v20746_v41  ;;  %20768 = vmatpush3.bf16.msra.mxu1 %v20746_v41 }
 0xd6e   :  { %20748 = vmatprep.subr.bf16.mxu0 %v21799_v0  ;;  %20769 = vmatprep.subr.bf16.mxu1 %v21799_v0 }
 0xd71   :  { %20750 = vmatpush3.bf16.msra.mxu0 %v20749_v59  ;;  %20771 = vmatpush3.bf16.msra.mxu1 %v20749_v59 }
 0xd72   :  { %20751 = vmatprep.subr.bf16.mxu0 %v21799_v0  ;;  %20772 = vmatprep.subr.bf16.mxu1 %v21799_v0 }
 0xd75   :  { %20753 = vmatpush3.bf16.msra.mxu0 %v20752_v13  ;;  %20774 = vmatpush3.bf16.msra.mxu1 %v20752_v13 }
 0xd76   :  { %v8003_v61 = vpop.f32.mrb[96].mxu0  ;;  %v8073_v48 = vpop.f32.mrb[102].mxu1  ;;  %20754 = vmatprep.subr.bf16.mxu0 %v21799_v0  ;;  %20775 = vmatprep.subr.bf16.mxu1 %v21799_v0 }
 0xd77   :  { %v24165_v16 = vadd.f32 %v8073_v48, %v8003_v61  ;;  %v17209_v36 = vpop.f32.mrb[97].mxu0  ;;  %v17240_v35 = vpop.f32.mrb[103].mxu1  ;;  %v9074_v61 = vmul.f32 %v24213_v63, %v24213_v63  ;;  %v24220_v48 = vadd.f32 %v13075_v27, %v24143_v39 }
 0xd79   :  { %20756 = vmatpush3.bf16.msra.mxu0 %v20755_v2  ;;  %20777 = vmatpush3.bf16.msra.mxu1 %v20755_v2  ;;  %v24225_v20 = vadd.f32 %v13075_v27, %v24165_v16  ;;  %v9077_v36 = vadd.f32 %v9076_v43, %v9074_v61 }
 0xd7a   :  { %20757 = vmatprep.subr.bf16.mxu0 %v21799_v0  ;;  %20778 = vmatprep.subr.bf16.mxu1 %v21799_v0 }
 0xd7d   :  { %20759 = vmatpush3.bf16.msra.mxu0 %v20758_v19  ;;  %20780 = vmatpush3.bf16.msra.mxu1 %v20758_v19 }
 0xd7e   :  { %20760 = vmatprep.subr.bf16.mxu0 %v21799_v0  ;;  %20781 = vmatprep.subr.bf16.mxu1 %v21799_v0 }
 0xd81   :  { %20762 = vmatpush3.bf16.msra.mxu0 %v20761_v14  ;;  %20783 = vmatpush3.bf16.msra.mxu1 %v20761_v14 }
 0xd82   :  { %17737 = vmatprep.subr.mxu0 %v21802_v1  ;;  %20805 = vmatprep.subr.bf16.mxu1 %v21799_v0 }
 0xd92   :  { %v24167_v38 = vpop.f32.mrb[98].mxu0  ;;  %v8217_v12 = vpop.f32.mrb[104].mxu1 }
 0xd93   :  { %v17271_v34 = vpop.f32.mrb[99].mxu0  ;;  %v17302_v46 = vpop.f32.mrb[105].mxu1  ;;  %v24228_v35 = vadd.f32 %v13075_v27, %v24167_v38 }
 0xd94   :  { %v9079_v34 = vmul.f32 %v24220_v48, %v24220_v48  ;;  %v9082_v46 = vmul.f32 %v24225_v20, %v24225_v20 }
 0xd95   :  { %v9085_v16 = vmul.f32 %v24228_v35, %v24228_v35 }
 0xd96   :  { %v9080_v51 = vadd.f32 %v9079_v34, %v9077_v36 }
 0xd98   :  { %v9083_v44 = vadd.f32 %v9082_v46, %v9080_v51 }
 0xd9a   :  { %v9086_v54 = vadd.f32 %v9085_v16, %v9083_v44 }
 0xdae   :  { %v8287_v42 = vpop.f32.mrb[100].mxu0  ;;  %v24178_v52 = vpop.f32.mrb[106].mxu1 }
 0xdaf   :  { %v24182_v5 = vadd.f32 %v8287_v42, %v8217_v12  ;;  %v17333_v60 = vpop.f32.mrb[101].mxu0  ;;  %v17364_v50 = vpop.f32.mrb[107].mxu1  ;;  %v9078_v12 = vadd.f32 %v9075_v7, %v24220_v48  ;;  %v24245_v41 = vadd.f32 %v13075_v27, %v24178_v52 }
 0xdb1   :  { %v24236_v39 = vadd.f32 %v13075_v27, %v24182_v5  ;;  %v9081_v40 = vadd.f32 %v9078_v12, %v24225_v20  ;;  %v9091_v56 = vmul.f32 %v24245_v41, %v24245_v41 }
 0xdb3   :  { %v9084_v38 = vadd.f32 %v9081_v40, %v24228_v35  ;;  %v9088_v45 = vmul.f32 %v24236_v39, %v24236_v39 }
 0xdb5   :  { %v9087_v42 = vadd.f32 %v9084_v38, %v24236_v39  ;;  %v9089_v60 = vadd.f32 %v9088_v45, %v9086_v54  ;;  %v9300_v38 = vld [vmem:[%s12730_s19] sm:$0xff]  ;;  %v9498_v54 = vld [vmem:[%s24301_s23 + $0x8] sm:$0xff] }
 0xdb6   :  { %v9497_v45 = vld [vmem:[%s24301_s23] sm:$0xff] }
 0xdb7   :  { %v9090_v30 = vadd.f32 %v9087_v42, %v24245_v41  ;;  %v9092_v28 = vadd.f32 %v9091_v56, %v9089_v60  ;;  %v24305_v42 = vpack.c.bf16 %v9498_v54, %v9497_v45  ;;  %v9499_v60 = vld [vmem:[%s24301_s23 + $0x10] sm:$0xff]  ;;  %v13111_v45 = vld [vmem:[%s24301_s23 + $0xc8] sm:$0xff] }
 0xdb8   :  { %v9507_v54 = vld [vmem:[%s24301_s23 + $0x50] sm:$0xff] }
 0xdca   :  { %v8431_v21 = vpop.f32.mrb[102].mxu0  ;;  %v8501_v23 = vpop.f32.mrb[108].mxu1 }
 0xdcb   :  { %v8502_v10 = vadd.f32 %v8501_v23, %v8431_v21  ;;  %v17395_v31 = vpop.f32.mrb[103].mxu0  ;;  %v17426_v3 = vpop.f32.mrb[109].mxu1 }
 0xdcd   :  { %v24248_v5 = vadd.f32 %v13075_v27, %v8502_v10 }
 0xdcf   :  { %v9094_v59 = vmul.f32 %v24248_v5, %v24248_v5  ;;  %v9093_v52 = vadd.f32 %v9090_v30, %v24248_v5  ;;  %v9500_v30 = vld [vmem:[%s24301_s23 + $0x18] sm:$0xff] }
 0xdd0   :  { %v24310_v56 = vpack.c.bf16 %v9500_v30, %v9499_v60  ;;  %v9508_v30 = vld [vmem:[%s24301_s23 + $0x58] sm:$0xff] }
 0xdd1   :  { %v9095_v58 = vadd.f32 %v9094_v59, %v9092_v28  ;;  %v9501_v59 = vld [vmem:[%s24301_s23 + $0x20] sm:$0xff]  ;;  %v9502_v28 = vld [vmem:[%s24301_s23 + $0x28] sm:$0xff] }
 0xde6   :  { %v8572_v22 = vpop.f32.mrb[104].mxu0  ;;  %v8645_v55 = vpop.f32.mrb[110].mxu1 }
 0xde7   :  { %v17457_v9 = vpop.f32.mrb[105].mxu0  ;;  %v17488_v57 = vpop.f32.mrb[111].mxu1  ;;  %v24250_v50 = vadd.f32 %v13075_v27, %v8572_v22 }
 0xde9   :  { %v9097_v13 = vmul.f32 %v24250_v50, %v24250_v50  ;;  %v9096_v11 = vadd.f32 %v9093_v52, %v24250_v50  ;;  %v24316_v52 = vpack.c.bf16 %v9502_v28, %v9501_v59  ;;  %v24382_v59 = vpack.c.bf16 %v9508_v30, %v9507_v54  ;;  %v13112_v28 = vld [vmem:[%s24301_s23 + $0xd0] sm:$0xff]  ;;  %v13118_v54 = vld [vmem:[%s24301_s23 + $0x100] sm:$0xff]  ;;  %v13119_v30 = vld [vmem:[%s24301_s23 + $0x108] sm:$0xff] }
 0xdeb   :  { %v9098_v15 = vadd.f32 %v9097_v13, %v9095_v58  ;;  %v9503_v13 = vld [vmem:[%s24301_s23 + $0x30] sm:$0xff]  ;;  %v9504_v58 = vld [vmem:[%s24301_s23 + $0x38] sm:$0xff] }
 0xe02   :  { %v8715_v49 = vpop.f32.mrb[106].mxu0  ;;  %v8786_v62 = vpop.f32.mrb[112].mxu1 }
 0xe03   :  { %v8716_v47 = vadd.f32 %v8715_v49, %v8645_v55  ;;  %v17519_v33 = vpop.f32.mrb[107].mxu0  ;;  %v17550_v24 = vpop.f32.mrb[113].mxu1  ;;  %v24265_v8 = vadd.f32 %v13075_v27, %v8786_v62 }
 0xe05   :  { %v24257_v53 = vadd.f32 %v13075_v27, %v8716_v47  ;;  %v9103_v21 = vmul.f32 %v24265_v8, %v24265_v8 }
 0xe07   :  { %v9100_v2 = vmul.f32 %v24257_v53, %v24257_v53  ;;  %v9099_v19 = vadd.f32 %v9096_v11, %v24257_v53  ;;  %v24322_v11 = vpack.c.bf16 %v9504_v58, %v9503_v13  ;;  %v13113_v13 = vld [vmem:[%s24301_s23 + $0xd8] sm:$0xff]  ;;  %v9509_v58 = vld [vmem:[%s24301_s23 + $0x60] sm:$0xff] }
 0xe09   :  { %v9101_v18 = vadd.f32 %v9100_v2, %v9098_v15  ;;  %v9102_v14 = vadd.f32 %v9099_v19, %v24265_v8  ;;  %v9505_v2 = vld [vmem:[%s24301_s23 + $0x40] sm:$0xff]  ;;  %v9506_v15 = vld [vmem:[%s24301_s23 + $0x48] sm:$0xff] }
 0xe0a   :  { %v24328_v19 = vpack.c.bf16 %v9506_v15, %v9505_v2  ;;  %v24391_v2 = vpack.c.bf16 %v13113_v13, %v13112_v28  ;;  %v9510_v15 = vld [vmem:[%s24301_s23 + $0x68] sm:$0xff]  ;;  %v24468_v28 = vpack.c.bf16 %v13119_v30, %v13118_v54  ;;  %v13120_v13 = vld [vmem:[%s24301_s23 + $0x110] sm:$0xff] }
 0xe0b   :  { %v9104_v3 = vadd.f32 %v9103_v21, %v9101_v18 }
 0xe1e   :  { %v8859_v25 = vpop.f32.mrb[108].mxu0  ;;  %v8929_v6 = vpop.f32.mrb[114].mxu1 }
 0xe1f   :  { %v8930_v37 = vadd.f32 %v8929_v6, %v8859_v25  ;;  %v17581_v26 = vpop.f32.mrb[109].mxu0  ;;  %v17612_v29 = vpop.f32.mrb[115].mxu1 }
 0xe21   :  { %v24268_v4 = vadd.f32 %v13075_v27, %v8930_v37 }
 0xe23   :  { %v9106_v23 = vmul.f32 %v24268_v4, %v24268_v4  ;;  %v9105_v55 = vadd.f32 %v9102_v14, %v24268_v4 }
 0xe25   :  { %v9107_v62 = vadd.f32 %v9106_v23, %v9104_v3 }
 0xe3a   :  { %v9000_v10 = vpop.f32.mrb[110].mxu0  ;;  %v9070_v31 = vpop.f32.mrb[116].mxu1 }
 0xe3b   :  { %v24275_v22 = vadd.f32 %v13075_v27, %v9000_v10  ;;  %v24278_v9 = vadd.f32 %v13075_v27, %v9070_v31  ;;  %v17643_v57 = vpop.f32.mrb[111].mxu0  ;;  %v17674_v49 = vpop.f32.mrb[117].mxu1 }
 0xe3d   :  { %v9108_v47 = vadd.f32 %v9105_v55, %v24275_v22  ;;  %v9109_v33 = vmul.f32 %v24275_v22, %v24275_v22  ;;  %v9112_v6 = vmul.f32 %v24278_v9, %v24278_v9 }
 0xe3f   :  { %v9110_v24 = vadd.f32 %v9109_v33, %v9107_v62  ;;  %v9111_v25 = vadd.f32 %v9108_v47, %v24278_v9  ;;  %v9293_v62 = vld [vmem:[%s12723_s27] sm:$0x1] }
 0xe41   :  { %v9113_v43 = vadd.f32 %v9112_v6, %v9110_v24  ;;  %v9114_v37 = vsel %vm4738_vm6, %v9111_v25, 0.0  ;;  %v13100_v24 = vld [vmem:[%s24301_s23 + $0x70] sm:$0xff]  ;;  %v13101_v25 = vld [vmem:[%s24301_s23 + $0x78] sm:$0xff]  ;;  %v9297_v6 = vld [vmem:[%s12724_s1] sm:$0x1] }
 0xe42   :  { %v9115_v26 = vrot.slane %v9114_v37, 4 }
 0xe43   :  { %v9121_v27 = vsel %vm4738_vm6, %v9113_v43, 0.0 }
 0xe44   :  { %v9116_v29 = vadd.f32 %v9115_v26, %v9114_v37  ;;  %v9122_v61 = vrot.slane %v9121_v27, 4  ;;  %v24344_v37 = vpack.c.bf16 %v13101_v25, %v13100_v24 }
 0xe46   :  { %v9117_v7 = vrot.slane %v9116_v29, 2  ;;  %v9123_v36 = vadd.f32 %v9122_v61, %v9121_v27  ;;  %v13102_v27 = vld [vmem:[%s24301_s23 + $0x80] sm:$0xff] }
 0xe48   :  { %v9118_v12 = vadd.f32 %v9117_v7, %v9116_v29  ;;  %v9124_v34 = vrot.slane %v9123_v36, 2  ;;  %v13103_v29 = vld [vmem:[%s24301_s23 + $0x88] sm:$0xff]  ;;  %v13104_v7 = vld [vmem:[%s24301_s23 + $0x90] sm:$0xff] }
 0xe49   :  { %v24351_v61 = vpack.c.bf16 %v13103_v29, %v13102_v27  ;;  %v13116_v29 = vld [vmem:[%s24301_s23 + $0xf0] sm:$0xff] }
 0xe4a   :  { %v9119_v46 = vrot.slane %v9118_v12, 1  ;;  %v9125_v51 = vadd.f32 %v9124_v34, %v9123_v36  ;;  %v13105_v36 = vld [vmem:[%s24301_s23 + $0x98] sm:$0xff]  ;;  %v13106_v34 = vld [vmem:[%s24301_s23 + $0xa0] sm:$0xff] }
 0xe4c   :  { %v9120_v40 = vadd.f32 %v9119_v46, %v9118_v12  ;;  %v9126_v16 = vrot.slane %v9125_v51, 1  ;;  %v24359_v12 = vpack.c.bf16 %v13105_v36, %v13104_v7  ;;  %v13107_v46 = vld [vmem:[%s24301_s23 + $0xa8] sm:$0xff] }
 0xe4e   :  { %17704 = vmatmul.mubr.msk.f32.vlgmr.msra.gmra.mrb[112].mxu0 %vm3257_vm5, %v9120_v40  ;;  %v9127_v44 = vadd.f32 %v9126_v16, %v9125_v51  ;;  %v24365_v51 = vpack.c.bf16 %v13107_v46, %v13106_v34  ;;  %v13108_v40 = vld [vmem:[%s24301_s23 + $0xb0] sm:$0xff]  ;;  %v13109_v16 = vld [vmem:[%s24301_s23 + $0xb8] sm:$0xff] }
 0xe4f   :  { %17739 = vmatprep.mubr.msk.f32.mxu0 %vm21801_vm0, %v21802_v1  ;;  %17738 = vmatpush3.msra.mxu0 %v9300_v38 }
 0xe50   :  { %17735 = vmatmul.mubr.msk.f32.vlgmr.msra.gmra.mrb[118].mxu1 %vm3257_vm5, %v9127_v44  ;;  %17742 = vmatprep.subr.mxu0 %v21802_v1  ;;  %v24371_v44 = vpack.c.bf16 %v13109_v16, %v13108_v40 }
 0xe51   :  { %17806 = vmatprep.mubr.msk.f32.mxu1 %vm21801_vm0, %v21802_v1  ;;  %20807 = vmatpush3.bf16.msra.mxu1 %v24305_v42 }
 0xe52   :  { %20808 = vmatprep.subr.bf16.mxu1 %v21799_v0 }
 0xe55   :  { %20810 = vmatpush3.bf16.msra.mxu1 %v24310_v56 }
 0xe56   :  { %20811 = vmatprep.subr.bf16.mxu1 %v21799_v0 }
 0xe59   :  { %20813 = vmatpush3.bf16.msra.mxu1 %v24316_v52 }
 0xe5a   :  { %20814 = vmatprep.subr.bf16.mxu1 %v21799_v0 }
 0xe5d   :  { %20816 = vmatpush3.bf16.msra.mxu1 %v24322_v11 }
 0xe5e   :  { %20817 = vmatprep.subr.bf16.mxu1 %v21799_v0 }
 0xe61   :  { %20819 = vmatpush3.bf16.msra.mxu1 %v24328_v19 }
 0xe62   :  { %20820 = vmatprep.subr.bf16.mxu1 %v21799_v0 }
 0xe65   :  { %20822 = vmatpush3.bf16.msra.mxu1 %v24382_v59 }
 0xe66   :  { %20823 = vmatprep.subr.bf16.mxu1 %v21799_v0 }
 0xf21   :  { %v9211_v18 = vpop.f32.mrb[112].mxu0 }
 0xf22   :  { %v9215_v14 = vmul.f32 0.0025510204, %v9211_v18  ;;  %v17705_v21 = vpop.f32.mrb[113].mxu0  ;;  %v24394_v18 = vpack.c.bf16 %v9510_v15, %v9509_v58  ;;  %v13121_v58 = vld [vmem:[%s24301_s23 + $0x118] sm:$0xff] }
 0xf23   :  { %v9285_v23 = vpop.f32.mrb[118].mxu1  ;;  %v24476_v15 = vpack.c.bf16 %v13121_v58, %v13120_v13 }
 0xf24   :  { %v9290_v10 = vmul.f32 %v9215_v14, %v9215_v14  ;;  %v9289_v31 = vmul.f32 0.0025510204, %v9285_v23  ;;  %v17736_v3 = vpop.f32.mrb[119].mxu1  ;;  %20825 = vmatpush3.bf16.msra.mxu1 %v24394_v18 }
 0xf25   :  { %20847 = vmatprep.subr.bf16.mxu1 %v21799_v0 }
 0xf26   :  { %v9291_v55 = vsub.f32 %v9289_v31, %v9290_v10  ;;  %v13114_v10 = vld [vmem:[%s24301_s23 + $0xe0] sm:$0xff]  ;;  %v13115_v31 = vld [vmem:[%s24301_s23 + $0xe8] sm:$0xff] }
 0xf28   :  { %v9292_v57 = vmax.f32 %v9291_v55, 0.0 }
 0xf2a   :  { %v9294_v49 = vadd.f32 1e-05, %v9292_v57 }
 0xf2c   :  { %21684 = vrsqrt.f32 %v9294_v49  ;;  %v24405_v49 = vpack.c.bf16 %v13115_v31, %v13114_v10  ;;  %v13124_v10 = vld [vmem:[%s24301_s23 + $0x130] sm:$0xff]  ;;  %v13125_v31 = vld [vmem:[%s24301_s23 + $0x138] sm:$0xff] }
 0xf36   :  { %v21685_v47 = vpop.eup %21684 }
 0xf37   :  { %v9296_v33 = vmul.f32 %v21685_v47, %v9293_v62 }
 0xf39   :  { %17740 = vmatmul.mubr.msk.f32.vlgmr.msra.gmra.mrb[114].mxu0 %vm6183_vm9, %v9296_v33  ;;  %v9298_v43 = vmul.f32 %v9296_v33, %v9215_v14 }
 0xf3a   :  { %17743 = vmatpush3.msra.mxu0 %v9300_v38  ;;  %17744 = vmatprep.mubr.msk.f32.mxu0 %vm21801_vm0, %v21802_v1  ;;  %v13110_v38 = vld [vmem:[%s24301_s23 + $0xc0] sm:$0xff] }
 0xf3b   :  { %v9299_v26 = vsub.f32 %v9297_v6, %v9298_v43  ;;  %20784 = vmatprep.subr.bf16.mxu0 %v21799_v0  ;;  %v24379_v60 = vpack.c.bf16 %v13111_v45, %v13110_v38 }
 0xf3d   :  { %17745 = vmatmul.mubr.msk.f32.vlgmr.msra.gmra.mrb[116].mxu0 %vm6183_vm9, %v9299_v26 }
 0xf3e   :  { %20786 = vmatpush3.bf16.msra.mxu0 %v24344_v37  ;;  %17775 = vmatprep.mubr.msk.f32.mxu0 %vm21801_vm0, %v21802_v1 }
 0xf3f   :  { %20787 = vmatprep.subr.bf16.mxu0 %v21799_v0 }
 0xf42   :  { %20789 = vmatpush3.bf16.msra.mxu0 %v24351_v61 }
 0xf43   :  { %20790 = vmatprep.subr.bf16.mxu0 %v21799_v0 }
 0xf46   :  { %20792 = vmatpush3.bf16.msra.mxu0 %v24359_v12 }
 0xf47   :  { %20793 = vmatprep.subr.bf16.mxu0 %v21799_v0 }
 0xf4a   :  { %20795 = vmatpush3.bf16.msra.mxu0 %v24365_v51 }
 0xf4b   :  { %20796 = vmatprep.subr.bf16.mxu0 %v21799_v0 }
 0xf4e   :  { %20798 = vmatpush3.bf16.msra.mxu0 %v24371_v44 }
 0xf4f   :  { %20799 = vmatprep.subr.bf16.mxu0 %v21799_v0 }
 0xf52   :  { %20801 = vmatpush3.bf16.msra.mxu0 %v24379_v60 }
 0xf53   :  { %20802 = vmatprep.subr.bf16.mxu0 %v21799_v0 }
 0xf56   :  { %20804 = vmatpush3.bf16.msra.mxu0 %v24391_v2 }
 0xf57   :  { %20826 = vmatprep.subr.bf16.mxu0 %v21799_v0 }
0x100c   :  { %v9370_v14 = vpop.f32.mrb[114].mxu0 }
0x100d   :  { %v9450_v21 = vrot.slane %v9370_v14, %v22984_v17  ;;  %v17741_v23 = vpop.f32.mrb[115].mxu0  ;;  %v13122_v14 = vld [vmem:[%s24301_s23 + $0x120] sm:$0xff] }
0x100f   :  { %v9451_v55 = vmul.f32 %v9450_v21, %v24213_v63  ;;  %v9458_v57 = vmul.f32 %v9450_v21, %v24210_v32  ;;  %v9461_v33 = vmul.f32 %v9450_v21, %v24220_v48  ;;  %v9464_v24 = vmul.f32 %v9450_v21, %v24225_v20 }
0x1010   :  { %v9443_v3 = vpop.f32.mrb[116].mxu0  ;;  %v9467_v25 = vmul.f32 %v9450_v21, %v24228_v35  ;;  %v9470_v6 = vmul.f32 %v9450_v21, %v24236_v39  ;;  %v9473_v43 = vmul.f32 %v9450_v21, %v24245_v41  ;;  %v9476_v26 = vmul.f32 %v9450_v21, %v24248_v5 }
0x1011   :  { %v9455_v62 = vrot.slane %v9443_v3, %v22984_v17  ;;  %v17746_v47 = vpop.f32.mrb[117].mxu0  ;;  %v9479_v63 = vmul.f32 %v9450_v21, %v24250_v50  ;;  %v13117_v17 = vld [vmem:[%s24301_s23 + $0xf8] sm:$0xff]  ;;  %v9482_v36 = vmul.f32 %v9450_v21, %v24257_v53  ;;  %v9485_v34 = vmul.f32 %v9450_v21, %v24265_v8 }
0x1012   :  { %v24436_v46 = vpack.c.bf16 %v13117_v17, %v13116_v29  ;;  %v9488_v40 = vmul.f32 %v9450_v21, %v24268_v4  ;;  %v9491_v16 = vmul.f32 %v9450_v21, %v24275_v22  ;;  %v9494_v38 = vmul.f32 %v9450_v21, %v24278_v9  ;;  %v13123_v21 = vld [vmem:[%s24301_s23 + $0x128] sm:$0xff] }
0x1013   :  { %v24415_v32 = vadd.f32 %v9455_v62, %v9451_v55  ;;  %v9459_v27 = vadd.f32 %v9458_v57, %v9455_v62  ;;  %v24419_v7 = vadd.f32 %v9461_v33, %v9455_v62  ;;  %v24421_v48 = vadd.f32 %v9464_v24, %v9455_v62  ;;  %v13126_v55 = vld [vmem:[%s24301_s23 + $0x140] sm:$0xff]  ;;  %v13127_v57 = vld [vmem:[%s24301_s23 + $0x148] sm:$0xff] }
0x1014   :  { %v24423_v20 = vadd.f32 %v9467_v25, %v9455_v62  ;;  %v24425_v35 = vadd.f32 %v9470_v6, %v9455_v62  ;;  %v24427_v39 = vadd.f32 %v9473_v43, %v9455_v62  ;;  %v24429_v41 = vadd.f32 %v9476_v26, %v9455_v62  ;;  %v24763_v6 = vld [vmem:[%s24752_s5] ss:$0 sm:$0xff] }
0x1015   :  { %v9457_v5 = vmax.f32 %v24415_v32, 0.0  ;;  %v24432_v50 = vmax.f32 %v9459_v27, 0.0  ;;  %v24444_v45 = vadd.f32 %v9479_v63, %v9455_v62  ;;  %v24446_v53 = vadd.f32 %v9482_v36, %v9455_v62 }
0x1016   :  { %v24448_v8 = vadd.f32 %v9485_v34, %v9455_v62  ;;  %v24452_v4 = vadd.f32 %v9488_v40, %v9455_v62  ;;  %v24454_v22 = vadd.f32 %v9491_v16, %v9455_v62  ;;  %v24456_v9 = vadd.f32 %v9494_v38, %v9455_v62 }
0x1017   :  { %17776 = vmatmul.mubr.msk.f32.vlgmr.msra.gmra.mrb[118].mxu0 %vm3257_vm5, %v9457_v5  ;;  %17807 = vmatmul.mubr.msk.f32.vlgmr.msra.gmra.mrb[120].mxu1 %vm3257_vm5, %v24432_v50  ;;  %v24484_v23 = vpack.c.bf16 %v13123_v21, %v13122_v14  ;;  %v24492_v3 = vpack.c.bf16 %v13125_v31, %v13124_v10  ;;  %v24500_v62 = vpack.c.bf16 %v13127_v57, %v13126_v55  ;;  %v24542_v47 = vmax.f32 %v24419_v7, 0.0 }
0x1018   :  { %20828 = vmatpush3.bf16.msra.mxu0 %v24405_v49  ;;  %20849 = vmatpush3.bf16.msra.mxu1 %v24344_v37  ;;  %v24581_v33 = vmax.f32 %v24421_v48, 0.0  ;;  %v24656_v24 = vmax.f32 %v24423_v20, 0.0  ;;  %v24695_v25 = vmax.f32 %v24425_v35, 0.0  ;;  %v24779_v7 = vmax.f32 %v24427_v39, 0.0 }
0x1019   :  { %20829 = vmatprep.subr.bf16.mxu0 %v21799_v0  ;;  %20850 = vmatprep.subr.bf16.mxu1 %v21799_v0  ;;  %v24827_v58 = vmax.f32 %v24429_v41, 0.0 }
0x101a   :  { %17837 = vmatprep.mubr.msk.f32.mxu0 %vm21801_vm0, %v21802_v1  ;;  %17868 = vmatprep.mubr.msk.f32.mxu1 %vm21801_vm0, %v21802_v1 }
0x101c   :  { %20831 = vmatpush3.bf16.msra.mxu0 %v24436_v46  ;;  %20852 = vmatpush3.bf16.msra.mxu1 %v24351_v61 }
0x101d   :  { %20832 = vmatprep.subr.bf16.mxu0 %v21799_v0  ;;  %20853 = vmatprep.subr.bf16.mxu1 %v21799_v0 }
0x1020   :  { %20834 = vmatpush3.bf16.msra.mxu0 %v24468_v28  ;;  %20855 = vmatpush3.bf16.msra.mxu1 %v24359_v12 }
0x1021   :  { %20835 = vmatprep.subr.bf16.mxu0 %v21799_v0  ;;  %20856 = vmatprep.subr.bf16.mxu1 %v21799_v0 }
0x1024   :  { %20837 = vmatpush3.bf16.msra.mxu0 %v24476_v15  ;;  %20858 = vmatpush3.bf16.msra.mxu1 %v24365_v51 }
0x1025   :  { %20838 = vmatprep.subr.bf16.mxu0 %v21799_v0  ;;  %20859 = vmatprep.subr.bf16.mxu1 %v21799_v0 }
0x1028   :  { %20840 = vmatpush3.bf16.msra.mxu0 %v24484_v23  ;;  %20861 = vmatpush3.bf16.msra.mxu1 %v24371_v44 }
0x1029   :  { %20841 = vmatprep.subr.bf16.mxu0 %v21799_v0  ;;  %20862 = vmatprep.subr.bf16.mxu1 %v21799_v0 }
0x102c   :  { %20843 = vmatpush3.bf16.msra.mxu0 %v24492_v3  ;;  %20864 = vmatpush3.bf16.msra.mxu1 %v24379_v60 }
0x102d   :  { %20844 = vmatprep.subr.bf16.mxu0 %v21799_v0  ;;  %20865 = vmatprep.subr.bf16.mxu1 %v21799_v0 }
0x1030   :  { %20846 = vmatpush3.bf16.msra.mxu0 %v24500_v62  ;;  %20867 = vmatpush3.bf16.msra.mxu1 %v24391_v2 }
0x1031   :  { %20868 = vmatprep.subr.bf16.mxu0 %v21799_v0  ;;  %20889 = vmatprep.subr.bf16.mxu1 %v21799_v0 }
0x1033   :  { %17838 = vmatmul.mubr.msk.f32.vlgmr.msra.gmra.mrb[120].mxu0 %vm3257_vm5, %v9457_v5  ;;  %17869 = vmatmul.mubr.msk.f32.vlgmr.msra.gmra.mrb[122].mxu1 %vm3257_vm5, %v24432_v50 }
0x1034   :  { %20870 = vmatpush3.bf16.msra.mxu0 %v24305_v42  ;;  %20891 = vmatpush3.bf16.msra.mxu1 %v24405_v49 }
0x1035   :  { %20871 = vmatprep.subr.bf16.mxu0 %v21799_v0  ;;  %20892 = vmatprep.subr.bf16.mxu1 %v21799_v0 }
0x1036   :  { %17899 = vmatprep.mubr.msk.f32.mxu0 %vm21801_vm0, %v21802_v1  ;;  %17930 = vmatprep.mubr.msk.f32.mxu1 %vm21801_vm0, %v21802_v1 }
0x1038   :  { %20873 = vmatpush3.bf16.msra.mxu0 %v24310_v56  ;;  %20894 = vmatpush3.bf16.msra.mxu1 %v24436_v46 }
0x1039   :  { %20874 = vmatprep.subr.bf16.mxu0 %v21799_v0  ;;  %20895 = vmatprep.subr.bf16.mxu1 %v21799_v0 }
0x103c   :  { %20876 = vmatpush3.bf16.msra.mxu0 %v24316_v52  ;;  %20897 = vmatpush3.bf16.msra.mxu1 %v24468_v28 }
0x103d   :  { %20877 = vmatprep.subr.bf16.mxu0 %v21799_v0  ;;  %20898 = vmatprep.subr.bf16.mxu1 %v21799_v0 }
0x1040   :  { %20879 = vmatpush3.bf16.msra.mxu0 %v24322_v11  ;;  %20900 = vmatpush3.bf16.msra.mxu1 %v24476_v15 }
0x1041   :  { %20880 = vmatprep.subr.bf16.mxu0 %v21799_v0  ;;  %20901 = vmatprep.subr.bf16.mxu1 %v21799_v0 }
0x1044   :  { %20882 = vmatpush3.bf16.msra.mxu0 %v24328_v19  ;;  %20903 = vmatpush3.bf16.msra.mxu1 %v24484_v23 }
0x1045   :  { %20883 = vmatprep.subr.bf16.mxu0 %v21799_v0  ;;  %20904 = vmatprep.subr.bf16.mxu1 %v21799_v0 }
0x1048   :  { %20885 = vmatpush3.bf16.msra.mxu0 %v24382_v59  ;;  %20906 = vmatpush3.bf16.msra.mxu1 %v24492_v3 }
0x1049   :  { %20886 = vmatprep.subr.bf16.mxu0 %v21799_v0  ;;  %20907 = vmatprep.subr.bf16.mxu1 %v21799_v0 }
0x104c   :  { %20888 = vmatpush3.bf16.msra.mxu0 %v24394_v18  ;;  %20909 = vmatpush3.bf16.msra.mxu1 %v24500_v62 }
0x104d   :  { %20910 = vmatprep.subr.bf16.mxu0 %v21799_v0  ;;  %20931 = vmatprep.subr.bf16.mxu1 %v21799_v0 }
0x104f   :  { %17900 = vmatmul.mubr.msk.f32.vlgmr.msra.gmra.mrb[122].mxu0 %vm3257_vm5, %v24542_v47  ;;  %17931 = vmatmul.mubr.msk.f32.vlgmr.msra.gmra.mrb[124].mxu1 %vm3257_vm5, %v24432_v50 }
0x1050   :  { %20912 = vmatpush3.bf16.msra.mxu0 %v24344_v37  ;;  %20933 = vmatpush3.bf16.msra.mxu1 %v24305_v42 }
0x1051   :  { %20913 = vmatprep.subr.bf16.mxu0 %v21799_v0  ;;  %20934 = vmatprep.subr.bf16.mxu1 %v21799_v0 }
0x1052   :  { %17961 = vmatprep.mubr.msk.f32.mxu0 %vm21801_vm0, %v21802_v1  ;;  %17992 = vmatprep.mubr.msk.f32.mxu1 %vm21801_vm0, %v21802_v1 }
0x1054   :  { %20915 = vmatpush3.bf16.msra.mxu0 %v24351_v61  ;;  %20936 = vmatpush3.bf16.msra.mxu1 %v24310_v56 }
0x1055   :  { %20916 = vmatprep.subr.bf16.mxu0 %v21799_v0  ;;  %20937 = vmatprep.subr.bf16.mxu1 %v21799_v0 }
0x1058   :  { %20918 = vmatpush3.bf16.msra.mxu0 %v24359_v12  ;;  %20939 = vmatpush3.bf16.msra.mxu1 %v24316_v52 }
0x1059   :  { %20919 = vmatprep.subr.bf16.mxu0 %v21799_v0  ;;  %20940 = vmatprep.subr.bf16.mxu1 %v21799_v0 }
0x105c   :  { %20921 = vmatpush3.bf16.msra.mxu0 %v24365_v51  ;;  %20942 = vmatpush3.bf16.msra.mxu1 %v24322_v11 }
0x105d   :  { %20922 = vmatprep.subr.bf16.mxu0 %v21799_v0  ;;  %20943 = vmatprep.subr.bf16.mxu1 %v21799_v0 }
0x1060   :  { %20924 = vmatpush3.bf16.msra.mxu0 %v24371_v44  ;;  %20945 = vmatpush3.bf16.msra.mxu1 %v24328_v19 }
0x1061   :  { %20925 = vmatprep.subr.bf16.mxu0 %v21799_v0  ;;  %20946 = vmatprep.subr.bf16.mxu1 %v21799_v0 }
0x1064   :  { %20927 = vmatpush3.bf16.msra.mxu0 %v24379_v60  ;;  %20948 = vmatpush3.bf16.msra.mxu1 %v24382_v59 }
0x1065   :  { %20928 = vmatprep.subr.bf16.mxu0 %v21799_v0  ;;  %20949 = vmatprep.subr.bf16.mxu1 %v21799_v0 }
0x1068   :  { %20930 = vmatpush3.bf16.msra.mxu0 %v24391_v2  ;;  %20951 = vmatpush3.bf16.msra.mxu1 %v24394_v18 }
0x1069   :  { %20952 = vmatprep.subr.bf16.mxu0 %v21799_v0  ;;  %20973 = vmatprep.subr.bf16.mxu1 %v21799_v0 }
0x106b   :  { %17962 = vmatmul.mubr.msk.f32.vlgmr.msra.gmra.mrb[124].mxu0 %vm3257_vm5, %v24542_v47  ;;  %17993 = vmatmul.mubr.msk.f32.vlgmr.msra.gmra.mrb[126].mxu1 %vm3257_vm5, %v24581_v33 }
0x106c   :  { %20954 = vmatpush3.bf16.msra.mxu0 %v24405_v49  ;;  %20975 = vmatpush3.bf16.msra.mxu1 %v24344_v37 }
0x106d   :  { %20955 = vmatprep.subr.bf16.mxu0 %v21799_v0  ;;  %20976 = vmatprep.subr.bf16.mxu1 %v21799_v0 }
0x106e   :  { %18023 = vmatprep.mubr.msk.f32.mxu0 %vm21801_vm0, %v21802_v1  ;;  %18054 = vmatprep.mubr.msk.f32.mxu1 %vm21801_vm0, %v21802_v1 }
0x1070   :  { %20957 = vmatpush3.bf16.msra.mxu0 %v24436_v46  ;;  %20978 = vmatpush3.bf16.msra.mxu1 %v24351_v61 }
0x1071   :  { %20958 = vmatprep.subr.bf16.mxu0 %v21799_v0  ;;  %20979 = vmatprep.subr.bf16.mxu1 %v21799_v0 }
0x1074   :  { %20960 = vmatpush3.bf16.msra.mxu0 %v24468_v28  ;;  %20981 = vmatpush3.bf16.msra.mxu1 %v24359_v12 }
0x1075   :  { %20961 = vmatprep.subr.bf16.mxu0 %v21799_v0  ;;  %20982 = vmatprep.subr.bf16.mxu1 %v21799_v0 }
0x1078   :  { %20963 = vmatpush3.bf16.msra.mxu0 %v24476_v15  ;;  %20984 = vmatpush3.bf16.msra.mxu1 %v24365_v51 }
0x1079   :  { %20964 = vmatprep.subr.bf16.mxu0 %v21799_v0  ;;  %20985 = vmatprep.subr.bf16.mxu1 %v21799_v0 }
0x107c   :  { %20966 = vmatpush3.bf16.msra.mxu0 %v24484_v23  ;;  %20987 = vmatpush3.bf16.msra.mxu1 %v24371_v44 }
0x107d   :  { %20967 = vmatprep.subr.bf16.mxu0 %v21799_v0  ;;  %20988 = vmatprep.subr.bf16.mxu1 %v21799_v0 }
0x1080   :  { %20969 = vmatpush3.bf16.msra.mxu0 %v24492_v3  ;;  %20990 = vmatpush3.bf16.msra.mxu1 %v24379_v60 }
0x1081   :  { %20970 = vmatprep.subr.bf16.mxu0 %v21799_v0  ;;  %20991 = vmatprep.subr.bf16.mxu1 %v21799_v0 }
0x1084   :  { %20972 = vmatpush3.bf16.msra.mxu0 %v24500_v62  ;;  %20993 = vmatpush3.bf16.msra.mxu1 %v24391_v2 }
0x1085   :  { %20994 = vmatprep.subr.bf16.mxu0 %v21799_v0  ;;  %21015 = vmatprep.subr.bf16.mxu1 %v21799_v0 }
0x1087   :  { %18024 = vmatmul.mubr.msk.f32.vlgmr.msra.gmra.mrb[126].mxu0 %vm3257_vm5, %v24542_v47  ;;  %18055 = vmatmul.mubr.msk.f32.vlgmr.msra.gmra.mrb[128].mxu1 %vm3257_vm5, %v24581_v33 }
0x1088   :  { %20996 = vmatpush3.bf16.msra.mxu0 %v24305_v42  ;;  %21017 = vmatpush3.bf16.msra.mxu1 %v24405_v49 }
0x1089   :  { %20997 = vmatprep.subr.bf16.mxu0 %v21799_v0  ;;  %21018 = vmatprep.subr.bf16.mxu1 %v21799_v0 }
0x108a   :  { %18085 = vmatprep.mubr.msk.f32.mxu0 %vm21801_vm0, %v21802_v1  ;;  %18116 = vmatprep.mubr.msk.f32.mxu1 %vm21801_vm0, %v21802_v1 }
0x108c   :  { %20999 = vmatpush3.bf16.msra.mxu0 %v24310_v56  ;;  %21020 = vmatpush3.bf16.msra.mxu1 %v24436_v46 }
0x108d   :  { %21000 = vmatprep.subr.bf16.mxu0 %v21799_v0  ;;  %21021 = vmatprep.subr.bf16.mxu1 %v21799_v0 }
0x1090   :  { %21002 = vmatpush3.bf16.msra.mxu0 %v24316_v52  ;;  %21023 = vmatpush3.bf16.msra.mxu1 %v24468_v28 }
0x1091   :  { %21003 = vmatprep.subr.bf16.mxu0 %v21799_v0  ;;  %21024 = vmatprep.subr.bf16.mxu1 %v21799_v0 }
0x1094   :  { %21005 = vmatpush3.bf16.msra.mxu0 %v24322_v11  ;;  %21026 = vmatpush3.bf16.msra.mxu1 %v24476_v15 }
0x1095   :  { %21006 = vmatprep.subr.bf16.mxu0 %v21799_v0  ;;  %21027 = vmatprep.subr.bf16.mxu1 %v21799_v0 }
0x1098   :  { %21008 = vmatpush3.bf16.msra.mxu0 %v24328_v19  ;;  %21029 = vmatpush3.bf16.msra.mxu1 %v24484_v23 }
0x1099   :  { %21009 = vmatprep.subr.bf16.mxu0 %v21799_v0  ;;  %21030 = vmatprep.subr.bf16.mxu1 %v21799_v0 }
0x109c   :  { %21011 = vmatpush3.bf16.msra.mxu0 %v24382_v59  ;;  %21032 = vmatpush3.bf16.msra.mxu1 %v24492_v3 }
0x109d   :  { %21012 = vmatprep.subr.bf16.mxu0 %v21799_v0  ;;  %21033 = vmatprep.subr.bf16.mxu1 %v21799_v0 }
0x10a0   :  { %21014 = vmatpush3.bf16.msra.mxu0 %v24394_v18  ;;  %21035 = vmatpush3.bf16.msra.mxu1 %v24500_v62 }
0x10a1   :  { %21036 = vmatprep.subr.bf16.mxu0 %v21799_v0  ;;  %21057 = vmatprep.subr.bf16.mxu1 %v21799_v0 }
0x10a3   :  { %18086 = vmatmul.mubr.msk.f32.vlgmr.msra.gmra.mrb[128].mxu0 %vm3257_vm5, %v24656_v24  ;;  %18117 = vmatmul.mubr.msk.f32.vlgmr.msra.gmra.mrb[130].mxu1 %vm3257_vm5, %v24581_v33 }
0x10a4   :  { %21038 = vmatpush3.bf16.msra.mxu0 %v24344_v37  ;;  %21059 = vmatpush3.bf16.msra.mxu1 %v24305_v42 }
0x10a5   :  { %21039 = vmatprep.subr.bf16.mxu0 %v21799_v0  ;;  %21060 = vmatprep.subr.bf16.mxu1 %v21799_v0 }
0x10a6   :  { %18147 = vmatprep.mubr.msk.f32.mxu0 %vm21801_vm0, %v21802_v1  ;;  %18178 = vmatprep.mubr.msk.f32.mxu1 %vm21801_vm0, %v21802_v1 }
0x10a8   :  { %21041 = vmatpush3.bf16.msra.mxu0 %v24351_v61  ;;  %21062 = vmatpush3.bf16.msra.mxu1 %v24310_v56 }
0x10a9   :  { %21042 = vmatprep.subr.bf16.mxu0 %v21799_v0  ;;  %21063 = vmatprep.subr.bf16.mxu1 %v21799_v0 }
0x10ac   :  { %21044 = vmatpush3.bf16.msra.mxu0 %v24359_v12  ;;  %21065 = vmatpush3.bf16.msra.mxu1 %v24316_v52 }
0x10ad   :  { %21045 = vmatprep.subr.bf16.mxu0 %v21799_v0  ;;  %21066 = vmatprep.subr.bf16.mxu1 %v21799_v0 }
0x10b0   :  { %21047 = vmatpush3.bf16.msra.mxu0 %v24365_v51  ;;  %21068 = vmatpush3.bf16.msra.mxu1 %v24322_v11 }
0x10b1   :  { %21048 = vmatprep.subr.bf16.mxu0 %v21799_v0  ;;  %21069 = vmatprep.subr.bf16.mxu1 %v21799_v0 }
0x10b4   :  { %21050 = vmatpush3.bf16.msra.mxu0 %v24371_v44  ;;  %21071 = vmatpush3.bf16.msra.mxu1 %v24328_v19 }
0x10b5   :  { %21051 = vmatprep.subr.bf16.mxu0 %v21799_v0  ;;  %21072 = vmatprep.subr.bf16.mxu1 %v21799_v0 }
0x10b8   :  { %21053 = vmatpush3.bf16.msra.mxu0 %v24379_v60  ;;  %21074 = vmatpush3.bf16.msra.mxu1 %v24382_v59 }
0x10b9   :  { %21054 = vmatprep.subr.bf16.mxu0 %v21799_v0  ;;  %21075 = vmatprep.subr.bf16.mxu1 %v21799_v0 }
0x10bc   :  { %21056 = vmatpush3.bf16.msra.mxu0 %v24391_v2  ;;  %21077 = vmatpush3.bf16.msra.mxu1 %v24394_v18 }
0x10bd   :  { %21078 = vmatprep.subr.bf16.mxu0 %v21799_v0  ;;  %21099 = vmatprep.subr.bf16.mxu1 %v21799_v0 }
0x10bf   :  { %18148 = vmatmul.mubr.msk.f32.vlgmr.msra.gmra.mrb[130].mxu0 %vm3257_vm5, %v24656_v24  ;;  %18179 = vmatmul.mubr.msk.f32.vlgmr.msra.gmra.mrb[132].mxu1 %vm3257_vm5, %v24695_v25 }
0x10c0   :  { %21080 = vmatpush3.bf16.msra.mxu0 %v24405_v49  ;;  %21101 = vmatpush3.bf16.msra.mxu1 %v24344_v37 }
0x10c1   :  { %21081 = vmatprep.subr.bf16.mxu0 %v21799_v0  ;;  %21102 = vmatprep.subr.bf16.mxu1 %v21799_v0 }
0x10c2   :  { %18209 = vmatprep.mubr.msk.f32.mxu0 %vm21801_vm0, %v21802_v1  ;;  %18240 = vmatprep.mubr.msk.f32.mxu1 %vm21801_vm0, %v21802_v1 }
0x10c4   :  { %21083 = vmatpush3.bf16.msra.mxu0 %v24436_v46  ;;  %21104 = vmatpush3.bf16.msra.mxu1 %v24351_v61 }
0x10c5   :  { %21084 = vmatprep.subr.bf16.mxu0 %v21799_v0  ;;  %21105 = vmatprep.subr.bf16.mxu1 %v21799_v0 }
0x10c8   :  { %21086 = vmatpush3.bf16.msra.mxu0 %v24468_v28  ;;  %21107 = vmatpush3.bf16.msra.mxu1 %v24359_v12 }
0x10c9   :  { %21087 = vmatprep.subr.bf16.mxu0 %v21799_v0  ;;  %21108 = vmatprep.subr.bf16.mxu1 %v21799_v0 }
0x10cc   :  { %21089 = vmatpush3.bf16.msra.mxu0 %v24476_v15  ;;  %21110 = vmatpush3.bf16.msra.mxu1 %v24365_v51 }
0x10cd   :  { %21090 = vmatprep.subr.bf16.mxu0 %v21799_v0  ;;  %21111 = vmatprep.subr.bf16.mxu1 %v21799_v0 }
0x10d0   :  { %21092 = vmatpush3.bf16.msra.mxu0 %v24484_v23  ;;  %21113 = vmatpush3.bf16.msra.mxu1 %v24371_v44 }
0x10d1   :  { %21093 = vmatprep.subr.bf16.mxu0 %v21799_v0  ;;  %21114 = vmatprep.subr.bf16.mxu1 %v21799_v0 }
0x10d4   :  { %21095 = vmatpush3.bf16.msra.mxu0 %v24492_v3  ;;  %21116 = vmatpush3.bf16.msra.mxu1 %v24379_v60 }
0x10d5   :  { %21096 = vmatprep.subr.bf16.mxu0 %v21799_v0  ;;  %21117 = vmatprep.subr.bf16.mxu1 %v21799_v0 }
0x10d8   :  { %21098 = vmatpush3.bf16.msra.mxu0 %v24500_v62  ;;  %21119 = vmatpush3.bf16.msra.mxu1 %v24391_v2 }
0x10d9   :  { %21120 = vmatprep.subr.bf16.mxu0 %v21799_v0  ;;  %21141 = vmatprep.subr.bf16.mxu1 %v21799_v0 }
0x10db   :  { %18210 = vmatmul.mubr.msk.f32.vlgmr.msra.gmra.mrb[132].mxu0 %vm3257_vm5, %v24656_v24  ;;  %18241 = vmatmul.mubr.msk.f32.vlgmr.msra.gmra.mrb[134].mxu1 %vm3257_vm5, %v24695_v25 }
0x10dc   :  { %21122 = vmatpush3.bf16.msra.mxu0 %v24305_v42  ;;  %21143 = vmatpush3.bf16.msra.mxu1 %v24405_v49 }
0x10dd   :  { %21123 = vmatprep.subr.bf16.mxu0 %v21799_v0  ;;  %21144 = vmatprep.subr.bf16.mxu1 %v21799_v0 }
0x10de   :  { %18271 = vmatprep.mubr.msk.f32.mxu0 %vm21801_vm0, %v21802_v1  ;;  %18302 = vmatprep.mubr.msk.f32.mxu1 %vm21801_vm0, %v21802_v1 }
0x10e0   :  { %21125 = vmatpush3.bf16.msra.mxu0 %v24310_v56  ;;  %21146 = vmatpush3.bf16.msra.mxu1 %v24436_v46 }
0x10e1   :  { %21126 = vmatprep.subr.bf16.mxu0 %v21799_v0  ;;  %21147 = vmatprep.subr.bf16.mxu1 %v21799_v0 }
0x10e4   :  { %21128 = vmatpush3.bf16.msra.mxu0 %v24316_v52  ;;  %21149 = vmatpush3.bf16.msra.mxu1 %v24468_v28 }
0x10e5   :  { %21129 = vmatprep.subr.bf16.mxu0 %v21799_v0  ;;  %21150 = vmatprep.subr.bf16.mxu1 %v21799_v0 }
0x10e8   :  { %21131 = vmatpush3.bf16.msra.mxu0 %v24322_v11  ;;  %21152 = vmatpush3.bf16.msra.mxu1 %v24476_v15 }
0x10e9   :  { %21132 = vmatprep.subr.bf16.mxu0 %v21799_v0  ;;  %21153 = vmatprep.subr.bf16.mxu1 %v21799_v0 }
0x10ea   :  { %v9617_v43 = vpop.f32.mrb[118].mxu0  ;;  %v9690_v26 = vpop.f32.mrb[120].mxu1 }
0x10eb   :  { %v9618_v63 = vadd.f32 %v24763_v6, %v9617_v43  ;;  %v17777_v32 = vpop.f32.mrb[119].mxu0  ;;  %v17808_v27 = vpop.f32.mrb[121].mxu1 }
0x10ec   :  { %21134 = vmatpush3.bf16.msra.mxu0 %v24328_v19  ;;  %21155 = vmatpush3.bf16.msra.mxu1 %v24484_v23 }
0x10ed   :  { %v12473_v29 = vsub.f32 0.0, %v9618_v63  ;;  %21135 = vmatprep.subr.bf16.mxu0 %v21799_v0  ;;  %21156 = vmatprep.subr.bf16.mxu1 %v21799_v0 }
0x10ef   :  { %v12474_v17 = vmul.f32 1.442695, %v12473_v29 }
0x10f0   :  { %21137 = vmatpush3.bf16.msra.mxu0 %v24382_v59  ;;  %21158 = vmatpush3.bf16.msra.mxu1 %v24492_v3 }
0x10f1   :  { %21686 = vpow2.f32 %v12474_v17  ;;  %21138 = vmatprep.subr.bf16.mxu0 %v21799_v0  ;;  %21159 = vmatprep.subr.bf16.mxu1 %v21799_v0 }
0x10f4   :  { %21140 = vmatpush3.bf16.msra.mxu0 %v24394_v18  ;;  %21161 = vmatpush3.bf16.msra.mxu1 %v24500_v62 }
0x10f5   :  { %21162 = vmatprep.subr.bf16.mxu0 %v21799_v0  ;;  %21183 = vmatprep.subr.bf16.mxu1 %v21799_v0 }
0x10f7   :  { %18272 = vmatmul.mubr.msk.f32.vlgmr.msra.gmra.mrb[134].mxu0 %vm3257_vm5, %v24779_v7  ;;  %18303 = vmatmul.mubr.msk.f32.vlgmr.msra.gmra.mrb[136].mxu1 %vm3257_vm5, %v24695_v25 }
0x10f8   :  { %21164 = vmatpush3.bf16.msra.mxu0 %v24344_v37  ;;  %21185 = vmatpush3.bf16.msra.mxu1 %v24305_v42 }
0x10f9   :  { %21165 = vmatprep.subr.bf16.mxu0 %v21799_v0  ;;  %21186 = vmatprep.subr.bf16.mxu1 %v21799_v0 }
0x10fa   :  { %18333 = vmatprep.mubr.msk.f32.mxu0 %vm21801_vm0, %v21802_v1  ;;  %18364 = vmatprep.mubr.msk.f32.mxu1 %vm21801_vm0, %v21802_v1 }
0x10fb   :  { %v21687_v48 = vpop.eup %21686 }
0x10fc   :  { %v12476_v20 = vadd.f32 1.0, %v21687_v48  ;;  %21167 = vmatpush3.bf16.msra.mxu0 %v24351_v61  ;;  %21188 = vmatpush3.bf16.msra.mxu1 %v24310_v56 }
0x10fd   :  { %21168 = vmatprep.subr.bf16.mxu0 %v21799_v0  ;;  %21189 = vmatprep.subr.bf16.mxu1 %v21799_v0 }
0x10fe   :  { %21688 = vrcp.f32 %v12476_v20 }
0x1100   :  { %21170 = vmatpush3.bf16.msra.mxu0 %v24359_v12  ;;  %21191 = vmatpush3.bf16.msra.mxu1 %v24316_v52 }
0x1101   :  { %21171 = vmatprep.subr.bf16.mxu0 %v21799_v0  ;;  %21192 = vmatprep.subr.bf16.mxu1 %v21799_v0 }
0x1104   :  { %21173 = vmatpush3.bf16.msra.mxu0 %v24365_v51  ;;  %21194 = vmatpush3.bf16.msra.mxu1 %v24322_v11 }
0x1105   :  { %21174 = vmatprep.subr.bf16.mxu0 %v21799_v0  ;;  %21195 = vmatprep.subr.bf16.mxu1 %v21799_v0 }
0x1106   :  { %v9760_v35 = vpop.f32.mrb[120].mxu0  ;;  %v9831_v39 = vpop.f32.mrb[122].mxu1 }
0x1107   :  { %v9761_v5 = vadd.f32 %v9760_v35, %v9690_v26  ;;  %v9832_v50 = vadd.f32 %v24763_v6, %v9831_v39  ;;  %v17839_v36 = vpop.f32.mrb[121].mxu0  ;;  %v17870_v34 = vpop.f32.mrb[123].mxu1 }
0x1108   :  { %v21689_v40 = vpop.eup %21688  ;;  %21176 = vmatpush3.bf16.msra.mxu0 %v24371_v44  ;;  %21197 = vmatpush3.bf16.msra.mxu1 %v24328_v19 }
0x1109   :  { %12480 = vst.msk [vmem:[%s24804_s9] sm:$0x3] %vm12479_vm10, %v21689_v40  ;;  %v9764_v16 = vadd.f32 %v24763_v6, %v9761_v5  ;;  %v12489_v38 = vsub.f32 0.0, %v9832_v50  ;;  %21177 = vmatprep.subr.bf16.mxu0 %v21799_v0  ;;  %21198 = vmatprep.subr.bf16.mxu1 %v21799_v0  ;;  %v24910_v50 = vmax.f32 %v24444_v45, 0.0 }
0x110b   :  { %v12481_v54 = vsub.f32 0.0, %v9764_v16  ;;  %v12490_v30 = vmul.f32 1.442695, %v12489_v38 }
0x110c   :  { %21179 = vmatpush3.bf16.msra.mxu0 %v24379_v60  ;;  %21200 = vmatpush3.bf16.msra.mxu1 %v24382_v59 }
0x110d   :  { %v12482_v13 = vmul.f32 1.442695, %v12481_v54  ;;  %21690 = vpow2.f32 %v12490_v30  ;;  %21180 = vmatprep.subr.bf16.mxu0 %v21799_v0  ;;  %21201 = vmatprep.subr.bf16.mxu1 %v21799_v0 }
0x110f   :  { %21692 = vpow2.f32 %v12482_v13 }
0x1110   :  { %21182 = vmatpush3.bf16.msra.mxu0 %v24391_v2  ;;  %21203 = vmatpush3.bf16.msra.mxu1 %v24394_v18 }
0x1111   :  { %21204 = vmatprep.subr.bf16.mxu0 %v21799_v0  ;;  %21225 = vmatprep.subr.bf16.mxu1 %v21799_v0 }
0x1113   :  { %18334 = vmatmul.mubr.msk.f32.vlgmr.msra.gmra.mrb[136].mxu0 %vm3257_vm5, %v24779_v7  ;;  %18365 = vmatmul.mubr.msk.f32.vlgmr.msra.gmra.mrb[138].mxu1 %vm3257_vm5, %v24827_v58 }
0x1114   :  { %21206 = vmatpush3.bf16.msra.mxu0 %v24405_v49  ;;  %21227 = vmatpush3.bf16.msra.mxu1 %v24344_v37 }
0x1115   :  { %21207 = vmatprep.subr.bf16.mxu0 %v21799_v0  ;;  %21228 = vmatprep.subr.bf16.mxu1 %v21799_v0 }
0x1116   :  { %18395 = vmatprep.mubr.msk.f32.mxu0 %vm21801_vm0, %v21802_v1  ;;  %18426 = vmatprep.mubr.msk.f32.mxu1 %vm21801_vm0, %v21802_v1 }
0x1117   :  { %v21691_v41 = vpop.eup %21690 }
0x1118   :  { %v12492_v14 = vadd.f32 1.0, %v21691_v41  ;;  %21209 = vmatpush3.bf16.msra.mxu0 %v24436_v46  ;;  %21230 = vmatpush3.bf16.msra.mxu1 %v24351_v61 }
0x1119   :  { %v21693_v21 = vpop.eup %21692  ;;  %21210 = vmatprep.subr.bf16.mxu0 %v21799_v0  ;;  %21231 = vmatprep.subr.bf16.mxu1 %v21799_v0 }
0x111a   :  { %v12484_v10 = vadd.f32 1.0, %v21693_v21  ;;  %21694 = vrcp.f32 %v12492_v14 }
0x111c   :  { %21696 = vrcp.f32 %v12484_v10  ;;  %21212 = vmatpush3.bf16.msra.mxu0 %v24468_v28  ;;  %21233 = vmatpush3.bf16.msra.mxu1 %v24359_v12 }
0x111d   :  { %21213 = vmatprep.subr.bf16.mxu0 %v21799_v0  ;;  %21234 = vmatprep.subr.bf16.mxu1 %v21799_v0 }
0x1120   :  { %21215 = vmatpush3.bf16.msra.mxu0 %v24476_v15  ;;  %21236 = vmatpush3.bf16.msra.mxu1 %v24365_v51 }
0x1121   :  { %21216 = vmatprep.subr.bf16.mxu0 %v21799_v0  ;;  %21237 = vmatprep.subr.bf16.mxu1 %v21799_v0 }
0x1122   :  { %v9904_v31 = vpop.f32.mrb[122].mxu0  ;;  %v9974_v55 = vpop.f32.mrb[124].mxu1 }
0x1123   :  { %v9975_v57 = vadd.f32 %v9974_v55, %v9904_v31  ;;  %v17901_v47 = vpop.f32.mrb[123].mxu0  ;;  %v17932_v33 = vpop.f32.mrb[125].mxu1  ;;  %v24953_v31 = vmax.f32 %v24446_v53, 0.0 }
0x1124   :  { %v21695_v24 = vpop.eup %21694  ;;  %21218 = vmatpush3.bf16.msra.mxu0 %v24484_v23  ;;  %21239 = vmatpush3.bf16.msra.mxu1 %v24371_v44 }
0x1125   :  { %13171 = vst.msk [vmem:[%s24804_s9 + $0x4] sm:$0x3] %vm12479_vm10, %v21695_v24  ;;  %v9978_v25 = vadd.f32 %v24763_v6, %v9975_v57  ;;  %21219 = vmatprep.subr.bf16.mxu0 %v21799_v0  ;;  %21240 = vmatprep.subr.bf16.mxu1 %v21799_v0 }
0x1126   :  { %v21697_v43 = vpop.eup %21696 }
0x1127   :  { %13170 = vst.msk [vmem:[%s24804_s9 + $0x2] sm:$0x3] %vm12479_vm10, %v21697_v43  ;;  %v12497_v26 = vsub.f32 0.0, %v9978_v25 }
0x1128   :  { %21221 = vmatpush3.bf16.msra.mxu0 %v24492_v3  ;;  %21242 = vmatpush3.bf16.msra.mxu1 %v24379_v60 }
0x1129   :  { %v12498_v63 = vmul.f32 1.442695, %v12497_v26  ;;  %21222 = vmatprep.subr.bf16.mxu0 %v21799_v0  ;;  %21243 = vmatprep.subr.bf16.mxu1 %v21799_v0 }
0x112b   :  { %21698 = vpow2.f32 %v12498_v63 }
0x112c   :  { %21224 = vmatpush3.bf16.msra.mxu0 %v24500_v62  ;;  %21245 = vmatpush3.bf16.msra.mxu1 %v24391_v2 }
0x112d   :  { %21246 = vmatprep.subr.bf16.mxu0 %v21799_v0  ;;  %21267 = vmatprep.subr.bf16.mxu1 %v21799_v0 }
0x112f   :  { %18396 = vmatmul.mubr.msk.f32.vlgmr.msra.gmra.mrb[138].mxu0 %vm3257_vm5, %v24779_v7  ;;  %18427 = vmatmul.mubr.msk.f32.vlgmr.msra.gmra.mrb[140].mxu1 %vm3257_vm5, %v24827_v58 }
0x1130   :  { %21248 = vmatpush3.bf16.msra.mxu0 %v24305_v42  ;;  %21269 = vmatpush3.bf16.msra.mxu1 %v24405_v49 }
0x1131   :  { %21249 = vmatprep.subr.bf16.mxu0 %v21799_v0  ;;  %21270 = vmatprep.subr.bf16.mxu1 %v21799_v0 }
0x1132   :  { %18457 = vmatprep.mubr.msk.f32.mxu0 %vm21801_vm0, %v21802_v1  ;;  %18488 = vmatprep.mubr.msk.f32.mxu1 %vm21801_vm0, %v21802_v1 }
0x1134   :  { %21251 = vmatpush3.bf16.msra.mxu0 %v24310_v56  ;;  %21272 = vmatpush3.bf16.msra.mxu1 %v24436_v46 }
0x1135   :  { %v21699_v32 = vpop.eup %21698  ;;  %21252 = vmatprep.subr.bf16.mxu0 %v21799_v0  ;;  %21273 = vmatprep.subr.bf16.mxu1 %v21799_v0 }
0x1136   :  { %v12500_v27 = vadd.f32 1.0, %v21699_v32 }
0x1138   :  { %21700 = vrcp.f32 %v12500_v27  ;;  %21254 = vmatpush3.bf16.msra.mxu0 %v24316_v52  ;;  %21275 = vmatpush3.bf16.msra.mxu1 %v24468_v28 }
0x1139   :  { %21255 = vmatprep.subr.bf16.mxu0 %v21799_v0  ;;  %21276 = vmatprep.subr.bf16.mxu1 %v21799_v0 }
0x113c   :  { %21257 = vmatpush3.bf16.msra.mxu0 %v24322_v11  ;;  %21278 = vmatpush3.bf16.msra.mxu1 %v24476_v15 }
0x113d   :  { %21258 = vmatprep.subr.bf16.mxu0 %v21799_v0  ;;  %21279 = vmatprep.subr.bf16.mxu1 %v21799_v0 }
0x113e   :  { %v10045_v29 = vpop.f32.mrb[124].mxu0  ;;  %v10118_v17 = vpop.f32.mrb[126].mxu1 }
0x113f   :  { %v10046_v7 = vadd.f32 %v24763_v6, %v10045_v29  ;;  %v17963_v48 = vpop.f32.mrb[125].mxu0  ;;  %v17994_v20 = vpop.f32.mrb[127].mxu1 }
0x1140   :  { %21260 = vmatpush3.bf16.msra.mxu0 %v24328_v19  ;;  %21281 = vmatpush3.bf16.msra.mxu1 %v24484_v23 }
0x1141   :  { %v12505_v35 = vsub.f32 0.0, %v10046_v7  ;;  %21261 = vmatprep.subr.bf16.mxu0 %v21799_v0  ;;  %21282 = vmatprep.subr.bf16.mxu1 %v21799_v0 }
0x1142   :  { %v21701_v39 = vpop.eup %21700 }
0x1143   :  { %13172 = vst.msk [vmem:[%s24804_s9 + $0x6] sm:$0x3] %vm12479_vm10, %v21701_v39  ;;  %v12506_v5 = vmul.f32 1.442695, %v12505_v35 }
0x1144   :  { %21263 = vmatpush3.bf16.msra.mxu0 %v24382_v59  ;;  %21284 = vmatpush3.bf16.msra.mxu1 %v24492_v3 }
0x1145   :  { %21702 = vpow2.f32 %v12506_v5  ;;  %21264 = vmatprep.subr.bf16.mxu0 %v21799_v0  ;;  %21285 = vmatprep.subr.bf16.mxu1 %v21799_v0 }
0x1148   :  { %21266 = vmatpush3.bf16.msra.mxu0 %v24394_v18  ;;  %21287 = vmatpush3.bf16.msra.mxu1 %v24500_v62 }
0x1149   :  { %21288 = vmatprep.subr.bf16.mxu0 %v21799_v0  ;;  %21309 = vmatprep.subr.bf16.mxu1 %v21799_v0 }
0x114b   :  { %18458 = vmatmul.mubr.msk.f32.vlgmr.msra.gmra.mrb[140].mxu0 %vm3257_vm5, %v24910_v50  ;;  %18489 = vmatmul.mubr.msk.f32.vlgmr.msra.gmra.mrb[142].mxu1 %vm3257_vm5, %v24827_v58 }
0x114c   :  { %21290 = vmatpush3.bf16.msra.mxu0 %v24344_v37  ;;  %21311 = vmatpush3.bf16.msra.mxu1 %v24305_v42 }
0x114d   :  { %21291 = vmatprep.subr.bf16.mxu0 %v21799_v0  ;;  %21312 = vmatprep.subr.bf16.mxu1 %v21799_v0 }
0x114e   :  { %18519 = vmatprep.mubr.msk.f32.mxu0 %vm21801_vm0, %v21802_v1  ;;  %18550 = vmatprep.mubr.msk.f32.mxu1 %vm21801_vm0, %v21802_v1 }
0x114f   :  { %v21703_v45 = vpop.eup %21702 }
0x1150   :  { %v12508_v36 = vadd.f32 1.0, %v21703_v45  ;;  %21293 = vmatpush3.bf16.msra.mxu0 %v24351_v61  ;;  %21314 = vmatpush3.bf16.msra.mxu1 %v24310_v56 }
0x1151   :  { %21294 = vmatprep.subr.bf16.mxu0 %v21799_v0  ;;  %21315 = vmatprep.subr.bf16.mxu1 %v21799_v0 }
0x1152   :  { %21704 = vrcp.f32 %v12508_v36 }
0x1154   :  { %21296 = vmatpush3.bf16.msra.mxu0 %v24359_v12  ;;  %21317 = vmatpush3.bf16.msra.mxu1 %v24316_v52 }
0x1155   :  { %21297 = vmatprep.subr.bf16.mxu0 %v21799_v0  ;;  %21318 = vmatprep.subr.bf16.mxu1 %v21799_v0 }
0x1158   :  { %21299 = vmatpush3.bf16.msra.mxu0 %v24365_v51  ;;  %21320 = vmatpush3.bf16.msra.mxu1 %v24322_v11 }
0x1159   :  { %21300 = vmatprep.subr.bf16.mxu0 %v21799_v0  ;;  %21321 = vmatprep.subr.bf16.mxu1 %v21799_v0 }
0x115a   :  { %v10188_v34 = vpop.f32.mrb[126].mxu0  ;;  %v10259_v40 = vpop.f32.mrb[128].mxu1 }
0x115b   :  { %v10189_v16 = vadd.f32 %v10188_v34, %v10118_v17  ;;  %v10260_v38 = vadd.f32 %v24763_v6, %v10259_v40  ;;  %v18025_v54 = vpop.f32.mrb[127].mxu0  ;;  %v18056_v30 = vpop.f32.mrb[129].mxu1  ;;  %v25036_v40 = vmax.f32 %v24448_v8, 0.0 }
0x115c   :  { %v21705_v13 = vpop.eup %21704  ;;  %21302 = vmatpush3.bf16.msra.mxu0 %v24371_v44  ;;  %21323 = vmatpush3.bf16.msra.mxu1 %v24328_v19 }
0x115d   :  { %13173 = vst.msk [vmem:[%s24804_s9 + $0x8] sm:$0x3] %vm12479_vm10, %v21705_v13  ;;  %v10192_v58 = vadd.f32 %v24763_v6, %v10189_v16  ;;  %v12521_v41 = vsub.f32 0.0, %v10260_v38  ;;  %21303 = vmatprep.subr.bf16.mxu0 %v21799_v0  ;;  %21324 = vmatprep.subr.bf16.mxu1 %v21799_v0 }
0x115f   :  { %v12513_v14 = vsub.f32 0.0, %v10192_v58  ;;  %v12522_v21 = vmul.f32 1.442695, %v12521_v41 }
0x1160   :  { %21305 = vmatpush3.bf16.msra.mxu0 %v24379_v60  ;;  %21326 = vmatpush3.bf16.msra.mxu1 %v24382_v59 }
0x1161   :  { %v12514_v10 = vmul.f32 1.442695, %v12513_v14  ;;  %21706 = vpow2.f32 %v12522_v21  ;;  %21306 = vmatprep.subr.bf16.mxu0 %v21799_v0  ;;  %21327 = vmatprep.subr.bf16.mxu1 %v21799_v0 }
0x1163   :  { %21708 = vpow2.f32 %v12514_v10 }
0x1164   :  { %21308 = vmatpush3.bf16.msra.mxu0 %v24391_v2  ;;  %21329 = vmatpush3.bf16.msra.mxu1 %v24394_v18 }
0x1165   :  { %21330 = vmatprep.subr.bf16.mxu0 %v21799_v0  ;;  %21351 = vmatprep.subr.bf16.mxu1 %v21799_v0 }
0x1167   :  { %18520 = vmatmul.mubr.msk.f32.vlgmr.msra.gmra.mrb[142].mxu0 %vm3257_vm5, %v24910_v50  ;;  %18551 = vmatmul.mubr.msk.f32.vlgmr.msra.gmra.mrb[144].mxu1 %vm3257_vm5, %v24953_v31 }
0x1168   :  { %21332 = vmatpush3.bf16.msra.mxu0 %v24405_v49  ;;  %21353 = vmatpush3.bf16.msra.mxu1 %v24344_v37 }
0x1169   :  { %21333 = vmatprep.subr.bf16.mxu0 %v21799_v0  ;;  %21354 = vmatprep.subr.bf16.mxu1 %v21799_v0 }
0x116a   :  { %18581 = vmatprep.mubr.msk.f32.mxu0 %vm21801_vm0, %v21802_v1  ;;  %18612 = vmatprep.mubr.msk.f32.mxu1 %vm21801_vm0, %v21802_v1 }
0x116b   :  { %v21707_v53 = vpop.eup %21706 }
0x116c   :  { %v12524_v55 = vadd.f32 1.0, %v21707_v53  ;;  %21335 = vmatpush3.bf16.msra.mxu0 %v24436_v46  ;;  %21356 = vmatpush3.bf16.msra.mxu1 %v24351_v61 }
0x116d   :  { %v21709_v57 = vpop.eup %21708  ;;  %21336 = vmatprep.subr.bf16.mxu0 %v21799_v0  ;;  %21357 = vmatprep.subr.bf16.mxu1 %v21799_v0 }
0x116e   :  { %v12516_v47 = vadd.f32 1.0, %v21709_v57  ;;  %21710 = vrcp.f32 %v12524_v55  ;;  %v25079_v57 = vmax.f32 %v24452_v4, 0.0 }
0x1170   :  { %21712 = vrcp.f32 %v12516_v47  ;;  %21338 = vmatpush3.bf16.msra.mxu0 %v24468_v28  ;;  %21359 = vmatpush3.bf16.msra.mxu1 %v24359_v12 }
0x1171   :  { %21339 = vmatprep.subr.bf16.mxu0 %v21799_v0  ;;  %21360 = vmatprep.subr.bf16.mxu1 %v21799_v0 }
0x1174   :  { %21341 = vmatpush3.bf16.msra.mxu0 %v24476_v15  ;;  %21362 = vmatpush3.bf16.msra.mxu1 %v24365_v51 }
0x1175   :  { %21342 = vmatprep.subr.bf16.mxu0 %v21799_v0  ;;  %21363 = vmatprep.subr.bf16.mxu1 %v21799_v0 }
0x1176   :  { %v10332_v33 = vpop.f32.mrb[128].mxu0  ;;  %v10402_v24 = vpop.f32.mrb[130].mxu1 }
0x1177   :  { %v10403_v25 = vadd.f32 %v10402_v24, %v10332_v33  ;;  %v18087_v43 = vpop.f32.mrb[129].mxu0  ;;  %v18118_v26 = vpop.f32.mrb[131].mxu1 }
0x1178   :  { %v21711_v63 = vpop.eup %21710  ;;  %21344 = vmatpush3.bf16.msra.mxu0 %v24484_v23  ;;  %21365 = vmatpush3.bf16.msra.mxu1 %v24371_v44 }
0x1179   :  { %13175 = vst.msk [vmem:[%s24804_s9 + $0xc] sm:$0x3] %vm12479_vm10, %v21711_v63  ;;  %v10406_v32 = vadd.f32 %v24763_v6, %v10403_v25  ;;  %21345 = vmatprep.subr.bf16.mxu0 %v21799_v0  ;;  %21366 = vmatprep.subr.bf16.mxu1 %v21799_v0 }
0x117a   :  { %v21713_v27 = vpop.eup %21712 }
0x117b   :  { %13174 = vst.msk [vmem:[%s24804_s9 + $0xa] sm:$0x3] %vm12479_vm10, %v21713_v27  ;;  %v12529_v29 = vsub.f32 0.0, %v10406_v32 }
0x117c   :  { %21347 = vmatpush3.bf16.msra.mxu0 %v24492_v3  ;;  %21368 = vmatpush3.bf16.msra.mxu1 %v24379_v60 }
0x117d   :  { %v12530_v17 = vmul.f32 1.442695, %v12529_v29  ;;  %21348 = vmatprep.subr.bf16.mxu0 %v21799_v0  ;;  %21369 = vmatprep.subr.bf16.mxu1 %v21799_v0 }
0x117f   :  { %21714 = vpow2.f32 %v12530_v17 }
0x1180   :  { %21350 = vmatpush3.bf16.msra.mxu0 %v24500_v62  ;;  %21371 = vmatpush3.bf16.msra.mxu1 %v24391_v2 }
0x1181   :  { %21372 = vmatprep.subr.bf16.mxu0 %v21799_v0  ;;  %21393 = vmatprep.subr.bf16.mxu1 %v21799_v0 }
0x1183   :  { %18582 = vmatmul.mubr.msk.f32.vlgmr.msra.gmra.mrb[144].mxu0 %vm3257_vm5, %v24910_v50  ;;  %18613 = vmatmul.mubr.msk.f32.vlgmr.msra.gmra.mrb[146].mxu1 %vm3257_vm5, %v24953_v31 }
0x1184   :  { %21374 = vmatpush3.bf16.msra.mxu0 %v24305_v42  ;;  %21395 = vmatpush3.bf16.msra.mxu1 %v24405_v49 }
0x1185   :  { %21375 = vmatprep.subr.bf16.mxu0 %v21799_v0  ;;  %21396 = vmatprep.subr.bf16.mxu1 %v21799_v0 }
0x1186   :  { %18643 = vmatprep.mubr.msk.f32.mxu0 %vm21801_vm0, %v21802_v1  ;;  %18674 = vmatprep.mubr.msk.f32.mxu1 %vm21801_vm0, %v21802_v1 }
0x1188   :  { %21377 = vmatpush3.bf16.msra.mxu0 %v24310_v56  ;;  %21398 = vmatpush3.bf16.msra.mxu1 %v24436_v46 }
0x1189   :  { %v21715_v7 = vpop.eup %21714  ;;  %21378 = vmatprep.subr.bf16.mxu0 %v21799_v0  ;;  %21399 = vmatprep.subr.bf16.mxu1 %v21799_v0 }
0x118a   :  { %v12532_v48 = vadd.f32 1.0, %v21715_v7 }
0x118c   :  { %21716 = vrcp.f32 %v12532_v48  ;;  %21380 = vmatpush3.bf16.msra.mxu0 %v24316_v52  ;;  %21401 = vmatpush3.bf16.msra.mxu1 %v24468_v28 }
0x118d   :  { %21381 = vmatprep.subr.bf16.mxu0 %v21799_v0  ;;  %21402 = vmatprep.subr.bf16.mxu1 %v21799_v0 }
0x1190   :  { %21383 = vmatpush3.bf16.msra.mxu0 %v24322_v11  ;;  %21404 = vmatpush3.bf16.msra.mxu1 %v24476_v15 }
0x1191   :  { %21384 = vmatprep.subr.bf16.mxu0 %v21799_v0  ;;  %21405 = vmatprep.subr.bf16.mxu1 %v21799_v0 }
0x1192   :  { %v10473_v20 = vpop.f32.mrb[130].mxu0  ;;  %v10546_v35 = vpop.f32.mrb[132].mxu1 }
0x1193   :  { %v10474_v39 = vadd.f32 %v24763_v6, %v10473_v20  ;;  %v18149_v5 = vpop.f32.mrb[131].mxu0  ;;  %v18180_v50 = vpop.f32.mrb[133].mxu1 }
0x1194   :  { %21386 = vmatpush3.bf16.msra.mxu0 %v24328_v19  ;;  %21407 = vmatpush3.bf16.msra.mxu1 %v24484_v23 }
0x1195   :  { %v12537_v45 = vsub.f32 0.0, %v10474_v39  ;;  %21387 = vmatprep.subr.bf16.mxu0 %v21799_v0  ;;  %21408 = vmatprep.subr.bf16.mxu1 %v21799_v0 }
0x1196   :  { %v21717_v36 = vpop.eup %21716 }
0x1197   :  { %13176 = vst.msk [vmem:[%s24804_s9 + $0xe] sm:$0x3] %vm12479_vm10, %v21717_v36  ;;  %v12538_v34 = vmul.f32 1.442695, %v12537_v45 }
0x1198   :  { %21389 = vmatpush3.bf16.msra.mxu0 %v24382_v59  ;;  %21410 = vmatpush3.bf16.msra.mxu1 %v24492_v3 }
0x1199   :  { %21718 = vpow2.f32 %v12538_v34  ;;  %21390 = vmatprep.subr.bf16.mxu0 %v21799_v0  ;;  %21411 = vmatprep.subr.bf16.mxu1 %v21799_v0 }
0x119c   :  { %21392 = vmatpush3.bf16.msra.mxu0 %v24394_v18  ;;  %21413 = vmatpush3.bf16.msra.mxu1 %v24500_v62 }
0x119d   :  { %21414 = vmatprep.subr.bf16.mxu0 %v21799_v0  ;;  %21435 = vmatprep.subr.bf16.mxu1 %v21799_v0 }
0x119f   :  { %18644 = vmatmul.mubr.msk.f32.vlgmr.msra.gmra.mrb[146].mxu0 %vm3257_vm5, %v25036_v40  ;;  %18675 = vmatmul.mubr.msk.f32.vlgmr.msra.gmra.mrb[148].mxu1 %vm3257_vm5, %v24953_v31 }
0x11a0   :  { %21416 = vmatpush3.bf16.msra.mxu0 %v24344_v37  ;;  %21437 = vmatpush3.bf16.msra.mxu1 %v24305_v42 }
0x11a1   :  { %21417 = vmatprep.subr.bf16.mxu0 %v21799_v0  ;;  %21438 = vmatprep.subr.bf16.mxu1 %v21799_v0 }
0x11a2   :  { %18705 = vmatprep.mubr.msk.f32.mxu0 %vm21801_vm0, %v21802_v1  ;;  %18736 = vmatprep.mubr.msk.f32.mxu1 %vm21801_vm0, %v21802_v1 }
0x11a3   :  { %v21719_v8 = vpop.eup %21718 }
0x11a4   :  { %v12540_v16 = vadd.f32 1.0, %v21719_v8  ;;  %21419 = vmatpush3.bf16.msra.mxu0 %v24351_v61  ;;  %21440 = vmatpush3.bf16.msra.mxu1 %v24310_v56 }
0x11a5   :  { %21420 = vmatprep.subr.bf16.mxu0 %v21799_v0  ;;  %21441 = vmatprep.subr.bf16.mxu1 %v21799_v0 }
0x11a6   :  { %21720 = vrcp.f32 %v12540_v16  ;;  %v25162_v16 = vmax.f32 %v24454_v22, 0.0 }
0x11a8   :  { %21422 = vmatpush3.bf16.msra.mxu0 %v24359_v12  ;;  %21443 = vmatpush3.bf16.msra.mxu1 %v24316_v52 }
0x11a9   :  { %21423 = vmatprep.subr.bf16.mxu0 %v21799_v0  ;;  %21444 = vmatprep.subr.bf16.mxu1 %v21799_v0 }
0x11ac   :  { %21425 = vmatpush3.bf16.msra.mxu0 %v24365_v51  ;;  %21446 = vmatpush3.bf16.msra.mxu1 %v24322_v11 }
0x11ad   :  { %21426 = vmatprep.subr.bf16.mxu0 %v21799_v0  ;;  %21447 = vmatprep.subr.bf16.mxu1 %v21799_v0 }
0x11ae   :  { %v10616_v38 = vpop.f32.mrb[132].mxu0  ;;  %v10687_v54 = vpop.f32.mrb[134].mxu1 }
0x11af   :  { %v10617_v30 = vadd.f32 %v10616_v38, %v10546_v35  ;;  %v10688_v13 = vadd.f32 %v24763_v6, %v10687_v54  ;;  %v18211_v58 = vpop.f32.mrb[133].mxu0  ;;  %v18242_v41 = vpop.f32.mrb[135].mxu1 }
0x11b0   :  { %v21721_v14 = vpop.eup %21720  ;;  %21428 = vmatpush3.bf16.msra.mxu0 %v24371_v44  ;;  %21449 = vmatpush3.bf16.msra.mxu1 %v24328_v19 }
0x11b1   :  { %13177 = vst.msk [vmem:[%s24804_s9 + $0x10] sm:$0x3] %vm12479_vm10, %v21721_v14  ;;  %v10620_v21 = vadd.f32 %v24763_v6, %v10617_v30  ;;  %v12553_v10 = vsub.f32 0.0, %v10688_v13  ;;  %21429 = vmatprep.subr.bf16.mxu0 %v21799_v0  ;;  %21450 = vmatprep.subr.bf16.mxu1 %v21799_v0 }
0x11b3   :  { %v12545_v31 = vsub.f32 0.0, %v10620_v21  ;;  %v12554_v53 = vmul.f32 1.442695, %v12553_v10 }
0x11b4   :  { %21431 = vmatpush3.bf16.msra.mxu0 %v24379_v60  ;;  %21452 = vmatpush3.bf16.msra.mxu1 %v24382_v59 }
0x11b5   :  { %v12546_v55 = vmul.f32 1.442695, %v12545_v31  ;;  %21722 = vpow2.f32 %v12554_v53  ;;  %21432 = vmatprep.subr.bf16.mxu0 %v21799_v0  ;;  %21453 = vmatprep.subr.bf16.mxu1 %v21799_v0 }
0x11b7   :  { %21724 = vpow2.f32 %v12546_v55 }
0x11b8   :  { %21434 = vmatpush3.bf16.msra.mxu0 %v24391_v2  ;;  %21455 = vmatpush3.bf16.msra.mxu1 %v24394_v18 }
0x11b9   :  { %21456 = vmatprep.subr.bf16.mxu0 %v21799_v0  ;;  %21477 = vmatprep.subr.bf16.mxu1 %v21799_v0 }
0x11bb   :  { %18706 = vmatmul.mubr.msk.f32.vlgmr.msra.gmra.mrb[148].mxu0 %vm3257_vm5, %v25036_v40  ;;  %18737 = vmatmul.mubr.msk.f32.vlgmr.msra.gmra.mrb[150].mxu1 %vm3257_vm5, %v25079_v57 }
0x11bc   :  { %21458 = vmatpush3.bf16.msra.mxu0 %v24405_v49  ;;  %21479 = vmatpush3.bf16.msra.mxu1 %v24344_v37 }
0x11bd   :  { %21459 = vmatprep.subr.bf16.mxu0 %v21799_v0  ;;  %21480 = vmatprep.subr.bf16.mxu1 %v21799_v0 }
0x11be   :  { %18767 = vmatprep.mubr.msk.f32.mxu0 %vm21801_vm0, %v21802_v1  ;;  %18798 = vmatprep.mubr.msk.f32.mxu1 %vm21801_vm0, %v21802_v1 }
0x11bf   :  { %v21723_v4 = vpop.eup %21722 }
0x11c0   :  { %v12556_v47 = vadd.f32 1.0, %v21723_v4  ;;  %21461 = vmatpush3.bf16.msra.mxu0 %v24436_v46  ;;  %21482 = vmatpush3.bf16.msra.mxu1 %v24351_v61 }
0x11c1   :  { %v21725_v33 = vpop.eup %21724  ;;  %21462 = vmatprep.subr.bf16.mxu0 %v21799_v0  ;;  %21483 = vmatprep.subr.bf16.mxu1 %v21799_v0 }
0x11c2   :  { %v12548_v24 = vadd.f32 1.0, %v21725_v33  ;;  %21726 = vrcp.f32 %v12556_v47 }
0x11c4   :  { %21728 = vrcp.f32 %v12548_v24  ;;  %21464 = vmatpush3.bf16.msra.mxu0 %v24468_v28  ;;  %21485 = vmatpush3.bf16.msra.mxu1 %v24359_v12 }
0x11c5   :  { %21465 = vmatprep.subr.bf16.mxu0 %v21799_v0  ;;  %21486 = vmatprep.subr.bf16.mxu1 %v21799_v0 }
0x11c8   :  { %21467 = vmatpush3.bf16.msra.mxu0 %v24476_v15  ;;  %21488 = vmatpush3.bf16.msra.mxu1 %v24365_v51 }
0x11c9   :  { %21468 = vmatprep.subr.bf16.mxu0 %v21799_v0  ;;  %21489 = vmatprep.subr.bf16.mxu1 %v21799_v0 }
0x11ca   :  { %v10760_v25 = vpop.f32.mrb[134].mxu0  ;;  %v10830_v43 = vpop.f32.mrb[136].mxu1 }
0x11cb   :  { %v10831_v26 = vadd.f32 %v10830_v43, %v10760_v25  ;;  %v18273_v63 = vpop.f32.mrb[135].mxu0  ;;  %v18304_v32 = vpop.f32.mrb[137].mxu1 }
0x11cc   :  { %v21727_v27 = vpop.eup %21726  ;;  %21470 = vmatpush3.bf16.msra.mxu0 %v24484_v23  ;;  %21491 = vmatpush3.bf16.msra.mxu1 %v24371_v44 }
0x11cd   :  { %13179 = vst.msk [vmem:[%s24804_s9 + $0x14] sm:$0x3] %vm12479_vm10, %v21727_v27  ;;  %v10834_v29 = vadd.f32 %v24763_v6, %v10831_v26  ;;  %21471 = vmatprep.subr.bf16.mxu0 %v21799_v0  ;;  %21492 = vmatprep.subr.bf16.mxu1 %v21799_v0 }
0x11ce   :  { %v21729_v17 = vpop.eup %21728 }
0x11cf   :  { %13178 = vst.msk [vmem:[%s24804_s9 + $0x12] sm:$0x3] %vm12479_vm10, %v21729_v17  ;;  %v12561_v7 = vsub.f32 0.0, %v10834_v29 }
0x11d0   :  { %21473 = vmatpush3.bf16.msra.mxu0 %v24492_v3  ;;  %21494 = vmatpush3.bf16.msra.mxu1 %v24379_v60 }
0x11d1   :  { %v12562_v48 = vmul.f32 1.442695, %v12561_v7  ;;  %21474 = vmatprep.subr.bf16.mxu0 %v21799_v0  ;;  %21495 = vmatprep.subr.bf16.mxu1 %v21799_v0 }
0x11d3   :  { %21730 = vpow2.f32 %v12562_v48 }
0x11d4   :  { %21476 = vmatpush3.bf16.msra.mxu0 %v24500_v62  ;;  %21497 = vmatpush3.bf16.msra.mxu1 %v24391_v2 }
0x11d5   :  { %21498 = vmatprep.subr.bf16.mxu0 %v21799_v0  ;;  %21519 = vmatprep.subr.bf16.mxu1 %v21799_v0 }
0x11d7   :  { %18768 = vmatmul.mubr.msk.f32.vlgmr.msra.gmra.mrb[150].mxu0 %vm3257_vm5, %v25036_v40  ;;  %18799 = vmatmul.mubr.msk.f32.vlgmr.msra.gmra.mrb[152].mxu1 %vm3257_vm5, %v25079_v57 }
0x11d8   :  { %21500 = vmatpush3.bf16.msra.mxu0 %v24305_v42  ;;  %21521 = vmatpush3.bf16.msra.mxu1 %v24405_v49 }
0x11d9   :  { %21501 = vmatprep.subr.bf16.mxu0 %v21799_v0  ;;  %21522 = vmatprep.subr.bf16.mxu1 %v21799_v0 }
0x11da   :  { %18829 = vmatprep.mubr.msk.f32.mxu0 %vm21801_vm0, %v21802_v1  ;;  %18860 = vmatprep.mubr.msk.f32.mxu1 %vm21801_vm0, %v21802_v1 }
0x11dc   :  { %21503 = vmatpush3.bf16.msra.mxu0 %v24310_v56  ;;  %21524 = vmatpush3.bf16.msra.mxu1 %v24436_v46 }
0x11dd   :  { %v21731_v20 = vpop.eup %21730  ;;  %21504 = vmatprep.subr.bf16.mxu0 %v21799_v0  ;;  %21525 = vmatprep.subr.bf16.mxu1 %v21799_v0 }
0x11de   :  { %v12564_v35 = vadd.f32 1.0, %v21731_v20 }
0x11e0   :  { %21732 = vrcp.f32 %v12564_v35  ;;  %21506 = vmatpush3.bf16.msra.mxu0 %v24316_v52  ;;  %21527 = vmatpush3.bf16.msra.mxu1 %v24468_v28 }
0x11e1   :  { %21507 = vmatprep.subr.bf16.mxu0 %v21799_v0  ;;  %21528 = vmatprep.subr.bf16.mxu1 %v21799_v0 }
0x11e4   :  { %21509 = vmatpush3.bf16.msra.mxu0 %v24322_v11  ;;  %21530 = vmatpush3.bf16.msra.mxu1 %v24476_v15 }
0x11e5   :  { %21510 = vmatprep.subr.bf16.mxu0 %v21799_v0  ;;  %21531 = vmatprep.subr.bf16.mxu1 %v21799_v0 }
0x11e6   :  { %v10901_v39 = vpop.f32.mrb[136].mxu0  ;;  %v10974_v5 = vpop.f32.mrb[138].mxu1 }
0x11e7   :  { %v10902_v50 = vadd.f32 %v24763_v6, %v10901_v39  ;;  %v18335_v45 = vpop.f32.mrb[137].mxu0  ;;  %v18366_v36 = vpop.f32.mrb[139].mxu1 }
0x11e8   :  { %21512 = vmatpush3.bf16.msra.mxu0 %v24328_v19  ;;  %21533 = vmatpush3.bf16.msra.mxu1 %v24484_v23 }
0x11e9   :  { %v12569_v34 = vsub.f32 0.0, %v10902_v50  ;;  %21513 = vmatprep.subr.bf16.mxu0 %v21799_v0  ;;  %21534 = vmatprep.subr.bf16.mxu1 %v21799_v0 }
0x11ea   :  { %v21733_v40 = vpop.eup %21732 }
0x11eb   :  { %13180 = vst.msk [vmem:[%s24804_s9 + $0x16] sm:$0x3] %vm12479_vm10, %v21733_v40  ;;  %v12570_v8 = vmul.f32 1.442695, %v12569_v34 }
0x11ec   :  { %21515 = vmatpush3.bf16.msra.mxu0 %v24382_v59  ;;  %21536 = vmatpush3.bf16.msra.mxu1 %v24492_v3 }
0x11ed   :  { %21734 = vpow2.f32 %v12570_v8  ;;  %21516 = vmatprep.subr.bf16.mxu0 %v21799_v0  ;;  %21537 = vmatprep.subr.bf16.mxu1 %v21799_v0 }
0x11f0   :  { %21518 = vmatpush3.bf16.msra.mxu0 %v24394_v18  ;;  %21539 = vmatpush3.bf16.msra.mxu1 %v24500_v62 }
0x11f1   :  { %21540 = vmatprep.subr.bf16.mxu0 %v21799_v0  ;;  %21561 = vmatprep.subr.bf16.mxu1 %v21799_v0 }
0x11f3   :  { %18830 = vmatmul.mubr.msk.f32.vlgmr.msra.gmra.mrb[152].mxu0 %vm3257_vm5, %v25162_v16  ;;  %18861 = vmatmul.mubr.msk.f32.vlgmr.msra.gmra.mrb[154].mxu1 %vm3257_vm5, %v25079_v57  ;;  %v25238_v57 = vld [vmem:[%s24752_s5] ss:$0 sm:$0xff] }
0x11f4   :  { %21542 = vmatpush3.bf16.msra.mxu0 %v24344_v37  ;;  %21563 = vmatpush3.bf16.msra.mxu1 %v24305_v42 }
0x11f5   :  { %21543 = vmatprep.subr.bf16.mxu0 %v21799_v0  ;;  %21564 = vmatprep.subr.bf16.mxu1 %v21799_v0 }
0x11f6   :  { %18891 = vmatprep.mubr.msk.f32.mxu0 %vm21801_vm0, %v21802_v1  ;;  %18922 = vmatprep.mubr.msk.f32.mxu1 %vm21801_vm0, %v21802_v1 }
0x11f7   :  { %v21735_v22 = vpop.eup %21734 }
0x11f8   :  { %v12572_v38 = vadd.f32 1.0, %v21735_v22  ;;  %21545 = vmatpush3.bf16.msra.mxu0 %v24351_v61  ;;  %21566 = vmatpush3.bf16.msra.mxu1 %v24310_v56 }
0x11f9   :  { %21546 = vmatprep.subr.bf16.mxu0 %v21799_v0  ;;  %21567 = vmatprep.subr.bf16.mxu1 %v21799_v0 }
0x11fa   :  { %21736 = vrcp.f32 %v12572_v38 }
0x11fc   :  { %21548 = vmatpush3.bf16.msra.mxu0 %v24359_v12  ;;  %21569 = vmatpush3.bf16.msra.mxu1 %v24316_v52 }
0x11fd   :  { %21549 = vmatprep.subr.bf16.mxu0 %v21799_v0  ;;  %21570 = vmatprep.subr.bf16.mxu1 %v21799_v0 }
0x1200   :  { %21551 = vmatpush3.bf16.msra.mxu0 %v24365_v51  ;;  %21572 = vmatpush3.bf16.msra.mxu1 %v24322_v11 }
0x1201   :  { %21552 = vmatprep.subr.bf16.mxu0 %v21799_v0  ;;  %21573 = vmatprep.subr.bf16.mxu1 %v21799_v0 }
0x1202   :  { %v11044_v42 = vpop.f32.mrb[138].mxu0  ;;  %v11115_v56 = vpop.f32.mrb[140].mxu1 }
0x1203   :  { %v11045_v54 = vadd.f32 %v11044_v42, %v10974_v5  ;;  %v11116_v30 = vadd.f32 %v24763_v6, %v11115_v56  ;;  %v18397_v13 = vpop.f32.mrb[139].mxu0  ;;  %v18428_v52 = vpop.f32.mrb[141].mxu1 }
0x1204   :  { %v21737_v58 = vpop.eup %21736  ;;  %21554 = vmatpush3.bf16.msra.mxu0 %v24371_v44  ;;  %21575 = vmatpush3.bf16.msra.mxu1 %v24328_v19  ;;  %v25205_v19 = vmax.f32 %v24456_v9, 0.0 }
0x1205   :  { %13181 = vst.msk [vmem:[%s24804_s9 + $0x18] sm:$0x3] %vm12479_vm10, %v21737_v58  ;;  %v11048_v11 = vadd.f32 %v24763_v6, %v11045_v54  ;;  %v12585_v41 = vsub.f32 0.0, %v11116_v30  ;;  %21555 = vmatprep.subr.bf16.mxu0 %v21799_v0  ;;  %21576 = vmatprep.subr.bf16.mxu1 %v21799_v0 }
0x1207   :  { %v12577_v14 = vsub.f32 0.0, %v11048_v11  ;;  %v12586_v21 = vmul.f32 1.442695, %v12585_v41 }
0x1208   :  { %21557 = vmatpush3.bf16.msra.mxu0 %v24379_v60  ;;  %21578 = vmatpush3.bf16.msra.mxu1 %v24382_v59 }
0x1209   :  { %v12578_v10 = vmul.f32 1.442695, %v12577_v14  ;;  %21738 = vpow2.f32 %v12586_v21  ;;  %21558 = vmatprep.subr.bf16.mxu0 %v21799_v0  ;;  %21579 = vmatprep.subr.bf16.mxu1 %v21799_v0 }
0x120b   :  { %21740 = vpow2.f32 %v12578_v10 }
0x120c   :  { %21560 = vmatpush3.bf16.msra.mxu0 %v24391_v2  ;;  %21581 = vmatpush3.bf16.msra.mxu1 %v24394_v18 }
0x120d   :  { %21582 = vmatprep.subr.bf16.mxu0 %v21799_v0  ;;  %21603 = vmatprep.subr.bf16.mxu1 %v21799_v0 }
0x120f   :  { %18892 = vmatmul.mubr.msk.f32.vlgmr.msra.gmra.mrb[154].mxu0 %vm3257_vm5, %v25162_v16  ;;  %18923 = vmatmul.mubr.msk.f32.vlgmr.msra.gmra.mrb[156].mxu1 %vm3257_vm5, %v25205_v19 }
0x1210   :  { %21584 = vmatpush3.bf16.msra.mxu0 %v24405_v49  ;;  %21605 = vmatpush3.bf16.msra.mxu1 %v24344_v37 }
0x1211   :  { %21585 = vmatprep.subr.bf16.mxu0 %v21799_v0  ;;  %21606 = vmatprep.subr.bf16.mxu1 %v21799_v0 }
0x1212   :  { %18953 = vmatprep.mubr.msk.f32.mxu0 %vm21801_vm0, %v21802_v1  ;;  %18984 = vmatprep.mubr.msk.f32.mxu1 %vm21801_vm0, %v21802_v1 }
0x1213   :  { %v21739_v59 = vpop.eup %21738 }
0x1214   :  { %v12588_v18 = vadd.f32 1.0, %v21739_v59  ;;  %21587 = vmatpush3.bf16.msra.mxu0 %v24436_v46  ;;  %21608 = vmatpush3.bf16.msra.mxu1 %v24351_v61 }
0x1215   :  { %v21741_v9 = vpop.eup %21740  ;;  %21588 = vmatprep.subr.bf16.mxu0 %v21799_v0  ;;  %21609 = vmatprep.subr.bf16.mxu1 %v21799_v0 }
0x1216   :  { %v12580_v37 = vadd.f32 1.0, %v21741_v9  ;;  %21742 = vrcp.f32 %v12588_v18 }
0x1218   :  { %21744 = vrcp.f32 %v12580_v37  ;;  %21590 = vmatpush3.bf16.msra.mxu0 %v24468_v28  ;;  %21611 = vmatpush3.bf16.msra.mxu1 %v24359_v12 }
0x1219   :  { %21591 = vmatprep.subr.bf16.mxu0 %v21799_v0  ;;  %21612 = vmatprep.subr.bf16.mxu1 %v21799_v0 }
0x121c   :  { %21593 = vmatpush3.bf16.msra.mxu0 %v24476_v15  ;;  %21614 = vmatpush3.bf16.msra.mxu1 %v24365_v51 }
0x121d   :  { %21594 = vmatprep.subr.bf16.mxu0 %v21799_v0  ;;  %21615 = vmatprep.subr.bf16.mxu1 %v21799_v0 }
0x121e   :  { %v11188_v61 = vpop.f32.mrb[140].mxu0  ;;  %v11258_v6 = vpop.f32.mrb[142].mxu1 }
0x121f   :  { %v11259_v31 = vadd.f32 %v11258_v6, %v11188_v61  ;;  %v18459_v53 = vpop.f32.mrb[141].mxu0  ;;  %v18490_v55 = vpop.f32.mrb[143].mxu1 }
0x1220   :  { %v21743_v12 = vpop.eup %21742  ;;  %21596 = vmatpush3.bf16.msra.mxu0 %v24484_v23  ;;  %21617 = vmatpush3.bf16.msra.mxu1 %v24371_v44 }
0x1221   :  { %13183 = vst.msk [vmem:[%s24804_s9 + $0x1c] sm:$0x3] %vm12479_vm10, %v21743_v12  ;;  %v11262_v51 = vadd.f32 %v25238_v57, %v11259_v31  ;;  %21597 = vmatprep.subr.bf16.mxu0 %v21799_v0  ;;  %21618 = vmatprep.subr.bf16.mxu1 %v21799_v0 }
0x1222   :  { %v21745_v4 = vpop.eup %21744 }
0x1223   :  { %13182 = vst.msk [vmem:[%s24804_s9 + $0x1a] sm:$0x3] %vm12479_vm10, %v21745_v4  ;;  %v12593_v47 = vsub.f32 0.0, %v11262_v51 }
0x1224   :  { %21599 = vmatpush3.bf16.msra.mxu0 %v24492_v3  ;;  %21620 = vmatpush3.bf16.msra.mxu1 %v24379_v60 }
0x1225   :  { %v12594_v33 = vmul.f32 1.442695, %v12593_v47  ;;  %21600 = vmatprep.subr.bf16.mxu0 %v21799_v0  ;;  %21621 = vmatprep.subr.bf16.mxu1 %v21799_v0 }
0x1227   :  { %21746 = vpow2.f32 %v12594_v33 }
0x1228   :  { %21602 = vmatpush3.bf16.msra.mxu0 %v24500_v62  ;;  %21623 = vmatpush3.bf16.msra.mxu1 %v24391_v2 }
0x1229   :  { %21624 = vmatprep.subr.bf16.mxu0 %v21799_v0 }
0x122b   :  { %18954 = vmatmul.mubr.msk.f32.vlgmr.msra.gmra.mrb[156].mxu0 %vm3257_vm5, %v25162_v16  ;;  %18985 = vmatmul.mubr.msk.f32.vlgmr.msra.gmra.mrb[158].mxu1 %vm3257_vm5, %v25205_v19 }
0x122c   :  { %21626 = vmatpush3.bf16.msra.mxu0 %v24405_v49  ;;  %19015 = vmatprep.mubr.msk.f32.mxu0 %vm21801_vm0, %v21802_v1 }
0x122d   :  { %21627 = vmatprep.subr.bf16.mxu0 %v21799_v0 }
0x1230   :  { %21629 = vmatpush3.bf16.msra.mxu0 %v24436_v46 }
0x1231   :  { %v21747_v44 = vpop.eup %21746  ;;  %21630 = vmatprep.subr.bf16.mxu0 %v21799_v0 }
0x1232   :  { %v12596_v60 = vadd.f32 1.0, %v21747_v44 }
0x1234   :  { %21748 = vrcp.f32 %v12596_v60  ;;  %21632 = vmatpush3.bf16.msra.mxu0 %v24468_v28 }
0x1235   :  { %21633 = vmatprep.subr.bf16.mxu0 %v21799_v0 }
0x1238   :  { %21635 = vmatpush3.bf16.msra.mxu0 %v24476_v15 }
0x1239   :  { %21636 = vmatprep.subr.bf16.mxu0 %v21799_v0 }
0x123a   :  { %v11329_v2 = vpop.f32.mrb[142].mxu0  ;;  %v11402_v1 = vpop.f32.mrb[144].mxu1 }
0x123b   :  { %v11330_v49 = vadd.f32 %v25238_v57, %v11329_v2  ;;  %v18521_v24 = vpop.f32.mrb[143].mxu0  ;;  %v18552_v46 = vpop.f32.mrb[145].mxu1 }
0x123c   :  { %21638 = vmatpush3.bf16.msra.mxu0 %v24484_v23 }
0x123d   :  { %v12601_v25 = vsub.f32 0.0, %v11330_v49  ;;  %21639 = vmatprep.subr.bf16.mxu0 %v21799_v0 }
0x123e   :  { %v21749_v43 = vpop.eup %21748 }
0x123f   :  { %13184 = vst.msk [vmem:[%s24804_s9 + $0x1e] sm:$0x3] %vm12479_vm10, %v21749_v43  ;;  %v12602_v28 = vmul.f32 1.442695, %v12601_v25 }
0x1240   :  { %21641 = vmatpush3.bf16.msra.mxu0 %v24492_v3 }
0x1241   :  { %21750 = vpow2.f32 %v12602_v28  ;;  %21642 = vmatprep.subr.bf16.mxu0 %v21799_v0 }
0x1244   :  { %21644 = vmatpush3.bf16.msra.mxu0 %v24500_v62 }
0x1247   :  { %19016 = vmatmul.mubr.msk.f32.vlgmr.msra.gmra.mrb[158].mxu0 %vm3257_vm5, %v25205_v19 }
0x124b   :  { %v21751_v15 = vpop.eup %21750 }
0x124c   :  { %v12604_v23 = vadd.f32 1.0, %v21751_v15 }
0x124e   :  { %21752 = vrcp.f32 %v12604_v23 }
0x1256   :  { %v11472_v26 = vpop.f32.mrb[144].mxu0  ;;  %v11543_v63 = vpop.f32.mrb[146].mxu1 }
0x1257   :  { %v11473_v32 = vadd.f32 %v11472_v26, %v11402_v1  ;;  %v11544_v27 = vadd.f32 %v25238_v57, %v11543_v63  ;;  %v18583_v29 = vpop.f32.mrb[145].mxu0  ;;  %v18614_v17 = vpop.f32.mrb[147].mxu1 }
0x1258   :  { %v21753_v7 = vpop.eup %21752 }
0x1259   :  { %13185 = vst.msk [vmem:[%s24804_s9 + $0x20] sm:$0x3] %vm12479_vm10, %v21753_v7  ;;  %v11476_v0 = vadd.f32 %v25238_v57, %v11473_v32  ;;  %v12617_v3 = vsub.f32 0.0, %v11544_v27 }
0x125b   :  { %v12609_v62 = vsub.f32 0.0, %v11476_v0  ;;  %v12618_v48 = vmul.f32 1.442695, %v12617_v3 }
0x125d   :  { %v12610_v20 = vmul.f32 1.442695, %v12609_v62  ;;  %21754 = vpow2.f32 %v12618_v48 }
0x125f   :  { %21756 = vpow2.f32 %v12610_v20 }
0x1267   :  { %v21755_v35 = vpop.eup %21754 }
0x1268   :  { %v12620_v39 = vadd.f32 1.0, %v21755_v35 }
0x1269   :  { %v21757_v5 = vpop.eup %21756 }
0x126a   :  { %v12612_v50 = vadd.f32 1.0, %v21757_v5  ;;  %21758 = vrcp.f32 %v12620_v39 }
0x126c   :  { %21760 = vrcp.f32 %v12612_v50 }
0x1272   :  { %v11616_v45 = vpop.f32.mrb[146].mxu0  ;;  %v11686_v36 = vpop.f32.mrb[148].mxu1 }
0x1273   :  { %v11687_v34 = vadd.f32 %v11686_v36, %v11616_v45  ;;  %v18645_v40 = vpop.f32.mrb[147].mxu0  ;;  %v18676_v8 = vpop.f32.mrb[149].mxu1 }
0x1274   :  { %v21759_v16 = vpop.eup %21758 }
0x1275   :  { %13187 = vst.msk [vmem:[%s24804_s9 + $0x24] sm:$0x3] %vm12479_vm10, %v21759_v16  ;;  %v11690_v22 = vadd.f32 %v25238_v57, %v11687_v34 }
0x1276   :  { %v21761_v38 = vpop.eup %21760 }
0x1277   :  { %13186 = vst.msk [vmem:[%s24804_s9 + $0x22] sm:$0x3] %vm12479_vm10, %v21761_v38  ;;  %v12625_v42 = vsub.f32 0.0, %v11690_v22 }
0x1279   :  { %v12626_v56 = vmul.f32 1.442695, %v12625_v42 }
0x127b   :  { %21762 = vpow2.f32 %v12626_v56 }
0x1285   :  { %v21763_v54 = vpop.eup %21762 }
0x1286   :  { %v12628_v30 = vadd.f32 1.0, %v21763_v54 }
0x1288   :  { %21764 = vrcp.f32 %v12628_v30 }
0x128e   :  { %v11757_v13 = vpop.f32.mrb[148].mxu0  ;;  %v11830_v52 = vpop.f32.mrb[150].mxu1 }
0x128f   :  { %v11758_v58 = vadd.f32 %v25238_v57, %v11757_v13  ;;  %v18707_v11 = vpop.f32.mrb[149].mxu0  ;;  %v18738_v41 = vpop.f32.mrb[151].mxu1 }
0x1291   :  { %v12633_v14 = vsub.f32 0.0, %v11758_v58 }
0x1292   :  { %v21765_v21 = vpop.eup %21764 }
0x1293   :  { %13188 = vst.msk [vmem:[%s24804_s9 + $0x26] sm:$0x3] %vm12479_vm10, %v21765_v21  ;;  %v12634_v10 = vmul.f32 1.442695, %v12633_v14 }
0x1295   :  { %21766 = vpow2.f32 %v12634_v10 }
0x129f   :  { %v21767_v19 = vpop.eup %21766 }
0x12a0   :  { %v12636_v59 = vadd.f32 1.0, %v21767_v19 }
0x12a2   :  { %21768 = vrcp.f32 %v12636_v59 }
0x12aa   :  { %v11900_v18 = vpop.f32.mrb[150].mxu0  ;;  %v11971_v9 = vpop.f32.mrb[152].mxu1 }
0x12ab   :  { %v11901_v37 = vadd.f32 %v11900_v18, %v11830_v52  ;;  %v11972_v61 = vadd.f32 %v25238_v57, %v11971_v9  ;;  %v18769_v6 = vpop.f32.mrb[151].mxu0  ;;  %v18800_v31 = vpop.f32.mrb[153].mxu1 }
0x12ac   :  { %v21769_v53 = vpop.eup %21768 }
0x12ad   :  { %13189 = vst.msk [vmem:[%s24804_s9 + $0x28] sm:$0x3] %vm12479_vm10, %v21769_v53  ;;  %v11904_v55 = vadd.f32 %v25238_v57, %v11901_v37  ;;  %v12649_v12 = vsub.f32 0.0, %v11972_v61 }
0x12af   :  { %v12641_v51 = vsub.f32 0.0, %v11904_v55  ;;  %v12650_v4 = vmul.f32 1.442695, %v12649_v12 }
0x12b1   :  { %v12642_v47 = vmul.f32 1.442695, %v12641_v51  ;;  %21770 = vpow2.f32 %v12650_v4 }
0x12b3   :  { %21772 = vpow2.f32 %v12642_v47 }
0x12bb   :  { %v21771_v33 = vpop.eup %21770 }
0x12bc   :  { %v12652_v44 = vadd.f32 1.0, %v21771_v33 }
0x12bd   :  { %v21773_v60 = vpop.eup %21772 }
0x12be   :  { %v12644_v2 = vadd.f32 1.0, %v21773_v60  ;;  %21774 = vrcp.f32 %v12652_v44 }
0x12c0   :  { %21776 = vrcp.f32 %v12644_v2 }
0x12c6   :  { %v12044_v1 = vpop.f32.mrb[152].mxu0  ;;  %v12114_v49 = vpop.f32.mrb[154].mxu1 }
0x12c7   :  { %v12115_v24 = vadd.f32 %v12114_v49, %v12044_v1  ;;  %v18831_v46 = vpop.f32.mrb[153].mxu0  ;;  %v18862_v25 = vpop.f32.mrb[155].mxu1 }
0x12c8   :  { %v21775_v43 = vpop.eup %21774 }
0x12c9   :  { %13191 = vst.msk [vmem:[%s24804_s9 + $0x2c] sm:$0x3] %vm12479_vm10, %v21775_v43  ;;  %v12118_v28 = vadd.f32 %v25238_v57, %v12115_v24 }
0x12ca   :  { %v21777_v15 = vpop.eup %21776 }
0x12cb   :  { %13190 = vst.msk [vmem:[%s24804_s9 + $0x2a] sm:$0x3] %vm12479_vm10, %v21777_v15  ;;  %v12657_v23 = vsub.f32 0.0, %v12118_v28 }
0x12cd   :  { %v12658_v26 = vmul.f32 1.442695, %v12657_v23 }
0x12cf   :  { %21778 = vpow2.f32 %v12658_v26 }
0x12d9   :  { %v21779_v63 = vpop.eup %21778 }
0x12da   :  { %v12660_v32 = vadd.f32 1.0, %v21779_v63 }
0x12dc   :  { %21780 = vrcp.f32 %v12660_v32 }
0x12e2   :  { %v12185_v27 = vpop.f32.mrb[154].mxu0  ;;  %v12258_v29 = vpop.f32.mrb[156].mxu1 }
0x12e3   :  { %v12186_v17 = vadd.f32 %v25238_v57, %v12185_v27  ;;  %v18893_v7 = vpop.f32.mrb[155].mxu0  ;;  %v18924_v0 = vpop.f32.mrb[157].mxu1 }
0x12e5   :  { %v12665_v3 = vsub.f32 0.0, %v12186_v17 }
0x12e6   :  { %v21781_v62 = vpop.eup %21780 }
0x12e7   :  { %13192 = vst.msk [vmem:[%s24804_s9 + $0x2e] sm:$0x3] %vm12479_vm10, %v21781_v62  ;;  %v12666_v48 = vmul.f32 1.442695, %v12665_v3 }
0x12e9   :  { %21782 = vpow2.f32 %v12666_v48 }
0x12f3   :  { %v21783_v20 = vpop.eup %21782 }
0x12f4   :  { %v12668_v35 = vadd.f32 1.0, %v21783_v20 }
0x12f6   :  { %21784 = vrcp.f32 %v12668_v35 }
0x12fe   :  { %v12328_v39 = vpop.f32.mrb[156].mxu0  ;;  %v12399_v5 = vpop.f32.mrb[158].mxu1 }
0x12ff   :  { %v12329_v50 = vadd.f32 %v12328_v39, %v12258_v29  ;;  %v12400_v45 = vadd.f32 %v25238_v57, %v12399_v5  ;;  %v18955_v36 = vpop.f32.mrb[157].mxu0  ;;  %v18986_v34 = vpop.f32.mrb[159].mxu1 }
0x1300   :  { %v21785_v40 = vpop.eup %21784 }
0x1301   :  { %13193 = vst.msk [vmem:[%s24804_s9 + $0x30] sm:$0x3] %vm12479_vm10, %v21785_v40  ;;  %v12332_v8 = vadd.f32 %v25238_v57, %v12329_v50  ;;  %v12681_v16 = vsub.f32 0.0, %v12400_v45 }
0x1303   :  { %v12673_v22 = vsub.f32 0.0, %v12332_v8  ;;  %v12682_v38 = vmul.f32 1.442695, %v12681_v16 }
0x1305   :  { %v12674_v42 = vmul.f32 1.442695, %v12673_v22  ;;  %21786 = vpow2.f32 %v12682_v38 }
0x1307   :  { %21788 = vpow2.f32 %v12674_v42 }
0x130f   :  { %v21787_v56 = vpop.eup %21786 }
0x1310   :  { %v12684_v54 = vadd.f32 1.0, %v21787_v56 }
0x1311   :  { %v21789_v30 = vpop.eup %21788 }
0x1312   :  { %v12676_v13 = vadd.f32 1.0, %v21789_v30  ;;  %21790 = vrcp.f32 %v12684_v54 }
0x1314   :  { %21792 = vrcp.f32 %v12676_v13 }
0x131a   :  { %v12469_v52 = vpop.f32.mrb[158].mxu0 }
0x131b   :  { %v12470_v58 = vadd.f32 %v25238_v57, %v12469_v52  ;;  %v19017_v11 = vpop.f32.mrb[159].mxu0 }
0x131c   :  { %v21791_v41 = vpop.eup %21790 }
0x131d   :  { %13195 = vst.msk [vmem:[%s24804_s9 + $0x34] sm:$0x3] %vm12479_vm10, %v21791_v41  ;;  %v12689_v14 = vsub.f32 0.0, %v12470_v58 }
0x131e   :  { %v21793_v21 = vpop.eup %21792 }
0x131f   :  { %13194 = vst.msk [vmem:[%s24804_s9 + $0x32] sm:$0x3] %vm12479_vm10, %v21793_v21  ;;  %v12690_v10 = vmul.f32 1.442695, %v12689_v14 }
0x1321   :  { %21794 = vpow2.f32 %v12690_v10 }
0x132b   :  { %v21795_v19 = vpop.eup %21794 }
0x132c   :  { %v12692_v59 = vadd.f32 1.0, %v21795_v19 }
0x132e   :  { %21796 = vrcp.f32 %v12692_v59 }
0x1338   :  { %v21797_v18 = vpop.eup %21796 }
0x1339   :  { %13196 = vst.msk [vmem:[%s24804_s9 + $0x36] sm:$0x3] %vm12479_vm10, %v21797_v18 }

</bundles_post_ra>
